<compile_context>
chip_gen: v5e
topology: v5e:2x2
jax: 0.10.0
libtpu: 0.0.40
codegen_flags: <defaults>
</compile_context>

<pallas_src>
import functools

import jax
import jax.numpy as jnp
from jax import lax
from jax.experimental import pallas as pl
from jax.experimental.pallas import tpu as pltpu

LEAKY_SLOPE = 0.2            # pyGAT LeakyReLU negative slope
MASK_FILL = -9e15            # pyGAT adjacency-mask fill (f32, epilogue only)
SC_PAD = 128                 # lane-dense width of the score-projection output
DENOM_EPS = 1e-30            # softmax denominator clamp for fully-masked rows
VMEM_LIMIT = 48 * 1024 * 1024   # safe on v5e/v6e (128 MiB) and v7x (64 MiB)


# ---------------------------------------------------------------------------
# Kernels
# ---------------------------------------------------------------------------
def _project_kernel(x_ref, w_ref, wh_ref, sc_ref, *, d_pad):
    """[Wh | scores] = x @ [W_all | W_all @ A]  — single fused MXU dot."""
    res = jnp.dot(x_ref[...], w_ref[...],              # bf16 x bf16 -> f32 acc
                  preferred_element_type=jnp.float32)  # (TQ, d_pad + SC_PAD)
    wh_ref[...] = res[:, :d_pad].astype(jnp.bfloat16)  # Wh stored bf16
    sc_ref[...] = res[:, d_pad:]                       # per-head src/dst scores f32


def _attention_kernel(adj_ref, wh_ref, sc_ref, dstt_ref, out_ref, *,
                      heads_meta, valid_cols, apply_log_softmax):
    """Masked multi-head graph attention for one row tile (all heads share adj)."""
    mask = adj_ref[...].astype(jnp.float32)            # (TQ, N_pad) 0/1 from int8

    out_col = 0
    for (src_col, dst_row, wh_start, wh_width) in heads_meta:
        src = sc_ref[:, src_col:src_col + 1]           # (TQ, 1)     f32
        dst = dstt_ref[dst_row:dst_row + 1, :]         # (1, N_pad)  f32
        e = src + dst                                  # broadcast (TQ, N_pad)
        e = jnp.where(e > 0, e, LEAKY_SLOPE * e)       # LeakyReLU(0.2)
        m = jnp.max(e, axis=-1, keepdims=True)         # row max (overflow guard)
        # mask-after-exp: no -9e15 fill / select needed.
        # NOTE: on v6e/v7x this exp could run on bf16 inputs for ~2x EUP
        # throughput; kept f32 here for portability/accuracy (v5e has no bf16 EUP).
        p = jnp.exp(e - m) * mask                      # (TQ, N_pad) f32
        s = jnp.sum(p, axis=-1, keepdims=True)
        inv = pl.reciprocal(jnp.maximum(s, DENOM_EPS), approx=True)  # EUP; clamp
        wh_h = wh_ref[:, wh_start:wh_start + wh_width]  # (N_pad, width) bf16
        out_h = jnp.dot(p.astype(jnp.bfloat16), wh_h,
                        preferred_element_type=jnp.float32) * inv     # fold 1/s
        out_ref[:, out_col:out_col + wh_width] = out_h.astype(out_ref.dtype)
        out_col += wh_width

    # Epilogue: zero padded tail, ELU, optional masked log_softmax (RMW on out_ref).
    out = out_ref[...].astype(jnp.float32)
    col = lax.broadcasted_iota(jnp.int32, out.shape, 1)
    valid = col < valid_cols
    out = jnp.where(valid, out, 0.0)                   # uninitialised padded tail
    out = jnp.where(out > 0, out, jnp.exp(jnp.minimum(out, 0.0)) - 1.0)  # ELU
    if apply_log_softmax:
        out = jnp.where(valid, out, MASK_FILL)         # mask padded classes
        m2 = jnp.max(out, axis=-1, keepdims=True)
        lse = m2 + jnp.log(jnp.sum(jnp.exp(out - m2), axis=-1, keepdims=True))
        out = out - lse
    out_ref[...] = out.astype(out_ref.dtype)


# ---------------------------------------------------------------------------
# pallas_call wrappers
# ---------------------------------------------------------------------------
def _round_up(v, m):
    return (v + m - 1) // m * m


def _pad2(a, rows, cols):
    return jnp.pad(a, ((0, rows - a.shape[0]), (0, cols - a.shape[1])))


def _project(x_p, w_big, *, d_pad, tq):
    n_pad, k_pad = x_p.shape
    total = w_big.shape[1]
    sc_pad = total - d_pad
    kernel = functools.partial(_project_kernel, d_pad=d_pad)
    return pl.pallas_call(
        kernel,
        out_shape=(jax.ShapeDtypeStruct((n_pad, d_pad), jnp.bfloat16),
                   jax.ShapeDtypeStruct((n_pad, sc_pad), jnp.float32)),
        grid_spec=pltpu.PrefetchScalarGridSpec(
            num_scalar_prefetch=0,
            grid=(n_pad // tq,),
            in_specs=[
                pl.BlockSpec((tq, k_pad), lambda i: (i, 0)),     # x row-tile (bf16)
                pl.BlockSpec((k_pad, total), lambda i: (0, 0)),  # fused W (resident)
            ],
            out_specs=[
                pl.BlockSpec((tq, d_pad), lambda i: (i, 0)),     # Wh  (bf16)
                pl.BlockSpec((tq, sc_pad), lambda i: (i, 0)),    # scores (f32)
            ]),
        compiler_params=pltpu.CompilerParams(
            dimension_semantics=("parallel",),
            vmem_limit_bytes=VMEM_LIMIT),
    )(x_p, w_big)


def _attention(adj_i8, wh, sc, dst_t, *, heads_meta, out_pad, out_dtype,
               valid_cols, apply_log_softmax, tq):
    n_pad = adj_i8.shape[0]
    d_pad = wh.shape[1]
    sc_pad = sc.shape[1]
    hd = dst_t.shape[0]
    kernel = functools.partial(
        _attention_kernel, heads_meta=heads_meta, valid_cols=valid_cols,
        apply_log_softmax=apply_log_softmax)
    # TODO(synk): on v7x, single-buffer the two resident inputs (Wh, dst^T)
    # with pipeline_mode=pl.Buffered(1) to cut VMEM residency for large N.
    return pl.pallas_call(
        kernel,
        out_shape=jax.ShapeDtypeStruct((n_pad, out_pad), out_dtype),
        grid_spec=pltpu.PrefetchScalarGridSpec(
            num_scalar_prefetch=0,
            grid=(n_pad // tq,),
            in_specs=[
                pl.BlockSpec((tq, n_pad), lambda i: (i, 0)),      # adj row-tile (i8)
                pl.BlockSpec((n_pad, d_pad), lambda i: (0, 0)),   # Wh bf16 (resident)
                pl.BlockSpec((tq, sc_pad), lambda i: (i, 0)),     # src scores row-tile
                pl.BlockSpec((hd, n_pad), lambda i: (0, 0)),      # dst^T (resident)
            ],
            out_specs=pl.BlockSpec((tq, out_pad), lambda i: (i, 0))),
        compiler_params=pltpu.CompilerParams(
            dimension_semantics=("parallel",),
            vmem_limit_bytes=VMEM_LIMIT),
    )(adj_i8, wh, sc, dst_t)


# ---------------------------------------------------------------------------
# GAT forward (eval mode)
# ---------------------------------------------------------------------------
def gat_forward(inputs, adj_matrix, params, *, tq=128):
    # tq=128 fills the v5e MXU and is safe everywhere; use tq=256 on v6e/v7x.
    assert tq % 128 == 0
    n, f_in = inputs.shape
    num_heads, _, f_hid = params["W1"].shape
    num_classes = params["W2"].shape[1]
    assert 2 * num_heads <= SC_PAD

    n_pad = _round_up(n, tq)
    f_pad = _round_up(f_in, 128)
    d1 = num_heads * f_hid
    d1_pad = _round_up(d1, 128)
    d2_pad = _round_up(num_classes, 128)

    # ---- pad inputs / pack parameters ------------------------------------
    x_p = _pad2(inputs.astype(jnp.float32), n_pad, f_pad).astype(jnp.bfloat16)
    adj_p = _pad2((adj_matrix > 0).astype(jnp.int8), n_pad, n_pad)

    # layer 1: all heads side by side -> (F_pad, D1_pad)
    w1_cat = jnp.concatenate([params["W1"][h] for h in range(num_heads)], axis=1)
    w1_p = _pad2(w1_cat.astype(jnp.float32), f_pad, d1_pad)
    # block-diagonal score projection: col h = a_src(head h), col H+h = a_dst(head h)
    amat1 = jnp.zeros((d1_pad, SC_PAD), jnp.float32)
    for h in range(num_heads):
        amat1 = amat1.at[h * f_hid:(h + 1) * f_hid, h].set(params["a1"][h, :f_hid])
        amat1 = amat1.at[h * f_hid:(h + 1) * f_hid, num_heads + h].set(
            params["a1"][h, f_hid:])
    # fold the score projection into the weight matrix: [W_all | W_all @ A]
    w1_big = jnp.concatenate([w1_p, w1_p @ amat1], axis=1).astype(jnp.bfloat16)

    # layer 2 (out attention)
    w2_p = _pad2(params["W2"].astype(jnp.float32), d1_pad, d2_pad)
    amat2 = jnp.zeros((d2_pad, SC_PAD), jnp.float32)
    amat2 = amat2.at[:num_classes, 0].set(params["a2"][:num_classes])
    amat2 = amat2.at[:num_classes, 1].set(params["a2"][num_classes:])
    w2_big = jnp.concatenate([w2_p, w2_p @ amat2], axis=1).astype(jnp.bfloat16)

    # ---- layer 1: all H heads, adjacency streamed once ---------------------
    wh1, sc1 = _project(x_p, w1_big, d_pad=d1_pad, tq=tq)
    dst1_t = jnp.zeros((_round_up(num_heads, 8), n_pad), jnp.float32)
    dst1_t = dst1_t.at[:num_heads, :].set(
        jnp.transpose(sc1[:, num_heads:2 * num_heads]))
    heads1 = tuple((h, h, h * f_hid, f_hid) for h in range(num_heads))
    x2 = _attention(adj_p, wh1, sc1, dst1_t, heads_meta=heads1, out_pad=d1_pad,
                    out_dtype=jnp.bfloat16, valid_cols=d1,
                    apply_log_softmax=False, tq=tq)

    # ---- layer 2 (out attention) + ELU + log_softmax (fused epilogue) ------
    wh2, sc2 = _project(x2, w2_big, d_pad=d2_pad, tq=tq)
    dst2_t = jnp.zeros((8, n_pad), jnp.float32)
    dst2_t = dst2_t.at[0, :].set(sc2[:, 1])
    heads2 = ((0, 0, 0, d2_pad),)
    out = _attention(adj_p, wh2, sc2, dst2_t, heads_meta=heads2, out_pad=d2_pad,
                     out_dtype=jnp.float32, valid_cols=num_classes,
                     apply_log_softmax=True, tq=tq)

    return out[:n, :num_classes]


# ---------------------------------------------------------------------------
# Pure-JAX f32 reference (mirrors the PyTorch module in eval mode)
# ---------------------------------------------------------------------------
def gat_reference(inputs, adj_matrix, params):
    num_heads, _, f_hid = params["W1"].shape
    num_classes = params["W2"].shape[1]

    def layer(x, w, a_src, a_dst, apply_elu):
        wh = x @ w
        e = (wh @ a_src)[:, None] + (wh @ a_dst)[None, :]
        e = jnp.where(e > 0, e, LEAKY_SLOPE * e)
        e = jnp.where(adj_matrix > 0, e, MASK_FILL)
        att = jax.nn.softmax(e, axis=1)
        out = att @ wh
        return jax.nn.elu(out) if apply_elu else out

    heads = [layer(inputs, params["W1"][h], params["a1"][h, :f_hid],
                   params["a1"][h, f_hid:], True) for h in range(num_heads)]
    x2 = jnp.concatenate(heads, axis=-1)
    out = layer(x2, params["W2"], params["a2"][:num_classes],
                params["a2"][num_classes:], False)
    return jax.nn.log_softmax(jax.nn.elu(out), axis=-1)


# ---------------------------------------------------------------------------
if __name__ == "__main__":
    key = jax.random.PRNGKey(0)
    n_nodes, input_dim, hidden_dim, head_num, output_dim = 200, 48, 16, 4, 7
    k_x, k_adj, k_w1, k_a1, k_w2, k_a2 = jax.random.split(key, 6)

    inputs = jax.random.normal(k_x, (n_nodes, input_dim), jnp.float32)
    adj = (jax.random.uniform(k_adj, (n_nodes, n_nodes)) < 0.05).astype(jnp.float32)
    adj = jnp.maximum(adj, adj.T)
    adj = jnp.maximum(adj, jnp.eye(n_nodes, dtype=jnp.float32))   # self loops

    params = {
        "W1": 0.1 * jax.random.normal(k_w1, (head_num, input_dim, hidden_dim),
                                      jnp.float32),
        "a1": 0.1 * jax.random.normal(k_a1, (head_num, 2 * hidden_dim), jnp.float32),
        "W2": 0.1 * jax.random.normal(k_w2, (head_num * hidden_dim, output_dim),
                                      jnp.float32),
        "a2": 0.1 * jax.random.normal(k_a2, (2 * output_dim,), jnp.float32),
    }

    out = jax.jit(gat_forward)(inputs, adj, params)
    out = jax.block_until_ready(out)

    assert out.shape == (n_nodes, output_dim)
    assert bool(jnp.all(jnp.isfinite(out)))

    ref = gat_reference(inputs, adj, params)
    max_err = float(jnp.max(jnp.abs(out - ref)))
    assert max_err < 0.1, f"max |pallas - reference| = {max_err}"

    print("KERNEL_OK")
</pallas_src>

<mosaic_0001>
module attributes {stable_mosaic.version = 11 : i64} {
  func.func @_project_kernel(%arg0: i32, %arg1: memref<128x128xbf16, #tpu.memory_space<vmem>>, %arg2: memref<128x256xbf16, #tpu.memory_space<vmem>>, %arg3: memref<128x128xbf16, #tpu.memory_space<vmem>>, %arg4: memref<128x128xf32, #tpu.memory_space<vmem>>) attributes {dimension_semantics = [#tpu.dimension_semantics<parallel>], iteration_bounds = array<i64: 2>, scalar_prefetch = 0 : i64, scratch_operands = 0 : i64, tpu.core_type = #tpu.core_type<tc>, window_params = [{transform_indices = @transform_0, window_bounds = array<i64: 128, 128>}, {pipeline_mode = #tpu.pipeline_mode<synchronous>, transform_indices = @transform_1, window_bounds = array<i64: 128, 256>}, {transform_indices = @transform_2, window_bounds = array<i64: 128, 128>}, {transform_indices = @transform_3, window_bounds = array<i64: 128, 128>}]} {
    %c0 = arith.constant 0 : index
    %c0_0 = arith.constant 0 : index
    %0 = vector.load %arg1[%c0, %c0_0] : memref<128x128xbf16, #tpu.memory_space<vmem>>, vector<128x128xbf16>
    %c0_1 = arith.constant 0 : index
    %c0_2 = arith.constant 0 : index
    %1 = vector.load %arg2[%c0_1, %c0_2] : memref<128x256xbf16, #tpu.memory_space<vmem>>, vector<128x256xbf16>
    %cst = arith.constant dense<0.000000e+00> : vector<128x256xf32>
    %2 = tpu.matmul %0, %1, %cst {dimension_numbers = #tpu.dot_dimension_numbers<[1], [0], [0], [1], [0, 0, 1, 1], [], []>} : vector<128x128xbf16>, vector<128x256xbf16>, vector<128x256xf32> -> vector<128x256xf32>
    %3 = vector.extract_strided_slice %2 {offsets = [0, 0], sizes = [128, 128], strides = [1, 1]} : vector<128x256xf32> to vector<128x128xf32>
    %4 = arith.truncf %3 : vector<128x128xf32> to vector<128x128xbf16>
    %c0_3 = arith.constant 0 : index
    %c0_4 = arith.constant 0 : index
    %5 = vector.load %arg3[%c0_3, %c0_4] : memref<128x128xbf16, #tpu.memory_space<vmem>>, vector<128x128xbf16>
    tpu.vector_store %arg3[%c0_3, %c0_4], %4 {strides = array<i32>} : memref<128x128xbf16, #tpu.memory_space<vmem>>, vector<128x128xbf16>,
    %6 = vector.extract_strided_slice %2 {offsets = [0, 128], sizes = [128, 128], strides = [1, 1]} : vector<128x256xf32> to vector<128x128xf32>
    %c0_5 = arith.constant 0 : index
    %c0_6 = arith.constant 0 : index
    %7 = vector.load %arg4[%c0_5, %c0_6] : memref<128x128xf32, #tpu.memory_space<vmem>>, vector<128x128xf32>
    tpu.vector_store %arg4[%c0_5, %c0_6], %6 {strides = array<i32>} : memref<128x128xf32, #tpu.memory_space<vmem>>, vector<128x128xf32>,
    return
  }
  func.func @transform_0(%arg0: i32) -> (i32, i32) {
    %c0_i32 = arith.constant 0 : i32
    %c0_i32_0 = arith.constant 0 : i32
    return %arg0, %c0_i32 : i32, i32
  }
  func.func @transform_1(%arg0: i32) -> (i32, i32) {
    %c0_i32 = arith.constant 0 : i32
    %c0_i32_0 = arith.constant 0 : i32
    %c0_i32_1 = arith.constant 0 : i32
    return %c0_i32, %c0_i32_0 : i32, i32
  }
  func.func @transform_2(%arg0: i32) -> (i32, i32) {
    %c0_i32 = arith.constant 0 : i32
    %c0_i32_0 = arith.constant 0 : i32
    return %arg0, %c0_i32 : i32, i32
  }
  func.func @transform_3(%arg0: i32) -> (i32, i32) {
    %c0_i32 = arith.constant 0 : i32
    %c0_i32_0 = arith.constant 0 : i32
    return %arg0, %c0_i32 : i32, i32
  }
}

module attributes {stable_mosaic.version = 11 : i64} {
  func.func @_attention_kernel(%arg0: i32, %arg1: memref<128x256xi8, #tpu.memory_space<vmem>>, %arg2: memref<256x128xbf16, #tpu.memory_space<vmem>>, %arg3: memref<128x128xf32, #tpu.memory_space<vmem>>, %arg4: memref<8x256xf32, #tpu.memory_space<vmem>>, %arg5: memref<128x128xbf16, #tpu.memory_space<vmem>>) attributes {dimension_semantics = [#tpu.dimension_semantics<parallel>], iteration_bounds = array<i64: 2>, scalar_prefetch = 0 : i64, scratch_operands = 0 : i64, tpu.core_type = #tpu.core_type<tc>, window_params = [{transform_indices = @transform_0, window_bounds = array<i64: 128, 256>}, {pipeline_mode = #tpu.pipeline_mode<synchronous>, transform_indices = @transform_1, window_bounds = array<i64: 256, 128>}, {transform_indices = @transform_2, window_bounds = array<i64: 128, 128>}, {pipeline_mode = #tpu.pipeline_mode<synchronous>, transform_indices = @transform_3, window_bounds = array<i64: 8, 256>}, {transform_indices = @transform_4, window_bounds = array<i64: 128, 128>}]} {
    %c0 = arith.constant 0 : index
    %c0_0 = arith.constant 0 : index
    %0 = vector.load %arg1[%c0, %c0_0] : memref<128x256xi8, #tpu.memory_space<vmem>>, vector<128x256xi8>
    %1 = arith.sitofp %0 : vector<128x256xi8> to vector<128x256xf32>
    %c0_1 = arith.constant 0 : index
    %c0_2 = arith.constant 0 : index
    %2 = vector.load %arg3[%c0_1, %c0_2] : memref<128x128xf32, #tpu.memory_space<vmem>>, vector<128x1xf32>
    %c0_3 = arith.constant 0 : index
    %c0_4 = arith.constant 0 : index
    %3 = vector.load %arg4[%c0_3, %c0_4] : memref<8x256xf32, #tpu.memory_space<vmem>>, vector<1x256xf32>
    %4 = vector.broadcast %2 : vector<128x1xf32> to vector<128x256xf32>
    %5 = vector.broadcast %3 : vector<1x256xf32> to vector<128x256xf32>
    %6 = arith.addf %4, %5 : vector<128x256xf32>
    %cst = arith.constant 0.000000e+00 : f32
    %7 = vector.broadcast %cst : f32 to vector<128x256xf32>
    %8 = arith.cmpf ogt, %6, %7 : vector<128x256xf32>
    %cst_5 = arith.constant 2.000000e-01 : f32
    %9 = vector.broadcast %cst_5 : f32 to vector<128x256xf32>
    %10 = arith.mulf %9, %6 : vector<128x256xf32>
    %11 = arith.select %8, %6, %10 : vector<128x256xi1>, vector<128x256xf32>
    %cst_6 = arith.constant dense<0xFF800000> : vector<128xf32>
    %12 = vector.multi_reduction <maximumf>, %11, %cst_6 [1] : vector<128x256xf32> to vector<128xf32>
    %13 = vector.shape_cast %12 : vector<128xf32> to vector<128x1xf32>
    %14 = vector.broadcast %13 : vector<128x1xf32> to vector<128x256xf32>
    %15 = arith.subf %11, %14 : vector<128x256xf32>
    %16 = math.exp %15 : vector<128x256xf32>
    %17 = arith.mulf %16, %1 : vector<128x256xf32>
    %cst_7 = arith.constant dense<0.000000e+00> : vector<128xf32>
    %18 = vector.multi_reduction <add>, %17, %cst_7 [1] : vector<128x256xf32> to vector<128xf32>
    %19 = vector.shape_cast %18 : vector<128xf32> to vector<128x1xf32>
    %cst_8 = arith.constant 1.000000e-30 : f32
    %20 = vector.broadcast %cst_8 : f32 to vector<128x1xf32>
    %21 = arith.maximumf %19, %20 : vector<128x1xf32>
    %22 = tpu.reciprocal %21 {approx = true} : vector<128x1xf32> -> vector<128x1xf32>
    %c0_9 = arith.constant 0 : index
    %c0_10 = arith.constant 0 : index
    %23 = vector.load %arg2[%c0_9, %c0_10] : memref<256x128xbf16, #tpu.memory_space<vmem>>, vector<256x16xbf16>
    %24 = arith.truncf %17 : vector<128x256xf32> to vector<128x256xbf16>
    %cst_11 = arith.constant dense<0.000000e+00> : vector<128x16xf32>
    %25 = tpu.matmul %24, %23, %cst_11 {dimension_numbers = #tpu.dot_dimension_numbers<[1], [0], [0], [1], [0, 0, 1, 1], [], []>} : vector<128x256xbf16>, vector<256x16xbf16>, vector<128x16xf32> -> vector<128x16xf32>
    %26 = vector.broadcast %22 : vector<128x1xf32> to vector<128x16xf32>
    %27 = arith.mulf %25, %26 : vector<128x16xf32>
    %28 = arith.truncf %27 : vector<128x16xf32> to vector<128x16xbf16>
    %c0_12 = arith.constant 0 : index
    %c0_13 = arith.constant 0 : index
    %29 = vector.load %arg5[%c0_12, %c0_13] : memref<128x128xbf16, #tpu.memory_space<vmem>>, vector<128x16xbf16>
    tpu.vector_store %arg5[%c0_12, %c0_13], %28 {strides = array<i32>} : memref<128x128xbf16, #tpu.memory_space<vmem>>, vector<128x16xbf16>,
    %c0_14 = arith.constant 0 : index
    %c1 = arith.constant 1 : index
    %30 = vector.load %arg3[%c0_14, %c1] : memref<128x128xf32, #tpu.memory_space<vmem>>, vector<128x1xf32>
    %c1_15 = arith.constant 1 : index
    %c0_16 = arith.constant 0 : index
    %31 = vector.load %arg4[%c1_15, %c0_16] : memref<8x256xf32, #tpu.memory_space<vmem>>, vector<1x256xf32>
    %32 = vector.broadcast %30 : vector<128x1xf32> to vector<128x256xf32>
    %33 = vector.broadcast %31 : vector<1x256xf32> to vector<128x256xf32>
    %34 = arith.addf %32, %33 : vector<128x256xf32>
    %cst_17 = arith.constant 0.000000e+00 : f32
    %35 = vector.broadcast %cst_17 : f32 to vector<128x256xf32>
    %36 = arith.cmpf ogt, %34, %35 : vector<128x256xf32>
    %cst_18 = arith.constant 2.000000e-01 : f32
    %37 = vector.broadcast %cst_18 : f32 to vector<128x256xf32>
    %38 = arith.mulf %37, %34 : vector<128x256xf32>
    %39 = arith.select %36, %34, %38 : vector<128x256xi1>, vector<128x256xf32>
    %cst_19 = arith.constant dense<0xFF800000> : vector<128xf32>
    %40 = vector.multi_reduction <maximumf>, %39, %cst_19 [1] : vector<128x256xf32> to vector<128xf32>
    %41 = vector.shape_cast %40 : vector<128xf32> to vector<128x1xf32>
    %42 = vector.broadcast %41 : vector<128x1xf32> to vector<128x256xf32>
    %43 = arith.subf %39, %42 : vector<128x256xf32>
    %44 = math.exp %43 : vector<128x256xf32>
    %45 = arith.mulf %44, %1 : vector<128x256xf32>
    %cst_20 = arith.constant dense<0.000000e+00> : vector<128xf32>
    %46 = vector.multi_reduction <add>, %45, %cst_20 [1] : vector<128x256xf32> to vector<128xf32>
    %47 = vector.shape_cast %46 : vector<128xf32> to vector<128x1xf32>
    %cst_21 = arith.constant 1.000000e-30 : f32
    %48 = vector.broadcast %cst_21 : f32 to vector<128x1xf32>
    %49 = arith.maximumf %47, %48 : vector<128x1xf32>
    %50 = tpu.reciprocal %49 {approx = true} : vector<128x1xf32> -> vector<128x1xf32>
    %c0_22 = arith.constant 0 : index
    %c16 = arith.constant 16 : index
    %51 = vector.load %arg2[%c0_22, %c16] : memref<256x128xbf16, #tpu.memory_space<vmem>>, vector<256x16xbf16>
    %52 = arith.truncf %45 : vector<128x256xf32> to vector<128x256xbf16>
    %cst_23 = arith.constant dense<0.000000e+00> : vector<128x16xf32>
    %53 = tpu.matmul %52, %51, %cst_23 {dimension_numbers = #tpu.dot_dimension_numbers<[1], [0], [0], [1], [0, 0, 1, 1], [], []>} : vector<128x256xbf16>, vector<256x16xbf16>, vector<128x16xf32> -> vector<128x16xf32>
    %54 = vector.broadcast %50 : vector<128x1xf32> to vector<128x16xf32>
    %55 = arith.mulf %53, %54 : vector<128x16xf32>
    %56 = arith.truncf %55 : vector<128x16xf32> to vector<128x16xbf16>
    %c0_24 = arith.constant 0 : index
    %c16_25 = arith.constant 16 : index
    %57 = vector.load %arg5[%c0_24, %c16_25] : memref<128x128xbf16, #tpu.memory_space<vmem>>, vector<128x16xbf16>
    tpu.vector_store %arg5[%c0_24, %c16_25], %56 {strides = array<i32>} : memref<128x128xbf16, #tpu.memory_space<vmem>>, vector<128x16xbf16>,
    %c0_26 = arith.constant 0 : index
    %c2 = arith.constant 2 : index
    %58 = vector.load %arg3[%c0_26, %c2] : memref<128x128xf32, #tpu.memory_space<vmem>>, vector<128x1xf32>
    %c2_27 = arith.constant 2 : index
    %c0_28 = arith.constant 0 : index
    %59 = vector.load %arg4[%c2_27, %c0_28] : memref<8x256xf32, #tpu.memory_space<vmem>>, vector<1x256xf32>
    %60 = vector.broadcast %58 : vector<128x1xf32> to vector<128x256xf32>
    %61 = vector.broadcast %59 : vector<1x256xf32> to vector<128x256xf32>
    %62 = arith.addf %60, %61 : vector<128x256xf32>
    %cst_29 = arith.constant 0.000000e+00 : f32
    %63 = vector.broadcast %cst_29 : f32 to vector<128x256xf32>
    %64 = arith.cmpf ogt, %62, %63 : vector<128x256xf32>
    %cst_30 = arith.constant 2.000000e-01 : f32
    %65 = vector.broadcast %cst_30 : f32 to vector<128x256xf32>
    %66 = arith.mulf %65, %62 : vector<128x256xf32>
    %67 = arith.select %64, %62, %66 : vector<128x256xi1>, vector<128x256xf32>
    %cst_31 = arith.constant dense<0xFF800000> : vector<128xf32>
    %68 = vector.multi_reduction <maximumf>, %67, %cst_31 [1] : vector<128x256xf32> to vector<128xf32>
    %69 = vector.shape_cast %68 : vector<128xf32> to vector<128x1xf32>
    %70 = vector.broadcast %69 : vector<128x1xf32> to vector<128x256xf32>
    %71 = arith.subf %67, %70 : vector<128x256xf32>
    %72 = math.exp %71 : vector<128x256xf32>
    %73 = arith.mulf %72, %1 : vector<128x256xf32>
    %cst_32 = arith.constant dense<0.000000e+00> : vector<128xf32>
    %74 = vector.multi_reduction <add>, %73, %cst_32 [1] : vector<128x256xf32> to vector<128xf32>
    %75 = vector.shape_cast %74 : vector<128xf32> to vector<128x1xf32>
    %cst_33 = arith.constant 1.000000e-30 : f32
    %76 = vector.broadcast %cst_33 : f32 to vector<128x1xf32>
    %77 = arith.maximumf %75, %76 : vector<128x1xf32>
    %78 = tpu.reciprocal %77 {approx = true} : vector<128x1xf32> -> vector<128x1xf32>
    %c0_34 = arith.constant 0 : index
    %c32 = arith.constant 32 : index
    %79 = vector.load %arg2[%c0_34, %c32] : memref<256x128xbf16, #tpu.memory_space<vmem>>, vector<256x16xbf16>
    %80 = arith.truncf %73 : vector<128x256xf32> to vector<128x256xbf16>
    %cst_35 = arith.constant dense<0.000000e+00> : vector<128x16xf32>
    %81 = tpu.matmul %80, %79, %cst_35 {dimension_numbers = #tpu.dot_dimension_numbers<[1], [0], [0], [1], [0, 0, 1, 1], [], []>} : vector<128x256xbf16>, vector<256x16xbf16>, vector<128x16xf32> -> vector<128x16xf32>
    %82 = vector.broadcast %78 : vector<128x1xf32> to vector<128x16xf32>
    %83 = arith.mulf %81, %82 : vector<128x16xf32>
    %84 = arith.truncf %83 : vector<128x16xf32> to vector<128x16xbf16>
    %c0_36 = arith.constant 0 : index
    %c32_37 = arith.constant 32 : index
    %85 = vector.load %arg5[%c0_36, %c32_37] : memref<128x128xbf16, #tpu.memory_space<vmem>>, vector<128x16xbf16>
    tpu.vector_store %arg5[%c0_36, %c32_37], %84 {strides = array<i32>} : memref<128x128xbf16, #tpu.memory_space<vmem>>, vector<128x16xbf16>,
    %c0_38 = arith.constant 0 : index
    %c3 = arith.constant 3 : index
    %86 = vector.load %arg3[%c0_38, %c3] : memref<128x128xf32, #tpu.memory_space<vmem>>, vector<128x1xf32>
    %c3_39 = arith.constant 3 : index
    %c0_40 = arith.constant 0 : index
    %87 = vector.load %arg4[%c3_39, %c0_40] : memref<8x256xf32, #tpu.memory_space<vmem>>, vector<1x256xf32>
    %88 = vector.broadcast %86 : vector<128x1xf32> to vector<128x256xf32>
    %89 = vector.broadcast %87 : vector<1x256xf32> to vector<128x256xf32>
    %90 = arith.addf %88, %89 : vector<128x256xf32>
    %cst_41 = arith.constant 0.000000e+00 : f32
    %91 = vector.broadcast %cst_41 : f32 to vector<128x256xf32>
    %92 = arith.cmpf ogt, %90, %91 : vector<128x256xf32>
    %cst_42 = arith.constant 2.000000e-01 : f32
    %93 = vector.broadcast %cst_42 : f32 to vector<128x256xf32>
    %94 = arith.mulf %93, %90 : vector<128x256xf32>
    %95 = arith.select %92, %90, %94 : vector<128x256xi1>, vector<128x256xf32>
    %cst_43 = arith.constant dense<0xFF800000> : vector<128xf32>
    %96 = vector.multi_reduction <maximumf>, %95, %cst_43 [1] : vector<128x256xf32> to vector<128xf32>
    %97 = vector.shape_cast %96 : vector<128xf32> to vector<128x1xf32>
    %98 = vector.broadcast %97 : vector<128x1xf32> to vector<128x256xf32>
    %99 = arith.subf %95, %98 : vector<128x256xf32>
    %100 = math.exp %99 : vector<128x256xf32>
    %101 = arith.mulf %100, %1 : vector<128x256xf32>
    %cst_44 = arith.constant dense<0.000000e+00> : vector<128xf32>
    %102 = vector.multi_reduction <add>, %101, %cst_44 [1] : vector<128x256xf32> to vector<128xf32>
    %103 = vector.shape_cast %102 : vector<128xf32> to vector<128x1xf32>
    %cst_45 = arith.constant 1.000000e-30 : f32
    %104 = vector.broadcast %cst_45 : f32 to vector<128x1xf32>
    %105 = arith.maximumf %103, %104 : vector<128x1xf32>
    %106 = tpu.reciprocal %105 {approx = true} : vector<128x1xf32> -> vector<128x1xf32>
    %c0_46 = arith.constant 0 : index
    %c48 = arith.constant 48 : index
    %107 = vector.load %arg2[%c0_46, %c48] : memref<256x128xbf16, #tpu.memory_space<vmem>>, vector<256x16xbf16>
    %108 = arith.truncf %101 : vector<128x256xf32> to vector<128x256xbf16>
    %cst_47 = arith.constant dense<0.000000e+00> : vector<128x16xf32>
    %109 = tpu.matmul %108, %107, %cst_47 {dimension_numbers = #tpu.dot_dimension_numbers<[1], [0], [0], [1], [0, 0, 1, 1], [], []>} : vector<128x256xbf16>, vector<256x16xbf16>, vector<128x16xf32> -> vector<128x16xf32>
    %110 = vector.broadcast %106 : vector<128x1xf32> to vector<128x16xf32>
    %111 = arith.mulf %109, %110 : vector<128x16xf32>
    %112 = arith.truncf %111 : vector<128x16xf32> to vector<128x16xbf16>
    %c0_48 = arith.constant 0 : index
    %c48_49 = arith.constant 48 : index
    %113 = vector.load %arg5[%c0_48, %c48_49] : memref<128x128xbf16, #tpu.memory_space<vmem>>, vector<128x16xbf16>
    tpu.vector_store %arg5[%c0_48, %c48_49], %112 {strides = array<i32>} : memref<128x128xbf16, #tpu.memory_space<vmem>>, vector<128x16xbf16>,
    %c0_50 = arith.constant 0 : index
    %c0_51 = arith.constant 0 : index
    %114 = vector.load %arg5[%c0_50, %c0_51] : memref<128x128xbf16, #tpu.memory_space<vmem>>, vector<128x128xbf16>
    %115 = arith.extf %114 : vector<128x128xbf16> to vector<128x128xf32>
    %116 = tpu.iota {dimensions = array<i32: 1>} : vector<128x128xi32>
    %c64_i32 = arith.constant 64 : i32
    %117 = vector.broadcast %c64_i32 : i32 to vector<128x128xi32>
    %118 = arith.cmpi slt, %116, %117 : vector<128x128xi32>
    %cst_52 = arith.constant 0.000000e+00 : f32
    %119 = vector.broadcast %cst_52 : f32 to vector<128x128xf32>
    %120 = arith.select %118, %115, %119 : vector<128x128xi1>, vector<128x128xf32>
    %cst_53 = arith.constant 0.000000e+00 : f32
    %121 = vector.broadcast %cst_53 : f32 to vector<128x128xf32>
    %122 = arith.cmpf ogt, %120, %121 : vector<128x128xf32>
    %cst_54 = arith.constant 0.000000e+00 : f32
    %123 = vector.broadcast %cst_54 : f32 to vector<128x128xf32>
    %124 = arith.minimumf %120, %123 : vector<128x128xf32>
    %125 = math.exp %124 : vector<128x128xf32>
    %cst_55 = arith.constant 1.000000e+00 : f32
    %126 = vector.broadcast %cst_55 : f32 to vector<128x128xf32>
    %127 = arith.subf %125, %126 : vector<128x128xf32>
    %128 = arith.select %122, %120, %127 : vector<128x128xi1>, vector<128x128xf32>
    %129 = arith.truncf %128 : vector<128x128xf32> to vector<128x128xbf16>
    %c0_56 = arith.constant 0 : index
    %c0_57 = arith.constant 0 : index
    %130 = vector.load %arg5[%c0_56, %c0_57] : memref<128x128xbf16, #tpu.memory_space<vmem>>, vector<128x128xbf16>
    tpu.vector_store %arg5[%c0_56, %c0_57], %129 {strides = array<i32>} : memref<128x128xbf16, #tpu.memory_space<vmem>>, vector<128x128xbf16>,
    return
  }
  func.func @transform_0(%arg0: i32) -> (i32, i32) {
    %c0_i32 = arith.constant 0 : i32
    %c0_i32_0 = arith.constant 0 : i32
    return %arg0, %c0_i32 : i32, i32
  }
  func.func @transform_1(%arg0: i32) -> (i32, i32) {
    %c0_i32 = arith.constant 0 : i32
    %c0_i32_0 = arith.constant 0 : i32
    %c0_i32_1 = arith.constant 0 : i32
    return %c0_i32, %c0_i32_0 : i32, i32
  }
  func.func @transform_2(%arg0: i32) -> (i32, i32) {
    %c0_i32 = arith.constant 0 : i32
    %c0_i32_0 = arith.constant 0 : i32
    return %arg0, %c0_i32 : i32, i32
  }
  func.func @transform_3(%arg0: i32) -> (i32, i32) {
    %c0_i32 = arith.constant 0 : i32
    %c0_i32_0 = arith.constant 0 : i32
    %c0_i32_1 = arith.constant 0 : i32
    return %c0_i32, %c0_i32_0 : i32, i32
  }
  func.func @transform_4(%arg0: i32) -> (i32, i32) {
    %c0_i32 = arith.constant 0 : i32
    %c0_i32_0 = arith.constant 0 : i32
    return %arg0, %c0_i32 : i32, i32
  }
}

module attributes {stable_mosaic.version = 11 : i64} {
  func.func @_attention_kernel(%arg0: i32, %arg1: memref<128x256xi8, #tpu.memory_space<vmem>>, %arg2: memref<256x128xbf16, #tpu.memory_space<vmem>>, %arg3: memref<128x128xf32, #tpu.memory_space<vmem>>, %arg4: memref<8x256xf32, #tpu.memory_space<vmem>>, %arg5: memref<128x128xf32, #tpu.memory_space<vmem>>) attributes {dimension_semantics = [#tpu.dimension_semantics<parallel>], iteration_bounds = array<i64: 2>, scalar_prefetch = 0 : i64, scratch_operands = 0 : i64, tpu.core_type = #tpu.core_type<tc>, window_params = [{transform_indices = @transform_0, window_bounds = array<i64: 128, 256>}, {pipeline_mode = #tpu.pipeline_mode<synchronous>, transform_indices = @transform_1, window_bounds = array<i64: 256, 128>}, {transform_indices = @transform_2, window_bounds = array<i64: 128, 128>}, {pipeline_mode = #tpu.pipeline_mode<synchronous>, transform_indices = @transform_3, window_bounds = array<i64: 8, 256>}, {transform_indices = @transform_4, window_bounds = array<i64: 128, 128>}]} {
    %c0 = arith.constant 0 : index
    %c0_0 = arith.constant 0 : index
    %0 = vector.load %arg1[%c0, %c0_0] : memref<128x256xi8, #tpu.memory_space<vmem>>, vector<128x256xi8>
    %1 = arith.sitofp %0 : vector<128x256xi8> to vector<128x256xf32>
    %c0_1 = arith.constant 0 : index
    %c0_2 = arith.constant 0 : index
    %2 = vector.load %arg3[%c0_1, %c0_2] : memref<128x128xf32, #tpu.memory_space<vmem>>, vector<128x1xf32>
    %c0_3 = arith.constant 0 : index
    %c0_4 = arith.constant 0 : index
    %3 = vector.load %arg4[%c0_3, %c0_4] : memref<8x256xf32, #tpu.memory_space<vmem>>, vector<1x256xf32>
    %4 = vector.broadcast %2 : vector<128x1xf32> to vector<128x256xf32>
    %5 = vector.broadcast %3 : vector<1x256xf32> to vector<128x256xf32>
    %6 = arith.addf %4, %5 : vector<128x256xf32>
    %cst = arith.constant 0.000000e+00 : f32
    %7 = vector.broadcast %cst : f32 to vector<128x256xf32>
    %8 = arith.cmpf ogt, %6, %7 : vector<128x256xf32>
    %cst_5 = arith.constant 2.000000e-01 : f32
    %9 = vector.broadcast %cst_5 : f32 to vector<128x256xf32>
    %10 = arith.mulf %9, %6 : vector<128x256xf32>
    %11 = arith.select %8, %6, %10 : vector<128x256xi1>, vector<128x256xf32>
    %cst_6 = arith.constant dense<0xFF800000> : vector<128xf32>
    %12 = vector.multi_reduction <maximumf>, %11, %cst_6 [1] : vector<128x256xf32> to vector<128xf32>
    %13 = vector.shape_cast %12 : vector<128xf32> to vector<128x1xf32>
    %14 = vector.broadcast %13 : vector<128x1xf32> to vector<128x256xf32>
    %15 = arith.subf %11, %14 : vector<128x256xf32>
    %16 = math.exp %15 : vector<128x256xf32>
    %17 = arith.mulf %16, %1 : vector<128x256xf32>
    %cst_7 = arith.constant dense<0.000000e+00> : vector<128xf32>
    %18 = vector.multi_reduction <add>, %17, %cst_7 [1] : vector<128x256xf32> to vector<128xf32>
    %19 = vector.shape_cast %18 : vector<128xf32> to vector<128x1xf32>
    %cst_8 = arith.constant 1.000000e-30 : f32
    %20 = vector.broadcast %cst_8 : f32 to vector<128x1xf32>
    %21 = arith.maximumf %19, %20 : vector<128x1xf32>
    %22 = tpu.reciprocal %21 {approx = true} : vector<128x1xf32> -> vector<128x1xf32>
    %c0_9 = arith.constant 0 : index
    %c0_10 = arith.constant 0 : index
    %23 = vector.load %arg2[%c0_9, %c0_10] : memref<256x128xbf16, #tpu.memory_space<vmem>>, vector<256x128xbf16>
    %24 = arith.truncf %17 : vector<128x256xf32> to vector<128x256xbf16>
    %cst_11 = arith.constant dense<0.000000e+00> : vector<128x128xf32>
    %25 = tpu.matmul %24, %23, %cst_11 {dimension_numbers = #tpu.dot_dimension_numbers<[1], [0], [0], [1], [0, 0, 1, 1], [], []>} : vector<128x256xbf16>, vector<256x128xbf16>, vector<128x128xf32> -> vector<128x128xf32>
    %26 = vector.broadcast %22 : vector<128x1xf32> to vector<128x128xf32>
    %27 = arith.mulf %25, %26 : vector<128x128xf32>
    %c0_12 = arith.constant 0 : index
    %c0_13 = arith.constant 0 : index
    %28 = vector.load %arg5[%c0_12, %c0_13] : memref<128x128xf32, #tpu.memory_space<vmem>>, vector<128x128xf32>
    tpu.vector_store %arg5[%c0_12, %c0_13], %27 {strides = array<i32>} : memref<128x128xf32, #tpu.memory_space<vmem>>, vector<128x128xf32>,
    %c0_14 = arith.constant 0 : index
    %c0_15 = arith.constant 0 : index
    %29 = vector.load %arg5[%c0_14, %c0_15] : memref<128x128xf32, #tpu.memory_space<vmem>>, vector<128x128xf32>
    %30 = tpu.iota {dimensions = array<i32: 1>} : vector<128x128xi32>
    %c7_i32 = arith.constant 7 : i32
    %31 = vector.broadcast %c7_i32 : i32 to vector<128x128xi32>
    %32 = arith.cmpi slt, %30, %31 : vector<128x128xi32>
    %cst_16 = arith.constant 0.000000e+00 : f32
    %33 = vector.broadcast %cst_16 : f32 to vector<128x128xf32>
    %34 = arith.select %32, %29, %33 : vector<128x128xi1>, vector<128x128xf32>
    %cst_17 = arith.constant 0.000000e+00 : f32
    %35 = vector.broadcast %cst_17 : f32 to vector<128x128xf32>
    %36 = arith.cmpf ogt, %34, %35 : vector<128x128xf32>
    %cst_18 = arith.constant 0.000000e+00 : f32
    %37 = vector.broadcast %cst_18 : f32 to vector<128x128xf32>
    %38 = arith.minimumf %34, %37 : vector<128x128xf32>
    %39 = math.exp %38 : vector<128x128xf32>
    %cst_19 = arith.constant 1.000000e+00 : f32
    %40 = vector.broadcast %cst_19 : f32 to vector<128x128xf32>
    %41 = arith.subf %39, %40 : vector<128x128xf32>
    %42 = arith.select %36, %34, %41 : vector<128x128xi1>, vector<128x128xf32>
    %cst_20 = arith.constant -9.000000e+15 : f32
    %43 = vector.broadcast %cst_20 : f32 to vector<128x128xf32>
    %44 = arith.select %32, %42, %43 : vector<128x128xi1>, vector<128x128xf32>
    %cst_21 = arith.constant dense<0xFF800000> : vector<128xf32>
    %45 = vector.multi_reduction <maximumf>, %44, %cst_21 [1] : vector<128x128xf32> to vector<128xf32>
    %46 = vector.shape_cast %45 : vector<128xf32> to vector<128x1xf32>
    %47 = vector.broadcast %46 : vector<128x1xf32> to vector<128x128xf32>
    %48 = arith.subf %44, %47 : vector<128x128xf32>
    %49 = math.exp %48 : vector<128x128xf32>
    %cst_22 = arith.constant dense<0.000000e+00> : vector<128xf32>
    %50 = vector.multi_reduction <add>, %49, %cst_22 [1] : vector<128x128xf32> to vector<128xf32>
    %51 = vector.shape_cast %50 : vector<128xf32> to vector<128x1xf32>
    %52 = math.log %51 : vector<128x1xf32>
    %53 = arith.addf %46, %52 : vector<128x1xf32>
    %54 = vector.broadcast %53 : vector<128x1xf32> to vector<128x128xf32>
    %55 = arith.subf %44, %54 : vector<128x128xf32>
    %c0_23 = arith.constant 0 : index
    %c0_24 = arith.constant 0 : index
    %56 = vector.load %arg5[%c0_23, %c0_24] : memref<128x128xf32, #tpu.memory_space<vmem>>, vector<128x128xf32>
    tpu.vector_store %arg5[%c0_23, %c0_24], %55 {strides = array<i32>} : memref<128x128xf32, #tpu.memory_space<vmem>>, vector<128x128xf32>,
    return
  }
  func.func @transform_0(%arg0: i32) -> (i32, i32) {
    %c0_i32 = arith.constant 0 : i32
    %c0_i32_0 = arith.constant 0 : i32
    return %arg0, %c0_i32 : i32, i32
  }
  func.func @transform_1(%arg0: i32) -> (i32, i32) {
    %c0_i32 = arith.constant 0 : i32
    %c0_i32_0 = arith.constant 0 : i32
    %c0_i32_1 = arith.constant 0 : i32
    return %c0_i32, %c0_i32_0 : i32, i32
  }
  func.func @transform_2(%arg0: i32) -> (i32, i32) {
    %c0_i32 = arith.constant 0 : i32
    %c0_i32_0 = arith.constant 0 : i32
    return %arg0, %c0_i32 : i32, i32
  }
  func.func @transform_3(%arg0: i32) -> (i32, i32) {
    %c0_i32 = arith.constant 0 : i32
    %c0_i32_0 = arith.constant 0 : i32
    %c0_i32_1 = arith.constant 0 : i32
    return %c0_i32, %c0_i32_0 : i32, i32
  }
  func.func @transform_4(%arg0: i32) -> (i32, i32) {
    %c0_i32 = arith.constant 0 : i32
    %c0_i32_0 = arith.constant 0 : i32
    return %arg0, %c0_i32 : i32, i32
  }
}

</mosaic_0001>

<bundles_post_ra>
// kernel: gat_forward.4
= control target key start
LH: loop header
LB: loop body
LE: loop exit
PB: predicated region body
PF: predicated region fallthrough
CT: control target
= control target key end

     0   :  { %s816_s12 = smov 0   ;;  %s970_s0 = inlined_call_operand.vmem [shape: bf16[256,128], index: 0, kind: input, shape index: {}]   ;;  %s971_s1 = inlined_call_operand.vmem [shape: bf16[128,256], index: 1, kind: input, shape index: {}]   ;;  %s972_s2 = inlined_call_operand.vmem [shape: bf16[256,128], index: 2, kind: output, shape index: {0}]   ;;  %s973_s3 = inlined_call_operand.vmem [shape: f32[256,128], index: 3, kind: output, shape index: {1}]  }
   0x1 LB: > { %s584_s13 = sadd.s32 4294967295, %s794_s12   ;;  %p588_p0 = scmp.ge.s32.totalorder %s794_s12, 1  ;;  %s794_s12 = sphi %s816_s12, %s14_s12  }
   0x2   : > { %p141_p1 = scmp.lt.s32.totalorder %s794_s12, 3 }
   0x4   : > { %p142_p2 = pnand %p588_p0, %p141_p1 }
   0x5   : > { %s589_s29 = sshll.u32 (!%p142_p2), %s584_s13, 4 }
   0x6   : > { %145 = sbr.rel (%p142_p2) target bundleno = 236 (0xec), region = 28  ;;  %p171_p3 = scmp.lt.s32.totalorder (!%p142_p2), %s589_s29, 31 }
   0xb   : > { %v685_v0 = vld [vmem:[%s971_s1 + $0x70] sm:$0xf]  ;;  %v716_v1 = vld [vmem:[%s971_s1 + $0x74] sm:$0xf0]  ;;  %v715_v2 = vld [vmem:[%s971_s1 + $0x74] sm:$0xf] }
   0xc   : > { %v686_v3 = vor.u32 %v716_v1, %v685_v0  ;;  %v687_v4 = vld [vmem:[%s971_s1 + $0x78] sm:$0xf0]  ;;  %v677_v5 = vld [vmem:[%s971_s1 + $0x60] sm:$0xf]  ;;  %v714_v6 = vld [vmem:[%s971_s1 + $0x64] sm:$0xf0] }
   0xd   : > { %v690_v7 = vor.u32 %v715_v2, %v687_v4  ;;  %v713_v8 = vld [vmem:[%s971_s1 + $0x64] sm:$0xf]  ;;  %v679_v9 = vld [vmem:[%s971_s1 + $0x68] sm:$0xf0]  ;;  %v678_v10 = vor.u32 %v714_v6, %v677_v5  ;;  %v669_v12 = vld [vmem:[%s971_s1 + $0x50] sm:$0xf] }
   0xe   : > { %348 = vmatpush.bf16.msra.mxu0 %v686_v3  ;;  %764 = vmatpush.bf16.msra.mxu2 %v686_v3  ;;  %v682_v11 = vor.u32 %v713_v8, %v679_v9  ;;  %v712_v13 = vld [vmem:[%s971_s1 + $0x54] sm:$0xf0]  ;;  %v711_v14 = vld [vmem:[%s971_s1 + $0x54] sm:$0xf]  ;;  %v671_v15 = vld [vmem:[%s971_s1 + $0x58] sm:$0xf0] }
   0xf   : > { %397 = vmatpush.bf16.msra.mxu1 %v690_v7  ;;  %772 = vmatpush.bf16.msra.mxu3 %v690_v7  ;;  %v670_v16 = vor.u32 %v712_v13, %v669_v12  ;;  %v674_v17 = vor.u32 %v711_v14, %v671_v15  ;;  %v661_v18 = vld [vmem:[%s971_s1 + $0x40] sm:$0xf]  ;;  %v710_v19 = vld [vmem:[%s971_s1 + $0x44] sm:$0xf0]  ;;  %v709_v20 = vld [vmem:[%s971_s1 + $0x44] sm:$0xf] }
  0x10   : > { %v663_v21 = vld [vmem:[%s971_s1 + $0x48] sm:$0xf0]  ;;  %v662_v22 = vor.u32 %v710_v19, %v661_v18  ;;  %v653_v24 = vld [vmem:[%s971_s1 + $0x30] sm:$0xf]  ;;  %v708_v25 = vld [vmem:[%s971_s1 + $0x34] sm:$0xf0] }
  0x11   : > { %v666_v23 = vor.u32 %v709_v20, %v663_v21  ;;  %v707_v26 = vld [vmem:[%s971_s1 + $0x34] sm:$0xf]  ;;  %v655_v27 = vld [vmem:[%s971_s1 + $0x38] sm:$0xf0]  ;;  %v654_v28 = vor.u32 %v708_v25, %v653_v24  ;;  %v645_v30 = vld [vmem:[%s971_s1 + $0x20] sm:$0xf] }
  0x12   : > { %349 = vmatpush.bf16.msra.mxu0 %v678_v10  ;;  %765 = vmatpush.bf16.msra.mxu2 %v678_v10  ;;  %v658_v29 = vor.u32 %v707_v26, %v655_v27  ;;  %v706_v31 = vld [vmem:[%s971_s1 + $0x24] sm:$0xf0]  ;;  %v705_v32 = vld [vmem:[%s971_s1 + $0x24] sm:$0xf]  ;;  %v647_v33 = vld [vmem:[%s971_s1 + $0x28] sm:$0xf0] }
  0x13   : > { %398 = vmatpush.bf16.msra.mxu1 %v682_v11  ;;  %773 = vmatpush.bf16.msra.mxu3 %v682_v11  ;;  %v646_v34 = vor.u32 %v706_v31, %v645_v30  ;;  %v650_v35 = vor.u32 %v705_v32, %v647_v33  ;;  %v637_v36 = vld [vmem:[%s971_s1 + $0x10] sm:$0xf]  ;;  %v704_v37 = vld [vmem:[%s971_s1 + $0x14] sm:$0xf0]  ;;  %s975_s29 = smov (!%p171_p3, %s589_s29), 31 }
  0x14   : > { %v703_v38 = vld [vmem:[%s971_s1 + $0x14] sm:$0xf]  ;;  %v639_v39 = vld [vmem:[%s971_s1 + $0x18] sm:$0xf0]  ;;  %v638_v40 = vor.u32 %v704_v37, %v637_v36  ;;  %v629_v42 = vld [vmem:[%s971_s1] sm:$0xf] }
  0x15   : > { %v642_v41 = vor.u32 %v703_v38, %v639_v39  ;;  %v702_v43 = vld [vmem:[%s971_s1 + $0x4] sm:$0xf0]  ;;  %s590_s24 = sshll.u32 %s975_s29, 2  ;;  %v701_v44 = vld [vmem:[%s971_s1 + $0x4] sm:$0xf]  ;;  %s594_s6 = sshll.u32 %s975_s29, 3 }
  0x16   : > { %350 = vmatpush.bf16.msra.mxu0 %v670_v16  ;;  %766 = vmatpush.bf16.msra.mxu2 %v670_v16  ;;  %v631_v45 = vld [vmem:[%s971_s1 + $0x8] sm:$0xf0]  ;;  %v630_v46 = vor.u32 %v702_v43, %v629_v42  ;;  %s174_s5 = scalar_lea.vmem %s970_s0, %s590_s24  ;;  %s934_s13 = scalar_lea.vmem %s973_s3, %s594_s6 }
  0x17   : > { %399 = vmatpush.bf16.msra.mxu1 %v674_v17  ;;  %774 = vmatpush.bf16.msra.mxu3 %v674_v17  ;;  %v634_v47 = vor.u32 %v701_v44, %v631_v45  ;;  %v693_v48 = vld [vmem:[%s174_s5] sm:$0xff]  ;;  %v694_v50 = vld [vmem:[%s174_s5 + $0x8] sm:$0xff]  ;;  %v695_v52 = vld [vmem:[%s174_s5 + $0x10] sm:$0xff]  ;;  %s943_s11 = scalar_lea.vmem %s972_s2, %s590_s24 }
  0x18   : > { %v697_v49 = vld [vmem:[%s174_s5 + $0x20] sm:$0xff]  ;;  %v698_v51 = vld [vmem:[%s174_s5 + $0x28] sm:$0xff]  ;;  %v699_v53 = vld [vmem:[%s174_s5 + $0x30] sm:$0xff] }
  0x19   : > { %v696_v54 = vld [vmem:[%s174_s5 + $0x18] sm:$0xff] }
  0x1a   : > { %351 = vmatpush.bf16.msra.mxu0 %v662_v22  ;;  %767 = vmatpush.bf16.msra.mxu2 %v662_v22  ;;  %v700_v55 = vld [vmem:[%s174_s5 + $0x38] sm:$0xff] }
  0x1b   : > { %400 = vmatpush.bf16.msra.mxu1 %v666_v23  ;;  %775 = vmatpush.bf16.msra.mxu3 %v666_v23 }
  0x1e   : > { %352 = vmatpush.bf16.msra.mxu0 %v654_v28  ;;  %768 = vmatpush.bf16.msra.mxu2 %v654_v28 }
  0x1f   : > { %401 = vmatpush.bf16.msra.mxu1 %v658_v29  ;;  %776 = vmatpush.bf16.msra.mxu3 %v658_v29 }
  0x22   : > { %353 = vmatpush.bf16.msra.mxu0 %v646_v34  ;;  %769 = vmatpush.bf16.msra.mxu2 %v646_v34 }
  0x23   : > { %402 = vmatpush.bf16.msra.mxu1 %v650_v35  ;;  %777 = vmatpush.bf16.msra.mxu3 %v650_v35 }
  0x26   : > { %354 = vmatpush.bf16.msra.mxu0 %v638_v40  ;;  %770 = vmatpush.bf16.msra.mxu2 %v638_v40 }
  0x27   : > { %403 = vmatpush.bf16.msra.mxu1 %v642_v41  ;;  %778 = vmatpush.bf16.msra.mxu3 %v642_v41 }
  0x2a   : > { %355 = vmatpush.bf16.msra.mxu0 %v630_v46  ;;  %771 = vmatpush.bf16.msra.mxu2 %v630_v46 }
  0x2b   : > { %404 = vmatpush.bf16.msra.mxu1 %v634_v47  ;;  %779 = vmatpush.bf16.msra.mxu3 %v634_v47 }
  0x2d   : > { %356 = vmatmul.bf16.vlgmr.msra.gmra.mxu0 %v693_v48  ;;  %376 = vmatmul.bf16.vlgmr.msra.gmra.mxu2 %v697_v49 }
  0x2e   : > { %405 = vmatmul.bf16.vlgmr.msra.gmra.mxu1 %v693_v48  ;;  %425 = vmatmul.bf16.vlgmr.msra.gmra.mxu3 %v697_v49 }
  0x3d   : > { %361 = vmatmul.bf16.gmra.mxu0 %v694_v50  ;;  %381 = vmatmul.bf16.gmra.mxu2 %v698_v51 }
  0x3e   : > { %410 = vmatmul.bf16.gmra.mxu1 %v694_v50  ;;  %430 = vmatmul.bf16.gmra.mxu3 %v698_v51 }
  0x4d   : > { %366 = vmatmul.bf16.gmra.mxu0 %v695_v52  ;;  %386 = vmatmul.bf16.gmra.mxu2 %v699_v53 }
  0x4e   : > { %415 = vmatmul.bf16.gmra.mxu1 %v695_v52  ;;  %435 = vmatmul.bf16.gmra.mxu3 %v699_v53 }
  0x5d   : > { %371 = vmatmul.bf16.gmra.mxu0 %v696_v54  ;;  %391 = vmatmul.bf16.gmra.mxu2 %v700_v55 }
  0x5e   : > { %420 = vmatmul.bf16.gmra.mxu1 %v696_v54  ;;  %440 = vmatmul.bf16.gmra.mxu3 %v700_v55 }
  0xaa   : > { %v357_v56 = vpop.f32.mrf.mxu0 }
  0xab   : > { %v406_v57 = vpop.f32.mrf.mxu1 }
  0xac   : > { %478 = vst [vmem:[%s934_s13] sm:$0xff] %v406_v57 }
  0xb0   : > { %v377_v58 = vpop.f32.mrf.mxu2 }
  0xb1   : > { %v426_v59 = vpop.f32.mrf.mxu3 }
  0xb2   : > { %486 = vst [vmem:[%s934_s13 + $0x40] sm:$0xff] %v426_v59  ;;  %v359_v60 = vpop.f32.mrf.mxu0 }
  0xb3   : > { %v720_v61 = vpack.c.bf16 %v359_v60, %v357_v56  ;;  %v408_v62 = vpop.f32.mrf.mxu1 }
  0xb4   : > { %479 = vst [vmem:[%s934_s13 + $0x8] sm:$0xff] %v408_v62 }
  0xb5   : > { %721 = vst [vmem:[%s943_s11] sm:$0xff] %v720_v61  }
  0xb8   : > { %v379_v63 = vpop.f32.mrf.mxu2 }
  0xb9   : > { %v740_v0 = vpack.c.bf16 %v379_v63, %v377_v58  ;;  %v428_v1 = vpop.f32.mrf.mxu3 }
  0xba   : > { %487 = vst [vmem:[%s934_s13 + $0x48] sm:$0xff] %v428_v1  ;;  %v362_v2 = vpop.f32.mrf.mxu0 }
  0xbb   : > { %760 = vst [vmem:[%s943_s11 + $0x20] sm:$0xff] %v740_v0   ;;  %v411_v3 = vpop.f32.mrf.mxu1 }
  0xbc   : > { %480 = vst [vmem:[%s934_s13 + $0x10] sm:$0xff] %v411_v3 }
  0xc0   : > { %v382_v4 = vpop.f32.mrf.mxu2 }
  0xc1   : > { %v431_v5 = vpop.f32.mrf.mxu3 }
  0xc2   : > { %488 = vst [vmem:[%s934_s13 + $0x50] sm:$0xff] %v431_v5  ;;  %v364_v6 = vpop.f32.mrf.mxu0 }
  0xc3   : > { %v725_v7 = vpack.c.bf16 %v364_v6, %v362_v2  ;;  %v413_v8 = vpop.f32.mrf.mxu1 }
  0xc4   : > { %481 = vst [vmem:[%s934_s13 + $0x18] sm:$0xff] %v413_v8 }
  0xc5   : > { %757 = vst [vmem:[%s943_s11 + $0x8] sm:$0xff] %v725_v7  }
  0xc8   : > { %v384_v9 = vpop.f32.mrf.mxu2 }
  0xc9   : > { %v745_v10 = vpack.c.bf16 %v384_v9, %v382_v4  ;;  %v433_v11 = vpop.f32.mrf.mxu3 }
  0xca   : > { %489 = vst [vmem:[%s934_s13 + $0x58] sm:$0xff] %v433_v11  ;;  %v367_v12 = vpop.f32.mrf.mxu0 }
  0xcb   : > { %761 = vst [vmem:[%s943_s11 + $0x28] sm:$0xff] %v745_v10   ;;  %v416_v13 = vpop.f32.mrf.mxu1 }
  0xcc   : > { %482 = vst [vmem:[%s934_s13 + $0x20] sm:$0xff] %v416_v13 }
  0xd0   : > { %v387_v14 = vpop.f32.mrf.mxu2 }
  0xd1   : > { %v436_v15 = vpop.f32.mrf.mxu3 }
  0xd2   : > { %490 = vst [vmem:[%s934_s13 + $0x60] sm:$0xff] %v436_v15  ;;  %v369_v16 = vpop.f32.mrf.mxu0 }
  0xd3   : > { %v730_v17 = vpack.c.bf16 %v369_v16, %v367_v12  ;;  %v418_v18 = vpop.f32.mrf.mxu1 }
  0xd4   : > { %483 = vst [vmem:[%s934_s13 + $0x28] sm:$0xff] %v418_v18 }
  0xd5   : > { %758 = vst [vmem:[%s943_s11 + $0x10] sm:$0xff] %v730_v17  }
  0xd8   : > { %v389_v19 = vpop.f32.mrf.mxu2 }
  0xd9   : > { %v750_v20 = vpack.c.bf16 %v389_v19, %v387_v14  ;;  %v438_v21 = vpop.f32.mrf.mxu3 }
  0xda   : > { %491 = vst [vmem:[%s934_s13 + $0x68] sm:$0xff] %v438_v21  ;;  %v372_v22 = vpop.f32.mrf.mxu0 }
  0xdb   : > { %762 = vst [vmem:[%s943_s11 + $0x30] sm:$0xff] %v750_v20   ;;  %v421_v23 = vpop.f32.mrf.mxu1 }
  0xdc   : > { %484 = vst [vmem:[%s934_s13 + $0x30] sm:$0xff] %v421_v23 }
  0xe0   : > { %v392_v24 = vpop.f32.mrf.mxu2 }
  0xe1   : > { %v441_v25 = vpop.f32.mrf.mxu3 }
  0xe2   : > { %492 = vst [vmem:[%s934_s13 + $0x70] sm:$0xff] %v441_v25  ;;  %v374_v26 = vpop.f32.mrf.mxu0 }
  0xe3   : > { %v735_v27 = vpack.c.bf16 %v374_v26, %v372_v22  ;;  %v423_v28 = vpop.f32.mrf.mxu1 }
  0xe4   : > { %485 = vst [vmem:[%s934_s13 + $0x38] sm:$0xff] %v423_v28 }
  0xe5   : > { %759 = vst [vmem:[%s943_s11 + $0x18] sm:$0xff] %v735_v27  }
  0xe8   : > { %v394_v29 = vpop.f32.mrf.mxu2 }
  0xe9   : > { %v755_v30 = vpack.c.bf16 %v394_v29, %v392_v24  ;;  %v443_v31 = vpop.f32.mrf.mxu3 }
  0xea   : > { %493 = vst [vmem:[%s934_s13 + $0x78] sm:$0xff] %v443_v31 }
  0xeb   : > { %763 = vst [vmem:[%s943_s11 + $0x38] sm:$0xff] %v755_v30  }
  0xec PF: > { %s14_s12 = sadd.s32 1, %s794_s12  }
  0xed   : > { %p11_p4 = scmp.ge.s32.totalorder %s14_s12, 4  }
  0xef   :  { %13 = sbr.rel (!%p11_p4) target bundleno = 1 (0x1), region = 70 }

// kernel: gat_forward.7
= control target key start
LH: loop header
LB: loop body
LE: loop exit
PB: predicated region body
PF: predicated region fallthrough
CT: control target
= control target key end

     0   :  { %s1830_s15 = smov 0   ;;  %s2487_s0 = inlined_call_operand.vmem [shape: s8[256,256], index: 0, kind: input, shape index: {}]   ;;  %s2488_s1 = inlined_call_operand.vmem [shape: bf16[256,128], index: 1, kind: input, shape index: {}]   ;;  %s2489_s2 = inlined_call_operand.vmem [shape: f32[256,128], index: 2, kind: input, shape index: {}]   ;;  %s2490_s3 = inlined_call_operand.vmem [shape: f32[8,256], index: 3, kind: input, shape index: {}]   ;;  %s2491_s4 = inlined_call_operand.vmem [shape: f32[256,128], index: 4, kind: output, shape index: {}]  }
   0x1 LB: > { %s1465_s16 = sadd.s32 4294967295, %s1802_s15   ;;  %p1469_p0 = scmp.ge.s32.totalorder %s1802_s15, 1  ;;  %s1802_s15 = sphi %s1830_s15, %s14_s15  }
   0x2   : > { %p175_p1 = scmp.lt.s32.totalorder %s1802_s15, 3 }
   0x4   : > { %p176_p2 = pnand %p1469_p0, %p175_p1 }
   0x5   : > { %s1473_s17 = sshll.u32 (!%p176_p2), %s1465_s16, 4  ;;  %s1470_s26 = sshll.u32 (!%p176_p2), %s1465_s16, 2 }
   0x6   : > { %179 = sbr.rel (%p176_p2) target bundleno = 865 (0x361), region = 36  ;;  %p215_p3 = scmp.lt.s32.totalorder (!%p176_p2), %s1473_s17, 31 }
   0x7   : > { %p208_p4 = scmp.lt.s32.totalorder (!%p176_p2), %s1470_s26, 7 }
   0xb   : > { %v1804_v0 = vmov 0   ;;  %s2493_s17 = smov (!%p215_p3, %s1473_s17), 31  ;;  %v314_v15 = vld [vmem:[%s2490_s3] ss:$8 sm:$0x3]  ;;  %s2495_s26 = smov (!%p208_p4, %s1470_s26), 7 }
   0xc   : > { %1602 = vset.pattern.permute.xlu1 %v1804_v0  ;;  %1601 = vset.pattern.permute.xlu0 %v1804_v0  ;;  %s1474_s18 = sshll.u32 %s2493_s17, 3  ;;  %v1867_v17 = vperm.slane %v314_v15, 0  ;;  %v1869_v18 = vperm.slane %v314_v15, 1  ;;  %s1559_s8 = sshll.u32 %s2495_s26, 4 }
   0xd   : > { %1603 = vset.pattern.permute.xlu2 %v1804_v0  ;;  %s1848_s21 = scalar_lea.vmem %s2489_s2, %s1474_s18  ;;  %s2048_s11 = scalar_lea.vmem %s2487_s0, %s1559_s8 }
   0xe   : > { %v306_v1 = vld [vmem:[%s1848_s21 + $0x40] sm:$0xff]  ;;  %v308_v3 = vld [vmem:[%s1848_s21 + $0x50] sm:$0xff]  ;;  %v307_v4 = vld [vmem:[%s1848_s21 + $0x48] sm:$0xff]  ;;  %s2411_s14 = scalar_lea.vmem %s2491_s4, %s1474_s18 }
   0xf   : > { %v298_v2 = vld [vmem:[%s1848_s21] sm:$0xff]  ;;  %357 = vperm.xlu0 %1601, %v306_v1   ;;  %367 = vperm.xlu2 %1603, %v308_v3   ;;  %v299_v5 = vld [vmem:[%s1848_s21 + $0x8] sm:$0xff]  ;;  %v309_v6 = vld [vmem:[%s1848_s21 + $0x58] sm:$0xff] }
  0x10   : > { %317 = vperm.xlu1 %1602, %v298_v2   ;;  %v300_v7 = vld [vmem:[%s1848_s21 + $0x10] sm:$0xff]  ;;  %v301_v8 = vld [vmem:[%s1848_s21 + $0x18] sm:$0xff]  ;;  %v310_v9 = vld [vmem:[%s1848_s21 + $0x60] sm:$0xff] }
  0x11   : > { %v311_v10 = vld [vmem:[%s1848_s21 + $0x68] sm:$0xff]  ;;  %v302_v11 = vld [vmem:[%s1848_s21 + $0x20] sm:$0xff]  ;;  %v312_v13 = vld [vmem:[%s1848_s21 + $0x70] sm:$0xff] }
  0x12   : > { %v303_v12 = vld [vmem:[%s1848_s21 + $0x28] sm:$0xff]  ;;  %v313_v14 = vld [vmem:[%s1848_s21 + $0x78] sm:$0xff] }
  0x17   : > { %362 = vperm.xlu0 %1601, %v307_v4   ;;  %372 = vperm.xlu2 %1603, %v309_v6  }
  0x18   : > { %322 = vperm.xlu1 %1602, %v299_v5  }
  0x1f   : > { %327 = vperm.xlu0 %1601, %v300_v7   ;;  %377 = vperm.xlu2 %1603, %v310_v9  }
  0x20   : > { %332 = vperm.xlu1 %1602, %v301_v8  }
  0x27   : > { %382 = vperm.xlu0 %1601, %v311_v10   ;;  %342 = vperm.xlu2 %1603, %v303_v12  }
  0x28   : > { %337 = vperm.xlu1 %1602, %v302_v11  }
  0x2f   : > { %387 = vperm.xlu2 %1603, %v312_v13  }
  0x37   : > { %392 = vperm.xlu2 %1603, %v313_v14  }
  0x69   : > { %v368_v16 = vpop.permute.xlu2 %367 }
  0x6a   : > { %v420_v19 = vadd.f32 %v1867_v17, %v368_v16  ;;  %v421_v20 = vadd.f32 %v1869_v18, %v368_v16 }
  0x6c   : > { %v484_v27 = vmul.f32 0.2, %v420_v19  ;;  %v485_v28 = vmul.f32 0.2, %v421_v20  ;;  %vm452_vm0 = vcmp.gt.f32.partialorder %v420_v19, 0.0  ;;  %vm453_vm1 = vcmp.gt.f32.partialorder %v421_v20, 0.0 }
  0x6e   : > { %v1890_v42 = vsel %vm452_vm0, %v420_v19, %v484_v27  ;;  %v1893_v43 = vsel %vm453_vm1, %v421_v20, %v485_v28  ;;  %v305_v20 = vld [vmem:[%s1848_s21 + $0x38] sm:$0xff] }
  0x6f   : > { %v558_v53 = vmax.f32 %v1890_v42, %v1893_v43 }
  0x71   : > { %v373_v36 = vpop.permute.xlu2 %372 }
  0x72   : > { %v422_v48 = vadd.f32 %v1867_v17, %v373_v36  ;;  %v423_v49 = vadd.f32 %v1869_v18, %v373_v36 }
  0x74   : > { %v486_v58 = vmul.f32 0.2, %v422_v48  ;;  %v487_v59 = vmul.f32 0.2, %v423_v49  ;;  %vm454_vm10 = vcmp.gt.f32.partialorder %v422_v48, 0.0  ;;  %vm455_vm11 = vcmp.gt.f32.partialorder %v423_v49, 0.0 }
  0x76   : > { %v1919_v3 = vsel %vm454_vm10, %v422_v48, %v486_v58  ;;  %v1921_v4 = vsel %vm455_vm11, %v423_v49, %v487_v59  ;;  %v1566_v59 = vld [vmem:[%s2488_s1 + $0x30] sm:$0xff] }
  0x77   : > { %v561_v5 = vmax.f32 %v1919_v3, %v1921_v4 }
  0x79   : > { %v378_v63 = vpop.permute.xlu2 %377 }
  0x7a   : > { %v424_v1 = vadd.f32 %v1867_v17, %v378_v63  ;;  %v425_v2 = vadd.f32 %v1869_v18, %v378_v63 }
  0x7c   : > { %v488_v6 = vmul.f32 0.2, %v424_v1  ;;  %v489_v7 = vmul.f32 0.2, %v425_v2  ;;  %vm456_vm12 = vcmp.gt.f32.partialorder %v424_v1, 0.0  ;;  %vm457_vm13 = vcmp.gt.f32.partialorder %v425_v2, 0.0 }
  0x7e   : > { %v1927_v10 = vsel %vm456_vm12, %v424_v1, %v488_v6  ;;  %v1929_v11 = vsel %vm457_vm13, %v425_v2, %v489_v7 }
  0x7f   : > { %v564_v14 = vmax.f32 %v1927_v10, %v1929_v11 }
  0x81   : > { %v358_v21 = vpop.permute.xlu0 %357 }
  0x82   : > { %v318_v22 = vpop.permute.xlu1 %317  ;;  %v416_v23 = vadd.f32 %v1867_v17, %v358_v21  ;;  %v417_v24 = vadd.f32 %v1869_v18, %v358_v21 }
  0x83   : > { %v400_v25 = vadd.f32 %v1867_v17, %v318_v22  ;;  %v401_v26 = vadd.f32 %v1869_v18, %v318_v22 }
  0x84   : > { %v480_v29 = vmul.f32 0.2, %v416_v23  ;;  %v481_v30 = vmul.f32 0.2, %v417_v24  ;;  %vm448_vm2 = vcmp.gt.f32.partialorder %v416_v23, 0.0  ;;  %vm449_vm3 = vcmp.gt.f32.partialorder %v417_v24, 0.0 }
  0x85   : > { %v464_v31 = vmul.f32 0.2, %v400_v25  ;;  %v465_v32 = vmul.f32 0.2, %v401_v26  ;;  %vm432_vm4 = vcmp.gt.f32.partialorder %v400_v25, 0.0  ;;  %vm433_vm5 = vcmp.gt.f32.partialorder %v401_v26, 0.0 }
  0x86   : > { %v1877_v33 = vsel %vm448_vm2, %v416_v23, %v480_v29  ;;  %v1879_v34 = vsel %vm449_vm3, %v417_v24, %v481_v30 }
  0x87   : > { %v1881_v35 = vsel %vm432_vm4, %v400_v25, %v464_v31  ;;  %v552_v37 = vmax.f32 %v1877_v33, %v1879_v34  ;;  %v1885_v38 = vsel %vm433_vm5, %v401_v26, %v465_v32  ;;  %v343_v25 = vpop.permute.xlu2 %342  ;;  %v304_v26 = vld [vmem:[%s1848_s21 + $0x30] sm:$0xff] }
  0x88   : > { %v528_v39 = vmax.f32 %v1881_v35, %v1885_v38  ;;  %v410_v30 = vadd.f32 %v1867_v17, %v343_v25  ;;  %v411_v31 = vadd.f32 %v1869_v18, %v343_v25 }
  0x89   : > { %v363_v40 = vpop.permute.xlu0 %362  ;;  %553 = vmax.xlane.f32.xlu0 %v552_v37 }
  0x8a   : > { %v323_v41 = vpop.permute.xlu1 %322  ;;  %v418_v44 = vadd.f32 %v1867_v17, %v363_v40  ;;  %v419_v45 = vadd.f32 %v1869_v18, %v363_v40  ;;  %529 = vmax.xlane.f32.xlu2 %v528_v39  ;;  %v474_v37 = vmul.f32 0.2, %v410_v30  ;;  %v475_v39 = vmul.f32 0.2, %v411_v31 }
  0x8b   : > { %v402_v46 = vadd.f32 %v1867_v17, %v323_v41  ;;  %v403_v47 = vadd.f32 %v1869_v18, %v323_v41  ;;  %vm442_vm2 = vcmp.gt.f32.partialorder %v410_v30, 0.0  ;;  %vm443_vm3 = vcmp.gt.f32.partialorder %v411_v31, 0.0 }
  0x8c   : > { %v482_v50 = vmul.f32 0.2, %v418_v44  ;;  %v483_v51 = vmul.f32 0.2, %v419_v45  ;;  %vm450_vm6 = vcmp.gt.f32.partialorder %v418_v44, 0.0  ;;  %vm451_vm7 = vcmp.gt.f32.partialorder %v419_v45, 0.0 }
  0x8d   : > { %v466_v52 = vmul.f32 0.2, %v402_v46  ;;  %v467_v54 = vmul.f32 0.2, %v403_v47  ;;  %vm434_vm8 = vcmp.gt.f32.partialorder %v402_v46, 0.0  ;;  %vm435_vm9 = vcmp.gt.f32.partialorder %v403_v47, 0.0 }
  0x8e   : > { %v1903_v55 = vsel %vm450_vm6, %v418_v44, %v482_v50  ;;  %v1905_v56 = vsel %vm451_vm7, %v419_v45, %v483_v51 }
  0x8f   : > { %v1907_v57 = vsel %vm434_vm8, %v402_v46, %v466_v52  ;;  %v555_v60 = vmax.f32 %v1903_v55, %v1905_v56  ;;  %v1911_v61 = vsel %vm435_vm9, %v403_v47, %v467_v54  ;;  %v388_v41 = vpop.permute.xlu2 %387  ;;  %v1955_v46 = vsel %vm442_vm2, %v410_v30, %v474_v37  ;;  %v1575_v54 = vld [vmem:[%s2488_s1 + $0x78] sm:$0xff]  ;;  %v1564_v30 = vld [vmem:[%s2488_s1 + $0x20] sm:$0xff] }
  0x90   : > { %v531_v62 = vmax.f32 %v1907_v57, %v1911_v61  ;;  %v428_v44 = vadd.f32 %v1867_v17, %v388_v41  ;;  %v429_v45 = vadd.f32 %v1869_v18, %v388_v41  ;;  %v1957_v47 = vsel %vm443_vm3, %v411_v31, %v475_v39  ;;  %977 = vmatpush.bf16.msra.mxu1 %v1575_v54  ;;  %v1572_v31 = vld [vmem:[%s2488_s1 + $0x60] sm:$0xff]  ;;  %v1563_v37 = vld [vmem:[%s2488_s1 + $0x18] sm:$0xff]  ;;  %v1570_v41 = vld [vmem:[%s2488_s1 + $0x50] sm:$0xff] }
  0x91   : > { %v1915_v0 = vpop.permute.xlu0 %327  ;;  %556 = vmax.xlane.f32.xlu1 %v555_v60  ;;  %v543_v48 = vmax.f32 %v1955_v46, %v1957_v47  ;;  %1584 = vmatpush.bf16.msra.mxu3 %v1575_v54  ;;  %v1574_v60 = vld [vmem:[%s2488_s1 + $0x70] sm:$0xff]  ;;  %v1571_v39 = vld [vmem:[%s2488_s1 + $0x58] sm:$0xff] }
  0x92   : > { %559 = vmax.xlane.f32.xlu2 %v558_v53  ;;  %532 = vmax.xlane.f32.xlu0 %v531_v62  ;;  %v1925_v8 = vpop.permute.xlu1 %332  ;;  %v492_v49 = vmul.f32 0.2, %v428_v44  ;;  %v493_v50 = vmul.f32 0.2, %v429_v45  ;;  %vm460_vm4 = vcmp.gt.f32.partialorder %v428_v44, 0.0  ;;  %vm461_vm5 = vcmp.gt.f32.partialorder %v429_v45, 0.0 }
  0x93   : > { %v1567_v53 = vld [vmem:[%s2488_s1 + $0x38] sm:$0xff]  ;;  %v406_v62 = vadd.f32 %v1867_v17, %v1925_v8  ;;  %v407_v63 = vadd.f32 %v1869_v18, %v1925_v8  ;;  %v404_v1 = vadd.f32 %v1867_v17, %v1915_v0  ;;  %v405_v2 = vadd.f32 %v1869_v18, %v1915_v0 }
  0x94   : > { %v1961_v51 = vsel %vm460_vm4, %v428_v44, %v492_v49  ;;  %v1963_v52 = vsel %vm461_vm5, %v429_v45, %v493_v50  ;;  %928 = vmatpush.bf16.msra.mxu0 %v1567_v53  ;;  %1576 = vmatpush.bf16.msra.mxu2 %v1567_v53  ;;  %v1561_v44 = vld [vmem:[%s2488_s1 + $0x8] sm:$0xff]  ;;  %v1568_v49 = vld [vmem:[%s2488_s1 + $0x40] sm:$0xff] }
  0x95   : > { %v570_v58 = vmax.f32 %v1961_v51, %v1963_v52  ;;  %978 = vmatpush.bf16.msra.mxu1 %v1574_v60  ;;  %1585 = vmatpush.bf16.msra.mxu3 %v1574_v60  ;;  %v471_v6 = vmul.f32 0.2, %v407_v63  ;;  %vm438_vm6 = vcmp.gt.f32.partialorder %v406_v62, 0.0  ;;  %vm439_vm7 = vcmp.gt.f32.partialorder %v407_v63, 0.0  ;;  %v1569_v45 = vld [vmem:[%s2488_s1 + $0x48] sm:$0xff] }
  0x96   : > { %vm436_vm8 = vcmp.gt.f32.partialorder %v404_v1, 0.0  ;;  %vm437_vm9 = vcmp.gt.f32.partialorder %v405_v2, 0.0 }
  0x97   : > { %v393_v7 = vpop.permute.xlu2 %392 }
  0x98   : > { %929 = vmatpush.bf16.msra.mxu0 %v1566_v59  ;;  %1577 = vmatpush.bf16.msra.mxu2 %v1566_v59  ;;  %v430_v8 = vadd.f32 %v1867_v17, %v393_v7  ;;  %v2053_v59 = vld [vmem:[%s2048_s11 + $0x20] sm:$0xff] }
  0x99   : > { %v383_v9 = vpop.permute.xlu0 %382 }
  0x9a   : > { %562 = vmax.xlane.f32.xlu2 %v561_v5  ;;  %v426_v12 = vadd.f32 %v1867_v17, %v383_v9  ;;  %v427_v13 = vadd.f32 %v1869_v18, %v383_v9  ;;  %v338_v19 = vpop.permute.xlu1 %337  ;;  %v470_v5 = vmul.f32 0.2, %v406_v62  ;;  %v468_v9 = vmul.f32 0.2, %v404_v1 }
  0x9b   : > { %v408_v21 = vadd.f32 %v1867_v17, %v338_v19  ;;  %v409_v22 = vadd.f32 %v1869_v18, %v338_v19  ;;  %vm462_vm10 = vcmp.gt.f32.partialorder %v430_v8, 0.0 }
  0x9c   : > { %v490_v15 = vmul.f32 0.2, %v426_v12  ;;  %v491_v16 = vmul.f32 0.2, %v427_v13  ;;  %vm458_vm14 = vcmp.gt.f32.partialorder %v426_v12, 0.0  ;;  %vm459_vm15 = vcmp.gt.f32.partialorder %v427_v13, 0.0 }
  0x9d   : > { %v472_v28 = vmul.f32 0.2, %v408_v21  ;;  %v473_v29 = vmul.f32 0.2, %v409_v22  ;;  %vm440_vm0 = vcmp.gt.f32.partialorder %v408_v21, 0.0  ;;  %vm441_vm1 = vcmp.gt.f32.partialorder %v409_v22, 0.0 }
  0x9e   : > { %v1938_v23 = vsel %vm458_vm14, %v426_v12, %v490_v15  ;;  %v1940_v24 = vsel %vm459_vm15, %v427_v13, %v491_v16  ;;  %v469_v12 = vmul.f32 0.2, %v405_v2  ;;  %v1987_v13 = vsel %vm438_vm6, %v406_v62, %v470_v5 }
  0x9f   : > { %v567_v27 = vmax.f32 %v1938_v23, %v1940_v24  ;;  %v1947_v32 = vsel %vm440_vm0, %v408_v21, %v472_v28  ;;  %v1949_v36 = vsel %vm441_vm1, %v409_v22, %v473_v29  ;;  %v431_v15 = vadd.f32 %v1869_v18, %v393_v7  ;;  %v1565_v28 = vld [vmem:[%s2488_s1 + $0x28] sm:$0xff] }
  0xa0   : > { %v540_v40 = vmax.f32 %v1947_v32, %v1949_v36  ;;  %v1995_v16 = vsel %vm436_vm8, %v404_v1, %v468_v9  ;;  %v1997_v19 = vsel %vm437_vm9, %v405_v2, %v469_v12  ;;  %v1573_v29 = vld [vmem:[%s2488_s1 + $0x68] sm:$0xff]  ;;  %930 = vmatpush.bf16.msra.mxu0 %v1565_v28  ;;  %1578 = vmatpush.bf16.msra.mxu2 %v1565_v28 }
  0xa1   : > { %v495_v21 = vmul.f32 0.2, %v431_v15  ;;  %v534_v22 = vmax.f32 %v1995_v16, %v1997_v19  ;;  %vm463_vm11 = vcmp.gt.f32.partialorder %v431_v15, 0.0  ;;  %979 = vmatpush.bf16.msra.mxu1 %v1573_v29  ;;  %1586 = vmatpush.bf16.msra.mxu3 %v1573_v29  ;;  %v2061_v1 = vld [vmem:[%s2048_s11 + $0x28] sm:$0xff] }
  0xa2   : > { %565 = vmax.xlane.f32.xlu2 %v564_v14  ;;  %v1989_v14 = vsel %vm439_vm7, %v407_v63, %v471_v6  ;;  %v2058_v63 = vld [vmem:[%s2048_s11] sm:$0xff]  ;;  %v2064_v9 = vld [vmem:[%s2048_s11 + $0x8] sm:$0xff]  ;;  %v251_v12 = vunpack.c.0.s8 %v2061_v1 }
  0xa3   : > { %v537_v0 = vmax.f32 %v1987_v13, %v1989_v14 }
  0xa4   : > { %931 = vmatpush.bf16.msra.mxu0 %v1564_v30  ;;  %1579 = vmatpush.bf16.msra.mxu2 %v1564_v30 }
  0xa5   : > { %980 = vmatpush.bf16.msra.mxu1 %v1572_v31  ;;  %1587 = vmatpush.bf16.msra.mxu3 %v1572_v31 }
  0xa6   : > { %352 = vperm.xlu0 %1601, %v305_v20   ;;  %v494_v20 = vmul.f32 0.2, %v430_v8 }
  0xa8   : > { %v2001_v25 = vsel %vm462_vm10, %v430_v8, %v494_v20  ;;  %932 = vmatpush.bf16.msra.mxu0 %v1563_v37  ;;  %1580 = vmatpush.bf16.msra.mxu2 %v1563_v37 }
  0xa9   : > { %981 = vmatpush.bf16.msra.mxu1 %v1571_v39  ;;  %1588 = vmatpush.bf16.msra.mxu3 %v1571_v39 }
  0xaa   : > { %568 = vmax.xlane.f32.xlu2 %v567_v27  ;;  %347 = vperm.xlu1 %1602, %v304_v26   ;;  %v2003_v26 = vsel %vm463_vm11, %v431_v15, %v495_v21 }
  0xab   : > { %v573_v27 = vmax.f32 %v2001_v25, %v2003_v26 }
  0xad   : > { %982 = vmatpush.bf16.msra.mxu1 %v1570_v41  ;;  %1589 = vmatpush.bf16.msra.mxu3 %v1570_v41  ;;  %v252_v41 = vunpack.c.1.s8 %v2053_v59 }
  0xb1   : > { %983 = vmatpush.bf16.msra.mxu1 %v1569_v45  ;;  %1590 = vmatpush.bf16.msra.mxu3 %v1569_v45 }
  0xb2   : > { %541 = vmax.xlane.f32.xlu2 %v540_v40  ;;  %v1562_v40 = vld [vmem:[%s2488_s1 + $0x10] sm:$0xff] }
  0xb3   : > { %933 = vmatpush.bf16.msra.mxu0 %v1562_v40  ;;  %1581 = vmatpush.bf16.msra.mxu2 %v1562_v40 }
  0xb5   : > { %984 = vmatpush.bf16.msra.mxu1 %v1568_v49  ;;  %1591 = vmatpush.bf16.msra.mxu3 %v1568_v49 }
  0xb7   : > { %934 = vmatpush.bf16.msra.mxu0 %v1561_v44  ;;  %1582 = vmatpush.bf16.msra.mxu2 %v1561_v44 }
  0xba   : > { %544 = vmax.xlane.f32.xlu2 %v543_v48  ;;  %v1560_v48 = vld [vmem:[%s2488_s1] sm:$0xff] }
  0xbb   : > { %935 = vmatpush.bf16.msra.mxu0 %v1560_v48  ;;  %1583 = vmatpush.bf16.msra.mxu2 %v1560_v48 }
  0xc2   : > { %571 = vmax.xlane.f32.xlu2 %v570_v58 }
  0xd0   : > { %538 = vmax.xlane.f32.xlu0 %v537_v0 }
  0xd4   : > { %535 = vmax.xlane.f32.xlu1 %v534_v22 }
  0xdc   : > { %574 = vmax.xlane.f32.xlu1 %v573_v27  ;;  %v283_v27 = vcvt.s32.f32 %v251_v12 }
  0xfc   : > { %v554_v50 = vpop.xlane.xlu0 %553 }
  0xfd   : > { %v592_v53 = vsub.f32 %v1877_v33, %v554_v50  ;;  %v593_v54 = vsub.f32 %v1879_v34, %v554_v50  ;;  %v530_v58 = vpop.xlane.xlu2 %529  ;;  %v250_v33 = vunpack.c.0.s8 %v2053_v59  ;;  %v234_v34 = vunpack.c.0.s8 %v2058_v63 }
  0xfe   : > { %v576_v60 = vsub.f32 %v1881_v35, %v530_v58  ;;  %v577_v62 = vsub.f32 %v1885_v38, %v530_v58  ;;  %v235_v35 = vunpack.c.0.s8 %v2064_v9 }
  0xff   : > { %v640_v2 = vmul.f32 1.442695, %v592_v53  ;;  %v642_v5 = vmul.f32 1.442695, %v593_v54  ;;  %v282_v8 = vcvt.s32.f32 %v250_v33  ;;  %v266_v22 = vcvt.s32.f32 %v234_v34 }
 0x100   : > { %v608_v6 = vmul.f32 1.442695, %v576_v60  ;;  %v610_v7 = vmul.f32 1.442695, %v577_v62  ;;  %v267_v40 = vcvt.s32.f32 %v235_v35  ;;  %v255_v54 = vunpack.c.2.s8 %v2061_v1 }
 0x101   : > { %1604 = vpow2.f32 %v640_v2  ;;  %v236_v60 = vunpack.c.1.s8 %v2058_v63  ;;  %v284_v2 = vcvt.s32.f32 %v252_v41  ;;  %v253_v33 = vunpack.c.1.s8 %v2061_v1 }
 0x102   : > { %1606 = vpow2.f32 %v642_v5  ;;  %v237_v5 = vunpack.c.1.s8 %v2064_v9 }
 0x103   : > { %1608 = vpow2.f32 %v608_v6 }
 0x104   : > { %1610 = vpow2.f32 %v610_v7  ;;  %v557_v38 = vpop.xlane.xlu1 %556 }
 0x105   : > { %v560_v15 = vpop.xlane.xlu2 %559  ;;  %v533_v0 = vpop.xlane.xlu0 %532  ;;  %v594_v20 = vsub.f32 %v1903_v55, %v557_v38  ;;  %v595_v21 = vsub.f32 %v1905_v56, %v557_v38  ;;  %v287_v38 = vcvt.s32.f32 %v255_v54  ;;  %v2112_v54 = vld [vmem:[%s2048_s11 + $0x38] sm:$0xff] }
 0x106   : > { %v596_v28 = vsub.f32 %v1890_v42, %v560_v15  ;;  %v597_v29 = vsub.f32 %v1893_v43, %v560_v15  ;;  %v578_v30 = vsub.f32 %v1907_v57, %v533_v0  ;;  %v579_v31 = vsub.f32 %v1911_v61, %v533_v0 }
 0x107   : > { %v1605_v37 = vpop.eup %1604  ;;  %v644_v39 = vmul.f32 1.442695, %v594_v20  ;;  %v254_v43 = vunpack.c.2.s8 %v2053_v59  ;;  %v646_v61 = vmul.f32 1.442695, %v595_v21  ;;  %v268_v15 = vcvt.s32.f32 %v236_v60 }
 0x108   : > { %v1607_v44 = vpop.eup %1606  ;;  %v648_v45 = vmul.f32 1.442695, %v596_v28  ;;  %v650_v55 = vmul.f32 1.442695, %v597_v29  ;;  %v612_v48 = vmul.f32 1.442695, %v578_v30  ;;  %v688_v56 = vmul.f32 %v1605_v37, %v282_v8 }
 0x109   : > { %v1609_v49 = vpop.eup %1608  ;;  %v614_v50 = vmul.f32 1.442695, %v579_v31  ;;  %1612 = vpow2.f32 %v644_v39  ;;  %v2077_v42 = vmul.f32 %v1607_v44, %v283_v27  ;;  %v286_v34 = vcvt.s32.f32 %v254_v43 }
 0x10a   : > { %v1611_v57 = vpop.eup %1610  ;;  %1614 = vpow2.f32 %v648_v45  ;;  %v672_v53 = vmul.f32 %v1609_v49, %v266_v22  ;;  %v269_v27 = vcvt.s32.f32 %v237_v5  ;;  %v285_v29 = vcvt.s32.f32 %v253_v33 }
 0x10b   : > { %1616 = vpow2.f32 %v650_v55  ;;  %v673_v58 = vmul.f32 %v1611_v57, %v267_v40  ;;  %v2083_v62 = vadd.f32 %v2077_v42, %v688_v56  ;;  %v256_v40 = vunpack.c.3.s8 %v2053_v59 }
 0x10c   : > { %1618 = vpow2.f32 %v612_v48  ;;  %v257_v45 = vunpack.c.3.s8 %v2061_v1 }
 0x10d   : > { %1620 = vpow2.f32 %v614_v50  ;;  %v563_v6 = vpop.xlane.xlu2 %562  ;;  %v704_v7 = vadd.f32 %v673_v58, %v672_v53  ;;  %v2105_v50 = vld [vmem:[%s2048_s11 + $0x30] sm:$0xff]  ;;  %v288_v1 = vcvt.s32.f32 %v256_v40 }
 0x10e   : > { %1622 = vpow2.f32 %v646_v61  ;;  %v598_v12 = vsub.f32 %v1919_v3, %v563_v6  ;;  %v599_v35 = vsub.f32 %v1921_v4, %v563_v6 }
 0x10f   : > { %v1613_v8 = vpop.eup %1612  ;;  %705 = vadd.xlane.f32.xlu1 %v704_v7  ;;  %v289_v7 = vcvt.s32.f32 %v257_v45 }
 0x110   : > { %v1615_v0 = vpop.eup %1614  ;;  %v652_v20 = vmul.f32 1.442695, %v598_v12  ;;  %v654_v21 = vmul.f32 1.442695, %v599_v35  ;;  %v690_v22 = vmul.f32 %v1613_v8, %v284_v2 }
 0x111   : > { %v1617_v28 = vpop.eup %1616  ;;  %v2089_v30 = vmul.f32 %v1615_v0, %v286_v34 }
 0x112   : > { %v1619_v31 = vpop.eup %1618  ;;  %1624 = vpow2.f32 %v652_v20  ;;  %v824_v37 = vpack.c.bf16 %v690_v22, %v688_v56  ;;  %v2091_v3 = vmul.f32 %v1617_v28, %v287_v38 }
 0x113   : > { %v1621_v4 = vpop.eup %1620  ;;  %1626 = vpow2.f32 %v654_v21  ;;  %v2093_v39 = vmul.f32 %v1619_v31, %v268_v15 }
 0x114   : > { %v1623_v41 = vpop.eup %1622  ;;  %956 = vmatmul.bf16.vlgmr.msra.gmra.mxu2 %v824_v37  ;;  %v2096_v44 = vmul.f32 %v1621_v4, %v269_v27  ;;  %v2101_v55 = vadd.f32 %v2091_v3, %v2089_v30 }
 0x115   : > { %v566_v48 = vpop.xlane.xlu2 %565  ;;  %v816_v56 = vpack.c.bf16 %v2093_v39, %v672_v53  ;;  %v691_v49 = vmul.f32 %v1623_v41, %v285_v29 }
 0x116   : > { %v600_v43 = vsub.f32 %v1927_v10, %v566_v48  ;;  %v601_v59 = vsub.f32 %v1929_v11, %v566_v48  ;;  %v817_v57 = vpack.c.bf16 %v2096_v44, %v673_v58  ;;  %v258_v10 = vunpack.c.0.s8 %v2105_v50 }
 0x117   : > { %936 = vmatmul.bf16.vlgmr.msra.gmra.mxu0 %v816_v56  ;;  %v825_v61 = vpack.c.bf16 %v691_v49, %v2077_v42  ;;  %v2114_v60 = vadd.f32 %v691_v49, %v690_v22  ;;  %v259_v42 = vunpack.c.0.s8 %v2112_v54 }
 0x118   : > { %v1625_v2 = vpop.eup %1624  ;;  %v656_v5 = vmul.f32 1.442695, %v600_v43  ;;  %v658_v53 = vmul.f32 1.442695, %v601_v59  ;;  %985 = vmatmul.bf16.vlgmr.msra.gmra.mxu1 %v817_v57  ;;  %v353_v6 = vpop.permute.xlu0 %352  ;;  %v290_v15 = vcvt.s32.f32 %v258_v10  ;;  %v261_v43 = vunpack.c.1.s8 %v2112_v54  ;;  %v2146_v10 = vld [vmem:[%s2048_s11 + $0x10] sm:$0xff] }
 0x119   : > { %v1627_v33 = vpop.eup %1626  ;;  %1005 = vmatmul.bf16.vlgmr.msra.gmra.mxu3 %v825_v61  ;;  %v414_v11 = vadd.f32 %v1867_v17, %v353_v6  ;;  %v415_v58 = vadd.f32 %v1869_v18, %v353_v6  ;;  %v694_v38 = vmul.f32 %v1625_v2, %v288_v1  ;;  %v291_v37 = vcvt.s32.f32 %v259_v42 }
 0x11a   : > { %1628 = vpow2.f32 %v656_v5  ;;  %v695_v8 = vmul.f32 %v1627_v33, %v289_v7  ;;  %v293_v7 = vcvt.s32.f32 %v261_v43 }
 0x11b   : > { %1630 = vpow2.f32 %v658_v53  ;;  %v478_v34 = vmul.f32 0.2, %v414_v11  ;;  %v479_v12 = vmul.f32 0.2, %v415_v58  ;;  %vm446_vm12 = vcmp.gt.f32.partialorder %v414_v11, 0.0 }
 0x11c   : > { %v348_v35 = vpop.permute.xlu1 %347  ;;  %vm447_vm13 = vcmp.gt.f32.partialorder %v415_v58, 0.0  ;;  %v2131_v48 = vadd.f32 %v695_v8, %v694_v38  ;;  %v826_v57 = vpack.c.bf16 %v694_v38, %v2089_v30  ;;  %v827_v33 = vpack.c.bf16 %v695_v8, %v2091_v3 }
 0x11d   : > { %v569_v0 = vpop.xlane.xlu2 %568  ;;  %v412_v20 = vadd.f32 %v1867_v17, %v348_v35  ;;  %v413_v21 = vadd.f32 %v1869_v18, %v348_v35  ;;  %v2122_v22 = vsel %vm446_vm12, %v414_v11, %v478_v34  ;;  %v2124_v27 = vsel %vm447_vm13, %v415_v58, %v479_v12  ;;  %v2150_v11 = vld [vmem:[%s2048_s11 + $0x18] sm:$0xff] }
 0x11e   : > { %v602_v28 = vsub.f32 %v1938_v23, %v569_v0  ;;  %v603_v29 = vsub.f32 %v1940_v24, %v569_v0  ;;  %v549_v31 = vmax.f32 %v2122_v22, %v2124_v27  ;;  %v260_v18 = vunpack.c.1.s8 %v2105_v50 }
 0x11f   : > { %v476_v4 = vmul.f32 0.2, %v412_v20  ;;  %v477_v40 = vmul.f32 0.2, %v413_v21  ;;  %vm444_vm14 = vcmp.gt.f32.partialorder %v412_v20, 0.0  ;;  %vm445_vm15 = vcmp.gt.f32.partialorder %v413_v21, 0.0 }
 0x120   : > { %v1629_v41 = vpop.eup %1628  ;;  %v660_v17 = vmul.f32 1.442695, %v602_v28  ;;  %v662_v45 = vmul.f32 1.442695, %v603_v29  ;;  %550 = vmax.xlane.f32.xlu2 %v549_v31  ;;  %v292_v5 = vcvt.s32.f32 %v260_v18  ;;  %v242_v35 = vunpack.c.0.s8 %v2146_v10 }
 0x121   : > { %v1631_v56 = vpop.eup %1630  ;;  %v2133_v23 = vsel %vm444_vm14, %v412_v20, %v476_v4  ;;  %v2135_v24 = vsel %vm445_vm15, %v413_v21, %v477_v40  ;;  %v696_v49 = vmul.f32 %v1629_v41, %v290_v15  ;;  %v243_v38 = vunpack.c.0.s8 %v2150_v11 }
 0x122   : > { %1632 = vpow2.f32 %v660_v17  ;;  %v546_v59 = vmax.f32 %v2133_v23, %v2135_v24  ;;  %v697_v61 = vmul.f32 %v1631_v56, %v291_v37  ;;  %v274_v8 = vcvt.s32.f32 %v242_v35 }
 0x123   : > { %1634 = vpow2.f32 %v662_v45  ;;  %v275_v15 = vcvt.s32.f32 %v243_v38 }
 0x124   : > { %547 = vmax.xlane.f32.xlu0 %v546_v59  ;;  %961 = vmatmul.bf16.gmra.mxu2 %v826_v57  ;;  %v2141_v1 = vadd.f32 %v697_v61, %v696_v49  ;;  %v241_v57 = vunpack.c.3.s8 %v2064_v9 }
 0x125   : > { %v542_v2 = vpop.xlane.xlu2 %541 }
 0x126   : > { %v584_v53 = vsub.f32 %v1947_v32, %v542_v2  ;;  %v585_v6 = vsub.f32 %v1949_v36, %v542_v2  ;;  %v707_v32 = vadd.f32 %v2096_v44, %v2093_v39 }
 0x128   : > { %v1633_v30 = vpop.eup %1632  ;;  %v624_v58 = vmul.f32 1.442695, %v584_v53  ;;  %v626_v42 = vmul.f32 1.442695, %v585_v6  ;;  %v238_v6 = vunpack.c.2.s8 %v2058_v63 }
 0x129   : > { %v1635_v34 = vpop.eup %1634  ;;  %1010 = vmatmul.bf16.gmra.mxu3 %v827_v33  ;;  %v698_v12 = vmul.f32 %v1633_v30, %v292_v5 }
 0x12a   : > { %1636 = vpow2.f32 %v624_v58  ;;  %v699_v36 = vmul.f32 %v1635_v34, %v293_v7  ;;  %v273_v7 = vcvt.s32.f32 %v241_v57  ;;  %v270_v34 = vcvt.s32.f32 %v238_v6 }
 0x12b   : > { %1638 = vpow2.f32 %v626_v42  ;;  %v828_v28 = vpack.c.bf16 %v698_v12, %v696_v49  ;;  %v240_v49 = vunpack.c.3.s8 %v2058_v63 }
 0x12c   : > { %708 = vadd.xlane.f32.xlu0 %v707_v32  ;;  %v2156_v3 = vadd.f32 %v699_v36, %v698_v12  ;;  %v829_v44 = vpack.c.bf16 %v699_v36, %v697_v61  ;;  %v244_v32 = vunpack.c.1.s8 %v2146_v10 }
 0x12d   : > { %v545_v31 = vpop.xlane.xlu2 %544  ;;  %v272_v53 = vcvt.s32.f32 %v240_v49 }
 0x12e   : > { %v586_v45 = vsub.f32 %v1955_v46, %v545_v31  ;;  %v587_v61 = vsub.f32 %v1957_v47, %v545_v31 }
 0x130   : > { %v1637_v0 = vpop.eup %1636  ;;  %v628_v5 = vmul.f32 1.442695, %v586_v45 }
 0x131   : > { %v1639_v20 = vpop.eup %1638  ;;  %v2158_v21 = vmul.f32 %v1637_v0, %v274_v8 }
 0x132   : > { %v2160_v29 = vmul.f32 %v1639_v20, %v275_v15 }
 0x134   : > { %966 = vmatmul.bf16.gmra.mxu2 %v828_v28  ;;  %v716_v39 = vadd.f32 %v2160_v29, %v2158_v21  ;;  %v262_v28 = vunpack.c.2.s8 %v2105_v50 }
 0x135   : > { %v572_v18 = vpop.xlane.xlu2 %571 }
 0x136   : > { %717 = vadd.xlane.f32.xlu0 %v716_v39  ;;  %v605_v46 = vsub.f32 %v1963_v52, %v572_v18  ;;  %v263_v39 = vunpack.c.2.s8 %v2112_v54 }
 0x138   : > { %v666_v58 = vmul.f32 1.442695, %v605_v46 }
 0x139   : > { %1015 = vmatmul.bf16.gmra.mxu3 %v829_v44  ;;  %v265_v44 = vunpack.c.3.s8 %v2112_v54 }
 0x143   : > { %v539_v37 = vpop.xlane.xlu0 %538 }
 0x144   : > { %v582_v4 = vsub.f32 %v1987_v13, %v539_v37  ;;  %v583_v40 = vsub.f32 %v1989_v14, %v539_v37  ;;  %v604_v13 = vsub.f32 %v1961_v51, %v572_v18  ;;  %v294_v18 = vcvt.s32.f32 %v262_v28 }
 0x146   : > { %v620_v41 = vmul.f32 1.442695, %v582_v4  ;;  %v622_v17 = vmul.f32 1.442695, %v583_v40  ;;  %v664_v30 = vmul.f32 1.442695, %v604_v13 }
 0x147   : > { %v536_v56 = vpop.xlane.xlu1 %535 }
 0x148   : > { %1640 = vpow2.f32 %v620_v41  ;;  %v580_v43 = vsub.f32 %v1995_v16, %v536_v56  ;;  %v581_v59 = vsub.f32 %v1997_v19, %v536_v56  ;;  %v239_v16 = vunpack.c.2.s8 %v2064_v9 }
 0x149   : > { %1642 = vpow2.f32 %v622_v17  ;;  %v630_v19 = vmul.f32 1.442695, %v587_v61  ;;  %v245_v9 = vunpack.c.1.s8 %v2150_v11  ;;  %v276_v41 = vcvt.s32.f32 %v244_v32 }
 0x14a   : > { %v616_v14 = vmul.f32 1.442695, %v580_v43  ;;  %v618_v2 = vmul.f32 1.442695, %v581_v59  ;;  %v271_v63 = vcvt.s32.f32 %v239_v16  ;;  %v297_v43 = vcvt.s32.f32 %v265_v44 }
 0x14b   : > { %v277_v17 = vcvt.s32.f32 %v245_v9 }
 0x14c   : > { %1644 = vpow2.f32 %v616_v14 }
 0x14d   : > { %1646 = vpow2.f32 %v618_v2 }
 0x14e   : > { %v1641_v33 = vpop.eup %1640  ;;  %1648 = vpow2.f32 %v628_v5 }
 0x14f   : > { %v1643_v47 = vpop.eup %1642  ;;  %v575_v51 = vpop.xlane.xlu1 %574  ;;  %v678_v42 = vmul.f32 %v1641_v33, %v272_v53  ;;  %1650 = vpow2.f32 %v630_v19 }
 0x150   : > { %v606_v12 = vsub.f32 %v2001_v25, %v575_v51  ;;  %v607_v52 = vsub.f32 %v2003_v26, %v575_v51  ;;  %v679_v35 = vmul.f32 %v1643_v47, %v273_v7  ;;  %1652 = vpow2.f32 %v664_v30 }
 0x151   : > { %1654 = vpow2.f32 %v666_v58  ;;  %v264_v25 = vunpack.c.3.s8 %v2105_v50  ;;  %v295_v50 = vcvt.s32.f32 %v263_v39  ;;  %v247_v39 = vunpack.c.2.s8 %v2150_v11 }
 0x152   : > { %v1645_v36 = vpop.eup %1644  ;;  %v668_v38 = vmul.f32 1.442695, %v606_v12  ;;  %v670_v8 = vmul.f32 1.442695, %v607_v52  ;;  %v713_v15 = vadd.f32 %v679_v35, %v678_v42  ;;  %v1074_v52 = vlaneseq }
 0x153   : > { %v1647_v0 = vpop.eup %1646  ;;  %v676_v20 = vmul.f32 %v1645_v36, %v270_v34  ;;  %v296_v56 = vcvt.s32.f32 %v264_v25 }
 0x154   : > { %1656 = vpow2.f32 %v668_v38  ;;  %714 = vadd.xlane.f32.xlu1 %v713_v15  ;;  %v677_v26 = vmul.f32 %v1647_v0, %v271_v63  ;;  %v1649_v31 = vpop.eup %1648 }
 0x155   : > { %1658 = vpow2.f32 %v670_v8  ;;  %v818_v37 = vpack.c.bf16 %v678_v42, %v676_v20  ;;  %v1651_v45 = vpop.eup %1650  ;;  %v682_v61 = vmul.f32 %v1649_v31, %v276_v41 }
 0x156   : > { %v819_v4 = vpack.c.bf16 %v679_v35, %v677_v26  ;;  %v710_v40 = vadd.f32 %v677_v26, %v676_v20  ;;  %v1653_v49 = vpop.eup %1652  ;;  %v683_v54 = vmul.f32 %v1651_v45, %v277_v17  ;;  %v246_v20 = vunpack.c.2.s8 %v2146_v10 }
 0x157   : > { %941 = vmatmul.bf16.gmra.mxu0 %v818_v37  ;;  %v1655_v59 = vpop.eup %1654  ;;  %v700_v14 = vmul.f32 %v1653_v49, %v294_v18  ;;  %v820_v19 = vpack.c.bf16 %v682_v61, %v2158_v21  ;;  %v279_v17 = vcvt.s32.f32 %v247_v39 }
 0x158   : > { %990 = vmatmul.bf16.gmra.mxu1 %v819_v4  ;;  %711 = vadd.xlane.f32.xlu2 %v710_v40  ;;  %v701_v5 = vmul.f32 %v1655_v59, %v295_v50  ;;  %v719_v7 = vadd.f32 %v683_v54, %v682_v61  ;;  %v821_v33 = vpack.c.bf16 %v683_v54, %v2160_v29  ;;  %v278_v4 = vcvt.s32.f32 %v246_v20 }
 0x15a   : > { %v1657_v57 = vpop.eup %1656  ;;  %v746_v30 = vadd.f32 %v701_v5, %v700_v14 }
 0x15b   : > { %v1659_v13 = vpop.eup %1658  ;;  %v702_v2 = vmul.f32 %v1657_v57, %v296_v56 }
 0x15c   : > { %v703_v46 = vmul.f32 %v1659_v13, %v297_v43 }
 0x15d   : > { %v830_v53 = vpack.c.bf16 %v702_v2, %v700_v14 }
 0x15e   : > { %v831_v6 = vpack.c.bf16 %v703_v46, %v701_v5  ;;  %v2184_v16 = vadd.f32 %v703_v46, %v702_v2 }
 0x15f   : > { %971 = vmatmul.bf16.gmra.mxu2 %v830_v53 }
 0x160   : > { %1020 = vmatmul.bf16.gmra.mxu3 %v831_v6  ;;  %720 = vadd.xlane.f32.xlu2 %v719_v7 }
 0x167   : > { %946 = vmatmul.bf16.gmra.mxu0 %v820_v19 }
 0x168   : > { %995 = vmatmul.bf16.gmra.mxu1 %v821_v33  ;;  %729 = vadd.xlane.f32.xlu2 %v2083_v62  ;;  %v248_v62 = vunpack.c.3.s8 %v2146_v10 }
 0x16a   : > { %v280_v0 = vcvt.s32.f32 %v248_v62 }
 0x170   : > { %738 = vadd.xlane.f32.xlu2 %v2131_v48  ;;  %v249_v48 = vunpack.c.3.s8 %v2150_v11 }
 0x172   : > { %v281_v26 = vcvt.s32.f32 %v249_v48 }
 0x178   : > { %747 = vadd.xlane.f32.xlu2 %v746_v30 }
 0x182   : > { %v706_v47 = vpop.xlane.xlu1 %705 }
 0x183   : > { %v752_v58 = vmax.f32 %v706_v47, 1e-30 }
 0x185   : > { %1660 = vrcp.f32 %v752_v58 }
 0x18b   : > { %v1661_v15 = vpop.eup %1660 }
 0x193   : > { %v551_v51 = vpop.xlane.xlu2 %550 }
 0x194   : > { %v590_v42 = vsub.f32 %v2122_v22, %v551_v51  ;;  %v591_v34 = vsub.f32 %v2124_v27, %v551_v51  ;;  %v937_v12 = vpop.f32.mrf.mxu0  ;;  %v2198_v27 = vand.u32 127, %v1074_v52 }
 0x195   : > { %v986_v21 = vpop.f32.mrf.mxu1 }
 0x196   : > { %v636_v29 = vmul.f32 1.442695, %v590_v42  ;;  %v638_v35 = vmul.f32 1.442695, %v591_v34  ;;  %v987_v9 = vadd.f32 %v986_v21, %v937_v12  ;;  %vm1076_vm0 = vcmp.lt.s32.totalorder %v2198_v27, 7 }
 0x197   : > { %v548_v63 = vpop.xlane.xlu0 %547  ;;  %v2192_v32 = vpop.f32.mrf.mxu2 }
 0x198   : > { %1662 = vpow2.f32 %v636_v29  ;;  %v588_v36 = vsub.f32 %v2133_v23, %v548_v63  ;;  %v589_v22 = vsub.f32 %v2135_v24, %v548_v63  ;;  %v1026_v28 = vmul.f32 %v1661_v15, %v987_v9 }
 0x199   : > { %1664 = vpow2.f32 %v638_v35 }
 0x19a   : > { %v632_v38 = vmul.f32 1.442695, %v588_v36  ;;  %v634_v8 = vmul.f32 1.442695, %v589_v22  ;;  %v1077_v10 = vsel %vm1076_vm0, %v1026_v28, 0.0 }
 0x19b   : > { %v1109_v50 = vmin.f32 %v1077_v10, 0.0  ;;  %vm1093_vm1 = vcmp.gt.f32.partialorder %v1077_v10, 0.0 }
 0x19c   : > { %1666 = vpow2.f32 %v632_v38  ;;  %v2201_v25 = vpop.f32.mrf.mxu3  ;;  %v939_v11 = vpop.f32.mrf.mxu0 }
 0x19d   : > { %1668 = vpow2.f32 %v634_v8  ;;  %v988_v43 = vpop.f32.mrf.mxu1  ;;  %v1125_v46 = vmul.f32 1.442695, %v1109_v50 }
 0x19e   : > { %v1663_v23 = vpop.eup %1662  ;;  %v989_v2 = vadd.f32 %v988_v43, %v939_v11 }
 0x19f   : > { %v1665_v24 = vpop.eup %1664  ;;  %v959_v44 = vpop.f32.mrf.mxu2  ;;  %v686_v37 = vmul.f32 %v1663_v23, %v280_v0 }
 0x1a0   : > { %v709_v31 = vpop.xlane.xlu0 %708  ;;  %v687_v41 = vmul.f32 %v1665_v24, %v281_v26 }
 0x1a1   : > { %v753_v40 = vmax.f32 %v709_v31, 1e-30 }
 0x1a2   : > { %v1667_v45 = vpop.eup %1666  ;;  %v725_v18 = vadd.f32 %v687_v41, %v686_v37 }
 0x1a3   : > { %1670 = vrcp.f32 %v753_v40  ;;  %v1669_v56 = vpop.eup %1668  ;;  %v684_v49 = vmul.f32 %v1667_v45, %v278_v4 }
 0x1a4   : > { %v1008_v59 = vpop.f32.mrf.mxu3  ;;  %726 = vadd.xlane.f32.xlu0 %v725_v18  ;;  %v685_v57 = vmul.f32 %v1669_v56, %v279_v17  ;;  %1672 = vpow2.f32 %v1125_v46 }
 0x1a5   : > { %v2207_v61 = vadd.f32 %v1008_v59, %v959_v44  ;;  %v822_v54 = vpack.c.bf16 %v686_v37, %v684_v49  ;;  %v1007_v44 = vadd.f32 %v2201_v25, %v2192_v32 }
 0x1a6   : > { %v823_v13 = vpack.c.bf16 %v687_v41, %v685_v57  ;;  %v722_v14 = vadd.f32 %v685_v57, %v684_v49 }
 0x1a7   : > { %v962_v5 = vpop.f32.mrf.mxu2  ;;  %951 = vmatmul.bf16.gmra.mxu0 %v822_v54 }
 0x1a8   : > { %1000 = vmatmul.bf16.gmra.mxu1 %v823_v13  ;;  %723 = vadd.xlane.f32.xlu1 %v722_v14 }
 0x1a9   : > { %v1671_v53 = vpop.eup %1670 }
 0x1aa   : > { %v1027_v6 = vmul.f32 %v1671_v53, %v989_v2  ;;  %v1673_v51 = vpop.eup %1672 }
 0x1ab   : > { %v1541_v34 = vadd.f32 -1.0, %v1673_v51 }
 0x1ac   : > { %v1078_v7 = vsel %vm1076_vm0, %v1027_v6, 0.0  ;;  %v1011_v19 = vpop.f32.mrf.mxu3  ;;  %735 = vadd.xlane.f32.xlu0 %v2101_v55 }
 0x1ad   : > { %v1110_v33 = vmin.f32 %v1078_v7, 0.0  ;;  %v2212_v30 = vadd.f32 %v1011_v19, %v962_v5  ;;  %v1173_v55 = vsel %vm1093_vm1, %v1077_v10, %v1541_v34  ;;  %vm1094_vm2 = vcmp.gt.f32.partialorder %v1078_v7, 0.0 }
 0x1af   : > { %v1127_v47 = vmul.f32 1.442695, %v1110_v33  ;;  %v964_v58 = vpop.f32.mrf.mxu2 }
 0x1b0   : > { %732 = vadd.xlane.f32.xlu1 %v2114_v60  ;;  %v2223_v60 = vsel %vm1076_vm0, %v1173_v55, -9e+15 }
 0x1b1   : > { %1674 = vpow2.f32 %v1127_v47 }
 0x1b4   : > { %v1013_v42 = vpop.f32.mrf.mxu3  ;;  %744 = vadd.xlane.f32.xlu0 %v2156_v3 }
 0x1b5   : > { %v1014_v50 = vadd.f32 %v1013_v42, %v964_v58 }
 0x1b7   : > { %v1675_v12 = vpop.eup %1674  ;;  %v967_v52 = vpop.f32.mrf.mxu2 }
 0x1b8   : > { %v1542_v21 = vadd.f32 -1.0, %v1675_v12  ;;  %741 = vadd.xlane.f32.xlu1 %v2141_v1 }
 0x1ba   : > { %v1174_v29 = vsel %vm1094_vm2, %v1078_v7, %v1542_v21 }
 0x1bb   : > { %v2219_v35 = vsel %vm1076_vm0, %v1174_v29, -9e+15 }
 0x1bc   : > { %1207 = vmax.xlane.f32.xlu2 %v2219_v35  ;;  %v1016_v3 = vpop.f32.mrf.mxu3  ;;  %1205 = vmax.xlane.f32.xlu0 %v2223_v60 }
 0x1bd   : > { %v2227_v63 = vadd.f32 %v1016_v3, %v967_v52 }
 0x1bf   : > { %v969_v1 = vpop.f32.mrf.mxu2 }
 0x1c0   : > { %750 = vadd.xlane.f32.xlu1 %v2184_v16 }
 0x1c4   : > { %v1018_v62 = vpop.f32.mrf.mxu3 }
 0x1c5   : > { %v2230_v48 = vadd.f32 %v1018_v62, %v969_v1 }
 0x1cb   : > { %v712_v9 = vpop.xlane.xlu2 %711 }
 0x1cc   : > { %v754_v36 = vmax.f32 %v712_v9, 1e-30 }
 0x1ce   : > { %1676 = vrcp.f32 %v754_v36 }
 0x1d3   : > { %v721_v22 = vpop.xlane.xlu2 %720 }
 0x1d4   : > { %v942_v38 = vpop.f32.mrf.mxu0  ;;  %v1677_v26 = vpop.eup %1676  ;;  %v757_v41 = vmax.f32 %v721_v22, 1e-30 }
 0x1d5   : > { %v991_v8 = vpop.f32.mrf.mxu1 }
 0x1d6   : > { %v992_v15 = vadd.f32 %v991_v8, %v942_v38 }
 0x1d8   : > { %v1028_v23 = vmul.f32 %v1677_v26, %v992_v15 }
 0x1da   : > { %v1079_v16 = vsel %vm1076_vm0, %v1028_v23, 0.0  ;;  %v718_v23 = vpop.xlane.xlu0 %717 }
 0x1db   : > { %v730_v0 = vpop.xlane.xlu2 %729  ;;  %v1111_v45 = vmin.f32 %v1079_v16, 0.0  ;;  %vm1095_vm4 = vcmp.gt.f32.partialorder %v1079_v16, 0.0 }
 0x1dc   : > { %v760_v20 = vmax.f32 %v730_v0, 1e-30  ;;  %v944_v28 = vpop.f32.mrf.mxu0 }
 0x1dd   : > { %v993_v39 = vpop.f32.mrf.mxu1  ;;  %v1129_v11 = vmul.f32 1.442695, %v1111_v45 }
 0x1de   : > { %1678 = vrcp.f32 %v760_v20  ;;  %v2232_v24 = vadd.f32 %v993_v39, %v944_v28 }
 0x1e2   : > { %v972_v6 = vpop.f32.mrf.mxu2 }
 0x1e3   : > { %v739_v31 = vpop.xlane.xlu2 %738  ;;  %v1021_v7 = vpop.f32.mrf.mxu3 }
 0x1e4   : > { %v1679_v37 = vpop.eup %1678  ;;  %v763_v4 = vmax.f32 %v739_v31, 1e-30  ;;  %v2238_v40 = vpop.f32.mrf.mxu0  ;;  %v1022_v42 = vadd.f32 %v1021_v7, %v972_v6 }
 0x1e5   : > { %v1034_v17 = vmul.f32 %v1679_v37, %v1007_v44  ;;  %v2240_v10 = vpop.f32.mrf.mxu1  ;;  %v715_v44 = vpop.xlane.xlu1 %714 }
 0x1e6   : > { %1680 = vrcp.f32 %v763_v4 }
 0x1e7   : > { %v1085_v18 = vsel %vm1076_vm0, %v1034_v17, 0.0  ;;  %1682 = vrcp.f32 %v757_v41  ;;  %v756_v41 = vmax.f32 %v718_v23, 1e-30  ;;  %v755_v17 = vmax.f32 %v715_v44, 1e-30 }
 0x1e8   : > { %v1117_v56 = vmin.f32 %v1085_v18, 0.0  ;;  %vm1101_vm3 = vcmp.gt.f32.partialorder %v1085_v18, 0.0 }
 0x1ea   : > { %v1141_v49 = vmul.f32 1.442695, %v1117_v56 }
 0x1eb   : > { %v748_v32 = vpop.xlane.xlu2 %747 }
 0x1ec   : > { %v1681_v25 = vpop.eup %1680  ;;  %v766_v43 = vmax.f32 %v748_v32, 1e-30  ;;  %v949_v59 = vpop.f32.mrf.mxu0  ;;  %1684 = vpow2.f32 %v1141_v49 }
 0x1ed   : > { %v1037_v57 = vmul.f32 %v1681_v25, %v1014_v50  ;;  %v998_v54 = vpop.f32.mrf.mxu1  ;;  %1686 = vpow2.f32 %v1129_v11  ;;  %v1683_v14 = vpop.eup %1682 }
 0x1ee   : > { %1688 = vrcp.f32 %v766_v43  ;;  %v999_v13 = vadd.f32 %v998_v54, %v949_v59 }
 0x1ef   : > { %v1088_v2 = vsel %vm1076_vm0, %v1037_v57, 0.0 }
 0x1f0   : > { %v1031_v5 = vmul.f32 %v1683_v14, %v999_v13  ;;  %v1120_v46 = vmin.f32 %v1088_v2, 0.0  ;;  %vm1104_vm5 = vcmp.gt.f32.partialorder %v1088_v2, 0.0 }
 0x1f2   : > { %v1685_v53 = vpop.eup %1684  ;;  %v1147_v19 = vmul.f32 1.442695, %v1120_v46  ;;  %v1082_v58 = vsel %vm1076_vm0, %v1031_v5, 0.0 }
 0x1f3   : > { %v1687_v33 = vpop.eup %1686  ;;  %v1549_v47 = vadd.f32 -1.0, %v1685_v53  ;;  %v1114_v21 = vmin.f32 %v1082_v58, 0.0  ;;  %vm1098_vm6 = vcmp.gt.f32.partialorder %v1082_v58, 0.0 }
 0x1f4   : > { %v1689_v51 = vpop.eup %1688  ;;  %1690 = vpow2.f32 %v1147_v19  ;;  %v1543_v55 = vadd.f32 -1.0, %v1687_v33 }
 0x1f5   : > { %v1181_v34 = vsel %vm1101_vm3, %v1085_v18, %v1549_v47  ;;  %v1040_v52 = vmul.f32 %v1689_v51, %v1022_v42  ;;  %v1135_v29 = vmul.f32 1.442695, %v1114_v21  ;;  %v997_v18 = vadd.f32 %v2240_v10, %v2238_v40 }
 0x1f6   : > { %v2250_v12 = vsel %vm1076_vm0, %v1181_v34, -9e+15  ;;  %v1175_v3 = vsel %vm1095_vm4, %v1079_v16, %v1543_v55 }
 0x1f7   : > { %1221 = vmax.xlane.f32.xlu1 %v2250_v12  ;;  %v1091_v1 = vsel %vm1076_vm0, %v1040_v52, 0.0  ;;  %v2257_v9 = vsel %vm1076_vm0, %v1175_v3, -9e+15  ;;  %1692 = vpow2.f32 %v1135_v29 }
 0x1f8   : > { %v1123_v36 = vmin.f32 %v1091_v1, 0.0  ;;  %vm1107_vm7 = vcmp.gt.f32.partialorder %v1091_v1, 0.0 }
 0x1fa   : > { %v1691_v62 = vpop.eup %1690  ;;  %v1153_v38 = vmul.f32 1.442695, %v1123_v36 }
 0x1fb   : > { %v1552_v22 = vadd.f32 -1.0, %v1691_v62 }
 0x1fc   : > { %1694 = vpow2.f32 %v1153_v38 }
 0x1fd   : > { %v1184_v8 = vsel %vm1104_vm5, %v1088_v2, %v1552_v22  ;;  %v1693_v15 = vpop.eup %1692  ;;  %1696 = vrcp.f32 %v756_v41 }
 0x1fe   : > { %v2262_v0 = vsel %vm1076_vm0, %v1184_v8, -9e+15  ;;  %v1546_v20 = vadd.f32 -1.0, %v1693_v15  ;;  %1698 = vrcp.f32 %v755_v17 }
 0x1ff   : > { %1209 = vmax.xlane.f32.xlu1 %v2257_v9 }
 0x200   : > { %v1178_v28 = vsel %vm1098_vm6, %v1082_v58, %v1546_v20 }
 0x201   : > { %v2267_v39 = vsel %vm1076_vm0, %v1178_v28, -9e+15 }
 0x202   : > { %v1695_v26 = vpop.eup %1694 }
 0x203   : > { %v1555_v16 = vadd.f32 -1.0, %v1695_v26  ;;  %v1697_v49 = vpop.eup %1696 }
 0x204   : > { %v1030_v50 = vmul.f32 %v1697_v49, %v997_v18  ;;  %v1699_v59 = vpop.eup %1698 }
 0x205   : > { %v1187_v31 = vsel %vm1107_vm7, %v1091_v1, %v1555_v16  ;;  %v1029_v13 = vmul.f32 %v1699_v59, %v2232_v24  ;;  %v974_v59 = vpop.f32.mrf.mxu2 }
 0x206   : > { %v2272_v37 = vsel %vm1076_vm0, %v1187_v31, -9e+15  ;;  %v2280_v2 = vsel %vm1076_vm0, %v1030_v50, 0.0 }
 0x207   : > { %1227 = vmax.xlane.f32.xlu1 %v2262_v0  ;;  %v1113_v46 = vmin.f32 %v2280_v2, 0.0  ;;  %v2286_v53 = vsel %vm1076_vm0, %v1029_v13, 0.0  ;;  %vm1097_vm10 = vcmp.gt.f32.partialorder %v2280_v2, 0.0 }
 0x208   : > { %vm1096_vm11 = vcmp.gt.f32.partialorder %v2286_v53, 0.0 }
 0x209   : > { %v1133_v55 = vmul.f32 1.442695, %v1113_v46 }
 0x20f   : > { %1215 = vmax.xlane.f32.xlu1 %v2267_v39 }
 0x217   : > { %v727_v4 = vpop.xlane.xlu0 %726  ;;  %1233 = vmax.xlane.f32.xlu1 %v2272_v37 }
 0x218   : > { %v759_v57 = vmax.f32 %v727_v4, 1e-30 }
 0x21b   : > { %v724_v45 = vpop.xlane.xlu1 %723 }
 0x21c   : > { %v758_v58 = vmax.f32 %v724_v45, 1e-30 }
 0x21f   : > { %v736_v56 = vpop.xlane.xlu0 %735 }
 0x220   : > { %v762_v11 = vmax.f32 %v736_v56, 1e-30 }
 0x222   : > { %1700 = vrcp.f32 %v762_v11 }
 0x223   : > { %v733_v32 = vpop.xlane.xlu1 %732 }
 0x224   : > { %v761_v25 = vmax.f32 %v733_v32, 1e-30  ;;  %v952_v43 = vpop.f32.mrf.mxu0 }
 0x225   : > { %v1001_v54 = vpop.f32.mrf.mxu1 }
 0x226   : > { %1702 = vrcp.f32 %v761_v25  ;;  %v1002_v16 = vadd.f32 %v1001_v54, %v952_v43 }
 0x227   : > { %v745_v14 = vpop.xlane.xlu0 %744  ;;  %1704 = vrcp.f32 %v759_v57  ;;  %v1023_v57 = vpop.f32.mrf.mxu3 }
 0x228   : > { %v1701_v40 = vpop.eup %1700  ;;  %v765_v10 = vmax.f32 %v745_v14, 1e-30  ;;  %v1024_v46 = vadd.f32 %v1023_v57, %v974_v59 }
 0x229   : > { %v1036_v5 = vmul.f32 %v1701_v40, %v2212_v30  ;;  %v1112_v30 = vmin.f32 %v2286_v53, 0.0 }
 0x22a   : > { %1706 = vrcp.f32 %v765_v10 }
 0x22b   : > { %v742_v6 = vpop.xlane.xlu1 %741  ;;  %v1087_v24 = vsel %vm1076_vm0, %v1036_v5, 0.0  ;;  %v1131_v38 = vmul.f32 1.442695, %v1112_v30 }
 0x22c   : > { %v1703_v7 = vpop.eup %1702  ;;  %v764_v19 = vmax.f32 %v742_v6, 1e-30  ;;  %v954_v33 = vpop.f32.mrf.mxu0  ;;  %v1119_v47 = vmin.f32 %v1087_v24, 0.0  ;;  %vm1103_vm8 = vcmp.gt.f32.partialorder %v1087_v24, 0.0 }
 0x22d   : > { %v1035_v51 = vmul.f32 %v1703_v7, %v2207_v61  ;;  %v1003_v42 = vpop.f32.mrf.mxu1  ;;  %v1705_v29 = vpop.eup %1704 }
 0x22e   : > { %1708 = vrcp.f32 %v764_v19  ;;  %v1004_v34 = vadd.f32 %v1003_v42, %v954_v33  ;;  %v1145_v52 = vmul.f32 1.442695, %v1119_v47 }
 0x22f   : > { %v2292_v21 = vpop.xlane.xlu2 %1207  ;;  %v1086_v1 = vsel %vm1076_vm0, %v1035_v51, 0.0 }
 0x230   : > { %v1238_v3 = vsub.f32 %v2219_v35, %v2292_v21  ;;  %v1707_v62 = vpop.eup %1706  ;;  %v1033_v36 = vmul.f32 %v1705_v29, %v1004_v34  ;;  %1710 = vpow2.f32 %v1145_v52  ;;  %v1118_v22 = vmin.f32 %v1086_v1, 0.0 }
 0x231   : > { %1712 = vrcp.f32 %v758_v58  ;;  %v1039_v15 = vmul.f32 %v1707_v62, %v2230_v48  ;;  %vm1102_vm9 = vcmp.gt.f32.partialorder %v1086_v1, 0.0 }
 0x232   : > { %v1255_v61 = vmul.f32 1.442695, %v1238_v3  ;;  %1714 = vpow2.f32 %v1133_v55  ;;  %v2300_v8 = vsel %vm1076_vm0, %v1033_v36, 0.0  ;;  %v1143_v28 = vmul.f32 1.442695, %v1118_v22 }
 0x233   : > { %v751_v20 = vpop.xlane.xlu1 %750  ;;  %v1116_v26 = vmin.f32 %v2300_v8, 0.0  ;;  %v2309_v18 = vsel %vm1076_vm0, %v1039_v15, 0.0  ;;  %vm1100_vm12 = vcmp.gt.f32.partialorder %v2300_v8, 0.0 }
 0x234   : > { %1716 = vpow2.f32 %v1255_v61  ;;  %v1709_v23 = vpop.eup %1708  ;;  %v767_v44 = vmax.f32 %v751_v20, 1e-30  ;;  %v1122_v25 = vmin.f32 %v2309_v18, 0.0  ;;  %v2342_v61 = vpop.xlane.xlu0 %1205  ;;  %vm1106_vm14 = vcmp.gt.f32.partialorder %v2309_v18, 0.0 }
 0x235   : > { %v1038_v31 = vmul.f32 %v1709_v23, %v2227_v63  ;;  %1718 = vpow2.f32 %v1143_v28  ;;  %v1139_v41 = vmul.f32 1.442695, %v1116_v26 }
 0x236   : > { %v1711_v4 = vpop.eup %1710  ;;  %1720 = vpow2.f32 %v1131_v38 }
 0x237   : > { %v1713_v17 = vpop.eup %1712  ;;  %1722 = vrcp.f32 %v767_v44  ;;  %v1551_v45 = vadd.f32 -1.0, %v1711_v4  ;;  %v1089_v48 = vsel %vm1076_vm0, %v1038_v31, 0.0 }
 0x238   : > { %v1715_v56 = vpop.eup %1714  ;;  %v1032_v11 = vmul.f32 %v1713_v17, %v1002_v16  ;;  %v1121_v49 = vmin.f32 %v1089_v48, 0.0  ;;  %1724 = vpow2.f32 %v1139_v41  ;;  %vm1105_vm13 = vcmp.gt.f32.partialorder %v1089_v48, 0.0 }
 0x239   : > { %v1183_v63 = vsel %vm1103_vm8, %v1087_v24, %v1551_v45  ;;  %v1545_v54 = vadd.f32 -1.0, %v1715_v56  ;;  %v1151_v24 = vmul.f32 1.442695, %v1122_v25 }
 0x23a   : > { %v1717_v50 = vpop.eup %1716  ;;  %v2313_v32 = vsel %vm1076_vm0, %v1183_v63, -9e+15  ;;  %v1149_v13 = vmul.f32 1.442695, %v1121_v49  ;;  %v1083_v10 = vsel %vm1076_vm0, %v1032_v11, 0.0 }
 0x23b   : > { %1287 = vadd.xlane.f32.xlu1 %v1717_v50  ;;  %v1719_v43 = vpop.eup %1718  ;;  %1225 = vmax.xlane.f32.xlu2 %v2313_v32  ;;  %v1177_v19 = vsel %vm1097_vm10, %v2280_v2, %v1545_v54  ;;  %v1115_v33 = vmin.f32 %v1083_v10, 0.0  ;;  %vm1099_vm15 = vcmp.gt.f32.partialorder %v1083_v10, 0.0 }
 0x23c   : > { %v1721_v14 = vpop.eup %1720  ;;  %v1550_v40 = vadd.f32 -1.0, %v1719_v43  ;;  %1726 = vpow2.f32 %v1149_v13  ;;  %v2328_v42 = vsel %vm1076_vm0, %v1177_v19, -9e+15 }
 0x23d   : > { %v1723_v5 = vpop.eup %1722  ;;  %v1544_v51 = vadd.f32 -1.0, %v1721_v14  ;;  %1728 = vpow2.f32 %v1151_v24  ;;  %v1137_v34 = vmul.f32 1.442695, %v1115_v33 }
 0x23e   : > { %v1182_v6 = vsel %vm1102_vm9, %v1086_v1, %v1550_v40  ;;  %v1725_v47 = vpop.eup %1724  ;;  %v1041_v58 = vmul.f32 %v1723_v5, %v1024_v46 }
 0x23f   : > { %v2322_v7 = vsel %vm1076_vm0, %v1182_v6, -9e+15  ;;  %v1548_v30 = vadd.f32 -1.0, %v1725_v47  ;;  %v1176_v2 = vsel %vm1096_vm11, %v2286_v53, %v1544_v51  ;;  %1730 = vpow2.f32 %v1137_v34 }
 0x240   : > { %1223 = vmax.xlane.f32.xlu0 %v2322_v7  ;;  %v1092_v52 = vsel %vm1076_vm0, %v1041_v58, 0.0  ;;  %v2338_v29 = vsel %vm1076_vm0, %v1176_v2, -9e+15 }
 0x241   : > { %v1180_v3 = vsel %vm1100_vm12, %v2300_v8, %v1548_v30  ;;  %v1124_v1 = vmin.f32 %v1092_v52, 0.0  ;;  %v1237_v8 = vsub.f32 %v2223_v60, %v2342_v61  ;;  %vm1108_vm1 = vcmp.gt.f32.partialorder %v1092_v52, 0.0 }
 0x242   : > { %v1727_v55 = vpop.eup %1726  ;;  %v2346_v53 = vsel %vm1076_vm0, %v1180_v3, -9e+15 }
 0x243   : > { %1213 = vmax.xlane.f32.xlu2 %v2328_v42  ;;  %v1729_v62 = vpop.eup %1728  ;;  %v1553_v36 = vadd.f32 -1.0, %v1727_v55  ;;  %v1155_v38 = vmul.f32 1.442695, %v1124_v1  ;;  %v1253_v23 = vmul.f32 1.442695, %v1237_v8 }
 0x244   : > { %v1554_v22 = vadd.f32 -1.0, %v1729_v62 }
 0x245   : > { %v1185_v15 = vsel %vm1105_vm13, %v1089_v48, %v1553_v36  ;;  %v1731_v20 = vpop.eup %1730  ;;  %1732 = vpow2.f32 %v1155_v38 }
 0x246   : > { %v2354_v28 = vsel %vm1076_vm0, %v1185_v15, -9e+15  ;;  %v1186_v26 = vsel %vm1106_vm14, %v2309_v18, %v1554_v22  ;;  %v1547_v16 = vadd.f32 -1.0, %v1731_v20  ;;  %1734 = vpow2.f32 %v1253_v23 }
 0x247   : > { %v2360_v44 = vsel %vm1076_vm0, %v1186_v26, -9e+15 }
 0x248   : > { %1211 = vmax.xlane.f32.xlu0 %v2338_v29  ;;  %v1179_v31 = vsel %vm1099_vm15, %v1083_v10, %v1547_v16 }
 0x249   : > { %v2365_v41 = vsel %vm1076_vm0, %v1179_v31, -9e+15 }
 0x24b   : > { %1219 = vmax.xlane.f32.xlu2 %v2346_v53  ;;  %v1733_v4 = vpop.eup %1732 }
 0x24c   : > { %v1556_v17 = vadd.f32 -1.0, %v1733_v4  ;;  %v1735_v45 = vpop.eup %1734 }
 0x24e   : > { %v1188_v48 = vsel %vm1108_vm1, %v1092_v52, %v1556_v17 }
 0x24f   : > { %v2370_v18 = vsel %vm1076_vm0, %v1188_v48, -9e+15 }
 0x250   : > { %1229 = vmax.xlane.f32.xlu0 %v2354_v28 }
 0x253   : > { %1231 = vmax.xlane.f32.xlu2 %v2360_v44 }
 0x258   : > { %1217 = vmax.xlane.f32.xlu0 %v2365_v41 }
 0x25b   : > { %1285 = vadd.xlane.f32.xlu2 %v1735_v45 }
 0x260   : > { %1235 = vmax.xlane.f32.xlu0 %v2370_v18 }
 0x26a   : > { %v2373_v56 = vpop.xlane.xlu1 %1221 }
 0x26b   : > { %v1245_v11 = vsub.f32 %v2250_v12, %v2373_v56 }
 0x26d   : > { %v1269_v49 = vmul.f32 1.442695, %v1245_v11 }
 0x26f   : > { %1736 = vpow2.f32 %v1269_v49 }
 0x272   : > { %v2377_v50 = vpop.xlane.xlu1 %1209 }
 0x273   : > { %v1239_v63 = vsub.f32 %v2257_v9, %v2377_v50 }
 0x275   : > { %v1737_v25 = vpop.eup %1736  ;;  %v1257_v43 = vmul.f32 1.442695, %v1239_v63 }
 0x276   : > { %1301 = vadd.xlane.f32.xlu0 %v1737_v25 }
 0x277   : > { %1738 = vpow2.f32 %v1257_v43 }
 0x27a   : > { %v2381_v27 = vpop.xlane.xlu1 %1227 }
 0x27b   : > { %v1248_v59 = vsub.f32 %v2262_v0, %v2381_v27 }
 0x27d   : > { %v1739_v57 = vpop.eup %1738  ;;  %v1275_v54 = vmul.f32 1.442695, %v1248_v59 }
 0x27e   : > { %1289 = vadd.xlane.f32.xlu0 %v1739_v57 }
 0x27f   : > { %1740 = vpow2.f32 %v1275_v54 }
 0x282   : > { %v2385_v13 = vpop.xlane.xlu1 %1215 }
 0x283   : > { %v1242_v14 = vsub.f32 %v2267_v39, %v2385_v13 }
 0x285   : > { %v1741_v40 = vpop.eup %1740  ;;  %v1263_v10 = vmul.f32 1.442695, %v1242_v14 }
 0x286   : > { %1307 = vadd.xlane.f32.xlu0 %v1741_v40 }
 0x287   : > { %1742 = vpow2.f32 %v1263_v10 }
 0x28a   : > { %v2389_v5 = vpop.xlane.xlu1 %1233 }
 0x28b   : > { %v1251_v46 = vsub.f32 %v2272_v37, %v2389_v5 }
 0x28d   : > { %v1743_v6 = vpop.eup %1742  ;;  %v1281_v24 = vmul.f32 1.442695, %v1251_v46 }
 0x28e   : > { %1295 = vadd.xlane.f32.xlu0 %v1743_v6 }
 0x28f   : > { %1744 = vpow2.f32 %v1281_v24 }
 0x295   : > { %v1745_v19 = vpop.eup %1744 }
 0x296   : > { %1313 = vadd.xlane.f32.xlu0 %v1745_v19 }
 0x2ae   : > { %v1288_v33 = vpop.xlane.xlu1 %1287  ;;  %v2393_v47 = vpop.xlane.xlu2 %1225 }
 0x2af   : > { %1746 = vlog2.f32 %v1288_v33  ;;  %v1247_v58 = vsub.f32 %v2313_v32, %v2393_v47 }
 0x2b1   : > { %v1273_v51 = vmul.f32 1.442695, %v1247_v58 }
 0x2b3   : > { %1748 = vpow2.f32 %v1273_v51  ;;  %v2397_v30 = vpop.xlane.xlu0 %1223 }
 0x2b4   : > { %v1246_v2 = vsub.f32 %v2322_v7, %v2397_v30 }
 0x2b5   : > { %v1747_v34 = vpop.eup %1746 }
 0x2b6   : > { %v1320_v52 = vmul.f32 0.6931472, %v1747_v34  ;;  %v1271_v55 = vmul.f32 1.442695, %v1246_v2  ;;  %v2401_v3 = vpop.xlane.xlu2 %1213 }
 0x2b7   : > { %v1241_v62 = vsub.f32 %v2328_v42, %v2401_v3 }
 0x2b8   : > { %v1350_v1 = vadd.f32 %v1320_v52, %v2292_v21  ;;  %1750 = vpow2.f32 %v1271_v55 }
 0x2b9   : > { %v1749_v36 = vpop.eup %1748  ;;  %v1261_v38 = vmul.f32 1.442695, %v1241_v62 }
 0x2ba   : > { %v1366_v22 = vsub.f32 %v2219_v35, %v1350_v1  ;;  %1305 = vadd.xlane.f32.xlu1 %v1749_v36 }
 0x2bb   : > { %1752 = vpow2.f32 %v1261_v38  ;;  %v2415_v8 = vpop.xlane.xlu0 %1211 }
 0x2bc   : > { %1382 = vst [vmem:[%s2411_s14 + $0x8] sm:$0xff] %v1366_v22  ;;  %v1240_v21 = vsub.f32 %v2338_v29, %v2415_v8 }
 0x2be   : > { %v1751_v15 = vpop.eup %1750  ;;  %v1259_v20 = vmul.f32 1.442695, %v1240_v21  ;;  %v2419_v26 = vpop.xlane.xlu2 %1219 }
 0x2bf   : > { %v1244_v23 = vsub.f32 %v2346_v53, %v2419_v26  ;;  %1303 = vadd.xlane.f32.xlu2 %v1751_v15 }
 0x2c0   : > { %1754 = vpow2.f32 %v1259_v20 }
 0x2c1   : > { %v1753_v16 = vpop.eup %1752  ;;  %v1267_v35 = vmul.f32 1.442695, %v1244_v23 }
 0x2c2   : > { %1293 = vadd.xlane.f32.xlu1 %v1753_v16 }
 0x2c3   : > { %1756 = vpow2.f32 %v1267_v35  ;;  %v2423_v31 = vpop.xlane.xlu0 %1229 }
 0x2c4   : > { %v1249_v4 = vsub.f32 %v2354_v28, %v2423_v31 }
 0x2c6   : > { %v1755_v17 = vpop.eup %1754  ;;  %v1277_v45 = vmul.f32 1.442695, %v1249_v4  ;;  %v2427_v48 = vpop.xlane.xlu2 %1231 }
 0x2c7   : > { %v1250_v11 = vsub.f32 %v2360_v44, %v2427_v48  ;;  %1291 = vadd.xlane.f32.xlu2 %v1755_v17 }
 0x2c8   : > { %1758 = vpow2.f32 %v1277_v45 }
 0x2c9   : > { %v1757_v49 = vpop.eup %1756  ;;  %v1279_v63 = vmul.f32 1.442695, %v1250_v11 }
 0x2ca   : > { %1299 = vadd.xlane.f32.xlu1 %v1757_v49 }
 0x2cb   : > { %1760 = vpow2.f32 %v1279_v63  ;;  %v2431_v25 = vpop.xlane.xlu0 %1217 }
 0x2cc   : > { %v1243_v43 = vsub.f32 %v2365_v41, %v2431_v25 }
 0x2ce   : > { %v1759_v59 = vpop.eup %1758  ;;  %v1265_v57 = vmul.f32 1.442695, %v1243_v43  ;;  %v1286_v54 = vpop.xlane.xlu2 %1285 }
 0x2cf   : > { %1762 = vlog2.f32 %v1286_v54  ;;  %1309 = vadd.xlane.f32.xlu2 %v1759_v59 }
 0x2d0   : > { %1764 = vpow2.f32 %v1265_v57 }
 0x2d1   : > { %v1761_v14 = vpop.eup %1760 }
 0x2d2   : > { %1311 = vadd.xlane.f32.xlu1 %v1761_v14 }
 0x2d3   : > { %v2435_v40 = vpop.xlane.xlu0 %1235 }
 0x2d4   : > { %v1252_v10 = vsub.f32 %v2370_v18, %v2435_v40 }
 0x2d5   : > { %v1763_v46 = vpop.eup %1762 }
 0x2d6   : > { %v1765_v6 = vpop.eup %1764  ;;  %v1318_v24 = vmul.f32 0.6931472, %v1763_v46  ;;  %v1283_v19 = vmul.f32 1.442695, %v1252_v10 }
 0x2d7   : > { %1297 = vadd.xlane.f32.xlu2 %v1765_v6 }
 0x2d8   : > { %v1349_v33 = vadd.f32 %v1318_v24, %v2342_v61  ;;  %1766 = vpow2.f32 %v1283_v19 }
 0x2da   : > { %v1365_v58 = vsub.f32 %v2223_v60, %v1349_v33 }
 0x2dc   : > { %1381 = vst [vmem:[%s2411_s14] sm:$0xff] %v1365_v58 }
 0x2de   : > { %v1767_v51 = vpop.eup %1766 }
 0x2df   : > { %1315 = vadd.xlane.f32.xlu2 %v1767_v51 }
 0x2e9   : > { %v1302_v34 = vpop.xlane.xlu0 %1301 }
 0x2ea   : > { %1768 = vlog2.f32 %v1302_v34 }
 0x2f0   : > { %v1769_v2 = vpop.eup %1768 }
 0x2f1   : > { %v1334_v52 = vmul.f32 0.6931472, %v1769_v2  ;;  %v1290_v55 = vpop.xlane.xlu0 %1289 }
 0x2f2   : > { %1770 = vlog2.f32 %v1290_v55 }
 0x2f3   : > { %v1357_v1 = vadd.f32 %v1334_v52, %v2373_v56 }
 0x2f5   : > { %v1373_v62 = vsub.f32 %v2250_v12, %v1357_v1 }
 0x2f7   : > { %1389 = vst [vmem:[%s2411_s14 + $0x40] sm:$0xff] %v1373_v62 }
 0x2f8   : > { %v1771_v61 = vpop.eup %1770 }
 0x2f9   : > { %v1322_v36 = vmul.f32 0.6931472, %v1771_v61  ;;  %v1308_v22 = vpop.xlane.xlu0 %1307 }
 0x2fa   : > { %1772 = vlog2.f32 %v1308_v22 }
 0x2fb   : > { %v1351_v60 = vadd.f32 %v1322_v36, %v2377_v50 }
 0x2fd   : > { %v1367_v38 = vsub.f32 %v2257_v9, %v1351_v60 }
 0x2ff   : > { %1383 = vst [vmem:[%s2411_s14 + $0x10] sm:$0xff] %v1367_v38 }
 0x300   : > { %v1773_v21 = vpop.eup %1772 }
 0x301   : > { %v1340_v15 = vmul.f32 0.6931472, %v1773_v21  ;;  %v1296_v20 = vpop.xlane.xlu0 %1295 }
 0x302   : > { %1774 = vlog2.f32 %v1296_v20 }
 0x303   : > { %v1360_v56 = vadd.f32 %v1340_v15, %v2381_v27 }
 0x305   : > { %v1376_v12 = vsub.f32 %v2262_v0, %v1360_v56 }
 0x307   : > { %1392 = vst [vmem:[%s2411_s14 + $0x58] sm:$0xff] %v1376_v12 }
 0x308   : > { %v1775_v23 = vpop.eup %1774 }
 0x309   : > { %v1328_v16 = vmul.f32 0.6931472, %v1775_v23  ;;  %v1314_v35 = vpop.xlane.xlu0 %1313 }
 0x30a   : > { %1776 = vlog2.f32 %v1314_v35 }
 0x30b   : > { %v1354_v50 = vadd.f32 %v1328_v16, %v2385_v13 }
 0x30d   : > { %v1370_v4 = vsub.f32 %v2267_v39, %v1354_v50 }
 0x30f   : > { %1386 = vst [vmem:[%s2411_s14 + $0x28] sm:$0xff] %v1370_v4 }
 0x310   : > { %v1777_v9 = vpop.eup %1776 }
 0x311   : > { %v1346_v17 = vmul.f32 0.6931472, %v1777_v9 }
 0x313   : > { %v1363_v45 = vadd.f32 %v1346_v17, %v2389_v5 }
 0x315   : > { %v1379_v11 = vsub.f32 %v2272_v37, %v1363_v45 }
 0x317   : > { %1395 = vst [vmem:[%s2411_s14 + $0x70] sm:$0xff] %v1379_v11 }
 0x32d   : > { %v1306_v27 = vpop.xlane.xlu1 %1305 }
 0x32e   : > { %1778 = vlog2.f32 %v1306_v27 }
 0x332   : > { %v1304_v0 = vpop.xlane.xlu2 %1303 }
 0x333   : > { %1780 = vlog2.f32 %v1304_v0 }
 0x334   : > { %v1779_v49 = vpop.eup %1778 }
 0x335   : > { %v1338_v63 = vmul.f32 0.6931472, %v1779_v49  ;;  %v1294_v43 = vpop.xlane.xlu1 %1293 }
 0x336   : > { %1782 = vlog2.f32 %v1294_v43 }
 0x337   : > { %v1359_v39 = vadd.f32 %v1338_v63, %v2393_v47 }
 0x339   : > { %v1781_v13 = vpop.eup %1780  ;;  %v1375_v59 = vsub.f32 %v2313_v32, %v1359_v39 }
 0x33a   : > { %v1336_v57 = vmul.f32 0.6931472, %v1781_v13  ;;  %v1292_v5 = vpop.xlane.xlu2 %1291 }
 0x33b   : > { %1391 = vst [vmem:[%s2411_s14 + $0x50] sm:$0xff] %v1375_v59  ;;  %1784 = vlog2.f32 %v1292_v5 }
 0x33c   : > { %v1783_v37 = vpop.eup %1782  ;;  %v1358_v54 = vadd.f32 %v1336_v57, %v2397_v30 }
 0x33d   : > { %v1326_v14 = vmul.f32 0.6931472, %v1783_v37  ;;  %v1300_v10 = vpop.xlane.xlu1 %1299 }
 0x33e   : > { %v1374_v46 = vsub.f32 %v2322_v7, %v1358_v54  ;;  %1786 = vlog2.f32 %v1300_v10 }
 0x33f   : > { %v1353_v6 = vadd.f32 %v1326_v14, %v2401_v3 }
 0x340   : > { %1390 = vst [vmem:[%s2411_s14 + $0x48] sm:$0xff] %v1374_v46 }
 0x341   : > { %v1785_v47 = vpop.eup %1784  ;;  %v1369_v32 = vsub.f32 %v2328_v42, %v1353_v6 }
 0x342   : > { %v1324_v24 = vmul.f32 0.6931472, %v1785_v47  ;;  %v1310_v19 = vpop.xlane.xlu2 %1309 }
 0x343   : > { %1385 = vst [vmem:[%s2411_s14 + $0x20] sm:$0xff] %v1369_v32  ;;  %1788 = vlog2.f32 %v1310_v19 }
 0x344   : > { %v1787_v33 = vpop.eup %1786  ;;  %v1352_v30 = vadd.f32 %v1324_v24, %v2415_v8 }
 0x345   : > { %v1332_v58 = vmul.f32 0.6931472, %v1787_v33  ;;  %v1312_v51 = vpop.xlane.xlu1 %1311 }
 0x346   : > { %v1368_v7 = vsub.f32 %v2338_v29, %v1352_v30  ;;  %1790 = vlog2.f32 %v1312_v51 }
 0x347   : > { %v1356_v3 = vadd.f32 %v1332_v58, %v2419_v26 }
 0x348   : > { %1384 = vst [vmem:[%s2411_s14 + $0x18] sm:$0xff] %v1368_v7 }
 0x349   : > { %v1789_v34 = vpop.eup %1788  ;;  %v1372_v42 = vsub.f32 %v2346_v53, %v1356_v3 }
 0x34a   : > { %v1342_v2 = vmul.f32 0.6931472, %v1789_v34  ;;  %v1298_v52 = vpop.xlane.xlu2 %1297 }
 0x34b   : > { %1388 = vst [vmem:[%s2411_s14 + $0x38] sm:$0xff] %v1372_v42  ;;  %1792 = vlog2.f32 %v1298_v52 }
 0x34c   : > { %v1791_v55 = vpop.eup %1790  ;;  %v1361_v8 = vadd.f32 %v1342_v2, %v2423_v31 }
 0x34d   : > { %v1344_v1 = vmul.f32 0.6931472, %v1791_v55 }
 0x34e   : > { %v1377_v62 = vsub.f32 %v2354_v28, %v1361_v8 }
 0x34f   : > { %v1362_v29 = vadd.f32 %v1344_v1, %v2427_v48 }
 0x350   : > { %1393 = vst [vmem:[%s2411_s14 + $0x60] sm:$0xff] %v1377_v62 }
 0x351   : > { %v1793_v26 = vpop.eup %1792  ;;  %v1378_v61 = vsub.f32 %v2360_v44, %v1362_v29 }
 0x352   : > { %v1330_v36 = vmul.f32 0.6931472, %v1793_v26  ;;  %v1316_v53 = vpop.xlane.xlu2 %1315 }
 0x353   : > { %1394 = vst [vmem:[%s2411_s14 + $0x68] sm:$0xff] %v1378_v61  ;;  %1794 = vlog2.f32 %v1316_v53 }
 0x354   : > { %v1355_v22 = vadd.f32 %v1330_v36, %v2431_v25 }
 0x356   : > { %v1371_v60 = vsub.f32 %v2365_v41, %v1355_v22 }
 0x358   : > { %1387 = vst [vmem:[%s2411_s14 + $0x30] sm:$0xff] %v1371_v60 }
 0x359   : > { %v1795_v31 = vpop.eup %1794 }
 0x35a   : > { %v1348_v38 = vmul.f32 0.6931472, %v1795_v31 }
 0x35c   : > { %v1364_v28 = vadd.f32 %v1348_v38, %v2435_v40 }
 0x35e   : > { %v1380_v21 = vsub.f32 %v2370_v18, %v1364_v28 }
 0x360   : > { %1396 = vst [vmem:[%s2411_s14 + $0x78] sm:$0xff] %v1380_v21 }
 0x361 PF: > { %s14_s15 = sadd.s32 1, %s1802_s15  }
 0x362   : > { %p11_p5 = scmp.ge.s32.totalorder %s14_s15, 4  }
 0x364   :  { %13 = sbr.rel (!%p11_p5) target bundleno = 1 (0x1), region = 69 }

// kernel: gat_forward.5
= control target key start
LH: loop header
LB: loop body
LE: loop exit
PB: predicated region body
PF: predicated region fallthrough
CT: control target
= control target key end

     0   :  { %s4876_s15 = smov 0   ;;  %s7216_s0 = inlined_call_operand.vmem [shape: s8[256,256], index: 0, kind: input, shape index: {}]   ;;  %s7217_s1 = inlined_call_operand.vmem [shape: bf16[256,128], index: 1, kind: input, shape index: {}]   ;;  %s7218_s2 = inlined_call_operand.vmem [shape: f32[256,128], index: 2, kind: input, shape index: {}]   ;;  %s7219_s3 = inlined_call_operand.vmem [shape: f32[8,256], index: 3, kind: input, shape index: {}]   ;;  %s7220_s4 = inlined_call_operand.vmem [shape: bf16[256,128], index: 4, kind: output, shape index: {}]  }
   0x1 LB: > { %s3944_s16 = sadd.s32 4294967295, %s4839_s15   ;;  %p3948_p0 = scmp.ge.s32.totalorder %s4839_s15, 1  ;;  %s4839_s15 = sphi %s4876_s15, %s14_s15  }
   0x2   : > { %p175_p1 = scmp.lt.s32.totalorder %s4839_s15, 3 }
   0x4   : > { %p176_p2 = pnand %p3948_p0, %p175_p1 }
   0x6   : > { %179 = sbr.rel (%p176_p2) target bundleno = 2326 (0x916), region = 36 }
   0xb   : > { %s3952_s17 = sshll.u32 %s3944_s16, 4  ;;  %v4841_v0 = vmov 0   ;;  %v314_v17 = vld [vmem:[%s7219_s3] ss:$8 sm:$0x3]  ;;  %s3949_s8 = sshll.u32 %s3944_s16, 2 }
   0xc   : > { %4403 = vset.pattern.permute.xlu1 %v4841_v0  ;;  %4402 = vset.pattern.permute.xlu0 %v4841_v0  ;;  %p215_p3 = scmp.lt.s32.totalorder %s3952_s17, 31  ;;  %v4961_v18 = vperm.slane %v314_v17, 0  ;;  %v4963_v19 = vperm.slane %v314_v17, 1  ;;  %p208_p4 = scmp.lt.s32.totalorder %s3949_s8, 7 }
   0xd   : > { %4404 = vset.pattern.permute.xlu2 %v4841_v0  ;;  %s4843_s25 = smov 112   ;;  %s4847_s10 = smov 80  }
   0xe   : > { %s7508_s17 = smov (!%p215_p3, %s3952_s17), 31  ;;  %s7510_s8 = smov (!%p208_p4, %s3949_s8), 7 }
   0xf   : > { %s3953_s18 = sshll.u32 %s7508_s17, 3  ;;  %s4233_s9 = sshll.u32 %s7510_s8, 4 }
  0x10   : > { %s4892_s21 = scalar_lea.vmem %s7218_s2, %s3953_s18  ;;  %s5166_s12 = scalar_lea.vmem %s7216_s0, %s4233_s9 }
  0x11   : > { %v4895_v1 = vld [vmem:[%s4892_s21 + $0x10] sm:$0xff]  ;;  %v4898_v2 = vld [vmem:[%s4892_s21] sm:$0xff]  ;;  %v4907_v4 = vld [vmem:[%s4892_s21 + $0x18] sm:$0xff]  ;;  %s3955_s14 = sshll.u32 %s7508_s17, 2  ;;  %s4848_s18 = smov 96  }
  0x12   : > { %327 = vperm.xlu1 %4403, %v4895_v1   ;;  %317 = vperm.xlu0 %4402, %v4898_v2   ;;  %v4903_v3 = vld [vmem:[%s4892_s21 + $0x20] sm:$0xff]  ;;  %v4910_v5 = vld [vmem:[%s4892_s21 + $0x8] sm:$0xff]  ;;  %v4919_v7 = vld [vmem:[%s4892_s21 + $0x38] sm:$0xff]  ;;  %s5678_s19 = scalar_lea.vmem %s7220_s4, %s3955_s14 }
  0x13   : > { %337 = vperm.xlu2 %4404, %v4903_v3   ;;  %v4913_v6 = vld [vmem:[%s4892_s21 + $0x28] sm:$0xff]  ;;  %v4922_v8 = vld [vmem:[%s4892_s21 + $0x30] sm:$0xff]  ;;  %v4925_v9 = vld [vmem:[%s4892_s21 + $0x40] sm:$0xff] }
  0x14   : > { %v4931_v10 = vld [vmem:[%s4892_s21 + $0x50] sm:$0xff]  ;;  %v4934_v11 = vld [vmem:[%s4892_s21 + $0x48] sm:$0xff]  ;;  %v4937_v12 = vld [vmem:[%s4892_s21 + $0x58] sm:$0xff] }
  0x15   : > { %v4943_v13 = vld [vmem:[%s4892_s21 + $0x68] sm:$0xff]  ;;  %v4946_v14 = vld [vmem:[%s4892_s21 + $0x60] sm:$0xff]  ;;  %v4949_v15 = vld [vmem:[%s4892_s21 + $0x70] sm:$0xff] }
  0x16   : > { %v4955_v16 = vld [vmem:[%s4892_s21 + $0x78] sm:$0xff] }
  0x1a   : > { %332 = vperm.xlu1 %4403, %v4907_v4   ;;  %322 = vperm.xlu0 %4402, %v4910_v5  }
  0x1b   : > { %342 = vperm.xlu2 %4404, %v4913_v6  }
  0x22   : > { %352 = vperm.xlu1 %4403, %v4919_v7   ;;  %347 = vperm.xlu0 %4402, %v4922_v8  }
  0x23   : > { %357 = vperm.xlu2 %4404, %v4925_v9  }
  0x2a   : > { %367 = vperm.xlu1 %4403, %v4931_v10   ;;  %362 = vperm.xlu0 %4402, %v4934_v11  }
  0x2b   : > { %372 = vperm.xlu2 %4404, %v4937_v12  }
  0x32   : > { %382 = vperm.xlu1 %4403, %v4943_v13   ;;  %377 = vperm.xlu0 %4402, %v4946_v14  }
  0x33   : > { %387 = vperm.xlu2 %4404, %v4949_v15  }
  0x3a   : > { %392 = vperm.xlu0 %4402, %v4955_v16  }
  0x6d   : > { %v338_v20 = vpop.permute.xlu2 %337 }
  0x6e   : > { %v408_v21 = vadd.f32 %v4961_v18, %v338_v20  ;;  %v409_v28 = vadd.f32 %v4963_v19, %v338_v20 }
  0x70   : > { %v472_v35 = vmul.f32 0.2, %v408_v21  ;;  %v473_v39 = vmul.f32 0.2, %v409_v28  ;;  %vm440_vm4 = vcmp.gt.f32.partialorder %v408_v21, 0.0  ;;  %vm441_vm5 = vcmp.gt.f32.partialorder %v409_v28, 0.0 }
  0x72   : > { %v4987_v48 = vsel %vm440_vm4, %v408_v21, %v472_v35  ;;  %v4989_v49 = vsel %vm441_vm5, %v409_v28, %v473_v39 }
  0x73   : > { %v540_v54 = vmax.f32 %v4987_v48, %v4989_v49 }
  0x75   : > { %v343_v43 = vpop.permute.xlu2 %342 }
  0x76   : > { %v410_v52 = vadd.f32 %v4961_v18, %v343_v43  ;;  %v411_v53 = vadd.f32 %v4963_v19, %v343_v43 }
  0x78   : > { %v474_v62 = vmul.f32 0.2, %v410_v52  ;;  %v475_v63 = vmul.f32 0.2, %v411_v53  ;;  %vm442_vm10 = vcmp.gt.f32.partialorder %v410_v52, 0.0  ;;  %vm443_vm11 = vcmp.gt.f32.partialorder %v411_v53, 0.0 }
  0x84   : > { %v328_v22 = vpop.permute.xlu1 %327  ;;  %v318_v23 = vpop.permute.xlu0 %317 }
  0x85   : > { %v404_v24 = vadd.f32 %v4961_v18, %v328_v22  ;;  %v405_v25 = vadd.f32 %v4963_v19, %v328_v22  ;;  %v400_v26 = vadd.f32 %v4961_v18, %v318_v23  ;;  %v401_v27 = vadd.f32 %v4963_v19, %v318_v23 }
  0x87   : > { %vm436_vm0 = vcmp.gt.f32.partialorder %v404_v24, 0.0  ;;  %vm437_vm1 = vcmp.gt.f32.partialorder %v405_v25, 0.0  ;;  %v468_v29 = vmul.f32 0.2, %v404_v24  ;;  %v469_v30 = vmul.f32 0.2, %v405_v25 }
  0x88   : > { %vm432_vm2 = vcmp.gt.f32.partialorder %v400_v26, 0.0  ;;  %vm433_vm3 = vcmp.gt.f32.partialorder %v401_v27, 0.0  ;;  %v464_v31 = vmul.f32 0.2, %v400_v26  ;;  %v465_v32 = vmul.f32 0.2, %v401_v27 }
  0x89   : > { %v4971_v33 = vsel %vm436_vm0, %v404_v24, %v468_v29  ;;  %v4973_v34 = vsel %vm437_vm1, %v405_v25, %v469_v30  ;;  %v358_v24 = vpop.permute.xlu2 %357 }
  0x8a   : > { %v534_v36 = vmax.f32 %v4971_v33, %v4973_v34  ;;  %v4977_v37 = vsel %vm432_vm2, %v400_v26, %v464_v31  ;;  %v4979_v38 = vsel %vm433_vm3, %v401_v27, %v465_v32 }
  0x8b   : > { %v528_v40 = vmax.f32 %v4977_v37, %v4979_v38 }
  0x8c   : > { %v333_v41 = vpop.permute.xlu1 %332  ;;  %535 = vmax.xlane.f32.xlu0 %v534_v36  ;;  %v323_v42 = vpop.permute.xlu0 %322 }
  0x8d   : > { %529 = vmax.xlane.f32.xlu1 %v528_v40  ;;  %v402_v44 = vadd.f32 %v4961_v18, %v323_v42  ;;  %v403_v45 = vadd.f32 %v4963_v19, %v323_v42  ;;  %v406_v46 = vadd.f32 %v4961_v18, %v333_v41  ;;  %v407_v47 = vadd.f32 %v4963_v19, %v333_v41 }
  0x8e   : > { %v5024_v40 = vsel %vm442_vm10, %v410_v52, %v474_v62  ;;  %v5027_v41 = vsel %vm443_vm11, %v411_v53, %v475_v63  ;;  %v416_v42 = vadd.f32 %v4961_v18, %v358_v24  ;;  %v4842_v53 = vmov 1  }
  0x8f   : > { %vm434_vm6 = vcmp.gt.f32.partialorder %v402_v44, 0.0  ;;  %vm435_vm7 = vcmp.gt.f32.partialorder %v403_v45, 0.0  ;;  %v466_v50 = vmul.f32 0.2, %v402_v44  ;;  %v467_v51 = vmul.f32 0.2, %v403_v45  ;;  %4407 = vset.pattern.permute.xlu1 %v4842_v53  ;;  %4406 = vset.pattern.permute.xlu0 %v4842_v53 }
  0x90   : > { %v470_v58 = vmul.f32 0.2, %v406_v46  ;;  %v471_v59 = vmul.f32 0.2, %v407_v47  ;;  %vm438_vm8 = vcmp.gt.f32.partialorder %v406_v46, 0.0  ;;  %vm439_vm9 = vcmp.gt.f32.partialorder %v407_v47, 0.0  ;;  %4405 = vset.pattern.permute.xlu2 %v4842_v53 }
  0x91   : > { %v4995_v55 = vsel %vm434_vm6, %v402_v44, %v466_v50  ;;  %v4997_v56 = vsel %vm435_vm7, %v403_v45, %v467_v51  ;;  %v417_v50 = vadd.f32 %v4963_v19, %v358_v24  ;;  %v543_v52 = vmax.f32 %v5024_v40, %v5027_v41 }
  0x92   : > { %v531_v57 = vmax.f32 %v4995_v55, %v4997_v56  ;;  %v5005_v22 = vsel %vm438_vm8, %v406_v46, %v470_v58  ;;  %v5007_v23 = vsel %vm439_vm9, %v407_v47, %v471_v59  ;;  %v480_v63 = vmul.f32 0.2, %v416_v42 }
  0x93   : > { %v537_v32 = vmax.f32 %v5005_v22, %v5007_v23  ;;  %vm448_vm4 = vcmp.gt.f32.partialorder %v416_v42, 0.0  ;;  %vm449_vm5 = vcmp.gt.f32.partialorder %v417_v50, 0.0 }
  0x94   : > { %v353_v60 = vpop.permute.xlu1 %352  ;;  %532 = vmax.xlane.f32.xlu2 %v531_v57  ;;  %v348_v61 = vpop.permute.xlu0 %347 }
  0x95   : > { %v414_v0 = vadd.f32 %v4961_v18, %v353_v60  ;;  %v415_v17 = vadd.f32 %v4963_v19, %v353_v60  ;;  %541 = vmax.xlane.f32.xlu1 %v540_v54  ;;  %v412_v20 = vadd.f32 %v4961_v18, %v348_v61  ;;  %v413_v21 = vadd.f32 %v4963_v19, %v348_v61  ;;  %v373_v60 = vpop.permute.xlu2 %372 }
  0x97   : > { %vm446_vm12 = vcmp.gt.f32.partialorder %v414_v0, 0.0  ;;  %vm447_vm13 = vcmp.gt.f32.partialorder %v415_v17, 0.0  ;;  %v478_v25 = vmul.f32 0.2, %v414_v0  ;;  %v479_v26 = vmul.f32 0.2, %v415_v17 }
  0x98   : > { %vm444_vm14 = vcmp.gt.f32.partialorder %v412_v20, 0.0  ;;  %vm445_vm15 = vcmp.gt.f32.partialorder %v413_v21, 0.0  ;;  %v476_v27 = vmul.f32 0.2, %v412_v20  ;;  %v477_v28 = vmul.f32 0.2, %v413_v21 }
  0x99   : > { %v5009_v29 = vsel %vm446_vm12, %v414_v0, %v478_v25  ;;  %v5011_v30 = vsel %vm447_vm13, %v415_v17, %v479_v26  ;;  %v422_v25 = vadd.f32 %v4961_v18, %v373_v60 }
  0x9a   : > { %v549_v31 = vmax.f32 %v5009_v29, %v5011_v30  ;;  %v5017_v35 = vsel %vm444_vm14, %v412_v20, %v476_v27  ;;  %v5019_v36 = vsel %vm445_vm15, %v413_v21, %v477_v28  ;;  %v481_v21 = vmul.f32 0.2, %v417_v50 }
  0x9b   : > { %v546_v39 = vmax.f32 %v5017_v35, %v5019_v36  ;;  %vm454_vm10 = vcmp.gt.f32.partialorder %v422_v25, 0.0 }
  0x9c   : > { %v368_v43 = vpop.permute.xlu1 %367  ;;  %538 = vmax.xlane.f32.xlu2 %v537_v32  ;;  %v363_v44 = vpop.permute.xlu0 %362 }
  0x9d   : > { %v420_v45 = vadd.f32 %v4961_v18, %v368_v43  ;;  %v421_v46 = vadd.f32 %v4963_v19, %v368_v43  ;;  %550 = vmax.xlane.f32.xlu1 %v549_v31  ;;  %547 = vmax.xlane.f32.xlu0 %v546_v39  ;;  %v418_v47 = vadd.f32 %v4961_v18, %v363_v44 }
  0x9e   : > { %v419_v51 = vadd.f32 %v4963_v19, %v363_v44  ;;  %v423_v39 = vadd.f32 %v4963_v19, %v373_v60  ;;  %v5055_v44 = vsel %vm448_vm4, %v416_v42, %v480_v63  ;;  %v388_v63 = vpop.permute.xlu2 %387 }
  0x9f   : > { %vm452_vm0 = vcmp.gt.f32.partialorder %v420_v45, 0.0  ;;  %vm453_vm1 = vcmp.gt.f32.partialorder %v421_v46, 0.0  ;;  %v484_v54 = vmul.f32 0.2, %v420_v45  ;;  %v485_v57 = vmul.f32 0.2, %v421_v46 }
  0xa0   : > { %vm450_vm2 = vcmp.gt.f32.partialorder %v418_v47, 0.0  ;;  %vm451_vm3 = vcmp.gt.f32.partialorder %v419_v51, 0.0  ;;  %v482_v58 = vmul.f32 0.2, %v418_v47  ;;  %v483_v59 = vmul.f32 0.2, %v419_v51 }
  0xa1   : > { %v5037_v61 = vsel %vm452_vm0, %v420_v45, %v484_v54  ;;  %v5039_v62 = vsel %vm453_vm1, %v421_v46, %v485_v57  ;;  %v5057_v45 = vsel %vm449_vm5, %v417_v50, %v481_v21  ;;  %v487_v60 = vmul.f32 0.2, %v423_v39 }
  0xa2   : > { %v558_v0 = vmax.f32 %v5037_v61, %v5039_v62  ;;  %v5043_v17 = vsel %vm450_vm2, %v418_v47, %v482_v58  ;;  %v5045_v20 = vsel %vm451_vm3, %v419_v51, %v483_v59  ;;  %v552_v57 = vmax.f32 %v5055_v44, %v5057_v45 }
  0xa3   : > { %v555_v24 = vmax.f32 %v5043_v17, %v5045_v20  ;;  %v486_v58 = vmul.f32 0.2, %v422_v25  ;;  %vm455_vm11 = vcmp.gt.f32.partialorder %v423_v39, 0.0 }
  0xa4   : > { %v383_v26 = vpop.permute.xlu1 %382  ;;  %544 = vmax.xlane.f32.xlu2 %v543_v52  ;;  %v378_v27 = vpop.permute.xlu0 %377 }
  0xa5   : > { %v426_v28 = vadd.f32 %v4961_v18, %v383_v26  ;;  %v427_v31 = vadd.f32 %v4963_v19, %v383_v26  ;;  %559 = vmax.xlane.f32.xlu1 %v558_v0  ;;  %556 = vmax.xlane.f32.xlu0 %v555_v24  ;;  %v424_v32 = vadd.f32 %v4961_v18, %v378_v27 }
  0xa6   : > { %v425_v43 = vadd.f32 %v4963_v19, %v378_v27  ;;  %v428_v27 = vadd.f32 %v4961_v18, %v388_v63 }
  0xa7   : > { %vm458_vm6 = vcmp.gt.f32.partialorder %v426_v28, 0.0  ;;  %vm459_vm7 = vcmp.gt.f32.partialorder %v427_v31, 0.0  ;;  %v490_v46 = vmul.f32 0.2, %v426_v28  ;;  %v491_v47 = vmul.f32 0.2, %v427_v31 }
  0xa8   : > { %vm456_vm8 = vcmp.gt.f32.partialorder %v424_v32, 0.0  ;;  %vm457_vm9 = vcmp.gt.f32.partialorder %v425_v43, 0.0  ;;  %v488_v51 = vmul.f32 0.2, %v424_v32  ;;  %v489_v52 = vmul.f32 0.2, %v425_v43 }
  0xa9   : > { %v5059_v53 = vsel %vm458_vm6, %v426_v28, %v490_v46  ;;  %v5061_v54 = vsel %vm459_vm7, %v427_v31, %v491_v47  ;;  %v429_v28 = vadd.f32 %v4963_v19, %v388_v63  ;;  %v5077_v31 = vsel %vm454_vm10, %v422_v25, %v486_v58 }
  0xaa   : > { %v567_v42 = vmax.f32 %v5059_v53, %v5061_v54  ;;  %v5067_v50 = vsel %vm456_vm8, %v424_v32, %v488_v51  ;;  %v5069_v59 = vsel %vm457_vm9, %v425_v43, %v489_v52  ;;  %v5079_v32 = vsel %vm455_vm11, %v423_v39, %v487_v60  ;;  %v4249_v60 = vld [vmem:[%s7217_s1 + $0x78] sm:$0xff] }
  0xab   : > { %v564_v0 = vmax.f32 %v5067_v50, %v5069_v59  ;;  %v561_v52 = vmax.f32 %v5077_v31, %v5079_v32  ;;  %vm460_vm14 = vcmp.gt.f32.partialorder %v428_v27, 0.0  ;;  %vm461_vm15 = vcmp.gt.f32.partialorder %v429_v28, 0.0  ;;  %977 = vmatpush.bf16.msra.mxu1 %v4249_v60 }
  0xac   : > { %553 = vmax.xlane.f32.xlu2 %v552_v57  ;;  %v393_v21 = vpop.permute.xlu0 %392  ;;  %v492_v57 = vmul.f32 0.2, %v428_v27 }
  0xad   : > { %568 = vmax.xlane.f32.xlu1 %v567_v42  ;;  %565 = vmax.xlane.f32.xlu0 %v564_v0  ;;  %v430_v24 = vadd.f32 %v4961_v18, %v393_v21  ;;  %v431_v26 = vadd.f32 %v4963_v19, %v393_v21  ;;  %v493_v19 = vmul.f32 0.2, %v429_v28  ;;  %v4241_v42 = vld [vmem:[%s7217_s1 + $0x38] sm:$0xff] }
  0xae   : > { %v5089_v25 = vsel %vm460_vm14, %v428_v27, %v492_v57  ;;  %928 = vmatpush.bf16.msra.mxu0 %v4241_v42  ;;  %v226_v27 = vld [vmem:[%s5166_s12] sm:$0xff] }
  0xaf   : > { %vm462_vm12 = vcmp.gt.f32.partialorder %v430_v24, 0.0  ;;  %vm463_vm13 = vcmp.gt.f32.partialorder %v431_v26, 0.0  ;;  %v494_v43 = vmul.f32 0.2, %v430_v24  ;;  %v495_v46 = vmul.f32 0.2, %v431_v26 }
  0xb0   : > { %v5091_v39 = vsel %vm461_vm15, %v429_v28, %v493_v19 }
  0xb1   : > { %v5081_v47 = vsel %vm462_vm12, %v430_v24, %v494_v43  ;;  %v5083_v51 = vsel %vm463_vm13, %v431_v26, %v495_v46  ;;  %v570_v58 = vmax.f32 %v5089_v25, %v5091_v39  ;;  %v234_v46 = vunpack.c.0.s8 %v226_v27 }
  0xb2   : > { %v573_v18 = vmax.f32 %v5081_v47, %v5083_v51 }
  0xb3   : > { %v5172_v42 = vcvt.s32.f32 %v234_v46 }
  0xb4   : > { %562 = vmax.xlane.f32.xlu2 %v561_v52  ;;  %v227_v52 = vld [vmem:[%s5166_s12 + $0x8] sm:$0xff] }
  0xb5   : > { %574 = vmax.xlane.f32.xlu0 %v573_v18  ;;  %v235_v57 = vunpack.c.0.s8 %v227_v52  ;;  %v237_v19 = vunpack.c.1.s8 %v227_v52  ;;  %7305 = vst [vmem:[#allocation2_spill] sm:$0xff] %v5172_v42 }
  0xbc   : > { %571 = vmax.xlane.f32.xlu2 %v570_v58 }
  0xc6   : > { %1105 = vperm.xlu1 %4407, %v4895_v1   ;;  %v4240_v1 = vld [vmem:[%s7217_s1 + $0x30] sm:$0xff] }
  0xc7   : > { %929 = vmatpush.bf16.msra.mxu0 %v4240_v1 }
  0xc9   : > { %1100 = vperm.xlu0 %4406, %v4910_v5   ;;  %v4247_v5 = vld [vmem:[%s7217_s1 + $0x68] sm:$0xff] }
  0xce   : > { %1115 = vperm.xlu1 %4407, %v4903_v3   ;;  %v4239_v3 = vld [vmem:[%s7217_s1 + $0x28] sm:$0xff] }
  0xcf   : > { %930 = vmatpush.bf16.msra.mxu0 %v4239_v3 }
  0xd1   : > { %1135 = vperm.xlu0 %4406, %v4925_v9   ;;  %v4237_v9 = vld [vmem:[%s7217_s1 + $0x18] sm:$0xff] }
  0xd4   : > { %1095 = vperm.xlu2 %4405, %v4898_v2   ;;  %v4248_v2 = vld [vmem:[%s7217_s1 + $0x70] sm:$0xff] }
  0xd5   : > { %978 = vmatpush.bf16.msra.mxu1 %v4248_v2 }
  0xd6   : > { %1125 = vperm.xlu1 %4407, %v4922_v8   ;;  %v4246_v8 = vld [vmem:[%s7217_s1 + $0x60] sm:$0xff] }
  0xd9   : > { %1150 = vperm.xlu0 %4406, %v4937_v12   ;;  %979 = vmatpush.bf16.msra.mxu1 %v4247_v5  ;;  %v4244_v12 = vld [vmem:[%s7217_s1 + $0x50] sm:$0xff]  ;;  %v5178_v5 = vcvt.s32.f32 %v235_v57 }
  0xdb   : > { %7307 = vst [vmem:[#allocation4_spill] sm:$0xff] %v5178_v5 }
  0xdc   : > { %1110 = vperm.xlu2 %4405, %v4907_v4   ;;  %v4238_v4 = vld [vmem:[%s7217_s1 + $0x20] sm:$0xff] }
  0xdd   : > { %931 = vmatpush.bf16.msra.mxu0 %v4238_v4  ;;  %980 = vmatpush.bf16.msra.mxu1 %v4246_v8  ;;  %v5180_v4 = vcvt.s32.f32 %v237_v19 }
  0xde   : > { %1140 = vperm.xlu1 %4407, %v4934_v11   ;;  %v4236_v11 = vld [vmem:[%s7217_s1 + $0x10] sm:$0xff] }
  0xdf   : > { %7308 = vst [vmem:[#allocation5_spill] sm:$0xff] %v5180_v4 }
  0xe1   : > { %1165 = vperm.xlu0 %4406, %v4949_v15   ;;  %932 = vmatpush.bf16.msra.mxu0 %v4237_v9  ;;  %v4234_v15 = vld [vmem:[%s7217_s1] sm:$0xff] }
  0xe4   : > { %1120 = vperm.xlu2 %4405, %v4913_v6   ;;  %v4245_v6 = vld [vmem:[%s7217_s1 + $0x58] sm:$0xff] }
  0xe5   : > { %981 = vmatpush.bf16.msra.mxu1 %v4245_v6  ;;  %933 = vmatpush.bf16.msra.mxu0 %v4236_v11 }
  0xe6   : > { %1155 = vperm.xlu1 %4407, %v4946_v14   ;;  %v4235_v14 = vld [vmem:[%s7217_s1 + $0x8] sm:$0xff] }
  0xe9   : > { %982 = vmatpush.bf16.msra.mxu1 %v4244_v12  ;;  %934 = vmatpush.bf16.msra.mxu0 %v4235_v14 }
  0xec   : > { %1130 = vperm.xlu2 %4405, %v4919_v7   ;;  %v4243_v7 = vld [vmem:[%s7217_s1 + $0x48] sm:$0xff] }
  0xed   : > { %983 = vmatpush.bf16.msra.mxu1 %v4243_v7  ;;  %935 = vmatpush.bf16.msra.mxu0 %v4234_v15 }
  0xee   : > { %1170 = vperm.xlu1 %4407, %v4955_v16   ;;  %v4242_v16 = vld [vmem:[%s7217_s1 + $0x40] sm:$0xff] }
  0xf1   : > { %984 = vmatpush.bf16.msra.mxu1 %v4242_v16 }
  0xf4   : > { %1145 = vperm.xlu2 %4405, %v4931_v10  }
  0xfc   : > { %1160 = vperm.xlu2 %4405, %v4943_v13  }
  0xff   : > { %v536_v18 = vpop.xlane.xlu0 %535 }
 0x100   : > { %v530_v63 = vpop.xlane.xlu1 %529  ;;  %v580_v2 = vsub.f32 %v4971_v33, %v536_v18 }
 0x101   : > { %v576_v10 = vsub.f32 %v4977_v37, %v530_v63  ;;  %v577_v0 = vsub.f32 %v4979_v38, %v530_v63  ;;  %v236_v38 = vunpack.c.1.s8 %v226_v27 }
 0x102   : > { %v616_v15 = vmul.f32 1.442695, %v580_v2 }
 0x103   : > { %v608_v21 = vmul.f32 1.442695, %v576_v10  ;;  %v610_v28 = vmul.f32 1.442695, %v577_v0 }
 0x105   : > { %4414 = vpow2.f32 %v608_v21  ;;  %v240_v21 = vunpack.c.3.s8 %v226_v27 }
 0x107   : > { %v533_v24 = vpop.xlane.xlu2 %532 }
 0x108   : > { %v578_v26 = vsub.f32 %v4995_v55, %v533_v24  ;;  %v579_v13 = vsub.f32 %v4997_v56, %v533_v24  ;;  %v5174_v55 = vcvt.s32.f32 %v236_v38  ;;  %v542_v3 = vpop.xlane.xlu1 %541  ;;  %v238_v24 = vunpack.c.2.s8 %v226_v27 }
 0x10a   : > { %v612_v37 = vmul.f32 1.442695, %v578_v26  ;;  %v614_v43 = vmul.f32 1.442695, %v579_v13  ;;  %7306 = vst [vmem:[#allocation3_spill] sm:$0xff] %v5174_v55  ;;  %v241_v13 = vunpack.c.3.s8 %v227_v52 }
 0x10b   : > { %v4415_v56 = vpop.eup %4414 }
 0x10c   : > { %4416 = vpow2.f32 %v612_v37  ;;  %v5184_v6 = vmul.f32 %v4415_v56, %v5172_v42 }
 0x10d   : > { %4418 = vpow2.f32 %v610_v28  ;;  %v5202_v28 = vcvt.s32.f32 %v240_v21  ;;  %v5246_v21 = vld [vmem:[%s5166_s12 + $0x18] sm:$0xff] }
 0x10e   : > { %4420 = vpow2.f32 %v614_v43  ;;  %v239_v43 = vunpack.c.2.s8 %v227_v52 }
 0x10f   : > { %v539_v58 = vpop.xlane.xlu2 %538  ;;  %7309 = vst [vmem:[#allocation6_spill] sm:$0xff] %v5202_v28 }
 0x110   : > { %v582_v60 = vsub.f32 %v5005_v22, %v539_v58  ;;  %v583_v9 = vsub.f32 %v5007_v23, %v539_v58  ;;  %v581_v22 = vsub.f32 %v4973_v34, %v536_v18  ;;  %v5190_v7 = vpop.xlane.xlu0 %547  ;;  %v551_v26 = vpop.xlane.xlu1 %550  ;;  %v5208_v18 = vcvt.s32.f32 %v238_v24 }
 0x111   : > { %v5211_v58 = vcvt.s32.f32 %v241_v13  ;;  %v245_v24 = vunpack.c.1.s8 %v5246_v21 }
 0x112   : > { %v4417_v1 = vpop.eup %4416  ;;  %v620_v12 = vmul.f32 1.442695, %v582_v60  ;;  %v622_v63 = vmul.f32 1.442695, %v583_v9  ;;  %v618_v34 = vmul.f32 1.442695, %v581_v22  ;;  %v584_v60 = vsub.f32 %v4987_v48, %v542_v3 }
 0x113   : > { %v4419_v8 = vpop.eup %4418  ;;  %v5187_v11 = vmul.f32 %v4417_v1, %v5174_v55  ;;  %7310 = vst [vmem:[#allocation7_spill] sm:$0xff] %v5208_v18  ;;  %v5217_v1 = vcvt.s32.f32 %v239_v43  ;;  %v590_v43 = vsub.f32 %v5009_v29, %v551_v26  ;;  %v589_v29 = vsub.f32 %v5019_v36, %v5190_v7 }
 0x114   : > { %v4421_v14 = vpop.eup %4420  ;;  %v5195_v16 = vmul.f32 %v4419_v8, %v5178_v5  ;;  %4422 = vpow2.f32 %v620_v12  ;;  %7311 = vst [vmem:[#allocation8_spill] sm:$0xff] %v5211_v58  ;;  %v585_v12 = vsub.f32 %v4989_v49, %v542_v3  ;;  %v624_v22 = vmul.f32 1.442695, %v584_v60 }
 0x115   : > { %v816_v33 = vpack.c.bf16 %v5187_v11, %v5184_v6  ;;  %v5198_v23 = vmul.f32 %v4421_v14, %v5180_v4  ;;  %4424 = vpow2.f32 %v616_v15  ;;  %7312 = vst [vmem:[#allocation9_spill] sm:$0xff] %v5217_v1 }
 0x116   : > { %4426 = vpow2.f32 %v622_v63  ;;  %v626_v49 = vmul.f32 1.442695, %v585_v12  ;;  %v5262_v12 = vcvt.s32.f32 %v245_v24 }
 0x117   : > { %v545_v10 = vpop.xlane.xlu2 %544  ;;  %936 = vmatmul.bf16.vlgmr.msra.gmra.mxu0 %v816_v33  ;;  %v817_v0 = vpack.c.bf16 %v5198_v23, %v5195_v16  ;;  %4428 = vpow2.f32 %v618_v34 }
 0x118   : > { %v5204_v46 = vpop.xlane.xlu0 %556  ;;  %v586_v19 = vsub.f32 %v5024_v40, %v545_v10  ;;  %v587_v2 = vsub.f32 %v5027_v41, %v545_v10  ;;  %v5229_v48 = vpop.xlane.xlu1 %559  ;;  %v5239_v10 = vld [vmem:[%s5166_s12 + $0x10] sm:$0xff]  ;;  %7315 = vst [vmem:[#allocation12_spill] sm:$0xff] %v5262_v12 }
 0x119   : > { %985 = vmatmul.bf16.vlgmr.msra.gmra.mxu1 %v817_v0  ;;  %v244_v0 = vunpack.c.1.s8 %v5239_v10  ;;  %v242_v34 = vunpack.c.0.s8 %v5239_v10 }
 0x11a   : > { %v4423_v37 = vpop.eup %4422  ;;  %v628_v9 = vmul.f32 1.442695, %v586_v19  ;;  %v630_v41 = vmul.f32 1.442695, %v587_v2  ;;  %v591_v19 = vsub.f32 %v5011_v30, %v551_v26  ;;  %v588_v2 = vsub.f32 %v5017_v35, %v5190_v7 }
 0x11b   : > { %v4425_v57 = vpop.eup %4424  ;;  %v5214_v27 = vmul.f32 %v4423_v37, %v5202_v28  ;;  %v5249_v13 = vcvt.s32.f32 %v244_v0  ;;  %v5256_v60 = vcvt.s32.f32 %v242_v34  ;;  %v4020_v30 = vld [vmem:[%s7219_s3 + $0x1] ss:$8 sm:$0x3] }
 0x11c   : > { %v4427_v56 = vpop.eup %4426  ;;  %v5221_v8 = vmul.f32 %v4425_v57, %v5208_v18  ;;  %4430 = vpow2.f32 %v628_v9  ;;  %v243_v57 = vunpack.c.0.s8 %v5246_v21  ;;  %v638_v35 = vmul.f32 1.442695, %v591_v19 }
 0x11d   : > { %v4429_v52 = vpop.eup %4428  ;;  %v5224_v40 = vmul.f32 %v4427_v56, %v5211_v58  ;;  %4432 = vpow2.f32 %v624_v22  ;;  %7313 = vst [vmem:[#allocation10_spill] sm:$0xff] %v5249_v13  ;;  %v636_v22 = vmul.f32 1.442695, %v590_v43  ;;  %v632_v34 = vmul.f32 1.442695, %v588_v2 }
 0x11e   : > { %v818_v14 = vpack.c.bf16 %v5214_v27, %v5221_v8  ;;  %v5232_v33 = vmul.f32 %v4429_v52, %v5217_v1  ;;  %4434 = vpow2.f32 %v630_v41  ;;  %7314 = vst [vmem:[#allocation11_spill] sm:$0xff] %v5256_v60  ;;  %v5272_v41 = vcvt.s32.f32 %v243_v57 }
 0x11f   : > { %v5206_v38 = vpop.xlane.xlu2 %553  ;;  %4436 = vpow2.f32 %v626_v49  ;;  %v5279_v24 = vperm.slane %v4020_v30, 0  ;;  %v5281_v36 = vperm.slane %v4020_v30, 1  ;;  %v246_v57 = vunpack.c.2.s8 %v5239_v10 }
 0x120   : > { %v819_v63 = vpack.c.bf16 %v5224_v40, %v5232_v33  ;;  %v5241_v3 = vpop.xlane.xlu0 %565  ;;  %v5260_v9 = vpop.xlane.xlu1 %568  ;;  %7316 = vst [vmem:[#allocation13_spill] sm:$0xff] %v5272_v41  ;;  %4438 = vpow2.f32 %v636_v22  ;;  %v247_v2 = vunpack.c.2.s8 %v5246_v21  ;;  %v249_v30 = vunpack.c.3.s8 %v5246_v21 }
 0x121   : > { %4440 = vpow2.f32 %v638_v35 }
 0x122   : > { %v4431_v37 = vpop.eup %4430  ;;  %4442 = vpow2.f32 %v632_v34 }
 0x123   : > { %v4433_v52 = vpop.eup %4432  ;;  %v5270_v26 = vmul.f32 %v4431_v37, %v5249_v13  ;;  %v634_v37 = vmul.f32 1.442695, %v589_v29 }
 0x124   : > { %v5277_v0 = vmul.f32 %v4433_v52, %v5256_v60 }
 0x125   : > { %4444 = vpow2.f32 %v634_v37 }
 0x126   : > { %v820_v43 = vpack.c.bf16 %v5270_v26, %v5277_v0 }
 0x127   : > { %v5234_v15 = vpop.xlane.xlu2 %562  ;;  %941 = vmatmul.bf16.gmra.mxu0 %v818_v14  ;;  %v4435_v14 = vpop.eup %4434 }
 0x128   : > { %v5274_v49 = vpop.xlane.xlu0 %574  ;;  %v5284_v7 = vmul.f32 %v4435_v14, %v5262_v12  ;;  %v248_v14 = vunpack.c.3.s8 %v5239_v10 }
 0x129   : > { %990 = vmatmul.bf16.gmra.mxu1 %v819_v63  ;;  %v4437_v63 = vpop.eup %4436 }
 0x12a   : > { %v5290_v19 = vmul.f32 %v4437_v63, %v5272_v41  ;;  %v4439_v60 = vpop.eup %4438  ;;  %v5315_v5 = vcvt.s32.f32 %v248_v14  ;;  %v5325_v14 = vcvt.s32.f32 %v249_v30 }
 0x12c   : > { %v821_v22 = vpack.c.bf16 %v5284_v7, %v5290_v19  ;;  %7318 = vst [vmem:[#allocation15_spill] sm:$0xff] %v5315_v5 }
 0x12d   : > { %7320 = vst [vmem:[#allocation17_spill] sm:$0xff] %v5325_v14 }
 0x12f   : > { %v5254_v56 = vpop.xlane.xlu2 %571 }
 0x137   : > { %v1096_v52 = vpop.permute.xlu2 %1095  ;;  %946 = vmatmul.bf16.gmra.mxu0 %v820_v43  ;;  %v5301_v43 = vcvt.s32.f32 %v246_v57  ;;  %v4441_v57 = vpop.eup %4440 }
 0x138   : > { %v1106_v29 = vpop.permute.xlu1 %1105  ;;  %v1178_v12 = vadd.f32 %v5279_v24, %v1096_v52  ;;  %v1179_v13 = vadd.f32 %v5281_v36, %v1096_v52  ;;  %v4443_v1 = vpop.eup %4442 }
 0x139   : > { %v1182_v63 = vadd.f32 %v5279_v24, %v1106_v29  ;;  %v1183_v35 = vadd.f32 %v5281_v36, %v1106_v29  ;;  %7317 = vst [vmem:[#allocation14_spill] sm:$0xff] %v5301_v43  ;;  %995 = vmatmul.bf16.gmra.mxu1 %v821_v22 }
 0x13a   : > { %vm1210_vm0 = vcmp.gt.f32.partialorder %v1178_v12, 0.0  ;;  %vm1211_vm1 = vcmp.gt.f32.partialorder %v1179_v13, 0.0  ;;  %v1242_v10 = vmul.f32 0.2, %v1178_v12  ;;  %v1243_v21 = vmul.f32 0.2, %v1179_v13 }
 0x13b   : > { %v1101_v34 = vpop.permute.xlu0 %1100  ;;  %vm1214_vm2 = vcmp.gt.f32.partialorder %v1182_v63, 0.0  ;;  %vm1215_vm3 = vcmp.gt.f32.partialorder %v1183_v35, 0.0  ;;  %v1246_v41 = vmul.f32 0.2, %v1182_v63  ;;  %v1247_v52 = vmul.f32 0.2, %v1183_v35 }
 0x13c   : > { %v1180_v58 = vadd.f32 %v5279_v24, %v1101_v34  ;;  %v1181_v37 = vadd.f32 %v5281_v36, %v1101_v34  ;;  %v5305_v28 = vsel %vm1210_vm0, %v1178_v12, %v1242_v10  ;;  %v5307_v29 = vsel %vm1211_vm1, %v1179_v13, %v1243_v21  ;;  %v4445_v10 = vpop.eup %4444 }
 0x13d   : > { %v5309_v22 = vsel %vm1214_vm2, %v1182_v63, %v1246_v41  ;;  %v5311_v4 = vsel %vm1215_vm3, %v1183_v35, %v1247_v52  ;;  %v1306_v55 = vmax.f32 %v5305_v28, %v5307_v29  ;;  %v592_v41 = vsub.f32 %v5055_v44, %v5206_v38 }
 0x13e   : > { %v1312_v42 = vmax.f32 %v5309_v22, %v5311_v4  ;;  %vm1212_vm4 = vcmp.gt.f32.partialorder %v1180_v58, 0.0  ;;  %vm1213_vm5 = vcmp.gt.f32.partialorder %v1181_v37, 0.0  ;;  %v1244_v12 = vmul.f32 0.2, %v1180_v58 }
 0x13f   : > { %1307 = vmax.xlane.f32.xlu2 %v1306_v55  ;;  %v1245_v13 = vmul.f32 0.2, %v1181_v37  ;;  %v5323_v35 = vcvt.s32.f32 %v247_v2  ;;  %v5330_v34 = vmul.f32 %v4443_v1, %v5301_v43  ;;  %v5333_v55 = vmul.f32 %v4439_v60, %v5315_v5 }
 0x140   : > { %1313 = vmax.xlane.f32.xlu1 %v1312_v42  ;;  %v5321_v63 = vsel %vm1212_vm4, %v1180_v58, %v1244_v12  ;;  %v594_v44 = vsub.f32 %v5043_v17, %v5204_v46  ;;  %v593_v58 = vsub.f32 %v5057_v45, %v5206_v38  ;;  %v640_v2 = vmul.f32 1.442695, %v592_v41 }
 0x141   : > { %7319 = vst [vmem:[#allocation16_spill] sm:$0xff] %v5323_v35  ;;  %v5327_v21 = vsel %vm1213_vm5, %v1181_v37, %v1245_v13  ;;  %v5342_v30 = vmul.f32 %v4445_v10, %v5323_v35  ;;  %v5345_v1 = vmul.f32 %v4441_v57, %v5325_v14  ;;  %v595_v60 = vsub.f32 %v5045_v20, %v5204_v46  ;;  %v5354_v37 = vld [vmem:[%s5166_s12 + $0x28] sm:$0xff]  ;;  %v5361_v57 = vld [vmem:[%s5166_s12 + $0x20] sm:$0xff] }
 0x142   : > { %v1309_v42 = vmax.f32 %v5321_v63, %v5327_v21  ;;  %v707_v17 = vadd.f32 %v5198_v23, %v5187_v11  ;;  %v822_v52 = vpack.c.bf16 %v5333_v55, %v5330_v34  ;;  %v596_v45 = vsub.f32 %v5037_v61, %v5229_v48 }
 0x143   : > { %v644_v38 = vmul.f32 1.442695, %v594_v44  ;;  %v704_v12 = vadd.f32 %v5195_v16, %v5184_v6  ;;  %v597_v20 = vsub.f32 %v5039_v62, %v5229_v48  ;;  %v642_v46 = vmul.f32 1.442695, %v593_v58 }
 0x144   : > { %1310 = vmax.xlane.f32.xlu0 %v1309_v42  ;;  %4446 = vpow2.f32 %v640_v2  ;;  %v823_v11 = vpack.c.bf16 %v5345_v1, %v5342_v30  ;;  %v253_v23 = vunpack.c.1.s8 %v5354_v37  ;;  %v646_v61 = vmul.f32 1.442695, %v595_v60 }
 0x145   : > { %v250_v10 = vunpack.c.0.s8 %v5361_v57  ;;  %v252_v6 = vunpack.c.1.s8 %v5361_v57  ;;  %v648_v16 = vmul.f32 1.442695, %v596_v45  ;;  %4448 = vpow2.f32 %v644_v38  ;;  %v5397_v45 = vld [vmem:[%s5166_s12 + $0x38] sm:$0xff] }
 0x146   : > { %v602_v62 = vsub.f32 %v5059_v53, %v5260_v9  ;;  %v710_v48 = vadd.f32 %v5232_v33, %v5221_v8  ;;  %v650_v13 = vmul.f32 1.442695, %v597_v20  ;;  %v603_v41 = vsub.f32 %v5061_v54, %v5260_v9 }
 0x147   : > { %708 = vadd.xlane.f32.xlu2 %v707_v17  ;;  %951 = vmatmul.bf16.gmra.mxu0 %v822_v52  ;;  %4450 = vpow2.f32 %v642_v46  ;;  %v254_v44 = vunpack.c.2.s8 %v5361_v57  ;;  %v598_v42 = vsub.f32 %v5077_v31, %v5234_v15  ;;  %v251_v58 = vunpack.c.0.s8 %v5354_v37  ;;  %v5394_v52 = vld [vmem:[%s5166_s12 + $0x30] sm:$0xff] }
 0x148   : > { %705 = vadd.xlane.f32.xlu1 %v704_v12  ;;  %v5380_v53 = vcvt.s32.f32 %v253_v23  ;;  %v255_v2 = vunpack.c.2.s8 %v5354_v37  ;;  %4452 = vpow2.f32 %v646_v61  ;;  %v599_v8 = vsub.f32 %v5079_v32, %v5234_v15 }
 0x149   : > { %1000 = vmatmul.bf16.gmra.mxu1 %v823_v11  ;;  %v716_v54 = vadd.f32 %v5290_v19, %v5277_v0  ;;  %v5387_v33 = vcvt.s32.f32 %v250_v10  ;;  %4454 = vpow2.f32 %v648_v16  ;;  %v660_v60 = vmul.f32 1.442695, %v602_v62 }
 0x14a   : > { %7321 = vst [vmem:[#allocation18_spill] sm:$0xff] %v5380_v53  ;;  %v4447_v9 = vpop.eup %4446  ;;  %v600_v31 = vsub.f32 %v5067_v50, %v5241_v3  ;;  %v713_v17 = vadd.f32 %v5224_v40, %v5214_v27  ;;  %4456 = vpow2.f32 %v650_v13  ;;  %v662_v32 = vmul.f32 1.442695, %v603_v41  ;;  %v5420_v41 = vpop.permute.xlu2 %1110 }
 0x14b   : > { %7322 = vst [vmem:[#allocation19_spill] sm:$0xff] %v5387_v33  ;;  %v601_v15 = vsub.f32 %v5069_v59, %v5241_v3  ;;  %v5401_v0 = vcvt.s32.f32 %v252_v6  ;;  %v4449_v19 = vpop.eup %4448  ;;  %v652_v38 = vmul.f32 1.442695, %v598_v42  ;;  %v5403_v12 = vcvt.s32.f32 %v251_v58 }
 0x14c   : > { %711 = vadd.xlane.f32.xlu0 %v710_v48  ;;  %v5405_v50 = vcvt.s32.f32 %v254_v44  ;;  %v5407_v27 = vcvt.s32.f32 %v255_v2  ;;  %v654_v20 = vmul.f32 1.442695, %v599_v8  ;;  %v688_v46 = vmul.f32 %v4447_v9, %v5387_v33  ;;  %v5433_v8 = vpop.permute.xlu1 %1115 }
 0x14d   : > { %7323 = vst [vmem:[#allocation20_spill] sm:$0xff] %v5401_v0  ;;  %v4451_v40 = vpop.eup %4450  ;;  %v260_v11 = vunpack.c.1.s8 %v5394_v52  ;;  %v261_v59 = vunpack.c.1.s8 %v5397_v45  ;;  %4458 = vpow2.f32 %v660_v60  ;;  %v656_v3 = vmul.f32 1.442695, %v600_v31 }
 0x14e   : > { %7324 = vst [vmem:[#allocation21_spill] sm:$0xff] %v5403_v12  ;;  %v719_v23 = vadd.f32 %v5284_v7, %v5270_v26  ;;  %v256_v61 = vunpack.c.3.s8 %v5361_v57  ;;  %v4453_v10 = vpop.eup %4452  ;;  %4460 = vpow2.f32 %v662_v32  ;;  %v658_v6 = vmul.f32 1.442695, %v601_v15 }
 0x14f   : > { %717 = vadd.xlane.f32.xlu2 %v716_v54  ;;  %7325 = vst [vmem:[#allocation22_spill] sm:$0xff] %v5405_v50  ;;  %v606_v16 = vsub.f32 %v5081_v47, %v5274_v49  ;;  %v690_v62 = vmul.f32 %v4449_v19, %v5401_v0  ;;  %v4455_v48 = vpop.eup %4454  ;;  %4462 = vpow2.f32 %v652_v38  ;;  %v604_v13 = vsub.f32 %v5089_v25, %v5254_v56 }
 0x150   : > { %714 = vadd.xlane.f32.xlu1 %v713_v17  ;;  %7326 = vst [vmem:[#allocation23_spill] sm:$0xff] %v5407_v27  ;;  %v689_v26 = vmul.f32 %v4451_v40, %v5403_v12  ;;  %v257_v7 = vunpack.c.3.s8 %v5354_v37  ;;  %v4457_v57 = vpop.eup %4456  ;;  %4464 = vpow2.f32 %v654_v20  ;;  %v605_v44 = vsub.f32 %v5091_v39, %v5254_v56 }
 0x151   : > { %v725_v47 = vadd.f32 %v5345_v1, %v5333_v55  ;;  %v824_v42 = vpack.c.bf16 %v690_v62, %v688_v46  ;;  %4466 = vpow2.f32 %v656_v3  ;;  %v607_v25 = vsub.f32 %v5083_v51, %v5274_v49 }
 0x152   : > { %v691_v58 = vmul.f32 %v4453_v10, %v5380_v53  ;;  %v722_v2 = vadd.f32 %v5342_v30, %v5330_v34  ;;  %4468 = vpow2.f32 %v658_v6  ;;  %v668_v37 = vmul.f32 1.442695, %v606_v16 }
 0x153   : > { %v258_v39 = vunpack.c.0.s8 %v5394_v52  ;;  %v259_v56 = vunpack.c.0.s8 %v5397_v45  ;;  %v4459_v55 = vpop.eup %4458  ;;  %v664_v1 = vmul.f32 1.442695, %v604_v13  ;;  %v5438_v51 = vmul.f32 %v4455_v48, %v5405_v50 }
 0x154   : > { %720 = vadd.xlane.f32.xlu0 %v719_v23  ;;  %v825_v54 = vpack.c.bf16 %v691_v58, %v689_v26  ;;  %v5441_v49 = vmul.f32 %v4457_v57, %v5407_v27  ;;  %v4461_v34 = vpop.eup %4460  ;;  %v666_v30 = vmul.f32 1.442695, %v605_v44  ;;  %v670_v60 = vmul.f32 1.442695, %v607_v25 }
 0x155   : > { %v4463_v9 = vpop.eup %4462  ;;  %v728_v31 = vadd.f32 %v689_v26, %v688_v46  ;;  %v5443_v17 = vcvt.s32.f32 %v256_v61  ;;  %v5445_v32 = vcvt.s32.f32 %v257_v7  ;;  %4470 = vpow2.f32 %v668_v37 }
 0x156   : > { %v4465_v15 = vpop.eup %4464  ;;  %v5447_v19 = vcvt.s32.f32 %v260_v11  ;;  %v5449_v38 = vcvt.s32.f32 %v261_v59  ;;  %4472 = vpow2.f32 %v664_v1  ;;  %v734_v20 = vadd.f32 %v5441_v49, %v5438_v51  ;;  %v1121_v59 = vpop.permute.xlu2 %1120 }
 0x157   : > { %726 = vadd.xlane.f32.xlu2 %v725_v47  ;;  %956 = vmatmul.bf16.gmra.mxu0 %v824_v42  ;;  %7327 = vst [vmem:[#allocation24_spill] sm:$0xff] %v5443_v17  ;;  %v4467_v40 = vpop.eup %4466  ;;  %v5453_v3 = vcvt.s32.f32 %v258_v39  ;;  %v5455_v23 = vcvt.s32.f32 %v259_v56  ;;  %4474 = vpow2.f32 %v666_v30  ;;  %v731_v61 = vadd.f32 %v691_v58, %v690_v62  ;;  %v1126_v47 = vpop.permute.xlu1 %1125 }
 0x158   : > { %723 = vadd.xlane.f32.xlu1 %v722_v2  ;;  %7328 = vst [vmem:[#allocation25_spill] sm:$0xff] %v5445_v32  ;;  %v4469_v46 = vpop.eup %4468  ;;  %v262_v10 = vunpack.c.2.s8 %v5394_v52  ;;  %v264_v11 = vunpack.c.3.s8 %v5394_v52  ;;  %4476 = vpow2.f32 %v670_v60  ;;  %v694_v6 = vmul.f32 %v4463_v9, %v5443_v17 }
 0x159   : > { %1005 = vmatmul.bf16.gmra.mxu1 %v825_v54  ;;  %7329 = vst [vmem:[#allocation26_spill] sm:$0xff] %v5447_v19  ;;  %v695_v16 = vmul.f32 %v4465_v15, %v5445_v32  ;;  %v263_v48 = vunpack.c.2.s8 %v5397_v45  ;;  %v265_v13 = vunpack.c.3.s8 %v5397_v45  ;;  %v5464_v26 = vmul.f32 %v4459_v55, %v5447_v19 }
 0x15a   : > { %7330 = vst [vmem:[#allocation27_spill] sm:$0xff] %v5449_v38  ;;  %v5467_v62 = vmul.f32 %v4461_v34, %v5449_v38  ;;  %v5470_v52 = vmul.f32 %v4467_v40, %v5453_v3  ;;  %v5473_v7 = vmul.f32 %v4469_v46, %v5455_v23  ;;  %v1184_v44 = vadd.f32 %v5279_v24, %v5420_v41 }
 0x15b   : > { %7331 = vst [vmem:[#allocation28_spill] sm:$0xff] %v5453_v3  ;;  %v4471_v57 = vpop.eup %4470  ;;  %v1185_v45 = vadd.f32 %v5281_v36, %v5420_v41  ;;  %v5479_v42 = vcvt.s32.f32 %v264_v11  ;;  %v737_v58 = vadd.f32 %v695_v16, %v694_v6  ;;  %v5481_v2 = vcvt.s32.f32 %v262_v10 }
 0x15c   : > { %729 = vadd.xlane.f32.xlu0 %v728_v31  ;;  %7332 = vst [vmem:[#allocation29_spill] sm:$0xff] %v5455_v23  ;;  %v4473_v25 = vpop.eup %4472  ;;  %v5483_v37 = vcvt.s32.f32 %v263_v48  ;;  %v5485_v56 = vcvt.s32.f32 %v265_v13  ;;  %v743_v1 = vadd.f32 %v5467_v62, %v5464_v26  ;;  %v740_v41 = vadd.f32 %v5473_v7, %v5470_v52  ;;  %v1136_v13 = vpop.permute.xlu0 %1135 }
 0x15d   : > { %7333 = vst [vmem:[#allocation30_spill] sm:$0xff] %v5479_v42  ;;  %v4475_v39 = vpop.eup %4474  ;;  %v826_v54 = vpack.c.bf16 %v694_v6, %v5438_v51  ;;  %v1248_v34 = vmul.f32 0.2, %v1184_v44  ;;  %v1249_v30 = vmul.f32 0.2, %v1185_v45  ;;  %v5493_v9 = vmul.f32 %v4471_v57, %v5479_v42 }
 0x15e   : > { %7334 = vst [vmem:[#allocation31_spill] sm:$0xff] %v5481_v2  ;;  %v4477_v55 = vpop.eup %4476  ;;  %v5496_v60 = vmul.f32 %v4473_v25, %v5481_v2  ;;  %v5499_v31 = vmul.f32 %v4475_v39, %v5483_v37  ;;  %vm1216_vm6 = vcmp.gt.f32.partialorder %v1184_v44, 0.0  ;;  %vm1217_vm7 = vcmp.gt.f32.partialorder %v1185_v45, 0.0 }
 0x15f   : > { %735 = vadd.xlane.f32.xlu2 %v734_v20  ;;  %7335 = vst [vmem:[#allocation32_spill] sm:$0xff] %v5483_v37  ;;  %v1186_v15 = vadd.f32 %v5279_v24, %v5433_v8  ;;  %v1187_v40 = vadd.f32 %v5281_v36, %v5433_v8  ;;  %v5506_v51 = vmul.f32 %v4477_v55, %v5485_v56  ;;  %v1141_v25 = vpop.permute.xlu1 %1140 }
 0x160   : > { %732 = vadd.xlane.f32.xlu1 %v731_v61  ;;  %7336 = vst [vmem:[#allocation33_spill] sm:$0xff] %v5485_v56  ;;  %v1188_v20 = vadd.f32 %v5279_v24, %v1121_v59  ;;  %v1189_v46 = vadd.f32 %v5281_v36, %v1121_v59  ;;  %v1131_v61 = vpop.permute.xlu2 %1130  ;;  %v827_v10 = vpack.c.bf16 %v695_v16, %v5441_v49 }
 0x161   : > { %v1190_v11 = vadd.f32 %v5279_v24, %v1126_v47  ;;  %v1191_v6 = vadd.f32 %v5281_v36, %v1126_v47  ;;  %v5513_v48 = vsel %vm1216_vm6, %v1184_v44, %v1248_v34  ;;  %v5515_v8 = vsel %vm1217_vm7, %v1185_v45, %v1249_v30 }
 0x162   : > { %v746_v57 = vadd.f32 %v5499_v31, %v5496_v60  ;;  %v749_v59 = vadd.f32 %v5506_v51, %v5493_v9  ;;  %vm1218_vm8 = vcmp.gt.f32.partialorder %v1186_v15, 0.0  ;;  %v1250_v49 = vmul.f32 0.2, %v1186_v15 }
 0x163   : > { %v1251_v16 = vmul.f32 0.2, %v1187_v40  ;;  %v1315_v47 = vmax.f32 %v5513_v48, %v5515_v8  ;;  %vm1219_vm9 = vcmp.gt.f32.partialorder %v1187_v40, 0.0  ;;  %v1252_v44 = vmul.f32 0.2, %v1188_v20 }
 0x164   : > { %738 = vadd.xlane.f32.xlu0 %v737_v58  ;;  %v1253_v45 = vmul.f32 0.2, %v1189_v46  ;;  %v1254_v58 = vmul.f32 0.2, %v1190_v11  ;;  %v1255_v39 = vmul.f32 0.2, %v1191_v6  ;;  %v1192_v55 = vadd.f32 %v5279_v24, %v1131_v61 }
 0x165   : > { %vm1220_vm10 = vcmp.gt.f32.partialorder %v1188_v20, 0.0  ;;  %vm1221_vm11 = vcmp.gt.f32.partialorder %v1189_v46, 0.0  ;;  %vm1222_vm12 = vcmp.gt.f32.partialorder %v1190_v11, 0.0  ;;  %vm1223_vm13 = vcmp.gt.f32.partialorder %v1191_v6, 0.0 }
 0x166   : > { %v5528_v34 = vsel %vm1218_vm8, %v1186_v15, %v1250_v49  ;;  %v5530_v30 = vsel %vm1219_vm9, %v1187_v40, %v1251_v16  ;;  %v1196_v37 = vadd.f32 %v5279_v24, %v1141_v25  ;;  %v5538_v2 = vsel %vm1222_vm12, %v1190_v11, %v1254_v58 }
 0x167   : > { %744 = vadd.xlane.f32.xlu2 %v743_v1  ;;  %961 = vmatmul.bf16.gmra.mxu0 %v826_v54  ;;  %v1193_v1 = vadd.f32 %v5281_v36, %v1131_v61  ;;  %v1195_v54 = vadd.f32 %v5281_v36, %v1136_v13  ;;  %v1197_v61 = vadd.f32 %v5281_v36, %v1141_v25  ;;  %vm1224_vm14 = vcmp.gt.f32.partialorder %v1192_v55, 0.0  ;;  %v1156_v16 = vpop.permute.xlu1 %1155 }
 0x168   : > { %741 = vadd.xlane.f32.xlu1 %v740_v41  ;;  %v1194_v41 = vadd.f32 %v5279_v24, %v1136_v13  ;;  %v5540_v56 = vsel %vm1223_vm13, %v1191_v6, %v1255_v39  ;;  %v1146_v13 = vpop.permute.xlu2 %1145  ;;  %v1318_v15 = vmax.f32 %v5528_v34, %v5530_v30  ;;  %v828_v40 = vpack.c.bf16 %v5464_v26, %v5470_v52 }
 0x169   : > { %1010 = vmatmul.bf16.gmra.mxu1 %v827_v10  ;;  %v5532_v10 = vsel %vm1220_vm10, %v1188_v20, %v1252_v44  ;;  %v1257_v20 = vmul.f32 0.2, %v1193_v1  ;;  %vm1225_vm15 = vcmp.gt.f32.partialorder %v1193_v1, 0.0  ;;  %vm1227_vm1 = vcmp.gt.f32.partialorder %v1195_v54, 0.0 }
 0x16a   : > { %vm1226_vm0 = vcmp.gt.f32.partialorder %v1194_v41, 0.0  ;;  %v1324_v11 = vmax.f32 %v5538_v2, %v5540_v56  ;;  %v1258_v25 = vmul.f32 0.2, %v1194_v41  ;;  %v1259_v49 = vmul.f32 0.2, %v1195_v54 }
 0x16b   : > { %vm1228_vm2 = vcmp.gt.f32.partialorder %v1196_v37, 0.0  ;;  %vm1229_vm3 = vcmp.gt.f32.partialorder %v1197_v61, 0.0  ;;  %v1260_v26 = vmul.f32 0.2, %v1196_v37  ;;  %v1261_v52 = vmul.f32 0.2, %v1197_v61 }
 0x16c   : > { %747 = vadd.xlane.f32.xlu0 %v746_v57  ;;  %v5534_v57 = vsel %vm1221_vm11, %v1189_v46, %v1253_v45  ;;  %v1151_v46 = vpop.permute.xlu0 %1150  ;;  %v1199_v44 = vadd.f32 %v5281_v36, %v1146_v13  ;;  %v5556_v58 = vsel %vm1225_vm15, %v1193_v1, %v1257_v20  ;;  %v5562_v42 = vsel %vm1226_vm0, %v1194_v41, %v1258_v25 }
 0x16d   : > { %v1321_v6 = vmax.f32 %v5532_v10, %v5534_v57  ;;  %v1200_v39 = vadd.f32 %v5279_v24, %v1151_v46  ;;  %v5565_v38 = vsel %vm1227_vm1, %v1195_v54, %v1259_v49  ;;  %vm1058_vm0 = vcmask 125952  }
 0x16e   : > { %vm1231_vm5 = vcmp.gt.f32.partialorder %v1199_v44, 0.0  ;;  %vm1932_vm1 = vcmask 257152  }
 0x16f   : > { %1316 = vmax.xlane.f32.xlu2 %v1315_v47  ;;  %v1198_v47 = vadd.f32 %v5279_v24, %v1146_v13  ;;  %v5571_v13 = vsel %vm1228_vm2, %v1196_v37, %v1260_v26  ;;  %v1330_v37 = vmax.f32 %v5562_v42, %v5565_v38  ;;  %v1171_v26 = vpop.permute.xlu1 %1170  ;;  %vm1232_vm8 = vcmp.gt.f32.partialorder %v1200_v39, 0.0 }
 0x170   : > { %750 = vadd.xlane.f32.xlu1 %v749_v59  ;;  %v1256_v59 = vmul.f32 0.2, %v1192_v55  ;;  %v1161_v54 = vpop.permute.xlu2 %1160 }
 0x171   : > { %v1262_v41 = vmul.f32 0.2, %v1198_v47  ;;  %vm1230_vm4 = vcmp.gt.f32.partialorder %v1198_v47, 0.0 }
 0x172   : > { %v5553_v45 = vsel %vm1224_vm14, %v1192_v55, %v1256_v59  ;;  %v1201_v55 = vadd.f32 %v5281_v36, %v1151_v46  ;;  %v1263_v59 = vmul.f32 0.2, %v1199_v44  ;;  %v1264_v46 = vmul.f32 0.2, %v1200_v39 }
 0x173   : > { %v1327_v1 = vmax.f32 %v5553_v45, %v5556_v58 }
 0x174   : > { %1319 = vmax.xlane.f32.xlu0 %v1318_v15  ;;  %v829_v15 = vpack.c.bf16 %v5467_v62, %v5473_v7  ;;  %v1202_v62 = vadd.f32 %v5279_v24, %v1156_v16  ;;  %v1203_v7 = vadd.f32 %v5281_v36, %v1156_v16  ;;  %v5584_v25 = vsel %vm1231_vm5, %v1199_v44, %v1263_v59 }
 0x175   : > { %vm1233_vm9 = vcmp.gt.f32.partialorder %v1201_v55, 0.0  ;;  %v1209_v59 = vadd.f32 %v5281_v36, %v1171_v26 }
 0x176   : > { %v1266_v49 = vmul.f32 0.2, %v1202_v62  ;;  %v1267_v16 = vmul.f32 0.2, %v1203_v7  ;;  %vm1234_vm6 = vcmp.gt.f32.partialorder %v1202_v62, 0.0  ;;  %vm1235_vm7 = vcmp.gt.f32.partialorder %v1203_v7, 0.0 }
 0x177   : > { %1325 = vmax.xlane.f32.xlu2 %v1324_v11  ;;  %966 = vmatmul.bf16.gmra.mxu0 %v828_v40  ;;  %v5574_v40 = vsel %vm1229_vm3, %v1197_v61, %v1261_v52  ;;  %v1265_v61 = vmul.f32 0.2, %v1201_v55  ;;  %v1166_v11 = vpop.permute.xlu0 %1165  ;;  %v1204_v52 = vadd.f32 %v5279_v24, %v1161_v54  ;;  %vm1241_vm13 = vcmp.gt.f32.partialorder %v1209_v59, 0.0 }
 0x178   : > { %1322 = vmax.xlane.f32.xlu1 %v1321_v6  ;;  %v1333_v20 = vmax.f32 %v5571_v13, %v5574_v40  ;;  %v5582_v6 = vsel %vm1230_vm4, %v1198_v47, %v1262_v41  ;;  %v1207_v47 = vadd.f32 %v5281_v36, %v1166_v11  ;;  %v1208_v41 = vadd.f32 %v5279_v24, %v1171_v26 }
 0x179   : > { %1015 = vmatmul.bf16.gmra.mxu1 %v829_v15  ;;  %v1205_v15 = vadd.f32 %v5281_v36, %v1161_v54  ;;  %v1336_v44 = vmax.f32 %v5582_v6, %v5584_v25  ;;  %v5594_v19 = vsel %vm1234_vm6, %v1202_v62, %v1266_v49  ;;  %v5596_v54 = vsel %vm1235_vm7, %v1203_v7, %v1267_v16 }
 0x17a   : > { %v1268_v32 = vmul.f32 0.2, %v1204_v52  ;;  %vm1236_vm10 = vcmp.gt.f32.partialorder %v1204_v52, 0.0  ;;  %v1272_v7 = vmul.f32 0.2, %v1208_v41  ;;  %vm1240_vm12 = vcmp.gt.f32.partialorder %v1208_v41, 0.0 }
 0x17b   : > { %v1269_v17 = vmul.f32 0.2, %v1205_v15  ;;  %vm1237_vm11 = vcmp.gt.f32.partialorder %v1205_v15, 0.0  ;;  %v831_v49 = vpack.c.bf16 %v5506_v51, %v5499_v31  ;;  %vm1239_vm15 = vcmp.gt.f32.partialorder %v1207_v47, 0.0 }
 0x17c   : > { %1328 = vmax.xlane.f32.xlu0 %v1327_v1  ;;  %v1206_v1 = vadd.f32 %v5279_v24, %v1166_v11  ;;  %v1342_v11 = vmax.f32 %v5594_v19, %v5596_v54  ;;  %v830_v24 = vpack.c.bf16 %v5493_v9, %v5496_v60  ;;  %v5616_v60 = vsel %vm1240_vm12, %v1208_v41, %v1272_v7 }
 0x17d   : > { %7337 = vst [vmem:[#allocation34_spill] sm:$0xff] %v5616_v60 }
 0x17e   : > { %v1270_v36 = vmul.f32 0.2, %v1206_v1  ;;  %vm1238_vm14 = vcmp.gt.f32.partialorder %v1206_v1, 0.0 }
 0x17f   : > { %1334 = vmax.xlane.f32.xlu2 %v1333_v20  ;;  %v5598_v20 = vsel %vm1232_vm8, %v1200_v39, %v1264_v46  ;;  %v1273_v39 = vmul.f32 0.2, %v1209_v59  ;;  %v1271_v46 = vmul.f32 0.2, %v1207_v47 }
 0x180   : > { %1331 = vmax.xlane.f32.xlu1 %v1330_v37  ;;  %v5600_v37 = vsel %vm1233_vm9, %v1201_v55, %v1265_v61  ;;  %v5608_v55 = vsel %vm1236_vm10, %v1204_v52, %v1268_v32  ;;  %v5610_v61 = vsel %vm1237_vm11, %v1205_v15, %v1269_v17  ;;  %v5620_v32 = vsel %vm1238_vm14, %v1206_v1, %v1270_v36 }
 0x181   : > { %v1339_v62 = vmax.f32 %v5598_v20, %v5600_v37  ;;  %v1345_v9 = vmax.f32 %v5608_v55, %v5610_v61  ;;  %v5618_v16 = vsel %vm1241_vm13, %v1209_v59, %v1273_v39  ;;  %7339 = vst [vmem:[#allocation36_spill] sm:$0xff] %v5620_v32  ;;  %v5622_v17 = vsel %vm1239_vm15, %v1207_v47, %v1271_v46 }
 0x182   : > { %7338 = vst [vmem:[#allocation35_spill] sm:$0xff] %v5618_v16  ;;  %v1351_v26 = vmax.f32 %v5616_v60, %v5618_v16  ;;  %v1348_v31 = vmax.f32 %v5620_v32, %v5622_v17  ;;  %v7345_v32 = vld [vmem:[#allocation5_spill] sm:$0xff] }
 0x183   : > { %7340 = vst [vmem:[#allocation37_spill] sm:$0xff] %v5622_v17 }
 0x184   : > { %1337 = vmax.xlane.f32.xlu0 %v1336_v44 }
 0x187   : > { %1343 = vmax.xlane.f32.xlu2 %v1342_v11  ;;  %971 = vmatmul.bf16.gmra.mxu0 %v830_v24 }
 0x188   : > { %1340 = vmax.xlane.f32.xlu1 %v1339_v62 }
 0x189   : > { %1020 = vmatmul.bf16.gmra.mxu1 %v831_v49 }
 0x18c   : > { %1346 = vmax.xlane.f32.xlu0 %v1345_v9 }
 0x18f   : > { %1352 = vmax.xlane.f32.xlu2 %v1351_v26 }
 0x190   : > { %1349 = vmax.xlane.f32.xlu1 %v1348_v31 }
 0x194   : > { %v937_v51 = vpop.f32.mrf.mxu0 }
 0x196   : > { %v986_v52 = vpop.f32.mrf.mxu1 }
 0x19c   : > { %v939_v15 = vpop.f32.mrf.mxu0 }
 0x19e   : > { %v988_v44 = vpop.f32.mrf.mxu1 }
 0x1a4   : > { %v5628_v41 = vpop.f32.mrf.mxu0 }
 0x1a6   : > { %v5630_v59 = vpop.f32.mrf.mxu1 }
 0x1ac   : > { %v5632_v1 = vpop.f32.mrf.mxu0 }
 0x1ae   : > { %v5634_v47 = vpop.f32.mrf.mxu1 }
 0x1b2   : > { %v1308_v11 = vpop.xlane.xlu2 %1307 }
 0x1b3   : > { %v1314_v24 = vpop.xlane.xlu1 %1313  ;;  %v1354_v36 = vsub.f32 %v5305_v28, %v1308_v11  ;;  %v1355_v62 = vsub.f32 %v5307_v29, %v1308_v11 }
 0x1b4   : > { %v1358_v7 = vsub.f32 %v5309_v22, %v1314_v24  ;;  %v1359_v39 = vsub.f32 %v5311_v4, %v1314_v24  ;;  %v5640_v46 = vpop.f32.mrf.mxu0 }
 0x1b5   : > { %v1386_v49 = vmul.f32 1.442695, %v1354_v36  ;;  %v1388_v31 = vmul.f32 1.442695, %v1355_v62 }
 0x1b6   : > { %v1394_v9 = vmul.f32 1.442695, %v1358_v7  ;;  %v1396_v26 = vmul.f32 1.442695, %v1359_v39  ;;  %v5642_v23 = vpop.f32.mrf.mxu1 }
 0x1b7   : > { %4478 = vpow2.f32 %v1386_v49  ;;  %v1311_v3 = vpop.xlane.xlu0 %1310 }
 0x1b8   : > { %4480 = vpow2.f32 %v1394_v9  ;;  %v1356_v27 = vsub.f32 %v5321_v63, %v1311_v3  ;;  %v1357_v28 = vsub.f32 %v5327_v21, %v1311_v3  ;;  %v7341_v3 = vld [vmem:[#allocation2_spill] sm:$0xff] }
 0x1b9   : > { %4482 = vpow2.f32 %v1396_v26 }
 0x1ba   : > { %4484 = vpow2.f32 %v1388_v31  ;;  %v1390_v29 = vmul.f32 1.442695, %v1356_v27  ;;  %v1392_v22 = vmul.f32 1.442695, %v1357_v28  ;;  %v709_v4 = vpop.xlane.xlu2 %708  ;;  %v7342_v28 = vld [vmem:[#allocation9_spill] sm:$0xff] }
 0x1bb   : > { %v753_v11 = vmax.f32 %v709_v4, 1e-30  ;;  %v706_v24 = vpop.xlane.xlu1 %705 }
 0x1bc   : > { %4486 = vpow2.f32 %v1390_v29  ;;  %v752_v36 = vmax.f32 %v706_v24, 1e-30  ;;  %v5646_v7 = vpop.f32.mrf.mxu0 }
 0x1bd   : > { %v4479_v62 = vpop.eup %4478  ;;  %4488 = vpow2.f32 %v1392_v22  ;;  %v7343_v22 = vld [vmem:[#allocation4_spill] sm:$0xff] }
 0x1be   : > { %v4481_v39 = vpop.eup %4480  ;;  %4490 = vrcp.f32 %v753_v11  ;;  %v5648_v63 = vpop.f32.mrf.mxu1  ;;  %v5654_v9 = vmul.f32 %v4479_v62, %v7341_v3  ;;  %v7344_v3 = vld [vmem:[#allocation3_spill] sm:$0xff] }
 0x1bf   : > { %v4483_v49 = vpop.eup %4482  ;;  %4492 = vrcp.f32 %v752_v36  ;;  %v712_v21 = vpop.xlane.xlu0 %711  ;;  %v5651_v27 = vmul.f32 %v4481_v39, %v5208_v18  ;;  %v989_v39 = vadd.f32 %v988_v44, %v939_v15  ;;  %v7358_v15 = vld [vmem:[#allocation28_spill] sm:$0xff] }
 0x1c0   : > { %v4485_v26 = vpop.eup %4484  ;;  %v754_v31 = vmax.f32 %v712_v21, 1e-30  ;;  %v5657_v29 = vmul.f32 %v4483_v49, %v7342_v28 }
 0x1c1   : > { %v5660_v4 = vmul.f32 %v4485_v26, %v7343_v22  ;;  %v987_v26 = vadd.f32 %v986_v52, %v937_v51  ;;  %v992_v52 = vadd.f32 %v5630_v59, %v5628_v41 }
 0x1c2   : > { %v4487_v11 = vpop.eup %4486  ;;  %4494 = vrcp.f32 %v754_v31  ;;  %v1488_v24 = vadd.f32 %v5657_v29, %v5651_v27  ;;  %v718_v36 = vpop.xlane.xlu2 %717 }
 0x1c3   : > { %v4489_v17 = vpop.eup %4488  ;;  %v756_v18 = vmax.f32 %v718_v36, 1e-30  ;;  %v1482_v62 = vadd.f32 %v5660_v4, %v5654_v9  ;;  %v715_v21 = vpop.xlane.xlu1 %714  ;;  %v5668_v49 = vmul.f32 %v4487_v11, %v7344_v3 }
 0x1c4   : > { %v4491_v28 = vpop.eup %4490  ;;  %1489 = vadd.xlane.f32.xlu2 %v1488_v24  ;;  %v755_v22 = vmax.f32 %v715_v21, 1e-30  ;;  %v952_v31 = vpop.f32.mrf.mxu0  ;;  %v5671_v50 = vmul.f32 %v4489_v17, %v7345_v32 }
 0x1c5   : > { %v4493_v16 = vpop.eup %4492  ;;  %v1027_v60 = vmul.f32 %v4491_v28, %v989_v39  ;;  %4496 = vrcp.f32 %v756_v18  ;;  %1483 = vadd.xlane.f32.xlu0 %v1482_v62 }
 0x1c6   : > { %v1026_v51 = vmul.f32 %v4493_v16, %v987_v26  ;;  %4498 = vrcp.f32 %v755_v22  ;;  %v1485_v17 = vadd.f32 %v5671_v50, %v5668_v49  ;;  %v1001_v28 = vpop.f32.mrf.mxu1  ;;  %v997_v16 = vadd.f32 %v5642_v23, %v5640_v46 }
 0x1c7   : > { %v1043_v44 = vpack.c.bf16 %v1027_v60, %v1027_v60  ;;  %v721_v11 = vpop.xlane.xlu0 %720  ;;  %v994_v60 = vadd.f32 %v5634_v47, %v5632_v1  ;;  %v999_v46 = vadd.f32 %v5648_v63, %v5646_v7 }
 0x1c8   : > { %v4495_v24 = vpop.eup %4494  ;;  %v1042_v36 = vpack.c.bf16 %v1026_v51, %v1026_v51  ;;  %v757_v39 = vmax.f32 %v721_v11, 1e-30  ;;  %1486 = vadd.xlane.f32.xlu1 %v1485_v17 }
 0x1c9   : > { %v1028_v62 = vmul.f32 %v4495_v24, %v992_v52  ;;  %1060 = vst.msk [vmem:[%s5678_s19 + $0x4] sm:$0xf] %vm1058_vm0, %v1043_v44 }
 0x1ca   : > { %4500 = vrcp.f32 %v757_v39  ;;  %v727_v22 = vpop.xlane.xlu2 %726  ;;  %1059 = vst.msk [vmem:[%s5678_s19] sm:$0xf] %vm1058_vm0, %v1042_v36 }
 0x1cb   : > { %v4497_v21 = vpop.eup %4496  ;;  %v1044_v41 = vpack.c.bf16 %v1028_v62, %v1028_v62  ;;  %v759_v59 = vmax.f32 %v727_v22, 1e-30  ;;  %v724_v26 = vpop.xlane.xlu1 %723 }
 0x1cc   : > { %v4499_v51 = vpop.eup %4498  ;;  %v1030_v17 = vmul.f32 %v4497_v21, %v997_v16  ;;  %v758_v52 = vmax.f32 %v724_v26, 1e-30  ;;  %v954_v44 = vpop.f32.mrf.mxu0 }
 0x1cd   : > { %v1029_v11 = vmul.f32 %v4499_v51, %v994_v60  ;;  %4502 = vrcp.f32 %v759_v59  ;;  %1061 = vst.msk [vmem:[%s5678_s19 + $0x8] sm:$0xf] %vm1058_vm0, %v1044_v41  ;;  %v1002_v60 = vadd.f32 %v1001_v28, %v952_v31 }
 0x1ce   : > { %v1046_v23 = vpack.c.bf16 %v1030_v17, %v1030_v17  ;;  %4504 = vrcp.f32 %v758_v52  ;;  %v1003_v1 = vpop.f32.mrf.mxu1 }
 0x1cf   : > { %v1045_v24 = vpack.c.bf16 %v1029_v11, %v1029_v11  ;;  %v730_v47 = vpop.xlane.xlu0 %729  ;;  %v1004_v16 = vadd.f32 %v1003_v1, %v954_v44 }
 0x1d0   : > { %v4501_v36 = vpop.eup %4500  ;;  %v760_v39 = vmax.f32 %v730_v47, 1e-30  ;;  %1063 = vst.msk [vmem:[%s5678_s19 + $0x10] sm:$0xf] %vm1058_vm0, %v1046_v23 }
 0x1d1   : > { %v1031_v62 = vmul.f32 %v4501_v36, %v999_v46  ;;  %1062 = vst.msk [vmem:[%s5678_s19 + $0xc] sm:$0xf] %vm1058_vm0, %v1045_v24 }
 0x1d2   : > { %4506 = vrcp.f32 %v760_v39  ;;  %v736_v22 = vpop.xlane.xlu2 %735 }
 0x1d3   : > { %v4503_v21 = vpop.eup %4502  ;;  %v1047_v41 = vpack.c.bf16 %v1031_v62, %v1031_v62  ;;  %v733_v7 = vpop.xlane.xlu1 %732  ;;  %v762_v39 = vmax.f32 %v736_v22, 1e-30 }
 0x1d4   : > { %v4505_v63 = vpop.eup %4504  ;;  %v1033_v59 = vmul.f32 %v4503_v21, %v1004_v16  ;;  %v957_v26 = vpop.f32.mrf.mxu0  ;;  %v761_v11 = vmax.f32 %v733_v7, 1e-30 }
 0x1d5   : > { %v1032_v51 = vmul.f32 %v4505_v63, %v1002_v60  ;;  %1064 = vst.msk [vmem:[%s5678_s19 + $0x14] sm:$0xf] %vm1058_vm0, %v1047_v41 }
 0x1d6   : > { %v1049_v17 = vpack.c.bf16 %v1033_v59, %v1033_v59  ;;  %v1006_v23 = vpop.f32.mrf.mxu1  ;;  %4508 = vrcp.f32 %v761_v11 }
 0x1d7   : > { %v1048_v52 = vpack.c.bf16 %v1032_v51, %v1032_v51  ;;  %v739_v44 = vpop.xlane.xlu0 %738  ;;  %v1007_v24 = vadd.f32 %v1006_v23, %v957_v26  ;;  %4510 = vrcp.f32 %v762_v39 }
 0x1d8   : > { %v4507_v46 = vpop.eup %4506  ;;  %1066 = vst.msk [vmem:[%s5678_s19 + $0x1c] sm:$0xf] %vm1058_vm0, %v1049_v17  ;;  %v763_v22 = vmax.f32 %v739_v44, 1e-30 }
 0x1d9   : > { %1065 = vst.msk [vmem:[%s5678_s19 + $0x18] sm:$0xf] %vm1058_vm0, %v1048_v52  ;;  %v1034_v31 = vmul.f32 %v4507_v46, %v1007_v24 }
 0x1da   : > { %v745_v28 = vpop.xlane.xlu2 %744 }
 0x1db   : > { %v5708_v1 = vpop.xlane.xlu1 %741  ;;  %v1050_v47 = vpack.c.bf16 %v1034_v31, %v1034_v31 }
 0x1dc   : > { %v959_v36 = vpop.f32.mrf.mxu0  ;;  %v4509_v60 = vpop.eup %4508 }
 0x1dd   : > { %1067 = vst.msk [vmem:[%s5678_s19 + $0x20] sm:$0xf] %vm1058_vm0, %v1050_v47  ;;  %v4511_v47 = vpop.eup %4510 }
 0x1de   : > { %v1008_v62 = vpop.f32.mrf.mxu1 }
 0x1df   : > { %v5712_v16 = vpop.xlane.xlu0 %747  ;;  %v1009_v21 = vadd.f32 %v1008_v62, %v959_v36 }
 0x1e1   : > { %v1035_v41 = vmul.f32 %v4509_v60, %v1009_v21 }
 0x1e2   : > { %v1317_v7 = vpop.xlane.xlu2 %1316 }
 0x1e3   : > { %v1360_v63 = vsub.f32 %v5513_v48, %v1317_v7  ;;  %v1361_v59 = vsub.f32 %v5515_v8, %v1317_v7  ;;  %v5716_v26 = vpop.xlane.xlu1 %750  ;;  %v1051_v51 = vpack.c.bf16 %v1035_v41, %v1035_v41  ;;  %v765_v8 = vmax.f32 %v745_v28, 1e-30 }
 0x1e4   : > { %v962_v17 = vpop.f32.mrf.mxu0 }
 0x1e5   : > { %v1398_v52 = vmul.f32 1.442695, %v1360_v63  ;;  %v1400_v11 = vmul.f32 1.442695, %v1361_v59  ;;  %1068 = vst.msk [vmem:[%s5678_s19 + $0x24] sm:$0xf] %vm1058_vm0, %v1051_v51 }
 0x1e6   : > { %v1011_v23 = vpop.f32.mrf.mxu1 }
 0x1e7   : > { %4512 = vpow2.f32 %v1398_v52  ;;  %v1320_v46 = vpop.xlane.xlu0 %1319  ;;  %v1012_v24 = vadd.f32 %v1011_v23, %v962_v17 }
 0x1e8   : > { %4514 = vpow2.f32 %v1400_v11  ;;  %v1362_v31 = vsub.f32 %v5528_v34, %v1320_v46  ;;  %v1363_v48 = vsub.f32 %v5530_v30, %v1320_v46  ;;  %v7347_v46 = vld [vmem:[#allocation8_spill] sm:$0xff] }
 0x1e9   : > { %v1036_v36 = vmul.f32 %v4511_v47, %v1012_v24  ;;  %4516 = vrcp.f32 %v763_v22 }
 0x1ea   : > { %v1402_v39 = vmul.f32 1.442695, %v1362_v31  ;;  %v1404_v62 = vmul.f32 1.442695, %v1363_v48  ;;  %v1326_v21 = vpop.xlane.xlu2 %1325 }
 0x1eb   : > { %v1366_v60 = vsub.f32 %v5538_v2, %v1326_v21  ;;  %v1367_v44 = vsub.f32 %v5540_v56, %v1326_v21  ;;  %v1323_v41 = vpop.xlane.xlu1 %1322  ;;  %v1052_v7 = vpack.c.bf16 %v1036_v36, %v1036_v36  ;;  %v7346_v2 = vld [vmem:[#allocation6_spill] sm:$0xff]  ;;  %v764_v56 = vmax.f32 %v5708_v1, 1e-30 }
 0x1ec   : > { %4518 = vpow2.f32 %v1402_v39  ;;  %v1364_v63 = vsub.f32 %v5532_v10, %v1323_v41  ;;  %v1365_v34 = vsub.f32 %v5534_v57, %v1323_v41  ;;  %v964_v30 = vpop.f32.mrf.mxu0  ;;  %v766_v10 = vmax.f32 %v5712_v16, 1e-30 }
 0x1ed   : > { %v4513_v59 = vpop.eup %4512  ;;  %4520 = vpow2.f32 %v1404_v62  ;;  %v1410_v28 = vmul.f32 1.442695, %v1366_v60  ;;  %v1412_v51 = vmul.f32 1.442695, %v1367_v44  ;;  %1069 = vst.msk [vmem:[%s5678_s19 + $0x28] sm:$0xf] %vm1058_vm0, %v1052_v7 }
 0x1ee   : > { %v4515_v17 = vpop.eup %4514  ;;  %4522 = vrcp.f32 %v765_v8  ;;  %v1406_v52 = vmul.f32 1.442695, %v1364_v63  ;;  %v1408_v11 = vmul.f32 1.442695, %v1365_v34  ;;  %v5727_v22 = vmul.f32 %v4513_v59, %v7346_v2  ;;  %v1013_v57 = vpop.f32.mrf.mxu1  ;;  %v7348_v63 = vld [vmem:[#allocation11_spill] sm:$0xff] }
 0x1ef   : > { %4524 = vpow2.f32 %v1410_v28  ;;  %v1329_v23 = vpop.xlane.xlu0 %1328  ;;  %v5734_v24 = vmul.f32 %v4515_v17, %v7347_v46  ;;  %v1014_v31 = vadd.f32 %v1013_v57, %v964_v30  ;;  %v4517_v8 = vpop.eup %4516 }
 0x1f0   : > { %4526 = vpow2.f32 %v1412_v51  ;;  %v1368_v48 = vsub.f32 %v5553_v45, %v1329_v23  ;;  %v1369_v47 = vsub.f32 %v5556_v58, %v1329_v23 }
 0x1f1   : > { %4528 = vpow2.f32 %v1406_v52  ;;  %v1491_v36 = vadd.f32 %v5734_v24, %v5727_v22  ;;  %v1037_v62 = vmul.f32 %v4517_v8, %v1014_v31 }
 0x1f2   : > { %v4519_v39 = vpop.eup %4518  ;;  %4530 = vpow2.f32 %v1408_v11  ;;  %v1414_v21 = vmul.f32 1.442695, %v1368_v48  ;;  %v1416_v60 = vmul.f32 1.442695, %v1369_v47  ;;  %v1335_v44 = vpop.xlane.xlu2 %1334 }
 0x1f3   : > { %v4521_v45 = vpop.eup %4520  ;;  %4532 = vrcp.f32 %v764_v56  ;;  %v1372_v58 = vsub.f32 %v5571_v13, %v1335_v44  ;;  %v1373_v41 = vsub.f32 %v5574_v40, %v1335_v44  ;;  %1492 = vadd.xlane.f32.xlu0 %v1491_v36  ;;  %v1332_v7 = vpop.xlane.xlu1 %1331  ;;  %v5747_v34 = vmul.f32 %v4519_v39, %v7348_v63  ;;  %v7349_v40 = vld [vmem:[#allocation13_spill] sm:$0xff] }
 0x1f4   : > { %v5749_v30 = vpop.eup %4522  ;;  %v1053_v59 = vpack.c.bf16 %v1037_v62, %v1037_v62  ;;  %4534 = vpow2.f32 %v1414_v21  ;;  %v1370_v28 = vsub.f32 %v5562_v42, %v1332_v7  ;;  %v1371_v51 = vsub.f32 %v5565_v38, %v1332_v7  ;;  %v967_v17 = vpop.f32.mrf.mxu0  ;;  %v7351_v7 = vld [vmem:[#allocation12_spill] sm:$0xff] }
 0x1f5   : > { %v4525_v52 = vpop.eup %4524  ;;  %4536 = vpow2.f32 %v1416_v60  ;;  %v1422_v13 = vmul.f32 1.442695, %v1372_v58  ;;  %v1424_v11 = vmul.f32 1.442695, %v1373_v41  ;;  %v5754_v56 = vmul.f32 %v4521_v45, %v7349_v40  ;;  %v7350_v58 = vld [vmem:[#allocation10_spill] sm:$0xff] }
 0x1f6   : > { %v4527_v57 = vpop.eup %4526  ;;  %4538 = vrcp.f32 %v766_v10  ;;  %v1418_v23 = vmul.f32 1.442695, %v1370_v28  ;;  %v1420_v31 = vmul.f32 1.442695, %v1371_v51  ;;  %v5757_v48 = vmul.f32 %v4525_v52, %v5301_v43  ;;  %1070 = vst.msk [vmem:[%s5678_s19 + $0x2c] sm:$0xf] %vm1058_vm0, %v1053_v59  ;;  %v1016_v47 = vpop.f32.mrf.mxu1 }
 0x1f7   : > { %v4529_v42 = vpop.eup %4528  ;;  %v767_v38 = vmax.f32 %v5716_v26, 1e-30  ;;  %4540 = vpow2.f32 %v1422_v13  ;;  %v1338_v8 = vpop.xlane.xlu0 %1337  ;;  %v1494_v36 = vadd.f32 %v5754_v56, %v5747_v34  ;;  %v5765_v39 = vmul.f32 %v4527_v57, %v5323_v35 }
 0x1f8   : > { %v4531_v10 = vpop.eup %4530  ;;  %4542 = vpow2.f32 %v1424_v11  ;;  %v1017_v62 = vadd.f32 %v1016_v47, %v967_v17  ;;  %v1374_v21 = vsub.f32 %v5582_v6, %v1338_v8  ;;  %v1375_v60 = vsub.f32 %v5584_v25, %v1338_v8 }
 0x1f9   : > { %v4533_v44 = vpop.eup %4532  ;;  %4544 = vpow2.f32 %v1418_v23  ;;  %1495 = vadd.xlane.f32.xlu1 %v1494_v36  ;;  %v1500_v45 = vadd.f32 %v5765_v39, %v5757_v48  ;;  %v5772_v41 = vmul.f32 %v4529_v42, %v7350_v58  ;;  %v5775_v59 = vmul.f32 %v4531_v10, %v7351_v7 }
 0x1fa   : > { %v4535_v28 = vpop.eup %4534  ;;  %4546 = vpow2.f32 %v1420_v31  ;;  %v1038_v51 = vmul.f32 %v4533_v44, %v1017_v62  ;;  %v1426_v17 = vmul.f32 1.442695, %v1374_v21  ;;  %v1428_v52 = vmul.f32 1.442695, %v1375_v60  ;;  %v1344_v6 = vpop.xlane.xlu2 %1343 }
 0x1fb   : > { %v4537_v13 = vpop.eup %4536  ;;  %v1378_v25 = vsub.f32 %v5594_v19, %v1344_v6  ;;  %v1379_v11 = vsub.f32 %v5596_v54, %v1344_v6  ;;  %1501 = vadd.xlane.f32.xlu0 %v1500_v45  ;;  %v1497_v57 = vadd.f32 %v5775_v59, %v5772_v41  ;;  %v1341_v23 = vpop.xlane.xlu1 %1340  ;;  %v5782_v42 = vmul.f32 %v4535_v28, %v5315_v5 }
 0x1fc   : > { %v5784_v47 = vpop.eup %4538  ;;  %v1054_v31 = vpack.c.bf16 %v1038_v51, %v1038_v51  ;;  %4548 = vpow2.f32 %v1426_v17  ;;  %v1376_v8 = vsub.f32 %v5598_v20, %v1341_v23  ;;  %v1377_v36 = vsub.f32 %v5600_v37, %v1341_v23  ;;  %v969_v19 = vpop.f32.mrf.mxu0 }
 0x1fd   : > { %v4541_v10 = vpop.eup %4540  ;;  %4550 = vpow2.f32 %v1428_v52  ;;  %v1434_v54 = vmul.f32 1.442695, %v1378_v25  ;;  %v1436_v62 = vmul.f32 1.442695, %v1379_v11  ;;  %1498 = vadd.xlane.f32.xlu2 %v1497_v57  ;;  %v5789_v21 = vmul.f32 %v4537_v13, %v5325_v14  ;;  %v7354_v13 = vld [vmem:[#allocation22_spill] sm:$0xff] }
 0x1fe   : > { %v4543_v60 = vpop.eup %4542  ;;  %v1430_v44 = vmul.f32 1.442695, %v1376_v8  ;;  %v1432_v45 = vmul.f32 1.442695, %v1377_v36  ;;  %v5792_v28 = vmul.f32 %v4541_v10, %v5401_v0  ;;  %1071 = vst.msk [vmem:[%s5678_s19 + $0x30] sm:$0xf] %vm1058_vm0, %v1054_v31  ;;  %v1018_v51 = vpop.f32.mrf.mxu1 }
 0x1ff   : > { %v4545_v37 = vpop.eup %4544  ;;  %4552 = vpow2.f32 %v1434_v54  ;;  %v1347_v17 = vpop.xlane.xlu0 %1346  ;;  %v1503_v52 = vadd.f32 %v5789_v21, %v5782_v42  ;;  %v5801_v6 = vmul.f32 %v4543_v60, %v5380_v53  ;;  %v1019_v11 = vadd.f32 %v1018_v51, %v969_v19  ;;  %v7353_v51 = vld [vmem:[#allocation35_spill] sm:$0xff] }
 0x200   : > { %v4547_v25 = vpop.eup %4546  ;;  %4554 = vpow2.f32 %v1436_v62  ;;  %v1380_v57 = vsub.f32 %v5608_v55, %v1347_v17  ;;  %v1381_v23 = vsub.f32 %v5610_v61, %v1347_v17  ;;  %v5810_v8 = vmul.f32 %v4545_v37, %v5387_v33  ;;  %v7352_v61 = vld [vmem:[#allocation34_spill] sm:$0xff]  ;;  %v7366_v53 = vld [vmem:[#allocation31_spill] sm:$0xff] }
 0x201   : > { %4556 = vpow2.f32 %v1430_v44  ;;  %1504 = vadd.xlane.f32.xlu1 %v1503_v52  ;;  %v1509_v31 = vadd.f32 %v5801_v6, %v5792_v28  ;;  %v5813_v36 = vmul.f32 %v4547_v25, %v5403_v12  ;;  %v1039_v54 = vmul.f32 %v5749_v30, %v1019_v11  ;;  %v7355_v30 = vld [vmem:[#allocation36_spill] sm:$0xff]  ;;  %v7356_v11 = vld [vmem:[#allocation37_spill] sm:$0xff] }
 0x202   : > { %v4549_v10 = vpop.eup %4548  ;;  %4558 = vpow2.f32 %v1432_v45  ;;  %v1438_v19 = vmul.f32 1.442695, %v1380_v57  ;;  %v1440_v62 = vmul.f32 1.442695, %v1381_v23  ;;  %v1353_v55 = vpop.xlane.xlu2 %1352 }
 0x203   : > { %v4551_v60 = vpop.eup %4550  ;;  %v1384_v44 = vsub.f32 %v7352_v61, %v1353_v55  ;;  %v1385_v17 = vsub.f32 %v7353_v51, %v1353_v55  ;;  %1510 = vadd.xlane.f32.xlu0 %v1509_v31  ;;  %v1506_v37 = vadd.f32 %v5813_v36, %v5810_v8  ;;  %v1350_v52 = vpop.xlane.xlu1 %1349  ;;  %v5821_v25 = vmul.f32 %v4549_v10, %v7354_v13  ;;  %v7357_v31 = vld [vmem:[#allocation23_spill] sm:$0xff] }
 0x204   : > { %v1055_v16 = vpack.c.bf16 %v1039_v54, %v1039_v54  ;;  %4560 = vpow2.f32 %v1438_v19  ;;  %v1382_v45 = vsub.f32 %v7355_v30, %v1350_v52  ;;  %v1383_v57 = vsub.f32 %v7356_v11, %v1350_v52  ;;  %v972_v23 = vpop.f32.mrf.mxu0 }
 0x205   : > { %v4553_v20 = vpop.eup %4552  ;;  %4562 = vpow2.f32 %v1440_v62  ;;  %v1446_v61 = vmul.f32 1.442695, %v1384_v44  ;;  %v1448_v55 = vmul.f32 1.442695, %v1385_v17  ;;  %1507 = vadd.xlane.f32.xlu2 %v1506_v37  ;;  %v5826_v51 = vmul.f32 %v4551_v60, %v7357_v31  ;;  %v7359_v17 = vld [vmem:[#allocation29_spill] sm:$0xff] }
 0x206   : > { %v4555_v18 = vpop.eup %4554  ;;  %v1442_v1 = vmul.f32 1.442695, %v1382_v45  ;;  %v1444_v10 = vmul.f32 1.442695, %v1383_v57  ;;  %v5829_v54 = vmul.f32 %v4553_v20, %v7358_v15  ;;  %1072 = vst.msk [vmem:[%s5678_s19 + $0x34] sm:$0xf] %vm1058_vm0, %v1055_v16  ;;  %v1021_v62 = vpop.f32.mrf.mxu1 }
 0x207   : > { %v4557_v52 = vpop.eup %4556  ;;  %4564 = vpow2.f32 %v1446_v61  ;;  %v1512_v44 = vadd.f32 %v5826_v51, %v5821_v25  ;;  %v5838_v60 = vmul.f32 %v4555_v18, %v7359_v17  ;;  %v1022_v20 = vadd.f32 %v1021_v62, %v972_v23  ;;  %v7360_v45 = vld [vmem:[#allocation24_spill] sm:$0xff]  ;;  %v7361_v61 = vld [vmem:[#allocation25_spill] sm:$0xff]  ;;  %v7362_v62 = vld [vmem:[#allocation26_spill] sm:$0xff] }
 0x208   : > { %v4559_v30 = vpop.eup %4558  ;;  %4566 = vpow2.f32 %v1448_v55  ;;  %v5843_v11 = vmul.f32 %v4557_v52, %v7360_v45  ;;  %v7364_v16 = vld [vmem:[#allocation30_spill] sm:$0xff]  ;;  %v7365_v15 = vld [vmem:[#allocation33_spill] sm:$0xff] }
 0x209   : > { %4568 = vpow2.f32 %v1442_v1  ;;  %1513 = vadd.xlane.f32.xlu1 %v1512_v44  ;;  %v1518_v57 = vadd.f32 %v5838_v60, %v5829_v54  ;;  %v5850_v18 = vmul.f32 %v4559_v30, %v7361_v61  ;;  %v1040_v23 = vmul.f32 %v5784_v47, %v1022_v20  ;;  %v7363_v47 = vld [vmem:[#allocation27_spill] sm:$0xff] }
 0x20a   : > { %v4561_v19 = vpop.eup %4560  ;;  %4570 = vpow2.f32 %v1444_v10 }
 0x20b   : > { %v4563_v52 = vpop.eup %4562  ;;  %4572 = vrcp.f32 %v767_v38  ;;  %1519 = vadd.xlane.f32.xlu0 %v1518_v57  ;;  %v1515_v1 = vadd.f32 %v5850_v18, %v5843_v11  ;;  %v5862_v44 = vmul.f32 %v4561_v19, %v7362_v62  ;;  %v1056_v30 = vpack.c.bf16 %v1040_v23, %v1040_v23 }
 0x20c   : > { %v5867_v20 = vmul.f32 %v4563_v52, %v7363_v47  ;;  %v974_v55 = vpop.f32.mrf.mxu0 }
 0x20d   : > { %v4565_v37 = vpop.eup %4564  ;;  %1516 = vadd.xlane.f32.xlu2 %v1515_v1  ;;  %1073 = vst.msk [vmem:[%s5678_s19 + $0x38] sm:$0xf] %vm1058_vm0, %v1056_v30 }
 0x20e   : > { %v4567_v38 = vpop.eup %4566  ;;  %v1521_v57 = vadd.f32 %v5867_v20, %v5862_v44  ;;  %v5874_v19 = vmul.f32 %v4565_v37, %v7364_v16  ;;  %v1023_v52 = vpop.f32.mrf.mxu1  ;;  %v7367_v16 = vld [vmem:[#allocation32_spill] sm:$0xff] }
 0x20f   : > { %v4569_v23 = vpop.eup %4568  ;;  %v5881_v1 = vmul.f32 %v4567_v38, %v7365_v15  ;;  %v1024_v26 = vadd.f32 %v1023_v52, %v974_v55  ;;  %v4253_v52 = vld [vmem:[%s7217_s1 + $0x18] sm:$0xff] }
 0x210   : > { %v4571_v17 = vpop.eup %4570  ;;  %v5884_v47 = vmul.f32 %v4569_v23, %v7366_v53 }
 0x211   : > { %v4573_v62 = vpop.eup %4572  ;;  %1522 = vadd.xlane.f32.xlu1 %v1521_v57  ;;  %v1527_v37 = vadd.f32 %v5881_v1, %v5874_v19  ;;  %v5889_v10 = vmul.f32 %v4571_v17, %v7367_v16  ;;  %v4252_v17 = vld [vmem:[%s7217_s1 + $0x10] sm:$0xff]  ;;  %v4254_v57 = vld [vmem:[%s7217_s1 + $0x20] sm:$0xff] }
 0x212   : > { %v1041_v30 = vmul.f32 %v4573_v62, %v1024_v26  ;;  %v4250_v62 = vld [vmem:[%s7217_s1] sm:$0xff]  ;;  %v4251_v26 = vld [vmem:[%s7217_s1 + $0x8] sm:$0xff] }
 0x213   : > { %1528 = vadd.xlane.f32.xlu0 %v1527_v37  ;;  %v1524_v38 = vadd.f32 %v5889_v10, %v5884_v47  ;;  %v4255_v37 = vld [vmem:[%s7217_s1 + $0x28] sm:$0xff] }
 0x214   : > { %v1057_v23 = vpack.c.bf16 %v1041_v30, %v1041_v30  ;;  %v4257_v30 = vld [vmem:[%s7217_s1 + $0x38] sm:$0xff] }
 0x215   : > { %1525 = vadd.xlane.f32.xlu2 %v1524_v38  ;;  %v4256_v38 = vld [vmem:[%s7217_s1 + $0x30] sm:$0xff] }
 0x216   : > { %1074 = vst.msk [vmem:[%s5678_s19 + $0x3c] sm:$0xf] %vm1058_vm0, %v1057_v23  ;;  %v4258_v23 = vld [vmem:[%s7217_s1 + $0x40] sm:$0xff] }
 0x227   : > { %1694 = vrot.lane.b32.xlu0 %v4252_v17, %s4843_s25  ;;  %v4260_v17 = vld [vmem:[%s7217_s1 + $0x50] sm:$0xff] }
 0x22a   : > { %1690 = vrot.lane.b32.xlu1 %v4250_v62, %s4843_s25  ;;  %v4259_v62 = vld [vmem:[%s7217_s1 + $0x48] sm:$0xff] }
 0x22d   : > { %1692 = vrot.lane.b32.xlu2 %v4251_v26, %s4843_s25  ;;  %v4261_v26 = vld [vmem:[%s7217_s1 + $0x58] sm:$0xff] }
 0x22f   : > { %1698 = vrot.lane.b32.xlu0 %v4254_v57, %s4843_s25  ;;  %v4263_v57 = vld [vmem:[%s7217_s1 + $0x68] sm:$0xff] }
 0x232   : > { %1696 = vrot.lane.b32.xlu1 %v4253_v52, %s4843_s25  ;;  %v4262_v52 = vld [vmem:[%s7217_s1 + $0x60] sm:$0xff] }
 0x235   : > { %1700 = vrot.lane.b32.xlu2 %v4255_v37, %s4843_s25  ;;  %v4265_v37 = vld [vmem:[%s7217_s1 + $0x78] sm:$0xff] }
 0x237   : > { %1704 = vrot.lane.b32.xlu0 %v4257_v30, %s4843_s25  ;;  %v4264_v30 = vld [vmem:[%s7217_s1 + $0x70] sm:$0xff] }
 0x23a   : > { %1702 = vrot.lane.b32.xlu1 %v4256_v38, %s4843_s25  ;;  %v5947_v38 = vpop.xlane.xlu0 %1483 }
 0x23d   : > { %1706 = vrot.lane.b32.xlu2 %v4258_v23, %s4843_s25 }
 0x23f   : > { %1710 = vrot.lane.b32.xlu0 %v4260_v17, %s4843_s25  ;;  %v5951_v17 = vpop.xlane.xlu1 %1486 }
 0x242   : > { %1708 = vrot.lane.b32.xlu1 %v4259_v62, %s4843_s25  ;;  %v5953_v62 = vpop.xlane.xlu2 %1489 }
 0x245   : > { %1712 = vrot.lane.b32.xlu2 %v4261_v26, %s4843_s25 }
 0x247   : > { %1716 = vrot.lane.b32.xlu0 %v4263_v57, %s4843_s25 }
 0x24a   : > { %1714 = vrot.lane.b32.xlu1 %v4262_v52, %s4843_s25 }
 0x24d   : > { %1718 = vrot.lane.b32.xlu2 %v4264_v30, %s4843_s25 }
 0x252   : > { %1720 = vrot.lane.b32.xlu1 %v4265_v37, %s4843_s25  ;;  %s4845_s25 = smov 16  }
 0x266   : > { %v5949_v23 = vpop.xlane.xlu0 %1492 }
 0x26c   : > { %v5957_v57 = vpop.xlane.xlu1 %1495 }
 0x26e   : > { %v5955_v26 = vpop.xlane.xlu0 %1501 }
 0x270   : > { %v5959_v52 = vpop.xlane.xlu2 %1498 }
 0x274   : > { %v5963_v0 = vpop.xlane.xlu1 %1504 }
 0x276   : > { %v5961_v55 = vpop.xlane.xlu0 %1510 }
 0x278   : > { %v5965_v30 = vpop.xlane.xlu2 %1507 }
 0x27c   : > { %v5969_v15 = vpop.xlane.xlu1 %1513 }
 0x27e   : > { %v5967_v37 = vpop.xlane.xlu0 %1519 }
 0x280   : > { %v5971_v16 = vpop.xlane.xlu2 %1516 }
 0x284   : > { %v5975_v61 = vpop.xlane.xlu1 %1522 }
 0x286   : > { %v5973_v53 = vpop.xlane.xlu0 %1528 }
 0x288   : > { %v5977_v45 = vpop.xlane.xlu2 %1525 }
 0x290   : > { %v1693_v13 = vpop.permute.xlu2 %1692 }
 0x298   : > { %v1701_v33 = vpop.permute.xlu2 %1700 }
 0x299   : > { %v1695_v35 = vpop.permute.xlu0 %1694 }
 0x29c   : > { %v1691_v31 = vpop.permute.xlu1 %1690 }
 0x2a0   : > { %v1707_v7 = vpop.permute.xlu2 %1706 }
 0x2a1   : > { %v1699_v43 = vpop.permute.xlu0 %1698 }
 0x2a4   : > { %v1697_v12 = vpop.permute.xlu1 %1696 }
 0x2a8   : > { %v1713_v5 = vpop.permute.xlu2 %1712 }
 0x2a9   : > { %v1705_v46 = vpop.permute.xlu0 %1704 }
 0x2aa   : > { %1738 = vmatpush.bf16.msra.mxu2 %v1705_v46  ;;  %v7368_v46 = vpack.c.bf16 %v5668_v49, %v5654_v9  ;;  %v7378_v9 = vpack.c.bf16 %v5801_v6, %v5813_v36  ;;  %v7381_v49 = vpack.c.bf16 %v5874_v19, %v5884_v47  ;;  %v1532_v6 = vmax.f32 %v5953_v62, 1e-30  ;;  %v1949_v47 = vld [vmem:[%s4892_s21] sm:$0xff] }
 0x2ab   : > { %v1534_v19 = vmax.f32 %v5957_v57, 1e-30  ;;  %v1953_v62 = vld [vmem:[%s4892_s21 + $0x20] sm:$0xff] }
 0x2ac   : > { %v1703_v2 = vpop.permute.xlu1 %1702 }
 0x2ae   : > { %1739 = vmatpush.bf16.msra.mxu2 %v1703_v2 }
 0x2b0   : > { %v1719_v32 = vpop.permute.xlu2 %1718 }
 0x2b1   : > { %v1711_v40 = vpop.permute.xlu0 %1710 }
 0x2b2   : > { %1740 = vmatpush.bf16.msra.mxu2 %v1701_v33  ;;  %v7371_v33 = vpack.c.bf16 %v5772_v41, %v5747_v34  ;;  %v4844_v34 = vmov 2  }
 0x2b3   : > { %4409 = vset.pattern.permute.xlu1 %v4844_v34  ;;  %4408 = vset.pattern.permute.xlu2 %v4844_v34 }
 0x2b4   : > { %v1709_v58 = vpop.permute.xlu1 %1708  ;;  %4410 = vset.pattern.permute.xlu0 %v4844_v34  ;;  %v1537_v34 = vmax.f32 %v5963_v0, 1e-30 }
 0x2b6   : > { %1741 = vmatpush.bf16.msra.mxu2 %v1699_v43  ;;  %v7369_v43 = vpack.c.bf16 %v5727_v22, %v5651_v27  ;;  %v7377_v27 = vpack.c.bf16 %v5843_v11, %v5821_v25  ;;  %v7382_v22 = vpack.c.bf16 %v5867_v20, %v5838_v60 }
 0x2b9   : > { %v1717_v2 = vpop.permute.xlu0 %1716 }
 0x2ba   : > { %1742 = vmatpush.bf16.msra.mxu2 %v1697_v12  ;;  %v7374_v12 = vpack.c.bf16 %v5775_v59, %v5754_v56 }
 0x2bc   : > { %v1715_v14 = vpop.permute.xlu1 %1714 }
 0x2be   : > { %1743 = vmatpush.bf16.msra.mxu2 %v1695_v35  ;;  %v7370_v35 = vpack.c.bf16 %v5671_v50, %v5660_v4  ;;  %v7375_v50 = vpack.c.bf16 %v5792_v28, %v5810_v8  ;;  %v7380_v4 = vpack.c.bf16 %v5850_v18, %v5826_v51 }
 0x2c2   : > { %1744 = vmatpush.bf16.msra.mxu2 %v1693_v13 }
 0x2c4   : > { %v1721_v63 = vpop.permute.xlu1 %1720 }
 0x2c5   : > { %1787 = vmatpush.bf16.msra.mxu3 %v1721_v63  ;;  %v1950_v63 = vld [vmem:[%s4892_s21 + $0x8] sm:$0xff] }
 0x2c6   : > { %1745 = vmatpush.bf16.msra.mxu2 %v1691_v31  ;;  %1974 = vperm.xlu1 %4409, %v1950_v63   ;;  %v1956_v63 = vld [vmem:[%s4892_s21 + $0x38] sm:$0xff] }
 0x2c9   : > { %1788 = vmatpush.bf16.msra.mxu3 %v1719_v32  ;;  %1746 = vmatmul.bf16.vlgmr.msra.gmra.mxu2 %v7368_v46  ;;  %v7376_v32 = vpack.c.bf16 %v5789_v21, %v5765_v39  ;;  %v1530_v39 = vmax.f32 %v5947_v38, 1e-30  ;;  %v1952_v46 = vld [vmem:[%s4892_s21 + $0x18] sm:$0xff] }
 0x2cb   : > { %4574 = vrcp.f32 %v1530_v39 }
 0x2cd   : > { %1789 = vmatpush.bf16.msra.mxu3 %v1717_v2 }
 0x2d1   : > { %1790 = vmatpush.bf16.msra.mxu3 %v1715_v14  ;;  %v7372_v14 = vpack.c.bf16 %v5734_v24, %v5657_v29  ;;  %v7379_v29 = vpack.c.bf16 %v5862_v44, %v5829_v54  ;;  %v1533_v54 = vmax.f32 %v5949_v23, 1e-30 }
 0x2d5   : > { %1791 = vmatpush.bf16.msra.mxu3 %v1713_v5  ;;  %v7373_v5 = vpack.c.bf16 %v5782_v42, %v5757_v48  ;;  %v4575_v42 = vpop.eup %4574 }
 0x2d9   : > { %1792 = vmatpush.bf16.msra.mxu3 %v1711_v40  ;;  %1751 = vmatmul.bf16.gmra.mxu2 %v7369_v43  ;;  %v7383_v40 = vpack.c.bf16 %v5881_v1, %v5889_v10 }
 0x2dd   : > { %1793 = vmatpush.bf16.msra.mxu3 %v1709_v58  ;;  %v1531_v58 = vmax.f32 %v5951_v17, 1e-30 }
 0x2df   : > { %4576 = vrcp.f32 %v1531_v58  ;;  %v1958_v58 = vld [vmem:[%s4892_s21 + $0x48] sm:$0xff] }
 0x2e0   : > { %4578 = vrcp.f32 %v1532_v6 }
 0x2e1   : > { %1794 = vmatpush.bf16.msra.mxu3 %v1707_v7  ;;  %4580 = vrcp.f32 %v1533_v54 }
 0x2e2   : > { %4582 = vrcp.f32 %v1534_v19 }
 0x2e4   : > { %1795 = vmatmul.bf16.vlgmr.msra.gmra.mxu3 %v7370_v35  ;;  %v1535_v35 = vmax.f32 %v5959_v52, 1e-30 }
 0x2e5   : > { %v4577_v36 = vpop.eup %4576 }
 0x2e6   : > { %v4579_v18 = vpop.eup %4578  ;;  %4584 = vrcp.f32 %v1535_v35 }
 0x2e7   : > { %v4581_v17 = vpop.eup %4580 }
 0x2e8   : > { %v4583_v57 = vpop.eup %4582 }
 0x2e9   : > { %1756 = vmatmul.bf16.gmra.mxu2 %v7371_v33 }
 0x2f4   : > { %1800 = vmatmul.bf16.gmra.mxu3 %v7372_v14 }
 0x2f9   : > { %1761 = vmatmul.bf16.gmra.mxu2 %v7373_v5 }
 0x304   : > { %1805 = vmatmul.bf16.gmra.mxu3 %v7374_v12  ;;  %v1955_v12 = vld [vmem:[%s4892_s21 + $0x30] sm:$0xff] }
 0x309   : > { %1766 = vmatmul.bf16.gmra.mxu2 %v7375_v50 }
 0x314   : > { %1810 = vmatmul.bf16.gmra.mxu3 %v7376_v32  ;;  %v1951_v32 = vld [vmem:[%s4892_s21 + $0x10] sm:$0xff] }
 0x319   : > { %1771 = vmatmul.bf16.gmra.mxu2 %v7377_v27  ;;  %v1536_v27 = vmax.f32 %v5955_v26, 1e-30 }
 0x31b   : > { %4586 = vrcp.f32 %v1536_v27 }
 0x31c   : > { %4588 = vrcp.f32 %v1537_v34 }
 0x324   : > { %1815 = vmatmul.bf16.gmra.mxu3 %v7378_v9 }
 0x329   : > { %1776 = vmatmul.bf16.gmra.mxu2 %v7379_v29 }
 0x334   : > { %1820 = vmatmul.bf16.gmra.mxu3 %v7380_v4  ;;  %v4585_v4 = vpop.eup %4584 }
 0x339   : > { %1781 = vmatmul.bf16.gmra.mxu2 %v7381_v49 }
 0x344   : > { %1825 = vmatmul.bf16.gmra.mxu3 %v7382_v22  ;;  %v1954_v22 = vld [vmem:[%s4892_s21 + $0x28] sm:$0xff] }
 0x34c   : > { %v1747_v24 = vpop.f32.mrf.mxu2 }
 0x354   : > { %1830 = vmatmul.bf16.gmra.mxu3 %v7383_v40  ;;  %v1749_v56 = vpop.f32.mrf.mxu2 }
 0x35c   : > { %v1752_v48 = vpop.f32.mrf.mxu2 }
 0x364   : > { %v1754_v41 = vpop.f32.mrf.mxu2 }
 0x367   : > { %v1796_v7 = vpop.f32.mrf.mxu3 }
 0x368   : > { %v1797_v59 = vadd.f32 %v1796_v7, %v1747_v24 }
 0x36a   : > { %v1836_v21 = vmul.f32 %v4575_v42, %v1797_v59  ;;  %v1538_v59 = vmax.f32 %v5965_v30, 1e-30 }
 0x36c   : > { %v1852_v28 = vpack.c.bf16 %v1836_v21, %v1836_v21  ;;  %v1757_v25 = vpop.f32.mrf.mxu2  ;;  %4590 = vrcp.f32 %v1538_v59 }
 0x36e   : > { %1884 = vrot.lane.b32.xlu0 %v1852_v28, %s4845_s25 }
 0x36f   : > { %v1798_v13 = vpop.f32.mrf.mxu3 }
 0x370   : > { %v1799_v8 = vadd.f32 %v1798_v13, %v1749_v56  ;;  %v4587_v56 = vpop.eup %4586  ;;  %v1961_v13 = vld [vmem:[%s4892_s21 + $0x60] sm:$0xff] }
 0x371   : > { %v4589_v21 = vpop.eup %4588 }
 0x372   : > { %v1837_v31 = vmul.f32 %v4577_v36, %v1799_v8  ;;  %v1959_v36 = vld [vmem:[%s4892_s21 + $0x50] sm:$0xff] }
 0x374   : > { %v1853_v51 = vpack.c.bf16 %v1837_v31, %v1837_v31  ;;  %v1759_v10 = vpop.f32.mrf.mxu2 }
 0x376   : > { %1886 = vrot.lane.b32.xlu2 %v1853_v51, %s4845_s25  ;;  %v4591_v51 = vpop.eup %4590 }
 0x377   : > { %v1801_v60 = vpop.f32.mrf.mxu3 }
 0x378   : > { %v1802_v11 = vadd.f32 %v1801_v60, %v1752_v48  ;;  %v1960_v60 = vld [vmem:[%s4892_s21 + $0x58] sm:$0xff] }
 0x37a   : > { %v1838_v44 = vmul.f32 %v4579_v18, %v1802_v11  ;;  %v1962_v18 = vld [vmem:[%s4892_s21 + $0x68] sm:$0xff] }
 0x37c   : > { %v1854_v20 = vpack.c.bf16 %v1838_v44, %v1838_v44  ;;  %v1762_v43 = vpop.f32.mrf.mxu2 }
 0x37e   : > { %1888 = vrot.lane.b32.xlu1 %v1854_v20, %s4845_s25  ;;  %1969 = vperm.xlu2 %4408, %v1949_v47  }
 0x37f   : > { %v1803_v1 = vpop.f32.mrf.mxu3 }
 0x380   : > { %v1804_v38 = vadd.f32 %v1803_v1, %v1754_v41  ;;  %v1957_v41 = vld [vmem:[%s4892_s21 + $0x40] sm:$0xff]  ;;  %v1964_v1 = vld [vmem:[%s4892_s21 + $0x78] sm:$0xff] }
 0x382   : > { %v1839_v23 = vmul.f32 %v4581_v17, %v1804_v38  ;;  %v1963_v38 = vld [vmem:[%s4892_s21 + $0x70] sm:$0xff] }
 0x384   : > { %v1855_v2 = vpack.c.bf16 %v1839_v23, %v1839_v23  ;;  %v1764_v9 = vpop.f32.mrf.mxu2  ;;  %v1541_v23 = vmax.f32 %v5971_v16, 1e-30 }
 0x386   : > { %1989 = vperm.xlu1 %4409, %v1953_v62   ;;  %1984 = vperm.xlu2 %4408, %v1952_v46  }
 0x387   : > { %1890 = vrot.lane.b32.xlu0 %v1855_v2, %s4845_s25  ;;  %v1806_v33 = vpop.f32.mrf.mxu3 }
 0x388   : > { %v1807_v14 = vadd.f32 %v1806_v33, %v1757_v25  ;;  %v1539_v25 = vmax.f32 %v5961_v55, 1e-30  ;;  %v1542_v33 = vmax.f32 %v5967_v37, 1e-30  ;;  %v1544_v37 = vmax.f32 %v5977_v45, 1e-30 }
 0x38a   : > { %v1840_v5 = vmul.f32 %v4583_v57, %v1807_v14  ;;  %4592 = vrcp.f32 %v1539_v25  ;;  %v4085_v25 = vld [vmem:[%s7219_s3 + $0x2] ss:$8 sm:$0x3] }
 0x38c   : > { %v1856_v50 = vpack.c.bf16 %v1840_v5, %v1840_v5  ;;  %v1767_v48 = vpop.f32.mrf.mxu2 }
 0x38e   : > { %1999 = vperm.xlu1 %4409, %v1955_v12   ;;  %1892 = vrot.lane.b32.xlu2 %v1856_v50, %s4845_s25 }
 0x38f   : > { %1979 = vperm.xlu0 %4410, %v1951_v32   ;;  %v1808_v52 = vpop.f32.mrf.mxu3  ;;  %v1543_v32 = vmax.f32 %v5975_v61, 1e-30 }
 0x390   : > { %v1809_v29 = vadd.f32 %v1808_v52, %v1759_v10  ;;  %v1540_v10 = vmax.f32 %v5969_v15, 1e-30  ;;  %v4593_v20 = vpop.eup %4592 }
 0x392   : > { %v1841_v49 = vmul.f32 %v4585_v4, %v1809_v29  ;;  %4594 = vrcp.f32 %v1540_v10 }
 0x393   : > { %4596 = vrcp.f32 %v1541_v23 }
 0x394   : > { %v1857_v24 = vpack.c.bf16 %v1841_v49, %v1841_v49  ;;  %v1769_v6 = vpop.f32.mrf.mxu2  ;;  %4598 = vrcp.f32 %v1542_v33 }
 0x395   : > { %4600 = vrcp.f32 %v1543_v32 }
 0x396   : > { %1894 = vrot.lane.b32.xlu1 %v1857_v24, %s4845_s25  ;;  %1994 = vperm.xlu2 %4408, %v1954_v22   ;;  %4602 = vrcp.f32 %v1544_v37 }
 0x397   : > { %2004 = vperm.xlu0 %4410, %v1956_v63   ;;  %v1811_v40 = vpop.f32.mrf.mxu3 }
 0x398   : > { %v1812_v26 = vadd.f32 %v1811_v40, %v1762_v43  ;;  %v4595_v43 = vpop.eup %4594 }
 0x399   : > { %v4597_v5 = vpop.eup %4596 }
 0x39a   : > { %v1842_v39 = vmul.f32 %v4587_v56, %v1812_v26  ;;  %v4599_v52 = vpop.eup %4598  ;;  %v1545_v56 = vmax.f32 %v5973_v53, 1e-30 }
 0x39b   : > { %v4601_v34 = vpop.eup %4600 }
 0x39c   : > { %v1858_v7 = vpack.c.bf16 %v1842_v39, %v1842_v39  ;;  %v1772_v44 = vpop.f32.mrf.mxu2  ;;  %4604 = vrcp.f32 %v1545_v56 }
 0x39e   : > { %2014 = vperm.xlu1 %4409, %v1958_v58   ;;  %2009 = vperm.xlu2 %4408, %v1957_v41   ;;  %v4603_v41 = vpop.eup %4602 }
 0x39f   : > { %1896 = vrot.lane.b32.xlu0 %v1858_v7, %s4845_s25  ;;  %v1813_v42 = vpop.f32.mrf.mxu3 }
 0x3a0   : > { %v1814_v0 = vadd.f32 %v1813_v42, %v1764_v9 }
 0x3a2   : > { %v1843_v28 = vmul.f32 %v4589_v21, %v1814_v0 }
 0x3a4   : > { %v1859_v8 = vpack.c.bf16 %v1843_v28, %v1843_v28  ;;  %v1774_v62 = vpop.f32.mrf.mxu2 }
 0x3a6   : > { %2029 = vperm.xlu1 %4409, %v1961_v13   ;;  %1898 = vrot.lane.b32.xlu2 %v1859_v8, %s4845_s25  ;;  %v1975_v8 = vpop.permute.xlu1 %1974 }
 0x3a7   : > { %2019 = vperm.xlu0 %4410, %v1959_v36   ;;  %v1816_v30 = vpop.f32.mrf.mxu3 }
 0x3a8   : > { %v1817_v31 = vadd.f32 %v1816_v30, %v1767_v48  ;;  %v6086_v30 = vperm.slane %v4085_v25, 0 }
 0x3aa   : > { %v1844_v54 = vmul.f32 %v4591_v51, %v1817_v31  ;;  %v6088_v31 = vperm.slane %v4085_v25, 1  ;;  %v2054_v51 = vadd.f32 %v6086_v30, %v1975_v8 }
 0x3ac   : > { %v1860_v11 = vpack.c.bf16 %v1844_v54, %v1844_v54  ;;  %v1777_v12 = vpop.f32.mrf.mxu2  ;;  %v2055_v54 = vadd.f32 %v6088_v31, %v1975_v8  ;;  %vm2086_vm2 = vcmp.gt.f32.partialorder %v2054_v51, 0.0 }
 0x3ae   : > { %1900 = vrot.lane.b32.xlu1 %v1860_v11, %s4845_s25  ;;  %2024 = vperm.xlu2 %4408, %v1960_v60   ;;  %vm2087_vm3 = vcmp.gt.f32.partialorder %v2055_v54, 0.0 }
 0x3af   : > { %2034 = vperm.xlu0 %4410, %v1962_v18   ;;  %v1818_v47 = vpop.f32.mrf.mxu3  ;;  %v2118_v18 = vmul.f32 0.2, %v2054_v51 }
 0x3b0   : > { %v1819_v55 = vadd.f32 %v1818_v47, %v1769_v6  ;;  %v4605_v6 = vpop.eup %4604 }
 0x3b2   : > { %v1845_v19 = vmul.f32 %v4593_v20, %v1819_v55  ;;  %v6094_v55 = vsel %vm2086_vm2, %v2054_v51, %v2118_v18 }
 0x3b4   : > { %v1861_v17 = vpack.c.bf16 %v1845_v19, %v1845_v19  ;;  %v1779_v4 = vpop.f32.mrf.mxu2 }
 0x3b6   : > { %2044 = vperm.xlu1 %4409, %v1964_v1   ;;  %2039 = vperm.xlu2 %4408, %v1963_v38  }
 0x3b7   : > { %1902 = vrot.lane.b32.xlu0 %v1861_v17, %s4845_s25  ;;  %v1821_v46 = vpop.f32.mrf.mxu3 }
 0x3b8   : > { %v1822_v2 = vadd.f32 %v1821_v46, %v1772_v44  ;;  %v2119_v44 = vmul.f32 0.2, %v2055_v54 }
 0x3ba   : > { %v1846_v15 = vmul.f32 %v4595_v43, %v1822_v2  ;;  %v6096_v20 = vsel %vm2087_vm3, %v2055_v54, %v2119_v44 }
 0x3bb   : > { %v2183_v17 = vmax.f32 %v6094_v55, %v6096_v20 }
 0x3bc   : > { %v1862_v35 = vpack.c.bf16 %v1846_v15, %v1846_v15  ;;  %v1782_v26 = vpop.f32.mrf.mxu2 }
 0x3be   : > { %1904 = vrot.lane.b32.xlu2 %v1862_v35, %s4845_s25 }
 0x3bf   : > { %v1823_v14 = vpop.f32.mrf.mxu3 }
 0x3c0   : > { %v1824_v57 = vadd.f32 %v1823_v14, %v1774_v62 }
 0x3c2   : > { %v1847_v50 = vmul.f32 %v4597_v5, %v1824_v57 }
 0x3c4   : > { %v1863_v16 = vpack.c.bf16 %v1847_v50, %v1847_v50  ;;  %v1784_v59 = vpop.f32.mrf.mxu2 }
 0x3c6   : > { %1906 = vrot.lane.b32.xlu1 %v1863_v16, %s4845_s25 }
 0x3c7   : > { %v1826_v27 = vpop.f32.mrf.mxu3 }
 0x3c8   : > { %v1827_v9 = vadd.f32 %v1826_v27, %v1777_v12 }
 0x3ca   : > { %v1848_v29 = vmul.f32 %v4599_v52, %v1827_v9 }
 0x3cc   : > { %v1864_v49 = vpack.c.bf16 %v1848_v29, %v1848_v29 }
 0x3ce   : > { %1908 = vrot.lane.b32.xlu0 %v1864_v49, %s4845_s25 }
 0x3cf   : > { %v1828_v22 = vpop.f32.mrf.mxu3 }
 0x3d0   : > { %v1829_v24 = vadd.f32 %v1828_v22, %v1779_v4  ;;  %v1887_v63 = vpop.permute.xlu2 %1886 }
 0x3d1   : > { %1934 = vst.msk [vmem:[%s5678_s19 + $0x4] sm:$0xf] %vm1932_vm1, %v1887_v63 }
 0x3d2   : > { %v1849_v40 = vmul.f32 %v4601_v34, %v1829_v24 }
 0x3d4   : > { %v1865_v61 = vpack.c.bf16 %v1849_v40, %v1849_v40 }
 0x3d6   : > { %1910 = vrot.lane.b32.xlu2 %v1865_v61, %s4845_s25 }
 0x3d7   : > { %v1831_v48 = vpop.f32.mrf.mxu3 }
 0x3d8   : > { %v1832_v39 = vadd.f32 %v1831_v48, %v1782_v26  ;;  %v1970_v58 = vpop.permute.xlu2 %1969 }
 0x3d9   : > { %v2052_v14 = vadd.f32 %v6086_v30, %v1970_v58  ;;  %v2053_v50 = vadd.f32 %v6088_v31, %v1970_v58 }
 0x3da   : > { %v1850_v45 = vmul.f32 %v4603_v41, %v1832_v39 }
 0x3db   : > { %v2116_v49 = vmul.f32 0.2, %v2052_v14  ;;  %v2117_v22 = vmul.f32 0.2, %v2053_v50  ;;  %vm2084_vm10 = vcmp.gt.f32.partialorder %v2052_v14, 0.0  ;;  %vm2085_vm11 = vcmp.gt.f32.partialorder %v2053_v50, 0.0 }
 0x3dc   : > { %v1866_v7 = vpack.c.bf16 %v1850_v45, %v1850_v45 }
 0x3dd   : > { %v6138_v45 = vsel %vm2084_vm10, %v2052_v14, %v2116_v49 }
 0x3de   : > { %1912 = vrot.lane.b32.xlu1 %v1866_v7, %s4845_s25  ;;  %v6140_v7 = vsel %vm2085_vm11, %v2053_v50, %v2117_v22 }
 0x3df   : > { %v1833_v42 = vpop.f32.mrf.mxu3 }
 0x3e0   : > { %v1834_v0 = vadd.f32 %v1833_v42, %v1784_v59  ;;  %v6076_v21 = vpop.permute.xlu2 %1984  ;;  %v1885_v28 = vpop.permute.xlu0 %1884 }
 0x3e1   : > { %1933 = vst.msk [vmem:[%s5678_s19] sm:$0xf] %vm1932_vm1, %v1885_v28  ;;  %v2058_v34 = vadd.f32 %v6086_v30, %v6076_v21  ;;  %v2059_v40 = vadd.f32 %v6088_v31, %v6076_v21 }
 0x3e2   : > { %v1851_v53 = vmul.f32 %v4605_v6, %v1834_v0  ;;  %v2180_v0 = vmax.f32 %v6138_v45, %v6140_v7 }
 0x3e3   : > { %vm2090_vm14 = vcmp.gt.f32.partialorder %v2058_v34, 0.0  ;;  %v2123_v8 = vmul.f32 0.2, %v2059_v40  ;;  %vm2091_vm15 = vcmp.gt.f32.partialorder %v2059_v40, 0.0 }
 0x3e4   : > { %v1867_v13 = vpack.c.bf16 %v1851_v53, %v1851_v53 }
 0x3e6   : > { %1914 = vrot.lane.b32.xlu0 %v1867_v13, %s4845_s25  ;;  %v2122_v13 = vmul.f32 0.2, %v2058_v34 }
 0x3e8   : > { %v1893_v36 = vpop.permute.xlu2 %1892 }
 0x3e9   : > { %1937 = vst.msk [vmem:[%s5678_s19 + $0x10] sm:$0xf] %vm1932_vm1, %v1893_v36 }
 0x3f0   : > { %v1995_v60 = vpop.permute.xlu2 %1994  ;;  %v1889_v11 = vpop.permute.xlu1 %1888 }
 0x3f1   : > { %1935 = vst.msk [vmem:[%s5678_s19 + $0x8] sm:$0xf] %vm1932_vm1, %v1889_v11  ;;  %v2062_v35 = vadd.f32 %v6086_v30, %v1995_v60  ;;  %v2063_v57 = vadd.f32 %v6088_v31, %v1995_v60 }
 0x3f3   : > { %v2126_v9 = vmul.f32 0.2, %v2062_v35  ;;  %v2127_v52 = vmul.f32 0.2, %v2063_v57  ;;  %vm2094_vm8 = vcmp.gt.f32.partialorder %v2062_v35, 0.0  ;;  %vm2095_vm9 = vcmp.gt.f32.partialorder %v2063_v57, 0.0 }
 0x3f5   : > { %v6132_v48 = vsel %vm2094_vm8, %v2062_v35, %v2126_v9  ;;  %v6134_v39 = vsel %vm2095_vm9, %v2063_v57, %v2127_v52 }
 0x3f6   : > { %v2195_v6 = vmax.f32 %v6132_v48, %v6134_v39 }
 0x3f8   : > { %v2010_v10 = vpop.permute.xlu2 %2009  ;;  %v1990_v47 = vpop.permute.xlu1 %1989 }
 0x3f9   : > { %v1891_v19 = vpop.permute.xlu0 %1890  ;;  %v2060_v1 = vadd.f32 %v6086_v30, %v1990_v47  ;;  %v2061_v38 = vadd.f32 %v6088_v31, %v1990_v47  ;;  %v2068_v58 = vadd.f32 %v6086_v30, %v2010_v10  ;;  %v2069_v41 = vadd.f32 %v6088_v31, %v2010_v10 }
 0x3fa   : > { %1936 = vst.msk [vmem:[%s5678_s19 + $0xc] sm:$0xf] %vm1932_vm1, %v1891_v19  ;;  %v6159_v47 = vsel %vm2090_vm14, %v2058_v34, %v2122_v13  ;;  %v6161_v19 = vsel %vm2091_vm15, %v2059_v40, %v2123_v8 }
 0x3fb   : > { %v2124_v23 = vmul.f32 0.2, %v2060_v1  ;;  %v2125_v62 = vmul.f32 0.2, %v2061_v38  ;;  %vm2092_vm4 = vcmp.gt.f32.partialorder %v2060_v1, 0.0  ;;  %vm2093_vm5 = vcmp.gt.f32.partialorder %v2061_v38, 0.0 }
 0x3fc   : > { %v2132_v36 = vmul.f32 0.2, %v2068_v58  ;;  %v2133_v25 = vmul.f32 0.2, %v2069_v41  ;;  %vm2100_vm0 = vcmp.gt.f32.partialorder %v2068_v58, 0.0  ;;  %vm2101_vm2 = vcmp.gt.f32.partialorder %v2069_v41, 0.0 }
 0x3fd   : > { %v6104_v43 = vsel %vm2092_vm4, %v2060_v1, %v2124_v23  ;;  %v6106_v15 = vsel %vm2093_vm5, %v2061_v38, %v2125_v62 }
 0x3fe   : > { %v2192_v16 = vmax.f32 %v6104_v43, %v6106_v15  ;;  %v6163_v1 = vsel %vm2100_vm0, %v2068_v58, %v2132_v36  ;;  %v6165_v38 = vsel %vm2101_vm2, %v2069_v41, %v2133_v25 }
 0x3ff   : > { %2184 = vmax.xlane.f32.xlu2 %v2183_v17  ;;  %v2204_v35 = vmax.f32 %v6163_v1, %v6165_v38 }
 0x400   : > { %v1899_v46 = vpop.permute.xlu2 %1898  ;;  %v2000_v2 = vpop.permute.xlu1 %1999 }
 0x401   : > { %1940 = vst.msk [vmem:[%s5678_s19 + $0x1c] sm:$0xf] %vm1932_vm1, %v1899_v46  ;;  %v1980_v33 = vpop.permute.xlu0 %1979  ;;  %v2064_v51 = vadd.f32 %v6086_v30, %v2000_v2  ;;  %v2065_v11 = vadd.f32 %v6088_v31, %v2000_v2  ;;  %v2189_v2 = vmax.f32 %v6159_v47, %v6161_v19 }
 0x402   : > { %v2056_v5 = vadd.f32 %v6086_v30, %v1980_v33  ;;  %v2057_v12 = vadd.f32 %v6088_v31, %v1980_v33 }
 0x403   : > { %v2128_v17 = vmul.f32 0.2, %v2064_v51  ;;  %vm2096_vm3 = vcmp.gt.f32.partialorder %v2064_v51, 0.0  ;;  %v2129_v62 = vmul.f32 0.2, %v2065_v11  ;;  %vm2097_vm5 = vcmp.gt.f32.partialorder %v2065_v11, 0.0 }
 0x404   : > { %v2120_v32 = vmul.f32 0.2, %v2056_v5  ;;  %v2121_v27 = vmul.f32 0.2, %v2057_v12  ;;  %vm2088_vm6 = vcmp.gt.f32.partialorder %v2056_v5, 0.0  ;;  %vm2089_vm7 = vcmp.gt.f32.partialorder %v2057_v12, 0.0 }
 0x405   : > { %v6171_v57 = vsel %vm2096_vm3, %v2064_v51, %v2128_v17 }
 0x406   : > { %v6118_v29 = vsel %vm2088_vm6, %v2056_v5, %v2120_v32  ;;  %v6120_v4 = vsel %vm2089_vm7, %v2057_v12, %v2121_v27 }
 0x407   : > { %2193 = vmax.xlane.f32.xlu2 %v2192_v16  ;;  %v2186_v37 = vmax.f32 %v6118_v29, %v6120_v4  ;;  %v6178_v16 = vsel %vm2097_vm5, %v2065_v11, %v2129_v62 }
 0x408   : > { %v2025_v24 = vpop.permute.xlu2 %2024  ;;  %v1895_v63 = vpop.permute.xlu1 %1894  ;;  %v2198_v40 = vmax.f32 %v6171_v57, %v6178_v16 }
 0x409   : > { %2187 = vmax.xlane.f32.xlu1 %v2186_v37  ;;  %v2005_v61 = vpop.permute.xlu0 %2004  ;;  %1938 = vst.msk [vmem:[%s5678_s19 + $0x14] sm:$0xf] %vm1932_vm1, %v1895_v63  ;;  %v2074_v18 = vadd.f32 %v6086_v30, %v2025_v24  ;;  %v2075_v10 = vadd.f32 %v6088_v31, %v2025_v24 }
 0x40a   : > { %v2066_v26 = vadd.f32 %v6086_v30, %v2005_v61  ;;  %v2067_v56 = vadd.f32 %v6088_v31, %v2005_v61 }
 0x40b   : > { %v2138_v23 = vmul.f32 0.2, %v2074_v18  ;;  %v2139_v46 = vmul.f32 0.2, %v2075_v10  ;;  %vm2106_vm4 = vcmp.gt.f32.partialorder %v2074_v18, 0.0  ;;  %vm2107_vm6 = vcmp.gt.f32.partialorder %v2075_v10, 0.0 }
 0x40c   : > { %v2130_v59 = vmul.f32 0.2, %v2066_v26  ;;  %v2131_v42 = vmul.f32 0.2, %v2067_v56  ;;  %vm2098_vm12 = vcmp.gt.f32.partialorder %v2066_v26, 0.0  ;;  %vm2099_vm13 = vcmp.gt.f32.partialorder %v2067_v56, 0.0 }
 0x40d   : > { %v6176_v50 = vsel %vm2106_vm4, %v2074_v18, %v2138_v23  ;;  %v6183_v52 = vsel %vm2107_vm6, %v2075_v10, %v2139_v46 }
 0x40e   : > { %v6144_v21 = vsel %vm2098_vm12, %v2066_v26, %v2130_v59  ;;  %v6146_v28 = vsel %vm2099_vm13, %v2067_v56, %v2131_v42  ;;  %v2213_v34 = vmax.f32 %v6176_v50, %v6183_v52 }
 0x40f   : > { %v2201_v53 = vmax.f32 %v6144_v21, %v6146_v28 }
 0x410   : > { %v2040_v54 = vpop.permute.xlu2 %2039  ;;  %2181 = vmax.xlane.f32.xlu0 %v2180_v0  ;;  %v2015_v60 = vpop.permute.xlu1 %2014 }
 0x411   : > { %2196 = vmax.xlane.f32.xlu1 %v2195_v6  ;;  %v1897_v44 = vpop.permute.xlu0 %1896  ;;  %2202 = vmax.xlane.f32.xlu2 %v2201_v53  ;;  %v2080_v5 = vadd.f32 %v6086_v30, %v2040_v54  ;;  %v2081_v32 = vadd.f32 %v6088_v31, %v2040_v54  ;;  %v2070_v49 = vadd.f32 %v6086_v30, %v2015_v60 }
 0x412   : > { %1939 = vst.msk [vmem:[%s5678_s19 + $0x18] sm:$0xf] %vm1932_vm1, %v1897_v44  ;;  %v2071_v37 = vadd.f32 %v6088_v31, %v2015_v60 }
 0x413   : > { %v2144_v63 = vmul.f32 0.2, %v2080_v5  ;;  %v2145_v61 = vmul.f32 0.2, %v2081_v32  ;;  %vm2112_vm9 = vcmp.gt.f32.partialorder %v2080_v5, 0.0  ;;  %vm2113_vm10 = vcmp.gt.f32.partialorder %v2081_v32, 0.0 }
 0x414   : > { %v2134_v58 = vmul.f32 0.2, %v2070_v49  ;;  %v2135_v41 = vmul.f32 0.2, %v2071_v37  ;;  %vm2102_vm11 = vcmp.gt.f32.partialorder %v2070_v49, 0.0  ;;  %vm2103_vm12 = vcmp.gt.f32.partialorder %v2071_v37, 0.0 }
 0x415   : > { %v6201_v13 = vsel %vm2112_vm9, %v2080_v5, %v2144_v63  ;;  %v6203_v8 = vsel %vm2113_vm10, %v2081_v32, %v2145_v61 }
 0x416   : > { %v6207_v51 = vsel %vm2102_vm11, %v2070_v49, %v2134_v58  ;;  %v6209_v54 = vsel %vm2103_vm12, %v2071_v37, %v2135_v41  ;;  %v2222_v62 = vmax.f32 %v6201_v13, %v6203_v8 }
 0x417   : > { %v2207_v10 = vmax.f32 %v6207_v51, %v6209_v54 }
 0x418   : > { %v1905_v33 = vpop.permute.xlu2 %1904  ;;  %2190 = vmax.xlane.f32.xlu0 %v2189_v2  ;;  %v2030_v14 = vpop.permute.xlu1 %2029 }
 0x419   : > { %1943 = vst.msk [vmem:[%s5678_s19 + $0x28] sm:$0xf] %vm1932_vm1, %v1905_v33  ;;  %2205 = vmax.xlane.f32.xlu1 %v2204_v35  ;;  %v2020_v12 = vpop.permute.xlu0 %2019  ;;  %v2076_v36 = vadd.f32 %v6086_v30, %v2030_v14  ;;  %v2077_v25 = vadd.f32 %v6088_v31, %v2030_v14 }
 0x41a   : > { %v2072_v27 = vadd.f32 %v6086_v30, %v2020_v12  ;;  %v2073_v9 = vadd.f32 %v6088_v31, %v2020_v12 }
 0x41b   : > { %v2140_v17 = vmul.f32 0.2, %v2076_v36  ;;  %v2141_v23 = vmul.f32 0.2, %v2077_v25  ;;  %vm2108_vm15 = vcmp.gt.f32.partialorder %v2076_v36, 0.0  ;;  %vm2109_vm0 = vcmp.gt.f32.partialorder %v2077_v25, 0.0 }
 0x41c   : > { %vm2104_vm7 = vcmp.gt.f32.partialorder %v2072_v27, 0.0  ;;  %vm2105_vm8 = vcmp.gt.f32.partialorder %v2073_v9, 0.0  ;;  %v2136_v22 = vmul.f32 0.2, %v2072_v27  ;;  %v2137_v24 = vmul.f32 0.2, %v2073_v9 }
 0x41d   : > { %v6225_v5 = vsel %vm2108_vm15, %v2076_v36, %v2140_v17  ;;  %v6227_v12 = vsel %vm2109_vm0, %v2077_v25, %v2141_v23 }
 0x41e   : > { %v6191_v26 = vsel %vm2104_vm7, %v2072_v27, %v2136_v22  ;;  %v6193_v56 = vsel %vm2105_vm8, %v2073_v9, %v2137_v24  ;;  %v2216_v32 = vmax.f32 %v6225_v5, %v6227_v12 }
 0x41f   : > { %v2210_v59 = vmax.f32 %v6191_v26, %v6193_v56 }
 0x420   : > { %2199 = vmax.xlane.f32.xlu0 %v2198_v40  ;;  %v1901_v42 = vpop.permute.xlu1 %1900 }
 0x421   : > { %2214 = vmax.xlane.f32.xlu1 %v2213_v34  ;;  %v2035_v0 = vpop.permute.xlu0 %2034  ;;  %2211 = vmax.xlane.f32.xlu2 %v2210_v59  ;;  %1941 = vst.msk [vmem:[%s5678_s19 + $0x20] sm:$0xf] %vm1932_vm1, %v1901_v42 }
 0x422   : > { %v2078_v6 = vadd.f32 %v6086_v30, %v2035_v0  ;;  %v2079_v53 = vadd.f32 %v6088_v31, %v2035_v0 }
 0x424   : > { %vm2110_vm13 = vcmp.gt.f32.partialorder %v2078_v6, 0.0  ;;  %vm2111_vm14 = vcmp.gt.f32.partialorder %v2079_v53, 0.0  ;;  %v2142_v60 = vmul.f32 0.2, %v2078_v6  ;;  %v2143_v11 = vmul.f32 0.2, %v2079_v53 }
 0x426   : > { %v6211_v18 = vsel %vm2110_vm13, %v2078_v6, %v2142_v60  ;;  %v6213_v44 = vsel %vm2111_vm14, %v2079_v53, %v2143_v11 }
 0x427   : > { %v2219_v46 = vmax.f32 %v6211_v18, %v6213_v44 }
 0x428   : > { %2208 = vmax.xlane.f32.xlu0 %v2207_v10  ;;  %v2045_v2 = vpop.permute.xlu1 %2044 }
 0x429   : > { %2223 = vmax.xlane.f32.xlu1 %v2222_v62  ;;  %v1903_v35 = vpop.permute.xlu0 %1902  ;;  %2220 = vmax.xlane.f32.xlu2 %v2219_v46  ;;  %v2082_v33 = vadd.f32 %v6086_v30, %v2045_v2  ;;  %v2083_v14 = vadd.f32 %v6088_v31, %v2045_v2  ;;  %v7385_v62 = vld [vmem:[#allocation5_spill] sm:$0xff] }
 0x42a   : > { %1942 = vst.msk [vmem:[%s5678_s19 + $0x24] sm:$0xf] %vm1932_vm1, %v1903_v35 }
 0x42b   : > { %v2146_v27 = vmul.f32 0.2, %v2082_v33  ;;  %v2147_v9 = vmul.f32 0.2, %v2083_v14  ;;  %vm2114_vm2 = vcmp.gt.f32.partialorder %v2082_v33, 0.0  ;;  %vm2115_vm3 = vcmp.gt.f32.partialorder %v2083_v14, 0.0 }
 0x42d   : > { %v6233_v30 = vsel %vm2114_vm2, %v2082_v33, %v2146_v27  ;;  %v6235_v31 = vsel %vm2115_vm3, %v2083_v14, %v2147_v9 }
 0x42e   : > { %7384 = vst [vmem:[#allocation3_spill] sm:$0xff] %v6235_v31  ;;  %v2225_v37 = vmax.f32 %v6233_v30, %v6235_v31 }
 0x430   : > { %v1911_v49 = vpop.permute.xlu2 %1910  ;;  %2217 = vmax.xlane.f32.xlu0 %v2216_v32 }
 0x431   : > { %1946 = vst.msk [vmem:[%s5678_s19 + $0x34] sm:$0xf] %vm1932_vm1, %v1911_v49 }
 0x438   : > { %2226 = vmax.xlane.f32.xlu0 %v2225_v37  ;;  %v1907_v22 = vpop.permute.xlu1 %1906 }
 0x439   : > { %1944 = vst.msk [vmem:[%s5678_s19 + $0x2c] sm:$0xf] %vm1932_vm1, %v1907_v22 }
 0x440   : > { %v1909_v24 = vpop.permute.xlu0 %1908 }
 0x441   : > { %1945 = vst.msk [vmem:[%s5678_s19 + $0x30] sm:$0xf] %vm1932_vm1, %v1909_v24  ;;  %v7386_v24 = vld [vmem:[#allocation11_spill] sm:$0xff] }
 0x450   : > { %v1913_v63 = vpop.permute.xlu1 %1912 }
 0x451   : > { %1947 = vst.msk [vmem:[%s5678_s19 + $0x38] sm:$0xf] %vm1932_vm1, %v1913_v63 }
 0x458   : > { %v1915_v34 = vpop.permute.xlu0 %1914 }
 0x459   : > { %1948 = vst.msk [vmem:[%s5678_s19 + $0x3c] sm:$0xf] %vm1932_vm1, %v1915_v34 }
 0x472   : > { %v2185_v40 = vpop.xlane.xlu2 %2184 }
 0x473   : > { %v2230_v61 = vsub.f32 %v6094_v55, %v2185_v40  ;;  %v2231_v58 = vsub.f32 %v6096_v20, %v2185_v40  ;;  %v7387_v40 = vld [vmem:[#allocation13_spill] sm:$0xff] }
 0x475   : > { %v2264_v41 = vmul.f32 1.442695, %v2230_v61  ;;  %v2266_v59 = vmul.f32 1.442695, %v2231_v58 }
 0x477   : > { %4606 = vpow2.f32 %v2264_v41 }
 0x478   : > { %4608 = vpow2.f32 %v2266_v59  ;;  %v7389_v59 = vld [vmem:[#allocation9_spill] sm:$0xff] }
 0x47a   : > { %v2194_v42 = vpop.xlane.xlu2 %2193 }
 0x47b   : > { %v2236_v0 = vsub.f32 %v6104_v43, %v2194_v42  ;;  %v2237_v6 = vsub.f32 %v6106_v15, %v2194_v42 }
 0x47c   : > { %v2188_v53 = vpop.xlane.xlu1 %2187 }
 0x47d   : > { %v4607_v36 = vpop.eup %4606  ;;  %v2276_v25 = vmul.f32 1.442695, %v2236_v0  ;;  %v2278_v60 = vmul.f32 1.442695, %v2237_v6  ;;  %v2232_v11 = vsub.f32 %v6118_v29, %v2188_v53  ;;  %v2233_v10 = vsub.f32 %v6120_v4, %v2188_v53 }
 0x47e   : > { %v4609_v55 = vpop.eup %4608  ;;  %v6254_v20 = vmul.f32 %v4607_v36, %v7344_v3 }
 0x47f   : > { %4610 = vpow2.f32 %v2276_v25  ;;  %v2268_v17 = vmul.f32 1.442695, %v2232_v11  ;;  %v2270_v23 = vmul.f32 1.442695, %v2233_v10  ;;  %v6257_v46 = vmul.f32 %v4609_v55, %v7385_v62 }
 0x480   : > { %4612 = vpow2.f32 %v2278_v60 }
 0x481   : > { %4614 = vpow2.f32 %v2268_v17  ;;  %v2359_v43 = vadd.f32 %v6257_v46, %v6254_v20 }
 0x482   : > { %4616 = vpow2.f32 %v2270_v23 }
 0x483   : > { %2360 = vadd.xlane.f32.xlu1 %v2359_v43  ;;  %v2182_v15 = vpop.xlane.xlu0 %2181 }
 0x484   : > { %v2228_v29 = vsub.f32 %v6138_v45, %v2182_v15  ;;  %v2229_v4 = vsub.f32 %v6140_v7, %v2182_v15  ;;  %v2203_v2 = vpop.xlane.xlu2 %2202  ;;  %v2197_v35 = vpop.xlane.xlu1 %2196 }
 0x485   : > { %v4611_v33 = vpop.eup %4610  ;;  %v2242_v14 = vsub.f32 %v6144_v21, %v2203_v2  ;;  %v2243_v32 = vsub.f32 %v6146_v28, %v2203_v2  ;;  %v2238_v27 = vsub.f32 %v6132_v48, %v2197_v35  ;;  %v2239_v9 = vsub.f32 %v6134_v39, %v2197_v35  ;;  %v7388_v28 = vld [vmem:[#allocation7_spill] sm:$0xff] }
 0x486   : > { %v4613_v49 = vpop.eup %4612  ;;  %v2260_v37 = vmul.f32 1.442695, %v2228_v29  ;;  %v2262_v22 = vmul.f32 1.442695, %v2229_v4  ;;  %v6268_v63 = vmul.f32 %v4611_v33, %v7386_v24  ;;  %v7390_v29 = vld [vmem:[#allocation2_spill] sm:$0xff]  ;;  %v7392_v33 = vld [vmem:[#allocation15_spill] sm:$0xff] }
 0x487   : > { %v4615_v45 = vpop.eup %4614  ;;  %v2288_v34 = vmul.f32 1.442695, %v2242_v14  ;;  %v2290_v7 = vmul.f32 1.442695, %v2243_v32  ;;  %v6271_v61 = vmul.f32 %v4613_v49, %v7387_v40  ;;  %v2280_v21 = vmul.f32 1.442695, %v2238_v27 }
 0x488   : > { %v4617_v58 = vpop.eup %4616  ;;  %4618 = vpow2.f32 %v2260_v37  ;;  %v6274_v41 = vmul.f32 %v4615_v45, %v7388_v28  ;;  %v2282_v48 = vmul.f32 1.442695, %v2239_v9  ;;  %v7393_v27 = vld [vmem:[#allocation17_spill] sm:$0xff]  ;;  %v4846_v49 = vmov 3  }
 0x489   : > { %4620 = vpow2.f32 %v2262_v22  ;;  %v2368_v39 = vadd.f32 %v6271_v61, %v6268_v63  ;;  %v6279_v42 = vmul.f32 %v4617_v58, %v7389_v59  ;;  %4411 = vset.pattern.permute.xlu2 %v4846_v49  ;;  %4412 = vset.pattern.permute.xlu1 %v4846_v49 }
 0x48a   : > { %4622 = vpow2.f32 %v2288_v34  ;;  %v7394_v34 = vld [vmem:[#allocation10_spill] sm:$0xff]  ;;  %4413 = vset.pattern.permute.xlu0 %v4846_v49 }
 0x48b   : > { %4624 = vpow2.f32 %v2290_v7  ;;  %2369 = vadd.xlane.f32.xlu1 %v2368_v39  ;;  %v2191_v0 = vpop.xlane.xlu0 %2190  ;;  %v2362_v6 = vadd.f32 %v6279_v42, %v6274_v41 }
 0x48c   : > { %4626 = vpow2.f32 %v2280_v21  ;;  %v2234_v53 = vsub.f32 %v6159_v47, %v2191_v0  ;;  %v2235_v36 = vsub.f32 %v6161_v19, %v2191_v0  ;;  %v2206_v25 = vpop.xlane.xlu1 %2205  ;;  %v7391_v47 = vld [vmem:[#allocation4_spill] sm:$0xff] }
 0x48d   : > { %4628 = vpow2.f32 %v2282_v48  ;;  %2363 = vadd.xlane.f32.xlu0 %v2362_v6  ;;  %v2244_v60 = vsub.f32 %v6163_v1, %v2206_v25  ;;  %v2245_v11 = vsub.f32 %v6165_v38, %v2206_v25  ;;  %v7395_v0 = vld [vmem:[#allocation12_spill] sm:$0xff]  ;;  %v7415_v38 = vld [vmem:[#allocation18_spill] sm:$0xff] }
 0x48e   : > { %v4619_v10 = vpop.eup %4618  ;;  %v2272_v55 = vmul.f32 1.442695, %v2234_v53  ;;  %v2274_v17 = vmul.f32 1.442695, %v2235_v36 }
 0x48f   : > { %v4621_v23 = vpop.eup %4620  ;;  %v2292_v43 = vmul.f32 1.442695, %v2244_v60  ;;  %v2294_v15 = vmul.f32 1.442695, %v2245_v11  ;;  %v6288_v4 = vmul.f32 %v4619_v10, %v7390_v29 }
 0x490   : > { %v4623_v2 = vpop.eup %4622  ;;  %4630 = vpow2.f32 %v2272_v55  ;;  %v6291_v19 = vmul.f32 %v4621_v23, %v7391_v47 }
 0x491   : > { %v4625_v35 = vpop.eup %4624  ;;  %4632 = vpow2.f32 %v2274_v17  ;;  %v6294_v1 = vmul.f32 %v4623_v2, %v7392_v33 }
 0x492   : > { %v4627_v14 = vpop.eup %4626  ;;  %4634 = vpow2.f32 %v2292_v43  ;;  %v2356_v32 = vadd.f32 %v6291_v19, %v6288_v4  ;;  %v6301_v9 = vmul.f32 %v4625_v35, %v7393_v27 }
 0x493   : > { %v4629_v22 = vpop.eup %4628  ;;  %4636 = vpow2.f32 %v2294_v15  ;;  %v2200_v45 = vpop.xlane.xlu0 %2199  ;;  %v6306_v7 = vmul.f32 %v4627_v14, %v7394_v34 }
 0x494   : > { %2357 = vadd.xlane.f32.xlu2 %v2356_v32  ;;  %v2377_v58 = vadd.f32 %v6301_v9, %v6294_v1  ;;  %v2212_v21 = vpop.xlane.xlu2 %2211  ;;  %v2240_v48 = vsub.f32 %v6171_v57, %v2200_v45  ;;  %v2241_v39 = vsub.f32 %v6178_v16, %v2200_v45  ;;  %v6313_v6 = vmul.f32 %v4629_v22, %v7395_v0  ;;  %v2215_v53 = vpop.xlane.xlu1 %2214  ;;  %v7398_v22 = vld [vmem:[#allocation19_spill] sm:$0xff] }
 0x495   : > { %v2248_v36 = vsub.f32 %v6191_v26, %v2212_v21  ;;  %v2249_v25 = vsub.f32 %v6193_v56, %v2212_v21  ;;  %v2250_v60 = vsub.f32 %v6176_v50, %v2215_v53  ;;  %v2251_v11 = vsub.f32 %v6183_v52, %v2215_v53  ;;  %v7396_v26 = vld [vmem:[#allocation6_spill] sm:$0xff]  ;;  %v7397_v52 = vld [vmem:[#allocation8_spill] sm:$0xff] }
 0x496   : > { %v4631_v10 = vpop.eup %4630  ;;  %2378 = vadd.xlane.f32.xlu1 %v2377_v58  ;;  %v2284_v55 = vmul.f32 1.442695, %v2240_v48  ;;  %v2371_v57 = vadd.f32 %v6313_v6, %v6306_v7  ;;  %v2286_v15 = vmul.f32 1.442695, %v2241_v39  ;;  %v7399_v48 = vld [vmem:[#allocation21_spill] sm:$0xff] }
 0x497   : > { %v4633_v17 = vpop.eup %4632  ;;  %v2300_v23 = vmul.f32 1.442695, %v2248_v36  ;;  %v2302_v43 = vmul.f32 1.442695, %v2249_v25  ;;  %v6324_v2 = vmul.f32 %v4631_v10, %v7396_v26  ;;  %v2304_v50 = vmul.f32 1.442695, %v2250_v60 }
 0x498   : > { %v4635_v56 = vpop.eup %4634  ;;  %4638 = vpow2.f32 %v2284_v55  ;;  %2372 = vadd.xlane.f32.xlu0 %v2371_v57  ;;  %v6327_v35 = vmul.f32 %v4633_v17, %v7397_v52  ;;  %v2306_v49 = vmul.f32 1.442695, %v2251_v11 }
 0x499   : > { %v4637_v32 = vpop.eup %4636  ;;  %4640 = vpow2.f32 %v2300_v23  ;;  %v6332_v45 = vmul.f32 %v4635_v56, %v7398_v22 }
 0x49a   : > { %4642 = vpow2.f32 %v2302_v43  ;;  %v2365_v21 = vadd.f32 %v6327_v35, %v6324_v2  ;;  %v6339_v39 = vmul.f32 %v4637_v32, %v7399_v48 }
 0x49b   : > { %4644 = vpow2.f32 %v2286_v15  ;;  %v2209_v36 = vpop.xlane.xlu0 %2208 }
 0x49c   : > { %4646 = vpow2.f32 %v2304_v50  ;;  %2366 = vadd.xlane.f32.xlu2 %v2365_v21  ;;  %v2221_v25 = vpop.xlane.xlu2 %2220  ;;  %v2246_v60 = vsub.f32 %v6207_v51, %v2209_v36  ;;  %v2247_v11 = vsub.f32 %v6209_v54, %v2209_v36  ;;  %v2380_v10 = vadd.f32 %v6339_v39, %v6332_v45  ;;  %v2224_v55 = vpop.xlane.xlu1 %2223  ;;  %v7400_v54 = vld [vmem:[#allocation14_spill] sm:$0xff] }
 0x49d   : > { %4648 = vpow2.f32 %v2306_v49  ;;  %v2254_v57 = vsub.f32 %v6211_v18, %v2221_v25  ;;  %v2255_v17 = vsub.f32 %v6213_v44, %v2221_v25  ;;  %v2256_v23 = vsub.f32 %v6201_v13, %v2224_v55  ;;  %v7401_v18 = vld [vmem:[#allocation22_spill] sm:$0xff]  ;;  %v7403_v25 = vld [vmem:[#allocation23_spill] sm:$0xff] }
 0x49e   : > { %v4639_v43 = vpop.eup %4638  ;;  %v2296_v15 = vmul.f32 1.442695, %v2246_v60  ;;  %v2257_v56 = vsub.f32 %v6203_v8, %v2224_v55  ;;  %v2298_v21 = vmul.f32 1.442695, %v2247_v11  ;;  %v7404_v55 = vld [vmem:[#allocation16_spill] sm:$0xff]  ;;  %v7411_v8 = vld [vmem:[#allocation26_spill] sm:$0xff] }
 0x49f   : > { %v4641_v50 = vpop.eup %4640  ;;  %v2312_v32 = vmul.f32 1.442695, %v2254_v57  ;;  %v2314_v51 = vmul.f32 1.442695, %v2255_v17  ;;  %v6352_v36 = vmul.f32 %v4639_v43, %v7400_v54  ;;  %v2316_v49 = vmul.f32 1.442695, %v2256_v23 }
 0x4a0   : > { %v4643_v14 = vpop.eup %4642  ;;  %4650 = vpow2.f32 %v2296_v15  ;;  %2381 = vadd.xlane.f32.xlu0 %v2380_v10  ;;  %v6355_v16 = vmul.f32 %v4641_v50, %v7401_v18  ;;  %v2318_v13 = vmul.f32 1.442695, %v2257_v56  ;;  %v7405_v10 = vld [vmem:[#allocation24_spill] sm:$0xff]  ;;  %v7408_v56 = vld [vmem:[#allocation25_spill] sm:$0xff] }
 0x4a1   : > { %v4645_v44 = vpop.eup %4644  ;;  %4652 = vpow2.f32 %v2312_v32  ;;  %v6360_v60 = vmul.f32 %v4643_v14, %v7403_v25  ;;  %v7413_v14 = vld [vmem:[#allocation27_spill] sm:$0xff]  ;;  %v7419_v25 = vld [vmem:[#allocation32_spill] sm:$0xff]  ;;  %v4269_v54 = vld [vmem:[%s7217_s1 + $0x18] sm:$0xff] }
 0x4a2   : > { %7402 = vst [vmem:[#allocation34_spill] sm:$0xff] %v6355_v16  ;;  %v4647_v11 = vpop.eup %4646  ;;  %4654 = vpow2.f32 %v2314_v51  ;;  %v6363_v57 = vmul.f32 %v4645_v44, %v7404_v55 }
 0x4a3   : > { %v4649_v17 = vpop.eup %4648  ;;  %4656 = vpow2.f32 %v2298_v21  ;;  %v6366_v23 = vmul.f32 %v4647_v11, %v7405_v10  ;;  %v6370_v43 = vadd.f32 %v6360_v60, %v6355_v16  ;;  %v7409_v21 = vld [vmem:[#allocation20_spill] sm:$0xff]  ;;  %v6488_v18 = vpop.xlane.xlu0 %2217 }
 0x4a4   : > { %4658 = vpow2.f32 %v2316_v49  ;;  %v2374_v15 = vadd.f32 %v6363_v57, %v6352_v36  ;;  %v6377_v50 = vmul.f32 %v4649_v17, %v7408_v56  ;;  %v7416_v56 = vld [vmem:[#allocation31_spill] sm:$0xff] }
 0x4a5   : > { %7406 = vst [vmem:[#allocation35_spill] sm:$0xff] %v6366_v23  ;;  %4660 = vpow2.f32 %v2318_v13 }
 0x4a6   : > { %7407 = vst [vmem:[#allocation36_spill] sm:$0xff] %v6370_v43  ;;  %v4651_v32 = vpop.eup %4650  ;;  %2375 = vadd.xlane.f32.xlu2 %v2374_v15  ;;  %v6384_v49 = vadd.f32 %v6377_v50, %v6366_v23 }
 0x4a7   : > { %v4653_v51 = vpop.eup %4652  ;;  %v6380_v44 = vmul.f32 %v4651_v32, %v7409_v21 }
 0x4a8   : > { %7410 = vst [vmem:[#allocation37_spill] sm:$0xff] %v6384_v49  ;;  %v4655_v11 = vpop.eup %4654  ;;  %v6387_v13 = vmul.f32 %v4653_v51, %v7411_v8  ;;  %v4297_v8 = vld [vmem:[%s7217_s1 + $0x78] sm:$0xff] }
 0x4a9   : > { %v4657_v58 = vpop.eup %4656  ;;  %v6392_v15 = vmul.f32 %v4655_v11, %v7413_v14 }
 0x4aa   : > { %7412 = vst [vmem:[#allocation5_spill] sm:$0xff] %v6387_v13  ;;  %v4659_v53 = vpop.eup %4658  ;;  %v6395_v32 = vmul.f32 %v4657_v58, %v7415_v38  ;;  %v4830_v58 = vld [vmem:[%s4892_s21] sm:$0xff] }
 0x4ab   : > { %7414 = vst [vmem:[#allocation2_spill] sm:$0xff] %v6392_v15  ;;  %v4661_v37 = vpop.eup %4660  ;;  %v6398_v10 = vmul.f32 %v4659_v53, %v7416_v56  ;;  %v6402_v51 = vadd.f32 %v6392_v15, %v6387_v13  ;;  %v4289_v53 = vld [vmem:[%s7217_s1 + $0x38] sm:$0xff] }
 0x4ac   : > { %v6407_v17 = vmul.f32 %v4661_v37, %v7419_v25  ;;  %v4831_v56 = vld [vmem:[%s4892_s21 + $0x18] sm:$0xff]  ;;  %v4288_v37 = vld [vmem:[%s7217_s1 + $0x30] sm:$0xff] }
 0x4ad   : > { %7417 = vst [vmem:[#allocation4_spill] sm:$0xff] %v6398_v10 }
 0x4ae   : > { %7418 = vst [vmem:[#allocation6_spill] sm:$0xff] %v6402_v51  ;;  %v6411_v11 = vadd.f32 %v6407_v17, %v6398_v10 }
 0x4af   : > { %7420 = vst [vmem:[#allocation8_spill] sm:$0xff] %v6407_v17  ;;  %3452 = vrot.lane.b32.xlu1 %v4289_v53, %s4847_s10  ;;  %v4272_v53 = vld [vmem:[%s7217_s1 + $0x30] sm:$0xff] }
 0x4b0   : > { %7421 = vst [vmem:[#allocation38_spill] sm:$0xff] %v6411_v11 }
 0x4b7   : > { %3450 = vrot.lane.b32.xlu1 %v4288_v37, %s4847_s10  ;;  %v4296_v37 = vld [vmem:[%s7217_s1 + $0x70] sm:$0xff] }
 0x4b8   : > { %3466 = vrot.lane.b32.xlu0 %v4296_v37, %s4847_s10  ;;  %v4279_v37 = vld [vmem:[%s7217_s1 + $0x68] sm:$0xff] }
 0x4be   : > { %2843 = vperm.xlu2 %4411, %v4830_v58   ;;  %v4281_v58 = vld [vmem:[%s7217_s1 + $0x78] sm:$0xff] }
 0x4bf   : > { %2594 = vrot.lane.b32.xlu1 %v4281_v58, %s4848_s18  ;;  %v4294_v58 = vld [vmem:[%s7217_s1 + $0x60] sm:$0xff] }
 0x4c6   : > { %2858 = vperm.xlu2 %4411, %v4831_v56   ;;  %v4832_v56 = vld [vmem:[%s4892_s21 + $0x28] sm:$0xff] }
 0x4c7   : > { %2576 = vrot.lane.b32.xlu1 %v4272_v53, %s4848_s18  ;;  %v4286_v53 = vld [vmem:[%s7217_s1 + $0x20] sm:$0xff] }
 0x4ce   : > { %3468 = vrot.lane.b32.xlu2 %v4297_v8, %s4847_s10  ;;  %v4273_v8 = vld [vmem:[%s7217_s1 + $0x38] sm:$0xff] }
 0x4cf   : > { %3462 = vrot.lane.b32.xlu1 %v4294_v58, %s4847_s10  ;;  %v4293_v58 = vld [vmem:[%s7217_s1 + $0x58] sm:$0xff] }
 0x4d6   : > { %2868 = vperm.xlu2 %4411, %v4832_v56   ;;  %v4295_v56 = vld [vmem:[%s7217_s1 + $0x68] sm:$0xff] }
 0x4de   : > { %2578 = vrot.lane.b32.xlu2 %v4273_v8, %s4848_s18  ;;  %v4285_v8 = vld [vmem:[%s7217_s1 + $0x18] sm:$0xff] }
 0x4e6   : > { %3464 = vrot.lane.b32.xlu2 %v4295_v56, %s4847_s10 }
 0x4ee   : > { %3446 = vrot.lane.b32.xlu2 %v4286_v53, %s4847_s10  ;;  %v4270_v53 = vld [vmem:[%s7217_s1 + $0x20] sm:$0xff] }
 0x4f6   : > { %2590 = vrot.lane.b32.xlu2 %v4279_v37, %s4848_s18  ;;  %v6479_v25 = vpop.xlane.xlu1 %2360 }
 0x4f7   : > { %7424 = vst [vmem:[#allocation41_spill] sm:$0xff] %v6479_v25 }
 0x4fe   : > { %3444 = vrot.lane.b32.xlu2 %v4285_v8, %s4847_s10  ;;  %v4278_v8 = vld [vmem:[%s7217_s1 + $0x60] sm:$0xff]  ;;  %v6494_v11 = vpop.xlane.xlu1 %2369 }
 0x4ff   : > { %7426 = vst [vmem:[#allocation43_spill] sm:$0xff] %v6494_v11 }
 0x506   : > { %3460 = vrot.lane.b32.xlu2 %v4293_v58, %s4847_s10  ;;  %v2829_v58 = vld [vmem:[%s4892_s21 + $0x30] sm:$0xff] }
 0x507   : > { %v6468_v56 = vpop.xlane.xlu2 %2357 }
 0x508   : > { %7422 = vst [vmem:[#allocation39_spill] sm:$0xff] %v6468_v56  ;;  %v4150_v56 = vld [vmem:[%s7219_s3 + $0x3] ss:$8 sm:$0x3] }
 0x509   : > { %v6512_v55 = vpop.xlane.xlu1 %2378 }
 0x50a   : > { %7427 = vst [vmem:[#allocation44_spill] sm:$0xff] %v6512_v55  ;;  %v2824_v55 = vld [vmem:[%s4892_s21 + $0x8] sm:$0xff] }
 0x50e   : > { %2572 = vrot.lane.b32.xlu2 %v4270_v53, %s4848_s18  ;;  %v6490_v53 = vperm.slane %v4150_v56, 0 }
 0x50f   : > { %v6474_v37 = vpop.xlane.xlu2 %2366 }
 0x510   : > { %7423 = vst [vmem:[#allocation40_spill] sm:$0xff] %v6474_v37  ;;  %v6492_v37 = vperm.slane %v4150_v56, 1 }
 0x516   : > { %2588 = vrot.lane.b32.xlu2 %v4278_v8, %s4848_s18 }
 0x519   : > { %v6482_v14 = vpop.xlane.xlu2 %2375 }
 0x51a   : > { %7425 = vst [vmem:[#allocation42_spill] sm:$0xff] %v6482_v14  ;;  %v4284_v14 = vld [vmem:[%s7217_s1 + $0x10] sm:$0xff] }
 0x51e   : > { %2873 = vperm.xlu2 %4411, %v2829_v58   ;;  %v6501_v58 = vpop.xlane.xlu0 %2226 }
 0x521   : > { %v2844_v49 = vpop.permute.xlu2 %2843 }
 0x522   : > { %v2926_v27 = vadd.f32 %v6490_v53, %v2844_v49  ;;  %v2927_v8 = vadd.f32 %v6492_v37, %v2844_v49 }
 0x524   : > { %vm2958_vm1 = vcmp.gt.f32.partialorder %v2926_v27, 0.0  ;;  %vm2959_vm4 = vcmp.gt.f32.partialorder %v2927_v8, 0.0  ;;  %v2990_v33 = vmul.f32 0.2, %v2926_v27  ;;  %v2991_v38 = vmul.f32 0.2, %v2927_v8 }
 0x526   : > { %3442 = vrot.lane.b32.xlu2 %v4284_v14, %s4847_s10  ;;  %v6504_v56 = vsel %vm2958_vm1, %v2926_v27, %v2990_v33  ;;  %v6506_v11 = vsel %vm2959_vm4, %v2927_v8, %v2991_v38  ;;  %v6517_v51 = vpop.xlane.xlu0 %2363  ;;  %v4277_v38 = vld [vmem:[%s7217_s1 + $0x58] sm:$0xff]  ;;  %v3453_v27 = vpop.permute.xlu1 %3452  ;;  %v4291_v8 = vld [vmem:[%s7217_s1 + $0x48] sm:$0xff] }
 0x527   : > { %v3054_v21 = vmax.f32 %v6504_v56, %v6506_v11  ;;  %7428 = vst [vmem:[#allocation45_spill] sm:$0xff] %v6517_v51  ;;  %3486 = vmatpush.bf16.msrb.mxu2 %v3453_v27  ;;  %v2827_v27 = vld [vmem:[%s4892_s21 + $0x20] sm:$0xff] }
 0x529   : > { %3055 = vmax.xlane.f32.xlu1 %v3054_v21  ;;  %v6510_v49 = vpop.permute.xlu2 %2858 }
 0x52e   : > { %2570 = vrot.lane.b32.xlu2 %v4269_v54, %s4848_s18  ;;  %v6524_v14 = vpop.xlane.xlu0 %2372  ;;  %v3451_v54 = vpop.permute.xlu1 %3450 }
 0x52f   : > { %7429 = vst [vmem:[#allocation46_spill] sm:$0xff] %v6524_v14  ;;  %3487 = vmatpush.bf16.msrb.mxu2 %v3451_v54 }
 0x531   : > { %v3469_v33 = vpop.permute.xlu2 %3468 }
 0x532   : > { %3535 = vmatpush.bf16.msrb.mxu3 %v3469_v33  ;;  %v4282_v33 = vld [vmem:[%s7217_s1] sm:$0xff] }
 0x536   : > { %2586 = vrot.lane.b32.xlu2 %v4277_v38, %s4848_s18  ;;  %v6533_v51 = vpop.xlane.xlu0 %2381  ;;  %v2595_v38 = vpop.permute.xlu1 %2594 }
 0x537   : > { %7430 = vst [vmem:[#allocation47_spill] sm:$0xff] %v6533_v51  ;;  %2661 = vmatpush.bf16.msrb.mxu1 %v2595_v38 }
 0x539   : > { %v6526_v21 = vpop.permute.xlu2 %2868 }
 0x53e   : > { %3456 = vrot.lane.b32.xlu2 %v4291_v8, %s4847_s10  ;;  %v4275_v8 = vld [vmem:[%s7217_s1 + $0x48] sm:$0xff]  ;;  %v3467_v54 = vpop.permute.xlu0 %3466  ;;  %v2577_v51 = vpop.permute.xlu1 %2576 }
 0x53f   : > { %3536 = vmatpush.bf16.msrb.mxu3 %v3467_v54 }
 0x541   : > { %v2579_v43 = vpop.permute.xlu2 %2578 }
 0x542   : > { %2848 = vperm.xlu1 %4412, %v2824_v55   ;;  %2612 = vmatpush.bf16.msrb.mxu0 %v2579_v43  ;;  %v4266_v43 = vld [vmem:[%s7217_s1] sm:$0xff] }
 0x546   : > { %3438 = vrot.lane.b32.xlu2 %v4282_v33, %s4847_s10  ;;  %2613 = vmatpush.bf16.msrb.mxu0 %v2577_v51  ;;  %v3463_v33 = vpop.permute.xlu1 %3462  ;;  %v4274_v51 = vld [vmem:[%s7217_s1 + $0x40] sm:$0xff] }
 0x549   : > { %v3465_v14 = vpop.permute.xlu2 %3464 }
 0x54a   : > { %2863 = vperm.xlu1 %4412, %v2827_v27   ;;  %3537 = vmatpush.bf16.msrb.mxu3 %v3465_v14  ;;  %v2831_v27 = vld [vmem:[%s4892_s21 + $0x40] sm:$0xff] }
 0x54e   : > { %2582 = vrot.lane.b32.xlu2 %v4275_v8, %s4848_s18  ;;  %3538 = vmatpush.bf16.msrb.mxu3 %v3463_v33  ;;  %v4287_v8 = vld [vmem:[%s7217_s1 + $0x28] sm:$0xff] }
 0x54f   : > { %3448 = vrot.lane.b32.xlu0 %v4287_v8, %s4847_s10  ;;  %v2832_v33 = vld [vmem:[%s4892_s21 + $0x48] sm:$0xff] }
 0x551   : > { %v6544_v55 = vpop.permute.xlu2 %3446 }
 0x556   : > { %2564 = vrot.lane.b32.xlu2 %v4266_v43, %s4848_s18  ;;  %v4280_v43 = vld [vmem:[%s7217_s1 + $0x70] sm:$0xff] }
 0x557   : > { %2592 = vrot.lane.b32.xlu0 %v4280_v43, %s4848_s18 }
 0x559   : > { %v6550_v38 = vpop.permute.xlu2 %2590 }
 0x55e   : > { %2580 = vrot.lane.b32.xlu2 %v4274_v51, %s4848_s18  ;;  %v4271_v51 = vld [vmem:[%s7217_s1 + $0x28] sm:$0xff] }
 0x55f   : > { %2574 = vrot.lane.b32.xlu0 %v4271_v51, %s4848_s18 }
 0x561   : > { %v6556_v14 = vpop.permute.xlu2 %3444 }
 0x566   : > { %2883 = vperm.xlu2 %4411, %v2831_v27  }
 0x569   : > { %v3461_v54 = vpop.permute.xlu2 %3460 }
 0x56a   : > { %3539 = vmatpush.bf16.msrb.mxu3 %v3461_v54  ;;  %v4268_v54 = vld [vmem:[%s7217_s1 + $0x10] sm:$0xff] }
 0x56b   : > { %2568 = vrot.lane.b32.xlu1 %v4268_v54, %s4848_s18 }
 0x56e   : > { %2888 = vperm.xlu2 %4411, %v2832_v33  }
 0x571   : > { %v2573_v25 = vpop.permute.xlu2 %2572 }
 0x579   : > { %v2589_v27 = vpop.permute.xlu2 %2588 }
 0x581   : > { %v6572_v48 = vpop.permute.xlu2 %2873 }
 0x589   : > { %v3443_v8 = vpop.permute.xlu2 %3442 }
 0x591   : > { %v2571_v40 = vpop.permute.xlu2 %2570 }
 0x599   : > { %v2587_v51 = vpop.permute.xlu2 %2586 }
 0x59c   : > { %v6574_v22 = vpop.xlane.xlu1 %3055 }
 0x5b4   : > { %v2849_v24 = vpop.permute.xlu1 %2848 }
 0x5b5   : > { %v2928_v43 = vadd.f32 %v6490_v53, %v2849_v24  ;;  %v2929_v33 = vadd.f32 %v6492_v37, %v2849_v24  ;;  %v4290_v24 = vld [vmem:[%s7217_s1 + $0x40] sm:$0xff] }
 0x5b6   : > { %3454 = vrot.lane.b32.xlu1 %v4290_v24, %s4847_s10  ;;  %v4292_v24 = vld [vmem:[%s7217_s1 + $0x50] sm:$0xff] }
 0x5b7   : > { %vm2960_vm5 = vcmp.gt.f32.partialorder %v2928_v43, 0.0  ;;  %vm2961_vm6 = vcmp.gt.f32.partialorder %v2929_v33, 0.0  ;;  %v2992_v0 = vmul.f32 0.2, %v2928_v43  ;;  %v2993_v10 = vmul.f32 0.2, %v2929_v33 }
 0x5b9   : > { %v6582_v34 = vsel %vm2960_vm5, %v2928_v43, %v2992_v0  ;;  %v6584_v17 = vsel %vm2961_vm6, %v2929_v33, %v2993_v10  ;;  %v6594_v43 = vpop.permute.xlu2 %3456 }
 0x5ba   : > { %v3057_v59 = vmax.f32 %v6582_v34, %v6584_v17 }
 0x5bc   : > { %3058 = vmax.xlane.f32.xlu0 %v3057_v59  ;;  %v2864_v28 = vpop.permute.xlu1 %2863 }
 0x5bd   : > { %v2934_v54 = vadd.f32 %v6490_v53, %v2864_v28  ;;  %v2935_v13 = vadd.f32 %v6492_v37, %v2864_v28  ;;  %v2825_v28 = vld [vmem:[%s4892_s21 + $0x10] sm:$0xff] }
 0x5bf   : > { %vm2966_vm7 = vcmp.gt.f32.partialorder %v2934_v54, 0.0  ;;  %vm2967_vm8 = vcmp.gt.f32.partialorder %v2935_v13, 0.0  ;;  %v2998_v0 = vmul.f32 0.2, %v2934_v54  ;;  %v2999_v10 = vmul.f32 0.2, %v2935_v13 }
 0x5c1   : > { %v6596_v59 = vsel %vm2966_vm7, %v2934_v54, %v2998_v0  ;;  %v6598_v33 = vsel %vm2967_vm8, %v2935_v13, %v2999_v10  ;;  %v6602_v31 = vpop.permute.xlu2 %3438  ;;  %v3449_v54 = vpop.permute.xlu0 %3448  ;;  %v2835_v13 = vld [vmem:[%s4892_s21 + $0x60] sm:$0xff] }
 0x5c2   : > { %7431 = vst [vmem:[#allocation48_spill] sm:$0xff] %v6596_v59  ;;  %v3066_v15 = vmax.f32 %v6596_v59, %v6598_v33  ;;  %3488 = vmatpush.bf16.msrb.mxu2 %v3449_v54 }
 0x5c3   : > { %7432 = vst [vmem:[#allocation49_spill] sm:$0xff] %v6598_v33 }
 0x5c4   : > { %3067 = vmax.xlane.f32.xlu2 %v3066_v15  ;;  %v4283_v15 = vld [vmem:[%s7217_s1 + $0x8] sm:$0xff] }
 0x5c6   : > { %3489 = vmatpush.bf16.msrb.mxu2 %v6544_v55 }
 0x5c9   : > { %v6608_v23 = vpop.permute.xlu2 %2582  ;;  %v2593_v10 = vpop.permute.xlu0 %2592 }
 0x5ca   : > { %2662 = vmatpush.bf16.msrb.mxu1 %v2593_v10  ;;  %3490 = vmatpush.bf16.msrb.mxu2 %v6556_v14 }
 0x5ce   : > { %2663 = vmatpush.bf16.msrb.mxu1 %v6550_v38  ;;  %3491 = vmatpush.bf16.msrb.mxu2 %v3443_v8 }
 0x5d0   : > { %2853 = vperm.xlu0 %4413, %v2825_v28   ;;  %v2836_v28 = vld [vmem:[%s4892_s21 + $0x68] sm:$0xff] }
 0x5d1   : > { %v6616_v0 = vpop.permute.xlu2 %2564  ;;  %v2575_v55 = vpop.permute.xlu0 %2574 }
 0x5d2   : > { %2614 = vmatpush.bf16.msrb.mxu0 %v2575_v55  ;;  %2664 = vmatpush.bf16.msrb.mxu1 %v2589_v27 }
 0x5d6   : > { %2615 = vmatpush.bf16.msrb.mxu0 %v2573_v25  ;;  %2665 = vmatpush.bf16.msrb.mxu1 %v2587_v51  ;;  %v2933_v51 = vadd.f32 %v6492_v37, %v6510_v49 }
 0x5d8   : > { %3458 = vrot.lane.b32.xlu0 %v4292_v24, %s4847_s10  ;;  %v4276_v24 = vld [vmem:[%s7217_s1 + $0x50] sm:$0xff]  ;;  %vm2965_vm12 = vcmp.gt.f32.partialorder %v2933_v51, 0.0 }
 0x5d9   : > { %v6626_v54 = vpop.permute.xlu2 %2580 }
 0x5da   : > { %2616 = vmatpush.bf16.msrb.mxu0 %v2571_v40  ;;  %v2932_v40 = vadd.f32 %v6490_v53, %v6510_v49 }
 0x5dc   : > { %2903 = vperm.xlu2 %4411, %v2835_v13   ;;  %v4267_v13 = vld [vmem:[%s7217_s1 + $0x8] sm:$0xff]  ;;  %v2996_v55 = vmul.f32 0.2, %v2932_v40  ;;  %vm2964_vm11 = vcmp.gt.f32.partialorder %v2932_v40, 0.0 }
 0x5e0   : > { %3440 = vrot.lane.b32.xlu0 %v4283_v15, %s4847_s10 }
 0x5e1   : > { %v2884_v14 = vpop.permute.xlu2 %2883 }
 0x5e4   : > { %2908 = vperm.xlu2 %4411, %v2836_v28  }
 0x5e8   : > { %2584 = vrot.lane.b32.xlu0 %v4276_v24, %s4848_s18 }
 0x5e9   : > { %v2889_v15 = vpop.permute.xlu2 %2888 }
 0x5ea   : > { %v2944_v38 = vadd.f32 %v6490_v53, %v2889_v15  ;;  %v2945_v8 = vadd.f32 %v6492_v37, %v2889_v15  ;;  %v2938_v15 = vadd.f32 %v6490_v53, %v6572_v48 }
 0x5ec   : > { %v3008_v10 = vmul.f32 0.2, %v2944_v38  ;;  %v3009_v28 = vmul.f32 0.2, %v2945_v8  ;;  %vm2976_vm9 = vcmp.gt.f32.partialorder %v2944_v38, 0.0  ;;  %vm2977_vm10 = vcmp.gt.f32.partialorder %v2945_v8, 0.0 }
 0x5ed   : > { %vm2970_vm13 = vcmp.gt.f32.partialorder %v2938_v15, 0.0 }
 0x5ee   : > { %v6634_v27 = vsel %vm2976_vm9, %v2944_v38, %v3008_v10  ;;  %v6636_v24 = vsel %vm2977_vm10, %v2945_v8, %v3009_v28  ;;  %v2939_v38 = vadd.f32 %v6492_v37, %v6572_v48  ;;  %v6648_v8 = vsel %vm2964_vm11, %v2932_v40, %v2996_v55 }
 0x5ef   : > { %7433 = vst [vmem:[#allocation50_spill] sm:$0xff] %v6634_v27  ;;  %v3081_v25 = vmax.f32 %v6634_v27, %v6636_v24  ;;  %v2943_v27 = vadd.f32 %v6492_v37, %v2884_v14 }
 0x5f0   : > { %2566 = vrot.lane.b32.xlu0 %v4267_v13, %s4848_s18  ;;  %7434 = vst [vmem:[#allocation51_spill] sm:$0xff] %v6636_v24  ;;  %v2997_v13 = vmul.f32 0.2, %v2933_v51  ;;  %v3002_v24 = vmul.f32 0.2, %v2938_v15  ;;  %vm2971_vm14 = vcmp.gt.f32.partialorder %v2939_v38, 0.0 }
 0x5f1   : > { %v3003_v49 = vmul.f32 0.2, %v2939_v38  ;;  %vm2975_vm0 = vcmp.gt.f32.partialorder %v2943_v27, 0.0  ;;  %s4850_s18 = smov 48  }
 0x5f2   : > { %v6650_v10 = vsel %vm2965_vm12, %v2933_v51, %v2997_v13  ;;  %v6656_v33 = vsel %vm2970_vm13, %v2938_v15, %v3002_v24  ;;  %v3007_v51 = vmul.f32 0.2, %v2943_v27  ;;  %v2569_v24 = vpop.permute.xlu1 %2568 }
 0x5f3   : > { %v3063_v28 = vmax.f32 %v6648_v8, %v6650_v10  ;;  %7435 = vst [vmem:[#allocation52_spill] sm:$0xff] %v6656_v33  ;;  %v6658_v59 = vsel %vm2971_vm14, %v2939_v38, %v3003_v49  ;;  %2617 = vmatpush.bf16.msrb.mxu0 %v2569_v24 }
 0x5f4   : > { %7436 = vst [vmem:[#allocation53_spill] sm:$0xff] %v6658_v59  ;;  %v3072_v48 = vmax.f32 %v6656_v33, %v6658_v59  ;;  %v6664_v13 = vsel %vm2975_vm0, %v2943_v27, %v3007_v51 }
 0x5f5   : > { %7438 = vst [vmem:[#allocation55_spill] sm:$0xff] %v6664_v13 }
 0x60d   : > { %3082 = vmax.xlane.f32.xlu2 %v3081_v25  ;;  %v2942_v25 = vadd.f32 %v6490_v53, %v2884_v14 }
 0x60f   : > { %v3006_v40 = vmul.f32 0.2, %v2942_v25  ;;  %vm2974_vm15 = vcmp.gt.f32.partialorder %v2942_v25, 0.0 }
 0x611   : > { %v6662_v55 = vsel %vm2974_vm15, %v2942_v25, %v3006_v40  ;;  %v2833_v40 = vld [vmem:[%s4892_s21 + $0x50] sm:$0xff] }
 0x612   : > { %7437 = vst [vmem:[#allocation54_spill] sm:$0xff] %v6662_v55  ;;  %v3078_v14 = vmax.f32 %v6662_v55, %v6664_v13 }
 0x61a   : > { %3064 = vmax.xlane.f32.xlu0 %v3063_v28 }
 0x622   : > { %3073 = vmax.xlane.f32.xlu0 %v3072_v48 }
 0x62a   : > { %3079 = vmax.xlane.f32.xlu0 %v3078_v14 }
 0x62f   : > { %v3059_v15 = vpop.xlane.xlu0 %3058 }
 0x630   : > { %v3104_v38 = vsub.f32 %v6582_v34, %v3059_v15  ;;  %v3105_v28 = vsub.f32 %v6584_v17, %v3059_v15 }
 0x632   : > { %v3138_v49 = vmul.f32 1.442695, %v3104_v38  ;;  %v3140_v59 = vmul.f32 1.442695, %v3105_v28  ;;  %v2936_v28 = vadd.f32 %v6490_v53, %v6526_v21 }
 0x634   : > { %4662 = vpow2.f32 %v3138_v49  ;;  %v2937_v49 = vadd.f32 %v6492_v37, %v6526_v21  ;;  %vm2968_vm5 = vcmp.gt.f32.partialorder %v2936_v28, 0.0 }
 0x635   : > { %4664 = vpow2.f32 %v3140_v59  ;;  %v3103_v59 = vsub.f32 %v6506_v11, %v6574_v22  ;;  %v2837_v11 = vld [vmem:[%s4892_s21 + $0x70] sm:$0xff] }
 0x636   : > { %vm2969_vm6 = vcmp.gt.f32.partialorder %v2937_v49, 0.0 }
 0x637   : > { %v6670_v25 = vpop.xlane.xlu2 %3067 }
 0x638   : > { %7439 = vst [vmem:[#allocation56_spill] sm:$0xff] %v6670_v25 }
 0x63a   : > { %v4663_v48 = vpop.eup %4662 }
 0x63b   : > { %v4665_v27 = vpop.eup %4664  ;;  %v6674_v51 = vmul.f32 %v4663_v48, %v7344_v3 }
 0x63c   : > { %v6677_v14 = vmul.f32 %v4665_v27, %v7385_v62 }
 0x63e   : > { %2893 = vperm.xlu0 %4413, %v2833_v40   ;;  %v6681_v34 = vadd.f32 %v6677_v14, %v6674_v51  ;;  %v3102_v40 = vsub.f32 %v6504_v56, %v6574_v22 }
 0x63f   : > { %v2904_v17 = vpop.permute.xlu2 %2903 }
 0x640   : > { %7440 = vst [vmem:[#allocation57_spill] sm:$0xff] %v6681_v34  ;;  %v2950_v24 = vadd.f32 %v6490_v53, %v2904_v17  ;;  %v2951_v15 = vadd.f32 %v6492_v37, %v2904_v17  ;;  %v3136_v17 = vmul.f32 1.442695, %v3103_v59 }
 0x642   : > { %vm2982_vm2 = vcmp.gt.f32.partialorder %v2950_v24, 0.0  ;;  %vm2983_vm3 = vcmp.gt.f32.partialorder %v2951_v15, 0.0  ;;  %v3014_v3 = vmul.f32 0.2, %v2950_v24  ;;  %v3015_v38 = vmul.f32 0.2, %v2951_v15  ;;  %v2854_v62 = vpop.permute.xlu0 %2853 }
 0x643   : > { %v2930_v48 = vadd.f32 %v6490_v53, %v2854_v62  ;;  %v2931_v27 = vadd.f32 %v6492_v37, %v2854_v62  ;;  %4666 = vpow2.f32 %v3136_v17 }
 0x644   : > { %v6696_v34 = vsel %vm2982_vm2, %v2950_v24, %v3014_v3  ;;  %v6698_v33 = vsel %vm2983_vm3, %v2951_v15, %v3015_v38  ;;  %v3000_v24 = vmul.f32 0.2, %v2936_v28  ;;  %v3001_v15 = vmul.f32 0.2, %v2937_v49 }
 0x645   : > { %vm2962_vm1 = vcmp.gt.f32.partialorder %v2930_v48, 0.0  ;;  %vm2963_vm4 = vcmp.gt.f32.partialorder %v2931_v27, 0.0  ;;  %v2994_v13 = vmul.f32 0.2, %v2930_v48  ;;  %v2995_v55 = vmul.f32 0.2, %v2931_v27 }
 0x646   : > { %2913 = vperm.xlu0 %4413, %v2837_v11   ;;  %v3090_v21 = vmax.f32 %v6696_v34, %v6698_v33  ;;  %v3134_v3 = vmul.f32 1.442695, %v3102_v40  ;;  %v6717_v11 = vsel %vm2968_vm5, %v2936_v28, %v3000_v24  ;;  %v6720_v40 = vsel %vm2969_vm6, %v2937_v49, %v3001_v15 }
 0x647   : > { %v2909_v25 = vpop.permute.xlu2 %2908  ;;  %v6702_v62 = vsel %vm2962_vm1, %v2930_v48, %v2994_v13  ;;  %v6704_v16 = vsel %vm2963_vm4, %v2931_v27, %v2995_v55  ;;  %vm2806_vm1 = vcmask 388352   ;;  %vm3680_vm4 = vcmask 519552  }
 0x648   : > { %3091 = vmax.xlane.f32.xlu2 %v3090_v21  ;;  %v2952_v22 = vadd.f32 %v6490_v53, %v2909_v25  ;;  %v2953_v56 = vadd.f32 %v6492_v37, %v2909_v25  ;;  %v3060_v59 = vmax.f32 %v6702_v62, %v6704_v16  ;;  %4668 = vpow2.f32 %v3134_v3 }
 0x649   : > { %v4667_v17 = vpop.eup %4666  ;;  %v3069_v21 = vmax.f32 %v6717_v11, %v6720_v40 }
 0x64a   : > { %vm2984_vm7 = vcmp.gt.f32.partialorder %v2952_v22, 0.0  ;;  %vm2985_vm8 = vcmp.gt.f32.partialorder %v2953_v56, 0.0  ;;  %v3016_v38 = vmul.f32 0.2, %v2952_v22  ;;  %v3017_v13 = vmul.f32 0.2, %v2953_v56  ;;  %3061 = vmax.xlane.f32.xlu1 %v3060_v59  ;;  %v3459_v55 = vpop.permute.xlu0 %3458 }
 0x64b   : > { %3540 = vmatpush.bf16.msrb.mxu3 %v3459_v55  ;;  %v6726_v59 = vmul.f32 %v4667_v17, %v7391_v47 }
 0x64c   : > { %v6710_v48 = vsel %vm2984_vm7, %v2952_v22, %v3016_v38  ;;  %v6712_v27 = vsel %vm2985_vm8, %v2953_v56, %v3017_v13  ;;  %v3455_v22 = vpop.permute.xlu1 %3454 }
 0x64d   : > { %v3093_v25 = vmax.f32 %v6710_v48, %v6712_v27  ;;  %v3343_v28 = vpack.c.bf16 %v6677_v14, %v6726_v59  ;;  %v7441_v14 = vpack.c.bf16 %v6257_v46, %v6291_v19  ;;  %v7445_v46 = vpack.c.bf16 %v6313_v6, %v6271_v61 }
 0x64e   : > { %v4669_v3 = vpop.eup %4668  ;;  %v7446_v19 = vpack.c.bf16 %v6306_v7, %v6268_v63  ;;  %v7448_v63 = vpack.c.bf16 %v6294_v1, %v6352_v36  ;;  %v2253_v1 = vsub.f32 %v6227_v12, %v6488_v18  ;;  %v2252_v36 = vsub.f32 %v6225_v5, %v6488_v18 }
 0x64f   : > { %3541 = vmatpush.bf16.msrb.mxu3 %v6594_v43  ;;  %v6731_v43 = vmul.f32 %v4669_v3, %v7390_v29  ;;  %v2830_v29 = vld [vmem:[%s4892_s21 + $0x38] sm:$0xff]  ;;  %v2258_v18 = vsub.f32 %v6233_v30, %v6501_v58 }
 0x650   : > { %3094 = vmax.xlane.f32.xlu2 %v3093_v25  ;;  %v2310_v13 = vmul.f32 1.442695, %v2253_v1  ;;  %v2308_v25 = vmul.f32 1.442695, %v2252_v36  ;;  %v7458_v36 = vld [vmem:[#allocation48_spill] sm:$0xff] }
 0x651   : > { %v3342_v49 = vpack.c.bf16 %v6674_v51, %v6731_v43  ;;  %v2834_v51 = vld [vmem:[%s4892_s21 + $0x58] sm:$0xff] }
 0x652   : > { %3070 = vmax.xlane.f32.xlu1 %v3069_v21  ;;  %v3441_v56 = vpop.permute.xlu0 %3440 }
 0x653   : > { %3492 = vmatpush.bf16.msrb.mxu2 %v3441_v56  ;;  %3542 = vmatpush.bf16.msrb.mxu3 %v3455_v22  ;;  %v7451_v22 = vld [vmem:[#allocation34_spill] sm:$0xff]  ;;  %v7452_v56 = vld [vmem:[#allocation35_spill] sm:$0xff] }
 0x654   : > { %v2478_v3 = vpack.c.bf16 %v7452_v56, %v7451_v22  ;;  %v7463_v22 = vld [vmem:[#allocation30_spill] sm:$0xff] }
 0x656   : > { %3543 = vmatmul.bf16.vlgmr.msrb.gmra.mxu3 %v3343_v28 }
 0x657   : > { %3493 = vmatpush.bf16.msrb.mxu2 %v6602_v31  ;;  %v7442_v31 = vpack.c.bf16 %v6254_v20, %v6288_v4 }
 0x65a   : > { %3494 = vmatmul.bf16.vlgmr.msrb.gmra.mxu2 %v3342_v49  ;;  %v2585_v47 = vpop.permute.xlu0 %2584 }
 0x65b   : > { %2666 = vmatpush.bf16.msrb.mxu1 %v2585_v47 }
 0x65f   : > { %2667 = vmatpush.bf16.msrb.mxu1 %v6608_v23  ;;  %v7443_v23 = vpack.c.bf16 %v6327_v35, %v6279_v42 }
 0x662   : > { %v2567_v24 = vpop.permute.xlu0 %2566 }
 0x663   : > { %2618 = vmatpush.bf16.msrb.mxu0 %v2567_v24  ;;  %2668 = vmatpush.bf16.msrb.mxu1 %v6626_v54  ;;  %v7444_v54 = vpack.c.bf16 %v6324_v2, %v6274_v41  ;;  %v7447_v41 = vpack.c.bf16 %v6301_v9, %v6363_v57  ;;  %v7449_v9 = vpack.c.bf16 %v6395_v32, %v6339_v39 }
 0x666   : > { %2669 = vmatmul.bf16.vlgmr.msrb.gmra.mxu1 %v7441_v14  ;;  %v2320_v14 = vmul.f32 1.442695, %v2258_v18 }
 0x667   : > { %2619 = vmatpush.bf16.msrb.mxu0 %v6616_v0 }
 0x66a   : > { %2620 = vmatmul.bf16.vlgmr.msrb.gmra.mxu0 %v7442_v31 }
 0x66b   : > { %2878 = vperm.xlu1 %4412, %v2830_v29  }
 0x673   : > { %2898 = vperm.xlu1 %4412, %v2834_v51  }
 0x676   : > { %2674 = vmatmul.bf16.gmra.mxu1 %v7443_v23 }
 0x67a   : > { %2625 = vmatmul.bf16.gmra.mxu0 %v7444_v54 }
 0x686   : > { %2679 = vmatmul.bf16.gmra.mxu1 %v7445_v46  ;;  %v2383_v46 = vadd.f32 %v6395_v32, %v6380_v44 }
 0x68a   : > { %2630 = vmatmul.bf16.gmra.mxu0 %v7446_v19 }
 0x68d   : > { %v3065_v20 = vpop.xlane.xlu0 %3064 }
 0x68e   : > { %v3108_v4 = vsub.f32 %v6648_v8, %v3065_v20  ;;  %v3109_v0 = vsub.f32 %v6650_v10, %v3065_v20 }
 0x690   : > { %v3146_v15 = vmul.f32 1.442695, %v3108_v4  ;;  %v3148_v42 = vmul.f32 1.442695, %v3109_v0 }
 0x692   : > { %4670 = vpow2.f32 %v3146_v15  ;;  %v7454_v15 = vld [vmem:[#allocation29_spill] sm:$0xff] }
 0x693   : > { %4672 = vpow2.f32 %v3148_v42 }
 0x694   : > { %4674 = vpow2.f32 %v2310_v13 }
 0x695   : > { %v6777_v8 = vpop.xlane.xlu0 %3073  ;;  %4676 = vpow2.f32 %v2308_v25  ;;  %v7461_v25 = vld [vmem:[#allocation7_spill] sm:$0xff] }
 0x696   : > { %2684 = vmatmul.bf16.gmra.mxu1 %v7447_v41  ;;  %4678 = vpow2.f32 %v2320_v14  ;;  %v7455_v41 = vld [vmem:[#allocation28_spill] sm:$0xff]  ;;  %v7465_v14 = vld [vmem:[#allocation54_spill] sm:$0xff] }
 0x698   : > { %v4671_v2 = vpop.eup %4670 }
 0x699   : > { %v4673_v61 = vpop.eup %4672  ;;  %v6765_v6 = vmul.f32 %v4671_v2, %v7396_v26  ;;  %v7450_v26 = vpack.c.bf16 %v6380_v44, %v6332_v45  ;;  %v2479_v45 = vpack.c.bf16 %v6377_v50, %v6360_v60  ;;  %v7453_v60 = vld [vmem:[#allocation3_spill] sm:$0xff] }
 0x69a   : > { %2635 = vmatmul.bf16.gmra.mxu0 %v7448_v63  ;;  %v6771_v7 = vmul.f32 %v4673_v61, %v7397_v52  ;;  %v2259_v50 = vsub.f32 %v7453_v60, %v6501_v58  ;;  %v4675_v30 = vpop.eup %4674 }
 0x69b   : > { %v4677_v19 = vpop.eup %4676  ;;  %v2349_v42 = vmul.f32 %v4675_v30, %v7454_v15 }
 0x69c   : > { %v6775_v35 = vadd.f32 %v6771_v7, %v6765_v6  ;;  %v2322_v29 = vmul.f32 1.442695, %v2259_v50  ;;  %v4679_v44 = vpop.eup %4678 }
 0x69d   : > { %v6782_v57 = vpop.xlane.xlu0 %3079  ;;  %v2354_v56 = vmul.f32 %v4679_v44, %v7463_v22 }
 0x69e   : > { %4680 = vpow2.f32 %v2322_v29  ;;  %v3118_v30 = vsub.f32 %v7465_v14, %v6782_v57  ;;  %v7466_v29 = vld [vmem:[#allocation55_spill] sm:$0xff] }
 0x6a6   : > { %2689 = vmatmul.bf16.gmra.mxu1 %v7449_v9  ;;  %v4681_v9 = vpop.eup %4680 }
 0x6aa   : > { %2640 = vmatmul.bf16.gmra.mxu0 %v7450_v26 }
 0x6b0   : > { %v2894_v52 = vpop.permute.xlu0 %2893 }
 0x6b1   : > { %v2946_v10 = vadd.f32 %v6490_v53, %v2894_v52  ;;  %v2947_v38 = vadd.f32 %v6492_v37, %v2894_v52  ;;  %v7457_v52 = vld [vmem:[#allocation56_spill] sm:$0xff] }
 0x6b3   : > { %vm2978_vm9 = vcmp.gt.f32.partialorder %v2946_v10, 0.0  ;;  %vm2979_vm10 = vcmp.gt.f32.partialorder %v2947_v38, 0.0  ;;  %v3010_v39 = vmul.f32 0.2, %v2946_v10  ;;  %v3011_v55 = vmul.f32 0.2, %v2947_v38 }
 0x6b5   : > { %v6795_v17 = vsel %vm2978_vm9, %v2946_v10, %v3010_v39  ;;  %v6797_v12 = vsel %vm2979_vm10, %v2947_v38, %v3011_v55  ;;  %v3110_v10 = vsub.f32 %v7458_v36, %v7457_v52  ;;  %v7459_v38 = vld [vmem:[#allocation5_spill] sm:$0xff] }
 0x6b6   : > { %2694 = vmatmul.bf16.gmra.mxu1 %v2479_v45  ;;  %v3084_v5 = vmax.f32 %v6795_v17, %v6797_v12  ;;  %v7460_v55 = vld [vmem:[#allocation49_spill] sm:$0xff] }
 0x6b7   : > { %v3111_v45 = vsub.f32 %v7460_v55, %v7457_v52 }
 0x6b8   : > { %3085 = vmax.xlane.f32.xlu0 %v3084_v5  ;;  %v2914_v21 = vpop.permute.xlu0 %2913 }
 0x6b9   : > { %v2954_v28 = vadd.f32 %v6490_v53, %v2914_v21  ;;  %v2955_v49 = vadd.f32 %v6492_v37, %v2914_v21 }
 0x6ba   : > { %2645 = vmatmul.bf16.gmra.mxu0 %v2478_v3 }
 0x6bb   : > { %vm2986_vm11 = vcmp.gt.f32.partialorder %v2954_v28, 0.0  ;;  %vm2987_vm12 = vcmp.gt.f32.partialorder %v2955_v49, 0.0  ;;  %v3018_v47 = vmul.f32 0.2, %v2954_v28  ;;  %v3019_v24 = vmul.f32 0.2, %v2955_v49 }
 0x6bd   : > { %v3062_v31 = vpop.xlane.xlu1 %3061  ;;  %v6809_v51 = vsel %vm2986_vm11, %v2954_v28, %v3018_v47  ;;  %v6811_v23 = vsel %vm2987_vm12, %v2955_v49, %v3019_v24  ;;  %v3150_v28 = vmul.f32 1.442695, %v3110_v10  ;;  %v3152_v47 = vmul.f32 1.442695, %v3111_v45 }
 0x6be   : > { %v3106_v54 = vsub.f32 %v6702_v62, %v3062_v31  ;;  %v3107_v58 = vsub.f32 %v6704_v16, %v3062_v31  ;;  %v3096_v20 = vmax.f32 %v6809_v51, %v6811_v23  ;;  %v2348_v62 = vmul.f32 %v4677_v19, %v7455_v41  ;;  %v7456_v16 = vld [vmem:[#allocation2_spill] sm:$0xff] }
 0x6bf   : > { %v2481_v2 = vpack.c.bf16 %v7456_v16, %v2349_v42  ;;  %v3119_v31 = vsub.f32 %v7466_v29, %v6782_v57  ;;  %v7469_v16 = vld [vmem:[#allocation4_spill] sm:$0xff]  ;;  %v7471_v57 = vld [vmem:[#allocation11_spill] sm:$0xff] }
 0x6c0   : > { %v3142_v4 = vmul.f32 1.442695, %v3106_v54  ;;  %v3144_v0 = vmul.f32 1.442695, %v3107_v58  ;;  %2384 = vadd.xlane.f32.xlu0 %v2383_v46  ;;  %3097 = vmax.xlane.f32.xlu2 %v3096_v20  ;;  %v2392_v63 = vadd.f32 %v2349_v42, %v2348_v62  ;;  %v2480_v13 = vpack.c.bf16 %v7459_v38, %v2348_v62  ;;  %v7467_v58 = vld [vmem:[#allocation8_spill] sm:$0xff]  ;;  %v7468_v42 = vld [vmem:[#allocation10_spill] sm:$0xff] }
 0x6c1   : > { %v3168_v19 = vmul.f32 1.442695, %v3119_v31 }
 0x6c2   : > { %4682 = vpow2.f32 %v3142_v4 }
 0x6c3   : > { %4684 = vpow2.f32 %v3144_v0 }
 0x6c5   : > { %v3071_v61 = vpop.xlane.xlu1 %3070 }
 0x6c6   : > { %v3112_v32 = vsub.f32 %v6717_v11, %v3071_v61  ;;  %2699 = vmatmul.bf16.gmra.mxu1 %v2481_v2  ;;  %v3113_v26 = vsub.f32 %v6720_v40, %v3071_v61  ;;  %v7462_v11 = vld [vmem:[#allocation9_spill] sm:$0xff]  ;;  %v2482_v2 = vpack.c.bf16 %v2354_v56, %v7469_v16  ;;  %v7470_v61 = vld [vmem:[#allocation12_spill] sm:$0xff] }
 0x6c7   : > { %v7464_v40 = vld [vmem:[#allocation33_spill] sm:$0xff] }
 0x6c8   : > { %v4683_v1 = vpop.eup %4682  ;;  %2393 = vadd.xlane.f32.xlu0 %v2392_v63  ;;  %v3154_v18 = vmul.f32 1.442695, %v3112_v32  ;;  %v2355_v3 = vmul.f32 %v4681_v9, %v7464_v40  ;;  %v3156_v60 = vmul.f32 1.442695, %v3113_v26  ;;  %v7472_v63 = vld [vmem:[#allocation13_spill] sm:$0xff] }
 0x6c9   : > { %v4685_v39 = vpop.eup %4684  ;;  %v3202_v5 = vmul.f32 %v4683_v1, %v7461_v25 }
 0x6ca   : > { %2650 = vmatmul.bf16.gmra.mxu0 %v2480_v13  ;;  %v3203_v21 = vmul.f32 %v4685_v39, %v7462_v11  ;;  %4686 = vpow2.f32 %v3154_v18  ;;  %v2401_v24 = vadd.f32 %v2355_v3, %v2354_v56  ;;  %v2483_v46 = vpack.c.bf16 %v2355_v3, %v7467_v58  ;;  %v7474_v3 = vld [vmem:[#allocation21_spill] sm:$0xff] }
 0x6cb   : > { %v3344_v50 = vpack.c.bf16 %v6765_v6, %v3202_v5  ;;  %4688 = vpow2.f32 %v3156_v60  ;;  %v3166_v6 = vmul.f32 1.442695, %v3118_v30  ;;  %v7475_v30 = vld [vmem:[#allocation41_spill] sm:$0xff] }
 0x6cc   : > { %v3345_v49 = vpack.c.bf16 %v6771_v7, %v3203_v21  ;;  %4690 = vpow2.f32 %v3150_v28  ;;  %v3236_v4 = vadd.f32 %v3203_v21, %v3202_v5  ;;  %v7473_v21 = vld [vmem:[#allocation19_spill] sm:$0xff]  ;;  %v2405_v29 = vmax.f32 %v7475_v30, 1e-30  ;;  %v7476_v58 = vld [vmem:[#allocation45_spill] sm:$0xff] }
 0x6cd   : > { %3499 = vmatmul.bf16.gmra.mxu2 %v3344_v50  ;;  %4692 = vpow2.f32 %v3152_v47 }
 0x6ce   : > { %3548 = vmatmul.bf16.gmra.mxu3 %v3345_v49  ;;  %4694 = vpow2.f32 %v3166_v6 }
 0x6cf   : > { %4696 = vpow2.f32 %v3168_v19 }
 0x6d0   : > { %2402 = vadd.xlane.f32.xlu0 %v2401_v24  ;;  %v4687_v54 = vpop.eup %4686  ;;  %4698 = vrcp.f32 %v2405_v29 }
 0x6d1   : > { %v4689_v7 = vpop.eup %4688  ;;  %v3208_v62 = vmul.f32 %v4687_v54, %v7468_v42 }
 0x6d2   : > { %v4691_v20 = vpop.eup %4690  ;;  %v3209_v44 = vmul.f32 %v4689_v7, %v7470_v61 }
 0x6d3   : > { %v4693_v0 = vpop.eup %4692  ;;  %v6844_v32 = vmul.f32 %v4691_v20, %v7471_v57 }
 0x6d4   : > { %v6847_v9 = vmul.f32 %v4693_v0, %v7472_v63  ;;  %v4695_v38 = vpop.eup %4694  ;;  %v3245_v55 = vadd.f32 %v3209_v44, %v3208_v62 }
 0x6d5   : > { %v3346_v1 = vpack.c.bf16 %v3208_v62, %v6844_v32  ;;  %v4697_v45 = vpop.eup %4696  ;;  %v6862_v56 = vmul.f32 %v4695_v38, %v7473_v21 }
 0x6d6   : > { %2704 = vmatmul.bf16.gmra.mxu1 %v2483_v46  ;;  %v3347_v52 = vpack.c.bf16 %v3209_v44, %v6847_v9  ;;  %v6865_v60 = vmul.f32 %v4697_v45, %v7474_v3  ;;  %v2406_v46 = vmax.f32 %v7476_v58, 1e-30  ;;  %v4699_v20 = vpop.eup %4698  ;;  %v2838_v44 = vld [vmem:[%s4892_s21 + $0x78] sm:$0xff]  ;;  %v7477_v58 = vld [vmem:[#allocation36_spill] sm:$0xff]  ;;  %s4849_s21 = smov 32  }
 0x6d8   : > { %3237 = vadd.xlane.f32.xlu0 %v3236_v4  ;;  %v3254_v14 = vadd.f32 %v6865_v60, %v6862_v56  ;;  %4700 = vrcp.f32 %v2406_v46 }
 0x6d9   : > { %v6849_v26 = vpop.f32.mrf.mxu3 }
 0x6da   : > { %2655 = vmatmul.bf16.gmra.mxu0 %v2482_v2 }
 0x6dd   : > { %v6853_v36 = vpop.f32.mrf.mxu2  ;;  %3504 = vmatmul.bf16.gmra.mxu2 %v3346_v1  ;;  %v2879_v10 = vpop.permute.xlu1 %2878 }
 0x6de   : > { %3553 = vmatmul.bf16.gmra.mxu3 %v3347_v52  ;;  %v2940_v13 = vadd.f32 %v6490_v53, %v2879_v10  ;;  %v2941_v39 = vadd.f32 %v6492_v37, %v2879_v10  ;;  %v4701_v16 = vpop.eup %4700 }
 0x6e0   : > { %vm2972_vm13 = vcmp.gt.f32.partialorder %v2940_v13, 0.0  ;;  %vm2973_vm14 = vcmp.gt.f32.partialorder %v2941_v39, 0.0  ;;  %v3004_v25 = vmul.f32 0.2, %v2940_v13  ;;  %v3005_v5 = vmul.f32 0.2, %v2941_v39  ;;  %3246 = vadd.xlane.f32.xlu0 %v3245_v55 }
 0x6e1   : > { %v3546_v49 = vpop.f32.mrf.mxu3 }
 0x6e2   : > { %v6857_v18 = vsel %vm2972_vm13, %v2940_v13, %v3004_v25  ;;  %v6859_v11 = vsel %vm2973_vm14, %v2941_v39, %v3005_v5 }
 0x6e3   : > { %v2670_v50 = vpop.f32.mrf.mxu1  ;;  %v3075_v28 = vmax.f32 %v6857_v18, %v6859_v11 }
 0x6e5   : > { %v3497_v47 = vpop.f32.mrf.mxu2  ;;  %3076 = vmax.xlane.f32.xlu1 %v3075_v28  ;;  %v2899_v39 = vpop.permute.xlu1 %2898 }
 0x6e6   : > { %v6869_v24 = vadd.f32 %v3546_v49, %v3497_v47  ;;  %v2948_v45 = vadd.f32 %v6490_v53, %v2899_v39  ;;  %v2949_v25 = vadd.f32 %v6492_v37, %v2899_v39  ;;  %v3230_v39 = vadd.f32 %v6726_v59, %v6731_v43 }
 0x6e7   : > { %v2621_v31 = vpop.f32.mrf.mxu0 }
 0x6e8   : > { %3255 = vadd.xlane.f32.xlu0 %v3254_v14  ;;  %v6874_v54 = vadd.f32 %v2670_v50, %v2621_v31  ;;  %v3012_v21 = vmul.f32 0.2, %v2948_v45  ;;  %v3013_v3 = vmul.f32 0.2, %v2949_v25  ;;  %vm2980_vm15 = vcmp.gt.f32.partialorder %v2948_v45, 0.0 }
 0x6e9   : > { %vm2981_vm0 = vcmp.gt.f32.partialorder %v2949_v25, 0.0 }
 0x6ea   : > { %v6904_v49 = vsel %vm2980_vm15, %v2948_v45, %v3012_v21  ;;  %v6906_v47 = vsel %vm2981_vm0, %v2949_v25, %v3013_v3  ;;  %v7481_v25 = vld [vmem:[#allocation50_spill] sm:$0xff]  ;;  %v7482_v3 = vld [vmem:[#allocation51_spill] sm:$0xff] }
 0x6eb   : > { %v2672_v6 = vpop.f32.mrf.mxu1  ;;  %v3087_v14 = vmax.f32 %v6904_v49, %v6906_v47 }
 0x6ef   : > { %v2623_v7 = vpop.f32.mrf.mxu0 }
 0x6f0   : > { %v2673_v19 = vadd.f32 %v2672_v6, %v2623_v7 }
 0x6f2   : > { %v6877_v4 = vmul.f32 %v4699_v20, %v2673_v19  ;;  %v7478_v19 = vld [vmem:[#allocation52_spill] sm:$0xff] }
 0x6f3   : > { %v2675_v0 = vpop.f32.mrf.mxu1  ;;  %v3114_v20 = vsub.f32 %v7478_v19, %v6777_v8 }
 0x6f7   : > { %v2626_v42 = vpop.f32.mrf.mxu0 }
 0x6f8   : > { %v2676_v62 = vadd.f32 %v2675_v0, %v2626_v42  ;;  %v7479_v0 = vld [vmem:[#allocation6_spill] sm:$0xff]  ;;  %v7480_v42 = vld [vmem:[#allocation53_spill] sm:$0xff] }
 0x6fa   : > { %v6879_v2 = vmul.f32 %v4701_v16, %v2676_v62  ;;  %v3115_v62 = vsub.f32 %v7480_v42, %v6777_v8  ;;  %v3158_v16 = vmul.f32 1.442695, %v3114_v20 }
 0x6fb   : > { %v6881_v61 = vpop.f32.mrf.mxu1 }
 0x6fc   : > { %4702 = vpow2.f32 %v3158_v16 }
 0x6fe   : > { %2918 = vperm.xlu1 %4412, %v2838_v44   ;;  %v3083_v44 = vpop.xlane.xlu2 %3082 }
 0x6ff   : > { %v6884_v57 = vpop.f32.mrf.mxu0  ;;  %v3120_v21 = vsub.f32 %v7481_v25, %v3083_v44 }
 0x703   : > { %v6886_v63 = vpop.f32.mrf.mxu1 }
 0x706   : > { %v3092_v8 = vpop.xlane.xlu2 %3091 }
 0x707   : > { %v6888_v1 = vpop.f32.mrf.mxu0  ;;  %v3126_v42 = vsub.f32 %v6696_v34, %v3092_v8  ;;  %v3127_v43 = vsub.f32 %v6698_v33, %v3092_v8 }
 0x709   : > { %v3184_v25 = vmul.f32 1.442695, %v3127_v43 }
 0x70b   : > { %v6890_v52 = vpop.f32.mrf.mxu1 }
 0x70f   : > { %v6892_v10 = vpop.f32.mrf.mxu0 }
 0x713   : > { %v2685_v38 = vpop.f32.mrf.mxu1 }
 0x717   : > { %v2636_v13 = vpop.f32.mrf.mxu0 }
 0x718   : > { %v6894_v55 = vadd.f32 %v2685_v38, %v2636_v13  ;;  %v3160_v38 = vmul.f32 1.442695, %v3115_v62  ;;  %v7483_v62 = vld [vmem:[#allocation14_spill] sm:$0xff] }
 0x71a   : > { %4704 = vpow2.f32 %v3160_v38 }
 0x71b   : > { %v6898_v5 = vpop.f32.mrf.mxu1 }
 0x71f   : > { %v6900_v50 = vpop.f32.mrf.mxu0 }
 0x723   : > { %v6902_v28 = vpop.f32.mrf.mxu1 }
 0x727   : > { %v6910_v30 = vpop.f32.mrf.mxu0 }
 0x728   : > { %3088 = vmax.xlane.f32.xlu1 %v3087_v14  ;;  %v3121_v14 = vsub.f32 %v7482_v3, %v3083_v44  ;;  %v7484_v44 = vld [vmem:[#allocation16_spill] sm:$0xff] }
 0x72b   : > { %v2692_v29 = vpop.f32.mrf.mxu1 }
 0x72f   : > { %v2643_v31 = vpop.f32.mrf.mxu0 }
 0x730   : > { %v6912_v6 = vadd.f32 %v2692_v29, %v2643_v31  ;;  %2387 = vadd.xlane.f32.xlu1 %v7477_v58  ;;  %v3170_v29 = vmul.f32 1.442695, %v3120_v21  ;;  %v3172_v31 = vmul.f32 1.442695, %v3121_v14  ;;  %v4703_v58 = vpop.eup %4702 }
 0x731   : > { %v4705_v19 = vpop.eup %4704  ;;  %v3210_v16 = vmul.f32 %v4703_v58, %v7483_v62 }
 0x732   : > { %4706 = vpow2.f32 %v3170_v29  ;;  %v3211_v38 = vmul.f32 %v4705_v19, %v7484_v44 }
 0x733   : > { %v6915_v46 = vpop.f32.mrf.mxu1  ;;  %4708 = vpow2.f32 %v3172_v31 }
 0x734   : > { %v3248_v3 = vadd.f32 %v3211_v38, %v3210_v16 }
 0x737   : > { %v6917_v7 = vpop.f32.mrf.mxu0 }
 0x738   : > { %2396 = vadd.xlane.f32.xlu1 %v7479_v0  ;;  %v4707_v21 = vpop.eup %4706 }
 0x739   : > { %v4709_v14 = vpop.eup %4708 }
 0x73b   : > { %v6924_v13 = vpop.f32.mrf.mxu1 }
 0x73f   : > { %v6928_v45 = vpop.f32.mrf.mxu0 }
 0x740   : > { %3231 = vadd.xlane.f32.xlu1 %v3230_v39  ;;  %v3182_v39 = vmul.f32 1.442695, %v3126_v42 }
 0x742   : > { %4710 = vpow2.f32 %v3182_v39 }
 0x743   : > { %v2700_v20 = vpop.f32.mrf.mxu1  ;;  %4712 = vpow2.f32 %v3184_v25 }
 0x747   : > { %v2651_v0 = vpop.f32.mrf.mxu0 }
 0x748   : > { %v6933_v59 = vadd.f32 %v2700_v20, %v2651_v0  ;;  %3240 = vadd.xlane.f32.xlu1 %v6775_v35  ;;  %v7485_v35 = vld [vmem:[#allocation20_spill] sm:$0xff]  ;;  %v7486_v0 = vld [vmem:[#allocation18_spill] sm:$0xff]  ;;  %v4711_v8 = vpop.eup %4710 }
 0x749   : > { %v3216_v31 = vmul.f32 %v4707_v21, %v7485_v35  ;;  %v3217_v33 = vmul.f32 %v4709_v14, %v7486_v0  ;;  %v4713_v62 = vpop.eup %4712  ;;  %v6946_v44 = vmul.f32 %v4711_v8, %v7455_v41  ;;  %v7488_v35 = vld [vmem:[#allocation17_spill] sm:$0xff] }
 0x74a   : > { %v6949_v39 = vmul.f32 %v4713_v62, %v7454_v15 }
 0x74b   : > { %v3257_v58 = vadd.f32 %v3217_v33, %v3216_v31 }
 0x74c   : > { %v3266_v21 = vadd.f32 %v6949_v39, %v6946_v44 }
 0x750   : > { %v3500_v29 = vpop.f32.mrf.mxu2  ;;  %3249 = vadd.xlane.f32.xlu1 %v3248_v3 }
 0x751   : > { %v3549_v34 = vpop.f32.mrf.mxu3 }
 0x752   : > { %v6939_v20 = vadd.f32 %v3549_v34, %v3500_v29  ;;  %v7487_v34 = vld [vmem:[#allocation15_spill] sm:$0xff] }
 0x758   : > { %3258 = vadd.xlane.f32.xlu1 %v3257_v58  ;;  %v3077_v19 = vpop.xlane.xlu1 %3076 }
 0x759   : > { %v3116_v42 = vsub.f32 %v6857_v18, %v3077_v19  ;;  %v3117_v43 = vsub.f32 %v6859_v11, %v3077_v19 }
 0x75b   : > { %v3162_v25 = vmul.f32 1.442695, %v3116_v42  ;;  %v3164_v3 = vmul.f32 1.442695, %v3117_v43 }
 0x75d   : > { %4714 = vpow2.f32 %v3162_v25  ;;  %v3350_v25 = vpack.c.bf16 %v3216_v31, %v6862_v56 }
 0x75e   : > { %4716 = vpow2.f32 %v3164_v3  ;;  %v3086_v3 = vpop.xlane.xlu0 %3085 }
 0x75f   : > { %v3123_v56 = vsub.f32 %v6797_v12, %v3086_v3 }
 0x760   : > { %3267 = vadd.xlane.f32.xlu1 %v3266_v21  ;;  %v3122_v21 = vsub.f32 %v6795_v17, %v3086_v3 }
 0x762   : > { %v3174_v31 = vmul.f32 1.442695, %v3122_v21 }
 0x763   : > { %v4715_v14 = vpop.eup %4714 }
 0x764   : > { %v4717_v29 = vpop.eup %4716  ;;  %v3212_v18 = vmul.f32 %v4715_v14, %v7487_v34  ;;  %v7491_v14 = vld [vmem:[#allocation57_spill] sm:$0xff]  ;;  %v3176_v34 = vmul.f32 1.442695, %v3123_v56  ;;  %4718 = vpow2.f32 %v3174_v31 }
 0x765   : > { %v3213_v11 = vmul.f32 %v4717_v29, %v7488_v35  ;;  %v3095_v29 = vpop.xlane.xlu2 %3094 }
 0x766   : > { %v3348_v0 = vpack.c.bf16 %v3212_v18, %v3210_v16  ;;  %v3128_v35 = vsub.f32 %v6710_v48, %v3095_v29  ;;  %4720 = vpow2.f32 %v3176_v34 }
 0x767   : > { %v3349_v41 = vpack.c.bf16 %v3213_v11, %v3211_v38  ;;  %v3351_v38 = vpack.c.bf16 %v3217_v33, %v6865_v60  ;;  %v3242_v60 = vadd.f32 %v6847_v9, %v6844_v32  ;;  %v3129_v33 = vsub.f32 %v6712_v27, %v3095_v29 }
 0x768   : > { %3509 = vmatmul.bf16.gmra.mxu2 %v3348_v0  ;;  %v3251_v27 = vadd.f32 %v3213_v11, %v3212_v18  ;;  %v7495_v11 = vld [vmem:[#allocation25_spill] sm:$0xff] }
 0x769   : > { %3558 = vmatmul.bf16.gmra.mxu3 %v3349_v41  ;;  %v3186_v41 = vmul.f32 1.442695, %v3128_v35  ;;  %v3188_v17 = vmul.f32 1.442695, %v3129_v33 }
 0x76b   : > { %4722 = vpow2.f32 %v3186_v41 }
 0x76c   : > { %4724 = vpow2.f32 %v3188_v17 }
 0x76d   : > { %v3098_v0 = vpop.xlane.xlu2 %3097 }
 0x76e   : > { %v3131_v48 = vsub.f32 %v6811_v23, %v3098_v0 }
 0x770   : > { %v2919_v15 = vpop.permute.xlu1 %2918 }
 0x771   : > { %v2956_v8 = vadd.f32 %v6490_v53, %v2919_v15  ;;  %v2957_v58 = vadd.f32 %v6492_v37, %v2919_v15  ;;  %v7489_v53 = vld [vmem:[#allocation37_spill] sm:$0xff]  ;;  %v7490_v37 = vld [vmem:[#allocation38_spill] sm:$0xff] }
 0x773   : > { %vm2988_vm2 = vcmp.gt.f32.partialorder %v2956_v8, 0.0  ;;  %vm2989_vm3 = vcmp.gt.f32.partialorder %v2957_v58, 0.0  ;;  %v3020_v62 = vmul.f32 0.2, %v2956_v8  ;;  %v3021_v19 = vmul.f32 0.2, %v2957_v58 }
 0x775   : > { %v6957_v42 = vsel %vm2988_vm2, %v2956_v8, %v3020_v62  ;;  %v6959_v43 = vsel %vm2989_vm3, %v2957_v58, %v3021_v19  ;;  %v3130_v8 = vsub.f32 %v6809_v51, %v3098_v0  ;;  %v4719_v62 = vpop.eup %4718  ;;  %v7497_v0 = vld [vmem:[#allocation27_spill] sm:$0xff] }
 0x776   : > { %v3099_v16 = vmax.f32 %v6957_v42, %v6959_v43  ;;  %v4721_v19 = vpop.eup %4720 }
 0x778   : > { %3514 = vmatmul.bf16.gmra.mxu2 %v3350_v25  ;;  %3100 = vmax.xlane.f32.xlu2 %v3099_v16  ;;  %v3190_v25 = vmul.f32 1.442695, %v3130_v8  ;;  %v3192_v16 = vmul.f32 1.442695, %v3131_v48  ;;  %v7498_v8 = vld [vmem:[#allocation31_spill] sm:$0xff] }
 0x779   : > { %3563 = vmatmul.bf16.gmra.mxu3 %v3351_v38  ;;  %v7492_v38 = vld [vmem:[#allocation22_spill] sm:$0xff] }
 0x77a   : > { %v3218_v51 = vmul.f32 %v4719_v62, %v7492_v38  ;;  %v7502_v38 = vld [vmem:[#allocation40_spill] sm:$0xff] }
 0x780   : > { %2390 = vadd.xlane.f32.xlu2 %v7489_v53  ;;  %v7493_v53 = vld [vmem:[#allocation23_spill] sm:$0xff] }
 0x788   : > { %2399 = vadd.xlane.f32.xlu2 %v7490_v37  ;;  %v4723_v37 = vpop.eup %4722 }
 0x790   : > { %3234 = vadd.xlane.f32.xlu2 %v7491_v14  ;;  %v7494_v14 = vld [vmem:[#allocation24_spill] sm:$0xff] }
 0x798   : > { %3243 = vadd.xlane.f32.xlu2 %v3242_v60  ;;  %v7496_v60 = vld [vmem:[#allocation26_spill] sm:$0xff] }
 0x799   : > { %v3224_v33 = vmul.f32 %v4723_v37, %v7496_v60  ;;  %v3502_v60 = vpop.f32.mrf.mxu2 }
 0x79b   : > { %v3089_v15 = vpop.xlane.xlu1 %3088 }
 0x79c   : > { %v3124_v12 = vsub.f32 %v6904_v49, %v3089_v15  ;;  %v3125_v58 = vsub.f32 %v6906_v47, %v3089_v15  ;;  %v3219_v49 = vmul.f32 %v4721_v19, %v7493_v53  ;;  %v4725_v47 = vpop.eup %4724 }
 0x79d   : > { %v3225_v41 = vmul.f32 %v4725_v47, %v7497_v0  ;;  %v7503_v47 = vld [vmem:[#allocation44_spill] sm:$0xff]  ;;  %v3551_v0 = vpop.f32.mrf.mxu3 }
 0x79e   : > { %v3178_v32 = vmul.f32 1.442695, %v3124_v12  ;;  %v3180_v9 = vmul.f32 1.442695, %v3125_v58  ;;  %v3260_v3 = vadd.f32 %v3219_v49, %v3218_v51  ;;  %v7499_v58 = vld [vmem:[#allocation32_spill] sm:$0xff] }
 0x79f   : > { %v3269_v15 = vadd.f32 %v3225_v41, %v3224_v33  ;;  %v3355_v19 = vpack.c.bf16 %v3225_v41, %v6949_v39  ;;  %v2678_v39 = vadd.f32 %v6881_v61, %v6884_v57  ;;  %v2683_v61 = vadd.f32 %v6890_v52, %v6892_v10 }
 0x7a0   : > { %4726 = vpow2.f32 %v3178_v32  ;;  %3252 = vadd.xlane.f32.xlu2 %v3251_v27  ;;  %v7500_v32 = vld [vmem:[#allocation39_spill] sm:$0xff]  ;;  %v3354_v27 = vpack.c.bf16 %v3224_v33, %v6946_v44  ;;  %v2727_v44 = vpack.c.bf16 %v6877_v4, %v6877_v4  ;;  %v2688_v57 = vadd.f32 %v6898_v5, %v6900_v50 }
 0x7a1   : > { %4728 = vpow2.f32 %v3180_v9  ;;  %v2404_v9 = vmax.f32 %v7500_v32, 1e-30  ;;  %v2691_v5 = vadd.f32 %v6902_v28, %v6910_v30 }
 0x7a2   : > { %4730 = vpow2.f32 %v3190_v25  ;;  %v7501_v25 = vld [vmem:[#allocation43_spill] sm:$0xff] }
 0x7a3   : > { %4732 = vpow2.f32 %v3192_v16  ;;  %v2408_v16 = vmax.f32 %v7501_v25, 1e-30  ;;  %v2388_v37 = vpop.xlane.xlu1 %2387 }
 0x7a4   : > { %4734 = vrcp.f32 %v2404_v9  ;;  %v2414_v4 = vmax.f32 %v2388_v37, 1e-30  ;;  %v7021_v9 = vpop.f32.mrf.mxu2 }
 0x7a5   : > { %4736 = vrcp.f32 %v2408_v16  ;;  %v2653_v16 = vpop.f32.mrf.mxu0 }
 0x7a6   : > { %v4727_v23 = vpop.eup %4726 }
 0x7a7   : > { %v4729_v21 = vpop.eup %4728  ;;  %v3220_v18 = vmul.f32 %v4727_v23, %v7494_v14  ;;  %v2411_v23 = vmax.f32 %v7503_v47, 1e-30  ;;  %v7504_v14 = vld [vmem:[#allocation46_spill] sm:$0xff] }
 0x7a8   : > { %3261 = vadd.xlane.f32.xlu2 %v3260_v3  ;;  %v3221_v29 = vmul.f32 %v4729_v21, %v7495_v11  ;;  %v4731_v31 = vpop.eup %4730  ;;  %v2681_v21 = vadd.f32 %v6886_v63, %v6888_v1  ;;  %v7505_v1 = vld [vmem:[#allocation47_spill] sm:$0xff] }
 0x7a9   : > { %v3352_v56 = vpack.c.bf16 %v3220_v18, %v3218_v51  ;;  %v4733_v17 = vpop.eup %4732  ;;  %v6985_v12 = vmul.f32 %v4731_v31, %v7498_v8  ;;  %v2407_v51 = vmax.f32 %v7502_v38, 1e-30 }
 0x7aa   : > { %v3353_v34 = vpack.c.bf16 %v3221_v29, %v3219_v49  ;;  %v3263_v35 = vadd.f32 %v3221_v29, %v3220_v18  ;;  %v6988_v48 = vmul.f32 %v4733_v17, %v7499_v58  ;;  %v4735_v53 = vpop.eup %4734  ;;  %v2409_v18 = vmax.f32 %v7504_v14, 1e-30 }
 0x7ab   : > { %3519 = vmatmul.bf16.gmra.mxu2 %v3352_v56  ;;  %v2710_v49 = vmul.f32 %v4735_v53, %v6874_v54  ;;  %4738 = vrcp.f32 %v2407_v51  ;;  %v4737_v11 = vpop.eup %4736  ;;  %v2397_v63 = vpop.xlane.xlu1 %2396  ;;  %v2696_v58 = vadd.f32 %v6915_v46, %v6917_v7 }
 0x7ac   : > { %3568 = vmatmul.bf16.gmra.mxu3 %v3353_v34  ;;  %3264 = vadd.xlane.f32.xlu0 %v3263_v35  ;;  %v3272_v62 = vadd.f32 %v6988_v48, %v6985_v12  ;;  %4740 = vrcp.f32 %v2411_v23  ;;  %v2714_v56 = vmul.f32 %v4737_v11, %v2681_v21  ;;  %v2412_v35 = vmax.f32 %v7505_v1, 1e-30  ;;  %v2702_v53 = vpop.f32.mrf.mxu1  ;;  %v7027_v37 = vpop.f32.mrf.mxu2 }
 0x7ad   : > { %v2726_v3 = vpack.c.bf16 %v2710_v49, %v2710_v49  ;;  %4742 = vrcp.f32 %v2409_v18  ;;  %v2417_v8 = vmax.f32 %v2397_v63, 1e-30  ;;  %v2703_v46 = vadd.f32 %v2702_v53, %v2653_v16  ;;  %v2656_v53 = vpop.f32.mrf.mxu0 }
 0x7ae   : > { %v2730_v34 = vpack.c.bf16 %v2714_v56, %v2714_v56  ;;  %4744 = vrcp.f32 %v2414_v4  ;;  %v7036_v4 = vpop.xlane.xlu0 %2384 }
 0x7af   : > { %4746 = vrcp.f32 %v2412_v35 }
 0x7b0   : > { %3270 = vadd.xlane.f32.xlu2 %v3269_v15  ;;  %4748 = vrcp.f32 %v2417_v8 }
 0x7b1   : > { %v4739_v54 = vpop.eup %4738 }
 0x7b2   : > { %v2713_v29 = vmul.f32 %v4739_v54, %v2678_v39  ;;  %v4741_v33 = vpop.eup %4740  ;;  %v3545_v39 = vadd.f32 %v6849_v26, %v6853_v36  ;;  %v3552_v26 = vadd.f32 %v3551_v0, %v3502_v60 }
 0x7b3   : > { %v4743_v41 = vpop.eup %4742  ;;  %v2717_v15 = vmul.f32 %v4741_v33, %v2688_v57 }
 0x7b4   : > { %3273 = vadd.xlane.f32.xlu0 %v3272_v62  ;;  %v2729_v31 = vpack.c.bf16 %v2713_v29, %v2713_v29  ;;  %v2715_v17 = vmul.f32 %v4743_v41, %v2683_v61  ;;  %v4745_v50 = vpop.eup %4744  ;;  %v3232_v62 = vpop.xlane.xlu1 %3231 }
 0x7b5   : > { %v2733_v10 = vpack.c.bf16 %v2717_v15, %v2717_v15  ;;  %v4747_v32 = vpop.eup %4746  ;;  %v2720_v25 = vmul.f32 %v4745_v50, %v2696_v58  ;;  %v3278_v38 = vmax.f32 %v3232_v62, 1e-30 }
 0x7b6   : > { %v2731_v52 = vpack.c.bf16 %v2715_v17, %v2715_v17  ;;  %v4749_v51 = vpop.eup %4748  ;;  %v7044_v0 = vpop.xlane.xlu0 %2393 }
 0x7b7   : > { %v2736_v30 = vpack.c.bf16 %v2720_v25, %v2720_v25  ;;  %4750 = vrcp.f32 %v3278_v38  ;;  %v2723_v49 = vmul.f32 %v4749_v51, %v2703_v46 }
 0x7bb   : > { %3524 = vmatmul.bf16.gmra.mxu2 %v3354_v27  ;;  %v2718_v27 = vmul.f32 %v4747_v32, %v2691_v5  ;;  %v2698_v32 = vadd.f32 %v6924_v13, %v6928_v45  ;;  %v2705_v45 = vpop.f32.mrf.mxu1 }
 0x7bc   : > { %3573 = vmatmul.bf16.gmra.mxu3 %v3355_v19  ;;  %v7023_v19 = vpop.f32.mrf.mxu3  ;;  %v3241_v7 = vpop.xlane.xlu1 %3240 }
 0x7bd   : > { %v2734_v28 = vpack.c.bf16 %v2718_v27, %v2718_v27  ;;  %v3281_v23 = vmax.f32 %v3241_v7, 1e-30 }
 0x7be   : > { %v2403_v13 = vpop.xlane.xlu0 %2402 }
 0x7bf   : > { %4752 = vrcp.f32 %v3281_v23 }
 0x7c4   : > { %v7029_v47 = vpop.f32.mrf.mxu3  ;;  %v3250_v11 = vpop.xlane.xlu1 %3249 }
 0x7c5   : > { %v3284_v63 = vmax.f32 %v3250_v11, 1e-30 }
 0x7c8   : > { %2760 = vrot.lane.b32.xlu0 %v2727_v44, %s4849_s21  ;;  %2758 = vrot.lane.b32.xlu2 %v2726_v3, %s4849_s21  ;;  %v2739_v3 = vpack.c.bf16 %v2723_v49, %v2723_v49  ;;  %v4751_v44 = vpop.eup %4750 }
 0x7c9   : > { %v3584_v21 = vmul.f32 %v4751_v44, %v3545_v39  ;;  %v4753_v57 = vpop.eup %4752 }
 0x7ca   : > { %v3587_v36 = vmul.f32 %v4753_v57, %v3552_v26  ;;  %v2413_v26 = vmax.f32 %v7036_v4, 1e-30 }
 0x7cb   : > { %v3600_v61 = vpack.c.bf16 %v3584_v21, %v3584_v21 }
 0x7cc   : > { %v3603_v17 = vpack.c.bf16 %v3587_v36, %v3587_v36  ;;  %v2728_v36 = vpack.c.bf16 %v6879_v2, %v6879_v2 }
 0x7d0   : > { %2764 = vrot.lane.b32.xlu0 %v2729_v31, %s4849_s21  ;;  %2766 = vrot.lane.b32.xlu2 %v2730_v34, %s4849_s21 }
 0x7d8   : > { %2768 = vrot.lane.b32.xlu0 %v2731_v52, %s4849_s21  ;;  %2772 = vrot.lane.b32.xlu2 %v2733_v10, %s4849_s21  ;;  %v3259_v10 = vpop.xlane.xlu1 %3258 }
 0x7d9   : > { %v3287_v16 = vmax.f32 %v3259_v10, 1e-30  ;;  %v2416_v10 = vmax.f32 %v7044_v0, 1e-30 }
 0x7e0   : > { %2774 = vrot.lane.b32.xlu0 %v2734_v28, %s4849_s21  ;;  %2778 = vrot.lane.b32.xlu2 %v2736_v30, %s4849_s21 }
 0x7e8   : > { %2784 = vrot.lane.b32.xlu2 %v2739_v3, %s4849_s21 }
 0x7eb   : > { %v3510_v14 = vpop.f32.mrf.mxu2  ;;  %v3101_v18 = vpop.xlane.xlu2 %3100 }
 0x7ec   : > { %v3559_v54 = vpop.f32.mrf.mxu3  ;;  %v3132_v29 = vsub.f32 %v6957_v42, %v3101_v18  ;;  %v3133_v56 = vsub.f32 %v6959_v43, %v3101_v18 }
 0x7ed   : > { %v3560_v41 = vadd.f32 %v3559_v54, %v3510_v14 }
 0x7ee   : > { %v3194_v31 = vmul.f32 1.442695, %v3132_v29  ;;  %v3196_v34 = vmul.f32 1.442695, %v3133_v56  ;;  %v7506_v56 = vld [vmem:[#allocation42_spill] sm:$0xff] }
 0x7f0   : > { %4754 = vpow2.f32 %v3194_v31  ;;  %3632 = vrot.lane.b32.xlu2 %v3600_v61, %s4850_s18  ;;  %v2410_v31 = vmax.f32 %v7506_v56, 1e-30  ;;  %v3557_v56 = vadd.f32 %v7029_v47, %v7027_v37 }
 0x7f1   : > { %4756 = vpow2.f32 %v3196_v34  ;;  %v3238_v34 = vpop.xlane.xlu0 %3237 }
 0x7f2   : > { %4758 = vrcp.f32 %v3284_v63 }
 0x7f3   : > { %v7039_v1 = vpop.f32.mrf.mxu2  ;;  %v2391_v42 = vpop.xlane.xlu2 %2390 }
 0x7f4   : > { %v7041_v35 = vpop.f32.mrf.mxu3  ;;  %v2415_v43 = vmax.f32 %v2391_v42, 1e-30  ;;  %v3555_v42 = vadd.f32 %v7023_v19, %v7021_v9 }
 0x7f5   : > { %v3562_v9 = vadd.f32 %v7041_v35, %v7039_v1 }
 0x7f6   : > { %v4755_v33 = vpop.eup %4754  ;;  %4760 = vrcp.f32 %v2415_v43 }
 0x7f7   : > { %v4757_v15 = vpop.eup %4756  ;;  %v3228_v60 = vmul.f32 %v4755_v33, %v7463_v22 }
 0x7f8   : > { %3638 = vrot.lane.b32.xlu2 %v3603_v17, %s4850_s18  ;;  %v3229_v8 = vmul.f32 %v4757_v15, %v7464_v40  ;;  %v4759_v52 = vpop.eup %4758 }
 0x7f9   : > { %v3356_v5 = vpack.c.bf16 %v3228_v60, %v6985_v12  ;;  %v3590_v50 = vmul.f32 %v4759_v52, %v3560_v41  ;;  %v3247_v15 = vpop.xlane.xlu0 %3246 }
 0x7fa   : > { %v3275_v58 = vadd.f32 %v3229_v8, %v3228_v60  ;;  %v3357_v62 = vpack.c.bf16 %v3229_v8, %v6988_v48  ;;  %v2706_v48 = vadd.f32 %v2705_v45, %v2656_v53 }
 0x7fb   : > { %v3515_v27 = vpop.f32.mrf.mxu2  ;;  %v2400_v25 = vpop.xlane.xlu2 %2399  ;;  %3529 = vmatmul.bf16.gmra.mxu2 %v3356_v5  ;;  %v3606_v12 = vpack.c.bf16 %v3590_v50, %v3590_v50 }
 0x7fc   : > { %v4761_v22 = vpop.eup %4760  ;;  %v3564_v38 = vpop.f32.mrf.mxu3  ;;  %3276 = vadd.xlane.f32.xlu1 %v3275_v58  ;;  %v2418_v28 = vmax.f32 %v2400_v25, 1e-30  ;;  %3578 = vmatmul.bf16.gmra.mxu3 %v3357_v62 }
 0x7fd   : > { %v7052_v40 = vadd.f32 %v3564_v38, %v3515_v27  ;;  %v2721_v30 = vmul.f32 %v4761_v22, %v2698_v32  ;;  %v2419_v27 = vmax.f32 %v2403_v13, 1e-30  ;;  %v2658_v25 = vpop.f32.mrf.mxu0 }
 0x7fe   : > { %4762 = vrcp.f32 %v2418_v28 }
 0x7ff   : > { %v2737_v51 = vpack.c.bf16 %v2721_v30, %v2721_v30  ;;  %4764 = vrcp.f32 %v3287_v16  ;;  %v2707_v16 = vpop.f32.mrf.mxu1 }
 0x800   : > { %3644 = vrot.lane.b32.xlu2 %v3606_v12, %s4850_s18  ;;  %v2708_v28 = vadd.f32 %v2707_v16, %v2658_v25 }
 0x801   : > { %2780 = vrot.lane.b32.xlu0 %v2737_v51, %s4849_s21 }
 0x803   : > { %v3517_v46 = vpop.f32.mrf.mxu2  ;;  %v3235_v7 = vpop.xlane.xlu2 %3234 }
 0x804   : > { %v4763_v49 = vpop.eup %4762  ;;  %v3566_v23 = vpop.f32.mrf.mxu3  ;;  %v3279_v3 = vmax.f32 %v3235_v7, 1e-30 }
 0x805   : > { %v3567_v44 = vadd.f32 %v3566_v23, %v3517_v46  ;;  %v2724_v39 = vmul.f32 %v4763_v49, %v2706_v48  ;;  %v4765_v21 = vpop.eup %4764 }
 0x806   : > { %4766 = vrcp.f32 %v3279_v3  ;;  %v3283_v3 = vmax.f32 %v3247_v15, 1e-30 }
 0x807   : > { %v3593_v14 = vmul.f32 %v4765_v21, %v3567_v44  ;;  %v2740_v18 = vpack.c.bf16 %v2724_v39, %v2724_v39  ;;  %v3268_v44 = vpop.xlane.xlu1 %3267 }
 0x809   : > { %v3609_v11 = vpack.c.bf16 %v3593_v14, %v3593_v14  ;;  %2786 = vrot.lane.b32.xlu0 %v2740_v18, %s4849_s21  ;;  %v3290_v18 = vmax.f32 %v3268_v44, 1e-30 }
 0x80b   : > { %3650 = vrot.lane.b32.xlu2 %v3609_v11, %s4850_s18  ;;  %v3244_v54 = vpop.xlane.xlu2 %3243 }
 0x80c   : > { %v4767_v29 = vpop.eup %4766  ;;  %v3282_v61 = vmax.f32 %v3244_v54, 1e-30 }
 0x80d   : > { %v3585_v57 = vmul.f32 %v4767_v29, %v6869_v24 }
 0x80e   : > { %4768 = vrcp.f32 %v3282_v61 }
 0x80f   : > { %v3601_v63 = vpack.c.bf16 %v3585_v57, %v3585_v57  ;;  %4770 = vrcp.f32 %v2410_v31 }
 0x810   : > { %4772 = vrcp.f32 %v2413_v26 }
 0x811   : > { %3634 = vrot.lane.b32.xlu0 %v3601_v63, %s4850_s18 }
 0x813   : > { %v3253_v43 = vpop.xlane.xlu2 %3252 }
 0x814   : > { %v4769_v33 = vpop.eup %4768  ;;  %v3285_v41 = vmax.f32 %v3253_v43, 1e-30 }
 0x815   : > { %2762 = vrot.lane.b32.xlu1 %v2728_v36, %s4849_s21  ;;  %v3588_v24 = vmul.f32 %v4769_v33, %v3555_v42  ;;  %v4771_v17 = vpop.eup %4770 }
 0x816   : > { %4774 = vrcp.f32 %v3285_v41  ;;  %v2716_v4 = vmul.f32 %v4771_v17, %v6894_v55  ;;  %v4773_v8 = vpop.eup %4772  ;;  %v3256_v55 = vpop.xlane.xlu0 %3255 }
 0x817   : > { %v3604_v60 = vpack.c.bf16 %v3588_v24, %v3588_v24  ;;  %v2719_v58 = vmul.f32 %v4773_v8, %v6912_v6  ;;  %4776 = vrcp.f32 %v2416_v10  ;;  %v3280_v6 = vmax.f32 %v3238_v34, 1e-30 }
 0x818   : > { %v2732_v2 = vpack.c.bf16 %v2716_v4, %v2716_v4  ;;  %4778 = vrcp.f32 %v2419_v27  ;;  %v3286_v34 = vmax.f32 %v3256_v55, 1e-30 }
 0x819   : > { %3640 = vrot.lane.b32.xlu0 %v3604_v60, %s4850_s18  ;;  %v2735_v32 = vpack.c.bf16 %v2719_v58, %v2719_v58 }
 0x81b   : > { %v3262_v19 = vpop.xlane.xlu2 %3261 }
 0x81c   : > { %v4775_v52 = vpop.eup %4774  ;;  %v3288_v0 = vmax.f32 %v3262_v19, 1e-30 }
 0x81d   : > { %2770 = vrot.lane.b32.xlu1 %v2732_v2, %s4849_s21  ;;  %v3591_v5 = vmul.f32 %v4775_v52, %v3562_v9  ;;  %v4777_v1 = vpop.eup %4776 }
 0x81e   : > { %v2722_v35 = vmul.f32 %v4777_v1, %v6933_v59  ;;  %4780 = vrcp.f32 %v3288_v0  ;;  %v4779_v12 = vpop.eup %4778 }
 0x81f   : > { %v3607_v50 = vpack.c.bf16 %v3591_v5, %v3591_v5  ;;  %v7077_v22 = vpop.xlane.xlu0 %3264  ;;  %4782 = vrcp.f32 %v3280_v6  ;;  %v2725_v51 = vmul.f32 %v4779_v12, %v2708_v28  ;;  %v3729_v12 = vlaneseq }
 0x820   : > { %v2738_v38 = vpack.c.bf16 %v2722_v35, %v2722_v35  ;;  %4784 = vrcp.f32 %v3283_v3  ;;  %v3289_v41 = vmax.f32 %v7077_v22, 1e-30 }
 0x821   : > { %3646 = vrot.lane.b32.xlu0 %v3607_v50, %s4850_s18  ;;  %v2741_v7 = vpack.c.bf16 %v2725_v51, %v2725_v51  ;;  %4786 = vrcp.f32 %v3290_v18 }
 0x822   : > { %4788 = vrcp.f32 %v3286_v34 }
 0x823   : > { %v3271_v62 = vpop.xlane.xlu2 %3270 }
 0x824   : > { %v4781_v45 = vpop.eup %4780  ;;  %v3291_v63 = vmax.f32 %v3271_v62, 1e-30 }
 0x825   : > { %2776 = vrot.lane.b32.xlu1 %v2735_v32, %s4849_s21  ;;  %v4783_v23 = vpop.eup %4782 }
 0x826   : > { %v3586_v14 = vmul.f32 %v4783_v23, %v6939_v20  ;;  %v4785_v61 = vpop.eup %4784  ;;  %4790 = vrcp.f32 %v3291_v63 }
 0x827   : > { %v7082_v48 = vpop.xlane.xlu0 %3273  ;;  %v3589_v57 = vmul.f32 %v4785_v61, %v3557_v56  ;;  %v4787_v42 = vpop.eup %4786  ;;  %4792 = vrcp.f32 %v3289_v41 }
 0x828   : > { %v3602_v29 = vpack.c.bf16 %v3586_v14, %v3586_v14  ;;  %v4789_v17 = vpop.eup %4788  ;;  %v3292_v35 = vmax.f32 %v7082_v48, 1e-30 }
 0x829   : > { %v3605_v43 = vpack.c.bf16 %v3589_v57, %v3589_v57  ;;  %v3592_v4 = vmul.f32 %v4789_v17, %v7052_v40 }
 0x82a   : > { %4794 = vrcp.f32 %v3292_v35 }
 0x82b   : > { %v2759_v30 = vpop.permute.xlu2 %2758  ;;  %v3608_v52 = vpack.c.bf16 %v3592_v4, %v3592_v4 }
 0x82c   : > { %2807 = vst.msk [vmem:[%s5678_s19] sm:$0xf] %vm2806_vm1, %v2759_v30  ;;  %v4791_v2 = vpop.eup %4790 }
 0x82d   : > { %2782 = vrot.lane.b32.xlu1 %v2738_v38, %s4849_s21  ;;  %v4793_v40 = vpop.eup %4792 }
 0x82e   : > { %v3520_v59 = vpop.f32.mrf.mxu2 }
 0x82f   : > { %v3569_v53 = vpop.f32.mrf.mxu3 }
 0x830   : > { %v3570_v13 = vadd.f32 %v3569_v53, %v3520_v59  ;;  %v4795_v28 = vpop.eup %4794 }
 0x832   : > { %v3594_v46 = vmul.f32 %v4781_v45, %v3570_v13  ;;  %v7125_v13 = vand.u32 127, %v3729_v12 }
 0x833   : > { %v2767_v49 = vpop.permute.xlu2 %2766 }
 0x834   : > { %v3610_v39 = vpack.c.bf16 %v3594_v46, %v3594_v46  ;;  %2811 = vst.msk [vmem:[%s5678_s19 + $0x10] sm:$0xf] %vm2806_vm1, %v2767_v49  ;;  %vm3731_vm5 = vcmp.lt.s32.totalorder %v7125_v13, 64 }
 0x835   : > { %2788 = vrot.lane.b32.xlu1 %v2741_v7, %s4849_s21 }
 0x836   : > { %3652 = vrot.lane.b32.xlu0 %v3610_v39, %s4850_s18  ;;  %v3522_v21 = vpop.f32.mrf.mxu2 }
 0x837   : > { %v3571_v11 = vpop.f32.mrf.mxu3 }
 0x838   : > { %v3572_v10 = vadd.f32 %v3571_v11, %v3522_v21 }
 0x83a   : > { %v2761_v54 = vpop.permute.xlu0 %2760  ;;  %v3595_v58 = vmul.f32 %v4793_v40, %v3572_v10 }
 0x83b   : > { %2808 = vst.msk [vmem:[%s5678_s19 + $0x4] sm:$0xf] %vm2806_vm1, %v2761_v54  ;;  %v2773_v31 = vpop.permute.xlu2 %2772 }
 0x83c   : > { %2814 = vst.msk [vmem:[%s5678_s19 + $0x1c] sm:$0xf] %vm2806_vm1, %v2773_v31  ;;  %v3611_v62 = vpack.c.bf16 %v3595_v58, %v3595_v58 }
 0x83d   : > { %3636 = vrot.lane.b32.xlu1 %v3602_v29, %s4850_s18 }
 0x83e   : > { %v3525_v20 = vpop.f32.mrf.mxu2 }
 0x83f   : > { %v3574_v26 = vpop.f32.mrf.mxu3 }
 0x840   : > { %v3575_v36 = vadd.f32 %v3574_v26, %v3525_v20 }
 0x842   : > { %v3596_v37 = vmul.f32 %v4787_v42, %v3575_v36  ;;  %v2765_v47 = vpop.permute.xlu0 %2764 }
 0x843   : > { %2810 = vst.msk [vmem:[%s5678_s19 + $0xc] sm:$0xf] %vm2806_vm1, %v2765_v47  ;;  %v2779_v33 = vpop.permute.xlu2 %2778 }
 0x844   : > { %v3612_v24 = vpack.c.bf16 %v3596_v37, %v3596_v37  ;;  %2817 = vst.msk [vmem:[%s5678_s19 + $0x28] sm:$0xf] %vm2806_vm1, %v2779_v33 }
 0x845   : > { %3642 = vrot.lane.b32.xlu1 %v3605_v43, %s4850_s18 }
 0x846   : > { %3656 = vrot.lane.b32.xlu2 %v3612_v24, %s4850_s18  ;;  %v3527_v15 = vpop.f32.mrf.mxu2 }
 0x847   : > { %v3576_v60 = vpop.f32.mrf.mxu3 }
 0x848   : > { %v3577_v8 = vadd.f32 %v3576_v60, %v3527_v15 }
 0x84a   : > { %v3597_v9 = vmul.f32 %v4791_v2, %v3577_v8  ;;  %v2769_v19 = vpop.permute.xlu0 %2768 }
 0x84b   : > { %2812 = vst.msk [vmem:[%s5678_s19 + $0x14] sm:$0xf] %vm2806_vm1, %v2769_v19  ;;  %v2785_v5 = vpop.permute.xlu2 %2784 }
 0x84c   : > { %v3613_v50 = vpack.c.bf16 %v3597_v9, %v3597_v9  ;;  %2820 = vst.msk [vmem:[%s5678_s19 + $0x34] sm:$0xf] %vm2806_vm1, %v2785_v5 }
 0x84d   : > { %3648 = vrot.lane.b32.xlu1 %v3608_v52, %s4850_s18 }
 0x84e   : > { %3658 = vrot.lane.b32.xlu0 %v3613_v50, %s4850_s18 }
 0x852   : > { %v2775_v55 = vpop.permute.xlu0 %2774 }
 0x853   : > { %2815 = vst.msk [vmem:[%s5678_s19 + $0x20] sm:$0xf] %vm2806_vm1, %v2775_v55  ;;  %v3633_v32 = vpop.permute.xlu2 %3632 }
 0x854   : > { %3681 = vst.msk [vmem:[%s5678_s19] sm:$0xf] %vm3680_vm4, %v3633_v32 }
 0x855   : > { %3654 = vrot.lane.b32.xlu1 %v3611_v62, %s4850_s18 }
 0x85b   : > { %v3639_v27 = vpop.permute.xlu2 %3638 }
 0x85c   : > { %3684 = vst.msk [vmem:[%s5678_s19 + $0xc] sm:$0xf] %vm3680_vm4, %v3639_v27 }
 0x863   : > { %v3645_v14 = vpop.permute.xlu2 %3644 }
 0x86b   : > { %v3651_v57 = vpop.permute.xlu2 %3650 }
 0x86f   : > { %v3277_v25 = vpop.xlane.xlu1 %3276 }
 0x870   : > { %v3293_v6 = vmax.f32 %v3277_v25, 1e-30 }
 0x872   : > { %4796 = vrcp.f32 %v3293_v6 }
 0x873   : > { %v2781_v1 = vpop.permute.xlu0 %2780 }
 0x874   : > { %2818 = vst.msk [vmem:[%s5678_s19 + $0x2c] sm:$0xf] %vm2806_vm1, %v2781_v1 }
 0x878   : > { %v4797_v7 = vpop.eup %4796 }
 0x87b   : > { %v2787_v0 = vpop.permute.xlu0 %2786 }
 0x87c   : > { %2821 = vst.msk [vmem:[%s5678_s19 + $0x38] sm:$0xf] %vm2806_vm1, %v2787_v0 }
 0x87e   : > { %v3530_v22 = vpop.f32.mrf.mxu2 }
 0x87f   : > { %v3579_v16 = vpop.f32.mrf.mxu3 }
 0x880   : > { %v3580_v38 = vadd.f32 %v3579_v16, %v3530_v22 }
 0x882   : > { %v3598_v30 = vmul.f32 %v4795_v28, %v3580_v38 }
 0x883   : > { %v3635_v59 = vpop.permute.xlu0 %3634 }
 0x884   : > { %v3614_v51 = vpack.c.bf16 %v3598_v30, %v3598_v30  ;;  %3682 = vst.msk [vmem:[%s5678_s19 + $0x4] sm:$0xf] %vm3680_vm4, %v3635_v59 }
 0x886   : > { %3660 = vrot.lane.b32.xlu1 %v3614_v51, %s4850_s18  ;;  %v3532_v53 = vpop.f32.mrf.mxu2 }
 0x887   : > { %v3581_v45 = vpop.f32.mrf.mxu3  ;;  %v2763_v48 = vpop.permute.xlu1 %2762 }
 0x888   : > { %v3582_v46 = vadd.f32 %v3581_v45, %v3532_v53  ;;  %2809 = vst.msk [vmem:[%s5678_s19 + $0x8] sm:$0xf] %vm2806_vm1, %v2763_v48 }
 0x88a   : > { %v3599_v49 = vmul.f32 %v4797_v7, %v3582_v46 }
 0x88b   : > { %v4299_v23 = vld [vmem:[%s5678_s19] sm:$0xff]   ;;  %v3641_v3 = vpop.permute.xlu0 %3640 }
 0x88c   : > { %v4300_v44 = vunpack.c.l.bf16 %v4299_v23  ;;  %v4301_v39 = vunpack.c.h.bf16 %v4299_v23  ;;  %v3615_v21 = vpack.c.bf16 %v3599_v49, %v3599_v49  ;;  %3685 = vst.msk [vmem:[%s5678_s19 + $0x10] sm:$0xf] %vm3680_vm4, %v3641_v3 }
 0x88e   : > { %v3732_v18 = vsel %vm3731_vm5, %v4300_v44, 0.0  ;;  %v3733_v11 = vsel %vm3731_vm5, %v4301_v39, 0.0  ;;  %3662 = vrot.lane.b32.xlu2 %v3615_v21, %s4850_s18 }
 0x88f   : > { %v3764_v54 = vmin.f32 %v3732_v18, 0.0  ;;  %v3765_v29 = vmin.f32 %v3733_v11, 0.0  ;;  %v2771_v56 = vpop.permute.xlu1 %2770  ;;  %vm3748_vm6 = vcmp.gt.f32.partialorder %v3732_v18, 0.0  ;;  %vm3749_vm7 = vcmp.gt.f32.partialorder %v3733_v11, 0.0 }
 0x890   : > { %2813 = vst.msk [vmem:[%s5678_s19 + $0x18] sm:$0xf] %vm2806_vm1, %v2771_v56 }
 0x891   : > { %v3780_v31 = vmul.f32 1.442695, %v3764_v54  ;;  %v3782_v34 = vmul.f32 1.442695, %v3765_v29  ;;  %3687 = vst.msk [vmem:[%s5678_s19 + $0x18] sm:$0xf] %vm3680_vm4, %v3645_v14 }
 0x893   : > { %4798 = vpow2.f32 %v3780_v31  ;;  %v3647_v61 = vpop.permute.xlu0 %3646 }
 0x894   : > { %4800 = vpow2.f32 %v3782_v34  ;;  %3688 = vst.msk [vmem:[%s5678_s19 + $0x1c] sm:$0xf] %vm3680_vm4, %v3647_v61 }
 0x897   : > { %v2777_v20 = vpop.permute.xlu1 %2776 }
 0x898   : > { %2816 = vst.msk [vmem:[%s5678_s19 + $0x24] sm:$0xf] %vm2806_vm1, %v2777_v20 }
 0x899   : > { %v4799_v63 = vpop.eup %4798  ;;  %3690 = vst.msk [vmem:[%s5678_s19 + $0x24] sm:$0xf] %vm3680_vm4, %v3651_v57 }
 0x89a   : > { %v4801_v26 = vpop.eup %4800  ;;  %v4215_v36 = vadd.f32 -1.0, %v4799_v63 }
 0x89b   : > { %v4216_v42 = vadd.f32 -1.0, %v4801_v26  ;;  %v4372_v37 = vld [vmem:[%s5678_s19 + $0x18] sm:$0xff]  }
 0x89c   : > { %v3828_v47 = vsel %vm3748_vm6, %v3732_v18, %v4215_v36  ;;  %v4312_v43 = vunpack.c.l.bf16 %v4372_v37  ;;  %v4313_v33 = vunpack.c.h.bf16 %v4372_v37 }
 0x89d   : > { %v3829_v41 = vsel %vm3749_vm7, %v3733_v11, %v4216_v42 }
 0x89e   : > { %v4333_v24 = vpack.c.bf16 %v3829_v41, %v3828_v47  ;;  %v3738_v17 = vsel %vm3731_vm5, %v4312_v43, 0.0  ;;  %v3739_v15 = vsel %vm3731_vm5, %v4313_v33, 0.0 }
 0x89f   : > { %v3770_v4 = vmin.f32 %v3738_v17, 0.0  ;;  %v3771_v60 = vmin.f32 %v3739_v15, 0.0  ;;  %v2783_v8 = vpop.permute.xlu1 %2782  ;;  %vm3754_vm8 = vcmp.gt.f32.partialorder %v3738_v17, 0.0  ;;  %vm3755_vm9 = vcmp.gt.f32.partialorder %v3739_v15, 0.0 }
 0x8a0   : > { %4334 = vst [vmem:[%s5678_s19] sm:$0xff] %v4333_v24   ;;  %v3657_v2 = vpop.permute.xlu2 %3656 }
 0x8a1   : > { %v3792_v9 = vmul.f32 1.442695, %v3770_v4  ;;  %v3794_v19 = vmul.f32 1.442695, %v3771_v60  ;;  %2819 = vst.msk [vmem:[%s5678_s19 + $0x30] sm:$0xf] %vm2806_vm1, %v2783_v8 }
 0x8a2   : > { %3693 = vst.msk [vmem:[%s5678_s19 + $0x30] sm:$0xf] %vm3680_vm4, %v3657_v2 }
 0x8a3   : > { %4802 = vpow2.f32 %v3792_v9 }
 0x8a4   : > { %4804 = vpow2.f32 %v3794_v19 }
 0x8a7   : > { %v2789_v52 = vpop.permute.xlu1 %2788 }
 0x8a8   : > { %2822 = vst.msk [vmem:[%s5678_s19 + $0x3c] sm:$0xf] %vm2806_vm1, %v2789_v52  ;;  %v3653_v10 = vpop.permute.xlu0 %3652 }
 0x8a9   : > { %v4803_v5 = vpop.eup %4802  ;;  %3691 = vst.msk [vmem:[%s5678_s19 + $0x28] sm:$0xf] %vm3680_vm4, %v3653_v10 }
 0x8aa   : > { %v4805_v50 = vpop.eup %4804  ;;  %v4221_v40 = vadd.f32 -1.0, %v4803_v5 }
 0x8ab   : > { %v4222_v58 = vadd.f32 -1.0, %v4805_v50 }
 0x8ac   : > { %v3834_v55 = vsel %vm3754_vm8, %v3738_v17, %v4221_v40 }
 0x8ad   : > { %v3835_v62 = vsel %vm3755_vm9, %v3739_v15, %v4222_v58 }
 0x8ae   : > { %v4348_v32 = vpack.c.bf16 %v3835_v62, %v3834_v55 }
 0x8af   : > { %v3637_v27 = vpop.permute.xlu1 %3636 }
 0x8b0   : > { %4379 = vst [vmem:[%s5678_s19 + $0x18] sm:$0xff] %v4348_v32  }
 0x8b1   : > { %3683 = vst.msk [vmem:[%s5678_s19 + $0x8] sm:$0xf] %vm3680_vm4, %v3637_v27 }
 0x8b7   : > { %v3643_v1 = vpop.permute.xlu1 %3642 }
 0x8b8   : > { %v4370_v35 = vld [vmem:[%s5678_s19 + $0x8] sm:$0xff]   ;;  %3686 = vst.msk [vmem:[%s5678_s19 + $0x14] sm:$0xf] %vm3680_vm4, %v3643_v1 }
 0x8b9   : > { %v4304_v0 = vunpack.c.l.bf16 %v4370_v35  ;;  %v4305_v25 = vunpack.c.h.bf16 %v4370_v35 }
 0x8bb   : > { %v3734_v22 = vsel %vm3731_vm5, %v4304_v0, 0.0  ;;  %v3735_v6 = vsel %vm3731_vm5, %v4305_v25, 0.0 }
 0x8bc   : > { %v3766_v16 = vmin.f32 %v3734_v22, 0.0  ;;  %v3767_v38 = vmin.f32 %v3735_v6, 0.0  ;;  %vm3750_vm10 = vcmp.gt.f32.partialorder %v3734_v22, 0.0  ;;  %vm3751_vm11 = vcmp.gt.f32.partialorder %v3735_v6, 0.0 }
 0x8be   : > { %v3784_v28 = vmul.f32 1.442695, %v3766_v16  ;;  %v3786_v30 = vmul.f32 1.442695, %v3767_v38 }
 0x8bf   : > { %v4371_v12 = vld [vmem:[%s5678_s19 + $0x10] sm:$0xff]   ;;  %v3649_v59 = vpop.permute.xlu1 %3648 }
 0x8c0   : > { %4806 = vpow2.f32 %v3784_v28  ;;  %v4308_v51 = vunpack.c.l.bf16 %v4371_v12  ;;  %v4309_v53 = vunpack.c.h.bf16 %v4371_v12  ;;  %3689 = vst.msk [vmem:[%s5678_s19 + $0x20] sm:$0xf] %vm3680_vm4, %v3649_v59  ;;  %v3659_v45 = vpop.permute.xlu0 %3658 }
 0x8c1   : > { %4808 = vpow2.f32 %v3786_v30  ;;  %3694 = vst.msk [vmem:[%s5678_s19 + $0x34] sm:$0xf] %vm3680_vm4, %v3659_v45 }
 0x8c2   : > { %v3736_v48 = vsel %vm3731_vm5, %v4308_v51, 0.0  ;;  %v3737_v46 = vsel %vm3731_vm5, %v4309_v53, 0.0 }
 0x8c3   : > { %v3768_v7 = vmin.f32 %v3736_v48, 0.0  ;;  %v3769_v49 = vmin.f32 %v3737_v46, 0.0  ;;  %vm3752_vm12 = vcmp.gt.f32.partialorder %v3736_v48, 0.0  ;;  %vm3753_vm13 = vcmp.gt.f32.partialorder %v3737_v46, 0.0 }
 0x8c5   : > { %v3788_v23 = vmul.f32 1.442695, %v3768_v7  ;;  %v3790_v3 = vmul.f32 1.442695, %v3769_v49 }
 0x8c6   : > { %v4807_v44 = vpop.eup %4806 }
 0x8c7   : > { %v4809_v39 = vpop.eup %4808  ;;  %v4217_v21 = vadd.f32 -1.0, %v4807_v44  ;;  %4810 = vpow2.f32 %v3788_v23  ;;  %v4373_v14 = vld [vmem:[%s5678_s19 + $0x20] sm:$0xff]   ;;  %v3655_v18 = vpop.permute.xlu1 %3654 }
 0x8c8   : > { %v4218_v11 = vadd.f32 -1.0, %v4809_v39  ;;  %4812 = vpow2.f32 %v3790_v3  ;;  %v4316_v54 = vunpack.c.l.bf16 %v4373_v14  ;;  %v4317_v29 = vunpack.c.h.bf16 %v4373_v14  ;;  %v4375_v56 = vld [vmem:[%s5678_s19 + $0x30] sm:$0xff]   ;;  %3692 = vst.msk [vmem:[%s5678_s19 + $0x2c] sm:$0xf] %vm3680_vm4, %v3655_v18 }
 0x8c9   : > { %v3830_v31 = vsel %vm3750_vm10, %v3734_v22, %v4217_v21  ;;  %v4324_v34 = vunpack.c.l.bf16 %v4375_v56  ;;  %v4325_v61 = vunpack.c.h.bf16 %v4375_v56 }
 0x8ca   : > { %v3831_v20 = vsel %vm3751_vm11, %v3735_v6, %v4218_v11  ;;  %v3740_v57 = vsel %vm3731_vm5, %v4316_v54, 0.0  ;;  %v3741_v63 = vsel %vm3731_vm5, %v4317_v29, 0.0 }
 0x8cb   : > { %v4338_v26 = vpack.c.bf16 %v3831_v20, %v3830_v31  ;;  %v3772_v36 = vmin.f32 %v3740_v57, 0.0  ;;  %v3773_v42 = vmin.f32 %v3741_v63, 0.0  ;;  %v3744_v37 = vsel %vm3731_vm5, %v4324_v34, 0.0 }
 0x8cc   : > { %v3745_v47 = vsel %vm3731_vm5, %v4325_v61, 0.0  ;;  %v3776_v41 = vmin.f32 %v3744_v37, 0.0  ;;  %vm3756_vm14 = vcmp.gt.f32.partialorder %v3740_v57, 0.0  ;;  %vm3757_vm15 = vcmp.gt.f32.partialorder %v3741_v63, 0.0 }
 0x8cd   : > { %v4811_v43 = vpop.eup %4810  ;;  %4377 = vst [vmem:[%s5678_s19 + $0x8] sm:$0xff] %v4338_v26   ;;  %v3796_v33 = vmul.f32 1.442695, %v3772_v36  ;;  %v3798_v15 = vmul.f32 1.442695, %v3773_v42  ;;  %v3777_v4 = vmin.f32 %v3745_v47, 0.0 }
 0x8ce   : > { %v4813_v24 = vpop.eup %4812  ;;  %v4219_v17 = vadd.f32 -1.0, %v4811_v43  ;;  %v3804_v8 = vmul.f32 1.442695, %v3776_v41  ;;  %vm3760_vm0 = vcmp.gt.f32.partialorder %v3744_v37, 0.0  ;;  %vm3761_vm2 = vcmp.gt.f32.partialorder %v3745_v47, 0.0 }
 0x8cf   : > { %v4220_v60 = vadd.f32 -1.0, %v4813_v24  ;;  %4814 = vpow2.f32 %v3796_v33  ;;  %v4374_v2 = vld [vmem:[%s5678_s19 + $0x28] sm:$0xff]   ;;  %v3806_v19 = vmul.f32 1.442695, %v3777_v4 }
 0x8d0   : > { %v3832_v9 = vsel %vm3752_vm12, %v3736_v48, %v4219_v17  ;;  %4816 = vpow2.f32 %v3798_v15  ;;  %v4320_v52 = vunpack.c.l.bf16 %v4374_v2  ;;  %v4321_v5 = vunpack.c.h.bf16 %v4374_v2 }
 0x8d1   : > { %v3833_v10 = vsel %vm3753_vm13, %v3737_v46, %v4220_v60  ;;  %4818 = vpow2.f32 %v3804_v8 }
 0x8d2   : > { %v4343_v50 = vpack.c.bf16 %v3833_v10, %v3832_v9  ;;  %4820 = vpow2.f32 %v3806_v19  ;;  %v3742_v40 = vsel %vm3731_vm5, %v4320_v52, 0.0  ;;  %v3743_v58 = vsel %vm3731_vm5, %v4321_v5, 0.0 }
 0x8d3   : > { %v3774_v55 = vmin.f32 %v3742_v40, 0.0  ;;  %v3775_v62 = vmin.f32 %v3743_v58, 0.0  ;;  %vm3758_vm3 = vcmp.gt.f32.partialorder %v3742_v40, 0.0  ;;  %vm3759_vm1 = vcmp.gt.f32.partialorder %v3743_v58, 0.0 }
 0x8d4   : > { %4378 = vst [vmem:[%s5678_s19 + $0x10] sm:$0xff] %v4343_v50  }
 0x8d5   : > { %v4815_v32 = vpop.eup %4814  ;;  %v3800_v27 = vmul.f32 1.442695, %v3774_v55  ;;  %v3802_v0 = vmul.f32 1.442695, %v3775_v62 }
 0x8d6   : > { %v4817_v1 = vpop.eup %4816  ;;  %v4223_v35 = vadd.f32 -1.0, %v4815_v32 }
 0x8d7   : > { %v4819_v25 = vpop.eup %4818  ;;  %v4224_v22 = vadd.f32 -1.0, %v4817_v1  ;;  %4822 = vpow2.f32 %v3800_v27 }
 0x8d8   : > { %v4821_v6 = vpop.eup %4820  ;;  %v3836_v16 = vsel %vm3756_vm14, %v3740_v57, %v4223_v35  ;;  %v4227_v38 = vadd.f32 -1.0, %v4819_v25  ;;  %4824 = vpow2.f32 %v3802_v0 }
 0x8d9   : > { %v3837_v28 = vsel %vm3757_vm15, %v3741_v63, %v4224_v22  ;;  %v4228_v30 = vadd.f32 -1.0, %v4821_v6 }
 0x8da   : > { %v4353_v12 = vpack.c.bf16 %v3837_v28, %v3836_v16  ;;  %v3840_v59 = vsel %vm3760_vm0, %v3744_v37, %v4227_v38 }
 0x8db   : > { %v3841_v51 = vsel %vm3761_vm2, %v3745_v47, %v4228_v30 }
 0x8dc   : > { %4380 = vst [vmem:[%s5678_s19 + $0x20] sm:$0xff] %v4353_v12   ;;  %v4363_v53 = vpack.c.bf16 %v3841_v51, %v3840_v59 }
 0x8dd   : > { %v4823_v45 = vpop.eup %4822 }
 0x8de   : > { %v4825_v48 = vpop.eup %4824  ;;  %4382 = vst [vmem:[%s5678_s19 + $0x30] sm:$0xff] %v4363_v53   ;;  %v4225_v46 = vadd.f32 -1.0, %v4823_v45 }
 0x8df   : > { %v4226_v7 = vadd.f32 -1.0, %v4825_v48 }
 0x8e0   : > { %v3838_v49 = vsel %vm3758_vm3, %v3742_v40, %v4225_v46 }
 0x8e1   : > { %v3839_v23 = vsel %vm3759_vm1, %v3743_v58, %v4226_v7 }
 0x8e2   : > { %v4358_v3 = vpack.c.bf16 %v3839_v23, %v3838_v49 }
 0x8e4   : > { %4381 = vst [vmem:[%s5678_s19 + $0x28] sm:$0xff] %v4358_v3  }
 0x8e8   : > { %v3663_v44 = vpop.permute.xlu2 %3662 }
 0x8e9   : > { %3696 = vst.msk [vmem:[%s5678_s19 + $0x3c] sm:$0xf] %vm3680_vm4, %v3663_v44 }
 0x8f8   : > { %v3661_v39 = vpop.permute.xlu1 %3660 }
 0x8f9   : > { %3695 = vst.msk [vmem:[%s5678_s19 + $0x38] sm:$0xf] %vm3680_vm4, %v3661_v39 }
 0x900   : > { %v4376_v21 = vld [vmem:[%s5678_s19 + $0x38] sm:$0xff]  }
 0x901   : > { %v4328_v14 = vunpack.c.l.bf16 %v4376_v21  ;;  %v4329_v18 = vunpack.c.h.bf16 %v4376_v21 }
 0x903   : > { %v3746_v11 = vsel %vm3731_vm5, %v4328_v14, 0.0  ;;  %v3747_v54 = vsel %vm3731_vm5, %v4329_v18, 0.0 }
 0x904   : > { %v3778_v29 = vmin.f32 %v3746_v11, 0.0  ;;  %v3779_v56 = vmin.f32 %v3747_v54, 0.0  ;;  %vm3762_vm4 = vcmp.gt.f32.partialorder %v3746_v11, 0.0  ;;  %vm3763_vm6 = vcmp.gt.f32.partialorder %v3747_v54, 0.0 }
 0x906   : > { %v3808_v31 = vmul.f32 1.442695, %v3778_v29  ;;  %v3810_v34 = vmul.f32 1.442695, %v3779_v56 }
 0x908   : > { %4826 = vpow2.f32 %v3808_v31 }
 0x909   : > { %4828 = vpow2.f32 %v3810_v34 }
 0x90e   : > { %v4827_v61 = vpop.eup %4826 }
 0x90f   : > { %v4829_v20 = vpop.eup %4828  ;;  %v4229_v57 = vadd.f32 -1.0, %v4827_v61 }
 0x910   : > { %v4230_v63 = vadd.f32 -1.0, %v4829_v20 }
 0x911   : > { %v3842_v26 = vsel %vm3762_vm4, %v3746_v11, %v4229_v57 }
 0x912   : > { %v3843_v36 = vsel %vm3763_vm6, %v3747_v54, %v4230_v63 }
 0x913   : > { %v4368_v42 = vpack.c.bf16 %v3843_v36, %v3842_v26 }
 0x915   : > { %4383 = vst [vmem:[%s5678_s19 + $0x38] sm:$0xff] %v4368_v42  }
 0x916 PF: > { %s14_s15 = sadd.s32 1, %s4839_s15  }
 0x917   : > { %p11_p5 = scmp.ge.s32.totalorder %s14_s15, 4  }
 0x919   :  { %13 = sbr.rel (!%p11_p5) target bundleno = 1 (0x1), region = 72 }

</bundles_post_ra>
